<compile_context>
chip_gen: v6e
topology: v6e:2x2x1
jax: 0.10.0
libtpu: 0.0.40
codegen_flags: <defaults>
</compile_context>

<pallas_src>
import functools
import numpy as np
import jax
import jax.numpy as jnp
from jax.experimental import pallas as pl
from jax.experimental.pallas import tpu as pltpu


# --------------------------------------------------------------------------
# Adjacency construction (pure host-side index logic -> glue, not a kernel)
# --------------------------------------------------------------------------
def initialize_adjacency_matrix(batch_size, encode_length, shot_type_np):
    N = encode_length * 2
    adj = np.zeros((14, N, N), dtype=np.int32)
    adj[13] = np.ones((N, N), dtype=np.int32) - np.eye(N, dtype=np.int32)
    for row in range(N):
        node_index = row // 2
        if row % 2 == 0:
            if node_index % 2 == 0 and (node_index + 1) * 2 <= N - 1:
                c = (node_index + 1) * 2
                adj[11, row, c] = 1; adj[11, c, row] = 1
                adj[13, row, c] = 0; adj[13, c, row] = 0
            if node_index % 2 == 1 and (node_index + 1) * 2 <= N - 1:
                c = (node_index + 1) * 2
                adj[12, row, c] = 1; adj[12, c, row] = 1
                adj[13, row, c] = 0; adj[13, c, row] = 0
        else:
            if node_index % 2 == 0 and (node_index + 1) * 2 + 1 <= N - 1:
                c = (node_index + 1) * 2 + 1
                adj[12, row, c] = 1; adj[12, c, row] = 1
                adj[13, row, c] = 0; adj[13, c, row] = 0
            if node_index % 2 == 1 and (node_index + 1) * 2 + 1 <= N - 1:
                c = (node_index + 1) * 2 + 1
                adj[11, row, c] = 1; adj[11, c, row] = 1
                adj[13, row, c] = 0; adj[13, c, row] = 0
    adj = np.tile(adj[None], (batch_size, 1, 1, 1))
    for b in range(batch_size):
        for step in range(shot_type_np.shape[1]):
            st = int(shot_type_np[b, step])
            if step % 2 == 0:
                r, c = step * 2, (step + 1) * 2 + 1
            else:
                r, c = step * 2 + 1, (step + 1) * 2
            adj[b, st, r, c] = 1; adj[b, st, c, r] = 1
            adj[b, 13, r, c] = 0; adj[b, 13, c, r] = 0
    return adj


# --------------------------------------------------------------------------
# Fused encoder kernel: each grid step processes a (rows = Bt*N) row slab
# covering Bt batch elements entirely in VMEM.
# --------------------------------------------------------------------------
def _encoder_kernel(packed_ref, bias_ref,
                    wc_ref, bc_ref, wmc_ref, wmp_ref, bm_ref,
                    w1p_ref, w2p_ref,
                    out_ref, x1_ref, *, num_heads, player_dim):
    H = num_heads
    Pd = player_dim

    # Block-diagonal additive mask for this tile: 0 / -1e30, shared by layers.
    bias = bias_ref[...]                                  # (R, R) f32

    # Lane-dense packed per-node input: [x, y, player_embedding, zero-pad].
    packed = packed_ref[...]                              # (R, >=128) f32
    cx = packed[:, 0:1]
    cy = packed[:, 1:2]
    pemb = packed[:, 2:2 + Pd]                            # (R, Pd)

    # coordination_transform (K=2 -> VPU FMAs, skip the MXU) + ReLU
    c = jnp.maximum(cx * wc_ref[0:1, :] + cy * wc_ref[1:2, :] + bc_ref[...], 0.0)

    # model_input_linear on cat([coord_transform, player_embedding]):
    # weight pre-split so the concat becomes a sum of two small matmuls.
    x = (jnp.dot(c, wmc_ref[...], preferred_element_type=jnp.float32)
         + jnp.dot(pemb, wmp_ref[...], preferred_element_type=jnp.float32)
         + bm_ref[...])                                   # (R, hidden) f32

    def gat(x_in, wp_ref, write_head):
        # Packed weight [W | W@A_src | W@A_tgt]: one bf16 MXU pass yields the
        # per-head node features AND the src/tgt attention scores.
        HO = wp_ref.shape[1] - 2 * H
        O = HO // H
        y = jnp.dot(x_in.astype(jnp.bfloat16), wp_ref[...],
                    preferred_element_type=jnp.float32)   # (R, HO + 2H) f32
        h_all = y[:, :HO]                                 # (R, H*O)
        S = y[:, HO:HO + H]                               # (R, H) src scores
        Tt = y[:, HO + H:HO + 2 * H].T                    # (H, R): 1 transpose / layer
        h_bf = h_all.astype(jnp.bfloat16)
        for hh in range(H):                               # static unroll over 4 heads
            e = S[:, hh:hh + 1] + Tt[hh:hh + 1, :]        # (R, R)
            e = jnp.where(e > 0, e, 0.2 * e)              # LeakyReLU(0.2)
            e = e + bias                                  # masked_fill(-inf) + block-diag
            e = e - jnp.max(e, axis=-1, keepdims=True)
            p = jnp.exp(e)
            inv = pl.reciprocal(jnp.sum(p, axis=-1, keepdims=True), approx=True)
            attn = p * inv                                # softmax(dim=-1), EUP recip
            # TODO(synk): nn.Dropout(0.1) on attention omitted (eval mode).
            col = jnp.dot(attn.astype(jnp.bfloat16), h_bf[:, hh * O:(hh + 1) * O],
                          preferred_element_type=jnp.float32)   # (R, O)
            write_head(hh, O, col)

    # GAT layer 1 -> F.relu, written head-by-head into the VMEM scratch.
    def write1(hh, O, col):
        x1_ref[:, hh * O:(hh + 1) * O] = jnp.maximum(col, 0.0)
    gat(x, w1p_ref, write1)

    # GAT layer 2 written head-by-head straight into the output block.
    def write2(hh, O, col):
        out_ref[:, hh * O:(hh + 1) * O] = col.astype(out_ref.dtype)
    gat(x1_ref[...], w2p_ref, write2)


def encoder_fused(packed2d, bias2d, wc, bc, wmc, wmp, bm, w1p, w2p,
                  *, rows, num_heads, player_dim, out_width):
    total_rows = packed2d.shape[0]
    ntiles = total_rows // rows
    kern = functools.partial(_encoder_kernel,
                             num_heads=num_heads, player_dim=player_dim)

    def tile_spec(width):
        return pl.BlockSpec((rows, width), lambda t: (t, 0))

    def full_spec(arr):
        return pl.BlockSpec(arr.shape, lambda t: (0, 0))

    return pl.pallas_call(
        kern,
        out_shape=jax.ShapeDtypeStruct((total_rows, out_width), jnp.float32),
        grid=(ntiles,),
        in_specs=[
            tile_spec(packed2d.shape[1]),
            tile_spec(bias2d.shape[1]),
            full_spec(wc), full_spec(bc), full_spec(wmc),
            full_spec(wmp), full_spec(bm),
            full_spec(w1p), full_spec(w2p),
        ],
        out_specs=pl.BlockSpec((rows, out_width), lambda t: (t, 0)),
        scratch_shapes=[
            pltpu.VMEM((rows, w1p.shape[1] - 2 * num_heads), jnp.float32)],
        compiler_params=pltpu.CompilerParams(
            dimension_semantics=("parallel",)),
    )(packed2d, bias2d, wc, bc, wmc, wmp, bm, w1p, w2p)


# --------------------------------------------------------------------------
# JAX-side glue: input assembly, block-diagonal mask bias, weight packing
# --------------------------------------------------------------------------
def _block_cols(a):
    """(H, O) per-head attention vectors -> (H*O, H) block-structured matrix."""
    H, O = a.shape
    return (a[:, :, None] * jnp.eye(H, dtype=a.dtype)[:, None, :]).reshape(H * O, H)


@jax.jit
def _encoder_core(params, player, adj, ax, ay, bx, by):
    B, L = ax.shape
    N = 2 * L
    H = 4
    Pd = params["player_embedding"].shape[1]
    hidden = params["wm_c"].shape[1]
    out_width = H * hidden

    # ---- batch-tile size: Bt*N rows per grid step (128-row slabs when possible)
    assert N % 8 == 0, "encode_length must be a multiple of 4 (sublane alignment)"
    Bt = max(1, 128 // N)
    rows = Bt * N
    Bp = ((B + Bt - 1) // Bt) * Bt
    pad = Bp - B
    ntiles = Bp // Bt

    # ---- per-node inputs (interleaved A,B coordinates + repeated player ids)
    a_coord = jnp.stack([ax, ay], axis=2).astype(jnp.float32)            # (B, L, 2)
    b_coord = jnp.stack([bx, by], axis=2).astype(jnp.float32)            # (B, L, 2)
    coords = jnp.stack([a_coord, b_coord], axis=2).reshape(B, N, 2)
    player_rep = jnp.tile(player, (1, L))                                # (B, 2L)
    pemb = jnp.take(params["player_embedding"], player_rep, axis=0)      # (B, 2L, Pd)

    # Lane-dense packed per-node input: [x, y, pemb, zero-pad] -> >=128 lanes.
    pack_w = ((Pd + 2 + 127) // 128) * 128
    packed = jnp.zeros((B, N, pack_w), jnp.float32)
    packed = packed.at[:, :, 0:2].set(coords)
    packed = packed.at[:, :, 2:2 + Pd].set(pemb)
    packed = jnp.pad(packed, ((0, pad), (0, 0), (0, 0)))
    packed2d = packed.reshape(Bp * N, pack_w)

    # TODO(synk): the original GATLayer masks with the full (B,14,N,N) relation
    # tensor via an ill-defined broadcast; implemented masking by the union of
    # all relation channels, precomputed as an additive bias (0 / -1e30).
    bias_b = jnp.where(jnp.sum(adj, axis=1) > 0, 0.0, -1e30).astype(jnp.float32)
    bias_b = jnp.pad(bias_b, ((0, pad), (0, 0), (0, 0)))   # padded rows: unmasked (no NaN)
    bias_t = bias_b.reshape(ntiles, Bt, N, N)
    same = jnp.eye(Bt, dtype=bool)
    # Block-diagonal per-tile mask: cross-batch entries forced to -1e30 so the
    # batched softmax never mixes batch elements inside a row slab.
    bias_full = jnp.where(same[None, :, None, :, None],
                          bias_t[:, :, :, None, :],
                          jnp.float32(-1e30))               # (ntiles, Bt, N, Bt, N)
    bias2d = bias_full.reshape(Bp * N, rows)

    # TODO(synk): the original attention scoring (torch.cat of non-broadcastable
    # tensors + einsum 'bhndh,hdo->bhndo') is ill-defined; implemented standard
    # additive GAT per-head src/tgt scores derived from the declared parameter.
    a1s = _block_cols(params["gat1_asrc"]); a1t = _block_cols(params["gat1_atgt"])
    a2s = _block_cols(params["gat2_asrc"]); a2t = _block_cols(params["gat2_atgt"])
    w1, w2 = params["gat1_w"], params["gat2_w"]
    # Fold the src/tgt projections into the main weight, bf16 for the MXU.
    w1p = jnp.concatenate([w1, w1 @ a1s, w1 @ a1t], axis=1).astype(jnp.bfloat16)
    w2p = jnp.concatenate([w2, w2 @ a2s, w2 @ a2t], axis=1).astype(jnp.bfloat16)

    out2d = encoder_fused(packed2d, bias2d,
                          params["wc"], params["bc"], params["wm_c"],
                          params["wm_p"], params["bm"], w1p, w2p,
                          rows=rows, num_heads=H, player_dim=Pd,
                          out_width=out_width)
    return out2d.reshape(Bp, N, out_width)[:B]


def encoder_forward(params, player, shot_type_np, ax, ay, bx, by, encode_length):
    B = player.shape[0]
    adj = jnp.asarray(
        initialize_adjacency_matrix(B, encode_length, shot_type_np), dtype=jnp.int32)
    node_embedding = _encoder_core(params, player, adj, ax, ay, bx, by)
    return node_embedding, adj


# --------------------------------------------------------------------------
# Deterministic parameter init (shapes follow the PyTorch __init__)
# --------------------------------------------------------------------------
def init_params(key, player_num, player_dim, location_dim, hidden):
    ks = jax.random.split(key, 8)
    H = 4

    def xavier(k, shape, fan_in, fan_out, gain=1.0):
        limit = gain * np.sqrt(6.0 / (fan_in + fan_out))
        return jax.random.uniform(k, shape, jnp.float32, -limit, limit)

    p = {}
    p["player_embedding"] = jax.random.normal(
        ks[0], (player_num, player_dim), jnp.float32)
    p["wc"] = xavier(ks[1], (2, location_dim), 2, location_dim)
    p["bc"] = jnp.zeros((1, location_dim), jnp.float32)
    # model_input_linear weight split into coord part and embedding part
    # (rally_information = cat([coord_transform, player_embedding], -1))
    p["wm_c"] = xavier(ks[2], (location_dim, hidden),
                       location_dim + player_dim, hidden)
    p["wm_p"] = xavier(ks[3], (player_dim, hidden),
                       location_dim + player_dim, hidden)
    p["bm"] = jnp.zeros((1, hidden), jnp.float32)

    relu_gain = float(np.sqrt(2.0))
    # GAT layer 1: in = hidden, out = hidden, heads = 4
    in1, out1 = hidden, hidden
    p["gat1_w"] = xavier(ks[4], (in1, H * out1), in1, H * out1)
    att1 = xavier(ks[5], (H, out1, 2 * in1), 2 * in1, out1, gain=relu_gain)
    a1 = jnp.mean(att1, axis=1)                                          # (H, 2*in1)
    p["gat1_asrc"] = a1[:, :out1]
    p["gat1_atgt"] = a1[:, in1:in1 + out1]
    # GAT layer 2: in = 4*hidden, out = hidden, heads = 4
    in2, out2 = H * hidden, hidden
    p["gat2_w"] = xavier(ks[6], (in2, H * out2), in2, H * out2)
    att2 = xavier(ks[7], (H, out2, 2 * in2), 2 * in2, out2, gain=relu_gain)
    a2 = jnp.mean(att2, axis=1)                                          # (H, 2*in2)
    p["gat2_asrc"] = a2[:, :out2]
    p["gat2_atgt"] = a2[:, in2:in2 + out2]
    return p


if __name__ == "__main__":
    key = jax.random.PRNGKey(0)
    B, L = 16, 8                     # batch, encode_length -> 2L = 16 nodes
    # B=16, N=16 -> 128-row slabs, 2 grid steps (keeps both v7x TCs busy).
    player_num, player_dim = 8, 16
    location_dim, hidden = 16, 32

    kp, k1, k2, k3, k4, k5, k6 = jax.random.split(key, 7)
    params = init_params(kp, player_num, player_dim, location_dim, hidden)

    player = jax.random.randint(k1, (B, 2), 0, player_num, dtype=jnp.int32)
    shot_type = np.asarray(
        jax.random.randint(k2, (B, L - 1), 0, 11, dtype=jnp.int32))
    ax = jax.random.uniform(k3, (B, L), jnp.float32)
    ay = jax.random.uniform(k4, (B, L), jnp.float32)
    bx = jax.random.uniform(k5, (B, L), jnp.float32)
    by = jax.random.uniform(k6, (B, L), jnp.float32)

    node_emb, adj = encoder_forward(params, player, shot_type, ax, ay, bx, by, L)
    node_emb = jax.block_until_ready(node_emb)
    adj = jax.block_until_ready(adj)

    assert node_emb.shape == (B, 2 * L, 4 * hidden), node_emb.shape
    assert adj.shape == (B, 14, 2 * L, 2 * L), adj.shape
    assert bool(jnp.all(jnp.isfinite(node_emb)))
    print("KERNEL_OK")
</pallas_src>

<mosaic_0001>
module attributes {stable_mosaic.version = 11 : i64} {
  func.func @_encoder_kernel(%arg0: i32, %arg1: memref<128x128xf32, #tpu.memory_space<vmem>>, %arg2: memref<128x128xf32, #tpu.memory_space<vmem>>, %arg3: memref<2x16xf32, #tpu.memory_space<vmem>>, %arg4: memref<1x16xf32, #tpu.memory_space<vmem>>, %arg5: memref<16x32xf32, #tpu.memory_space<vmem>>, %arg6: memref<16x32xf32, #tpu.memory_space<vmem>>, %arg7: memref<1x32xf32, #tpu.memory_space<vmem>>, %arg8: memref<32x136xbf16, #tpu.memory_space<vmem>>, %arg9: memref<128x136xbf16, #tpu.memory_space<vmem>>, %arg10: memref<128x128xf32, #tpu.memory_space<vmem>>, %arg11: memref<128x128xf32, #tpu.memory_space<vmem>>) attributes {dimension_semantics = [#tpu.dimension_semantics<parallel>], iteration_bounds = array<i64: 2>, scalar_prefetch = 0 : i64, scratch_operands = 1 : i64, tpu.core_type = #tpu.core_type<tc>, window_params = [{transform_indices = @transform_0, window_bounds = array<i64: 128, 128>}, {transform_indices = @transform_1, window_bounds = array<i64: 128, 128>}, {pipeline_mode = #tpu.pipeline_mode<synchronous>, transform_indices = @transform_2, window_bounds = array<i64: 2, 16>}, {pipeline_mode = #tpu.pipeline_mode<synchronous>, transform_indices = @transform_3, window_bounds = array<i64: 1, 16>}, {pipeline_mode = #tpu.pipeline_mode<synchronous>, transform_indices = @transform_4, window_bounds = array<i64: 16, 32>}, {pipeline_mode = #tpu.pipeline_mode<synchronous>, transform_indices = @transform_5, window_bounds = array<i64: 16, 32>}, {pipeline_mode = #tpu.pipeline_mode<synchronous>, transform_indices = @transform_6, window_bounds = array<i64: 1, 32>}, {pipeline_mode = #tpu.pipeline_mode<synchronous>, transform_indices = @transform_7, window_bounds = array<i64: 32, 136>}, {pipeline_mode = #tpu.pipeline_mode<synchronous>, transform_indices = @transform_8, window_bounds = array<i64: 128, 136>}, {transform_indices = @transform_9, window_bounds = array<i64: 128, 128>}]} {
    %c0 = arith.constant 0 : index
    %c0_0 = arith.constant 0 : index
    %0 = vector.load %arg2[%c0, %c0_0] : memref<128x128xf32, #tpu.memory_space<vmem>>, vector<128x128xf32>
    %c0_1 = arith.constant 0 : index
    %c0_2 = arith.constant 0 : index
    %1 = vector.load %arg1[%c0_1, %c0_2] : memref<128x128xf32, #tpu.memory_space<vmem>>, vector<128x128xf32>
    %2 = vector.extract_strided_slice %1 {offsets = [0, 0], sizes = [128, 1], strides = [1, 1]} : vector<128x128xf32> to vector<128x1xf32>
    %3 = vector.extract_strided_slice %1 {offsets = [0, 1], sizes = [128, 1], strides = [1, 1]} : vector<128x128xf32> to vector<128x1xf32>
    %4 = vector.extract_strided_slice %1 {offsets = [0, 2], sizes = [128, 16], strides = [1, 1]} : vector<128x128xf32> to vector<128x16xf32>
    %c0_3 = arith.constant 0 : index
    %c0_4 = arith.constant 0 : index
    %5 = vector.load %arg3[%c0_3, %c0_4] : memref<2x16xf32, #tpu.memory_space<vmem>>, vector<1x16xf32>
    %6 = vector.broadcast %2 : vector<128x1xf32> to vector<128x16xf32>
    %7 = vector.broadcast %5 : vector<1x16xf32> to vector<128x16xf32>
    %8 = arith.mulf %6, %7 : vector<128x16xf32>
    %c1 = arith.constant 1 : index
    %c0_5 = arith.constant 0 : index
    %9 = vector.load %arg3[%c1, %c0_5] : memref<2x16xf32, #tpu.memory_space<vmem>>, vector<1x16xf32>
    %10 = vector.broadcast %3 : vector<128x1xf32> to vector<128x16xf32>
    %11 = vector.broadcast %9 : vector<1x16xf32> to vector<128x16xf32>
    %12 = arith.mulf %10, %11 : vector<128x16xf32>
    %13 = arith.addf %8, %12 : vector<128x16xf32>
    %c0_6 = arith.constant 0 : index
    %c0_7 = arith.constant 0 : index
    %14 = vector.load %arg4[%c0_6, %c0_7] : memref<1x16xf32, #tpu.memory_space<vmem>>, vector<1x16xf32>
    %15 = vector.broadcast %14 : vector<1x16xf32> to vector<128x16xf32>
    %16 = arith.addf %13, %15 : vector<128x16xf32>
    %cst = arith.constant 0.000000e+00 : f32
    %17 = vector.broadcast %cst : f32 to vector<128x16xf32>
    %18 = arith.maximumf %16, %17 : vector<128x16xf32>
    %c0_8 = arith.constant 0 : index
    %c0_9 = arith.constant 0 : index
    %19 = vector.load %arg5[%c0_8, %c0_9] : memref<16x32xf32, #tpu.memory_space<vmem>>, vector<16x32xf32>
    %cst_10 = arith.constant dense<0.000000e+00> : vector<128x32xf32>
    %20 = tpu.matmul %18, %19, %cst_10 {dimension_numbers = #tpu.dot_dimension_numbers<[1], [0], [0], [1], [0, 0, 1, 1], [], []>} : vector<128x16xf32>, vector<16x32xf32>, vector<128x32xf32> -> vector<128x32xf32>
    %c0_11 = arith.constant 0 : index
    %c0_12 = arith.constant 0 : index
    %21 = vector.load %arg6[%c0_11, %c0_12] : memref<16x32xf32, #tpu.memory_space<vmem>>, vector<16x32xf32>
    %cst_13 = arith.constant dense<0.000000e+00> : vector<128x32xf32>
    %22 = tpu.matmul %4, %21, %cst_13 {dimension_numbers = #tpu.dot_dimension_numbers<[1], [0], [0], [1], [0, 0, 1, 1], [], []>} : vector<128x16xf32>, vector<16x32xf32>, vector<128x32xf32> -> vector<128x32xf32>
    %23 = arith.addf %20, %22 : vector<128x32xf32>
    %c0_14 = arith.constant 0 : index
    %c0_15 = arith.constant 0 : index
    %24 = vector.load %arg7[%c0_14, %c0_15] : memref<1x32xf32, #tpu.memory_space<vmem>>, vector<1x32xf32>
    %25 = vector.broadcast %24 : vector<1x32xf32> to vector<128x32xf32>
    %26 = arith.addf %23, %25 : vector<128x32xf32>
    %27 = arith.truncf %26 : vector<128x32xf32> to vector<128x32xbf16>
    %c0_16 = arith.constant 0 : index
    %c0_17 = arith.constant 0 : index
    %28 = vector.load %arg8[%c0_16, %c0_17] : memref<32x136xbf16, #tpu.memory_space<vmem>>, vector<32x136xbf16>
    %cst_18 = arith.constant dense<0.000000e+00> : vector<128x136xf32>
    %29 = tpu.matmul %27, %28, %cst_18 {dimension_numbers = #tpu.dot_dimension_numbers<[1], [0], [0], [1], [0, 0, 1, 1], [], []>} : vector<128x32xbf16>, vector<32x136xbf16>, vector<128x136xf32> -> vector<128x136xf32>
    %30 = vector.extract_strided_slice %29 {offsets = [0, 0], sizes = [128, 128], strides = [1, 1]} : vector<128x136xf32> to vector<128x128xf32>
    %31 = vector.extract_strided_slice %29 {offsets = [0, 128], sizes = [128, 4], strides = [1, 1]} : vector<128x136xf32> to vector<128x4xf32>
    %32 = vector.extract_strided_slice %29 {offsets = [0, 132], sizes = [128, 4], strides = [1, 1]} : vector<128x136xf32> to vector<128x4xf32>
    %33 = tpu.transpose %32, [1, 0] : vector<128x4xf32> -> vector<4x128xf32>
    %34 = arith.truncf %30 : vector<128x128xf32> to vector<128x128xbf16>
    %35 = vector.extract_strided_slice %31 {offsets = [0, 0], sizes = [128, 1], strides = [1, 1]} : vector<128x4xf32> to vector<128x1xf32>
    %36 = vector.extract_strided_slice %33 {offsets = [0, 0], sizes = [1, 128], strides = [1, 1]} : vector<4x128xf32> to vector<1x128xf32>
    %37 = vector.broadcast %35 : vector<128x1xf32> to vector<128x128xf32>
    %38 = vector.broadcast %36 : vector<1x128xf32> to vector<128x128xf32>
    %39 = arith.addf %37, %38 : vector<128x128xf32>
    %cst_19 = arith.constant 0.000000e+00 : f32
    %40 = vector.broadcast %cst_19 : f32 to vector<128x128xf32>
    %41 = arith.cmpf ogt, %39, %40 : vector<128x128xf32>
    %cst_20 = arith.constant 2.000000e-01 : f32
    %42 = vector.broadcast %cst_20 : f32 to vector<128x128xf32>
    %43 = arith.mulf %42, %39 : vector<128x128xf32>
    %44 = arith.select %41, %39, %43 : vector<128x128xi1>, vector<128x128xf32>
    %45 = arith.addf %44, %0 : vector<128x128xf32>
    %cst_21 = arith.constant dense<0xFF800000> : vector<128xf32>
    %46 = vector.multi_reduction <maximumf>, %45, %cst_21 [1] : vector<128x128xf32> to vector<128xf32>
    %47 = vector.shape_cast %46 : vector<128xf32> to vector<128x1xf32>
    %48 = vector.broadcast %47 : vector<128x1xf32> to vector<128x128xf32>
    %49 = arith.subf %45, %48 : vector<128x128xf32>
    %50 = math.exp %49 : vector<128x128xf32>
    %cst_22 = arith.constant dense<0.000000e+00> : vector<128xf32>
    %51 = vector.multi_reduction <add>, %50, %cst_22 [1] : vector<128x128xf32> to vector<128xf32>
    %52 = vector.shape_cast %51 : vector<128xf32> to vector<128x1xf32>
    %53 = tpu.reciprocal %52 {approx = true} : vector<128x1xf32> -> vector<128x1xf32>
    %54 = vector.broadcast %53 : vector<128x1xf32> to vector<128x128xf32>
    %55 = arith.mulf %50, %54 : vector<128x128xf32>
    %56 = arith.truncf %55 : vector<128x128xf32> to vector<128x128xbf16>
    %57 = vector.extract_strided_slice %34 {offsets = [0, 0], sizes = [128, 32], strides = [1, 1]} : vector<128x128xbf16> to vector<128x32xbf16>
    %cst_23 = arith.constant dense<0.000000e+00> : vector<128x32xf32>
    %58 = tpu.matmul %56, %57, %cst_23 {dimension_numbers = #tpu.dot_dimension_numbers<[1], [0], [0], [1], [0, 0, 1, 1], [], []>} : vector<128x128xbf16>, vector<128x32xbf16>, vector<128x32xf32> -> vector<128x32xf32>
    %cst_24 = arith.constant 0.000000e+00 : f32
    %59 = vector.broadcast %cst_24 : f32 to vector<128x32xf32>
    %60 = arith.maximumf %58, %59 : vector<128x32xf32>
    %c0_25 = arith.constant 0 : index
    %c0_26 = arith.constant 0 : index
    %61 = vector.load %arg11[%c0_25, %c0_26] : memref<128x128xf32, #tpu.memory_space<vmem>>, vector<128x32xf32>
    tpu.vector_store %arg11[%c0_25, %c0_26], %60 {strides = array<i32>} : memref<128x128xf32, #tpu.memory_space<vmem>>, vector<128x32xf32>,
    %62 = vector.extract_strided_slice %31 {offsets = [0, 1], sizes = [128, 1], strides = [1, 1]} : vector<128x4xf32> to vector<128x1xf32>
    %63 = vector.extract_strided_slice %33 {offsets = [1, 0], sizes = [1, 128], strides = [1, 1]} : vector<4x128xf32> to vector<1x128xf32>
    %64 = vector.broadcast %62 : vector<128x1xf32> to vector<128x128xf32>
    %65 = vector.broadcast %63 : vector<1x128xf32> to vector<128x128xf32>
    %66 = arith.addf %64, %65 : vector<128x128xf32>
    %cst_27 = arith.constant 0.000000e+00 : f32
    %67 = vector.broadcast %cst_27 : f32 to vector<128x128xf32>
    %68 = arith.cmpf ogt, %66, %67 : vector<128x128xf32>
    %cst_28 = arith.constant 2.000000e-01 : f32
    %69 = vector.broadcast %cst_28 : f32 to vector<128x128xf32>
    %70 = arith.mulf %69, %66 : vector<128x128xf32>
    %71 = arith.select %68, %66, %70 : vector<128x128xi1>, vector<128x128xf32>
    %72 = arith.addf %71, %0 : vector<128x128xf32>
    %cst_29 = arith.constant dense<0xFF800000> : vector<128xf32>
    %73 = vector.multi_reduction <maximumf>, %72, %cst_29 [1] : vector<128x128xf32> to vector<128xf32>
    %74 = vector.shape_cast %73 : vector<128xf32> to vector<128x1xf32>
    %75 = vector.broadcast %74 : vector<128x1xf32> to vector<128x128xf32>
    %76 = arith.subf %72, %75 : vector<128x128xf32>
    %77 = math.exp %76 : vector<128x128xf32>
    %cst_30 = arith.constant dense<0.000000e+00> : vector<128xf32>
    %78 = vector.multi_reduction <add>, %77, %cst_30 [1] : vector<128x128xf32> to vector<128xf32>
    %79 = vector.shape_cast %78 : vector<128xf32> to vector<128x1xf32>
    %80 = tpu.reciprocal %79 {approx = true} : vector<128x1xf32> -> vector<128x1xf32>
    %81 = vector.broadcast %80 : vector<128x1xf32> to vector<128x128xf32>
    %82 = arith.mulf %77, %81 : vector<128x128xf32>
    %83 = arith.truncf %82 : vector<128x128xf32> to vector<128x128xbf16>
    %84 = vector.extract_strided_slice %34 {offsets = [0, 32], sizes = [128, 32], strides = [1, 1]} : vector<128x128xbf16> to vector<128x32xbf16>
    %cst_31 = arith.constant dense<0.000000e+00> : vector<128x32xf32>
    %85 = tpu.matmul %83, %84, %cst_31 {dimension_numbers = #tpu.dot_dimension_numbers<[1], [0], [0], [1], [0, 0, 1, 1], [], []>} : vector<128x128xbf16>, vector<128x32xbf16>, vector<128x32xf32> -> vector<128x32xf32>
    %cst_32 = arith.constant 0.000000e+00 : f32
    %86 = vector.broadcast %cst_32 : f32 to vector<128x32xf32>
    %87 = arith.maximumf %85, %86 : vector<128x32xf32>
    %c0_33 = arith.constant 0 : index
    %c32 = arith.constant 32 : index
    %88 = vector.load %arg11[%c0_33, %c32] : memref<128x128xf32, #tpu.memory_space<vmem>>, vector<128x32xf32>
    tpu.vector_store %arg11[%c0_33, %c32], %87 {strides = array<i32>} : memref<128x128xf32, #tpu.memory_space<vmem>>, vector<128x32xf32>,
    %89 = vector.extract_strided_slice %31 {offsets = [0, 2], sizes = [128, 1], strides = [1, 1]} : vector<128x4xf32> to vector<128x1xf32>
    %90 = vector.extract_strided_slice %33 {offsets = [2, 0], sizes = [1, 128], strides = [1, 1]} : vector<4x128xf32> to vector<1x128xf32>
    %91 = vector.broadcast %89 : vector<128x1xf32> to vector<128x128xf32>
    %92 = vector.broadcast %90 : vector<1x128xf32> to vector<128x128xf32>
    %93 = arith.addf %91, %92 : vector<128x128xf32>
    %cst_34 = arith.constant 0.000000e+00 : f32
    %94 = vector.broadcast %cst_34 : f32 to vector<128x128xf32>
    %95 = arith.cmpf ogt, %93, %94 : vector<128x128xf32>
    %cst_35 = arith.constant 2.000000e-01 : f32
    %96 = vector.broadcast %cst_35 : f32 to vector<128x128xf32>
    %97 = arith.mulf %96, %93 : vector<128x128xf32>
    %98 = arith.select %95, %93, %97 : vector<128x128xi1>, vector<128x128xf32>
    %99 = arith.addf %98, %0 : vector<128x128xf32>
    %cst_36 = arith.constant dense<0xFF800000> : vector<128xf32>
    %100 = vector.multi_reduction <maximumf>, %99, %cst_36 [1] : vector<128x128xf32> to vector<128xf32>
    %101 = vector.shape_cast %100 : vector<128xf32> to vector<128x1xf32>
    %102 = vector.broadcast %101 : vector<128x1xf32> to vector<128x128xf32>
    %103 = arith.subf %99, %102 : vector<128x128xf32>
    %104 = math.exp %103 : vector<128x128xf32>
    %cst_37 = arith.constant dense<0.000000e+00> : vector<128xf32>
    %105 = vector.multi_reduction <add>, %104, %cst_37 [1] : vector<128x128xf32> to vector<128xf32>
    %106 = vector.shape_cast %105 : vector<128xf32> to vector<128x1xf32>
    %107 = tpu.reciprocal %106 {approx = true} : vector<128x1xf32> -> vector<128x1xf32>
    %108 = vector.broadcast %107 : vector<128x1xf32> to vector<128x128xf32>
    %109 = arith.mulf %104, %108 : vector<128x128xf32>
    %110 = arith.truncf %109 : vector<128x128xf32> to vector<128x128xbf16>
    %111 = vector.extract_strided_slice %34 {offsets = [0, 64], sizes = [128, 32], strides = [1, 1]} : vector<128x128xbf16> to vector<128x32xbf16>
    %cst_38 = arith.constant dense<0.000000e+00> : vector<128x32xf32>
    %112 = tpu.matmul %110, %111, %cst_38 {dimension_numbers = #tpu.dot_dimension_numbers<[1], [0], [0], [1], [0, 0, 1, 1], [], []>} : vector<128x128xbf16>, vector<128x32xbf16>, vector<128x32xf32> -> vector<128x32xf32>
    %cst_39 = arith.constant 0.000000e+00 : f32
    %113 = vector.broadcast %cst_39 : f32 to vector<128x32xf32>
    %114 = arith.maximumf %112, %113 : vector<128x32xf32>
    %c0_40 = arith.constant 0 : index
    %c64 = arith.constant 64 : index
    %115 = vector.load %arg11[%c0_40, %c64] : memref<128x128xf32, #tpu.memory_space<vmem>>, vector<128x32xf32>
    tpu.vector_store %arg11[%c0_40, %c64], %114 {strides = array<i32>} : memref<128x128xf32, #tpu.memory_space<vmem>>, vector<128x32xf32>,
    %116 = vector.extract_strided_slice %31 {offsets = [0, 3], sizes = [128, 1], strides = [1, 1]} : vector<128x4xf32> to vector<128x1xf32>
    %117 = vector.extract_strided_slice %33 {offsets = [3, 0], sizes = [1, 128], strides = [1, 1]} : vector<4x128xf32> to vector<1x128xf32>
    %118 = vector.broadcast %116 : vector<128x1xf32> to vector<128x128xf32>
    %119 = vector.broadcast %117 : vector<1x128xf32> to vector<128x128xf32>
    %120 = arith.addf %118, %119 : vector<128x128xf32>
    %cst_41 = arith.constant 0.000000e+00 : f32
    %121 = vector.broadcast %cst_41 : f32 to vector<128x128xf32>
    %122 = arith.cmpf ogt, %120, %121 : vector<128x128xf32>
    %cst_42 = arith.constant 2.000000e-01 : f32
    %123 = vector.broadcast %cst_42 : f32 to vector<128x128xf32>
    %124 = arith.mulf %123, %120 : vector<128x128xf32>
    %125 = arith.select %122, %120, %124 : vector<128x128xi1>, vector<128x128xf32>
    %126 = arith.addf %125, %0 : vector<128x128xf32>
    %cst_43 = arith.constant dense<0xFF800000> : vector<128xf32>
    %127 = vector.multi_reduction <maximumf>, %126, %cst_43 [1] : vector<128x128xf32> to vector<128xf32>
    %128 = vector.shape_cast %127 : vector<128xf32> to vector<128x1xf32>
    %129 = vector.broadcast %128 : vector<128x1xf32> to vector<128x128xf32>
    %130 = arith.subf %126, %129 : vector<128x128xf32>
    %131 = math.exp %130 : vector<128x128xf32>
    %cst_44 = arith.constant dense<0.000000e+00> : vector<128xf32>
    %132 = vector.multi_reduction <add>, %131, %cst_44 [1] : vector<128x128xf32> to vector<128xf32>
    %133 = vector.shape_cast %132 : vector<128xf32> to vector<128x1xf32>
    %134 = tpu.reciprocal %133 {approx = true} : vector<128x1xf32> -> vector<128x1xf32>
    %135 = vector.broadcast %134 : vector<128x1xf32> to vector<128x128xf32>
    %136 = arith.mulf %131, %135 : vector<128x128xf32>
    %137 = arith.truncf %136 : vector<128x128xf32> to vector<128x128xbf16>
    %138 = vector.extract_strided_slice %34 {offsets = [0, 96], sizes = [128, 32], strides = [1, 1]} : vector<128x128xbf16> to vector<128x32xbf16>
    %cst_45 = arith.constant dense<0.000000e+00> : vector<128x32xf32>
    %139 = tpu.matmul %137, %138, %cst_45 {dimension_numbers = #tpu.dot_dimension_numbers<[1], [0], [0], [1], [0, 0, 1, 1], [], []>} : vector<128x128xbf16>, vector<128x32xbf16>, vector<128x32xf32> -> vector<128x32xf32>
    %cst_46 = arith.constant 0.000000e+00 : f32
    %140 = vector.broadcast %cst_46 : f32 to vector<128x32xf32>
    %141 = arith.maximumf %139, %140 : vector<128x32xf32>
    %c0_47 = arith.constant 0 : index
    %c96 = arith.constant 96 : index
    %142 = vector.load %arg11[%c0_47, %c96] : memref<128x128xf32, #tpu.memory_space<vmem>>, vector<128x32xf32>
    tpu.vector_store %arg11[%c0_47, %c96], %141 {strides = array<i32>} : memref<128x128xf32, #tpu.memory_space<vmem>>, vector<128x32xf32>,
    %c0_48 = arith.constant 0 : index
    %c0_49 = arith.constant 0 : index
    %143 = vector.load %arg11[%c0_48, %c0_49] : memref<128x128xf32, #tpu.memory_space<vmem>>, vector<128x128xf32>
    %144 = arith.truncf %143 : vector<128x128xf32> to vector<128x128xbf16>
    %c0_50 = arith.constant 0 : index
    %c0_51 = arith.constant 0 : index
    %145 = vector.load %arg9[%c0_50, %c0_51] : memref<128x136xbf16, #tpu.memory_space<vmem>>, vector<128x136xbf16>
    %cst_52 = arith.constant dense<0.000000e+00> : vector<128x136xf32>
    %146 = tpu.matmul %144, %145, %cst_52 {dimension_numbers = #tpu.dot_dimension_numbers<[1], [0], [0], [1], [0, 0, 1, 1], [], []>} : vector<128x128xbf16>, vector<128x136xbf16>, vector<128x136xf32> -> vector<128x136xf32>
    %147 = vector.extract_strided_slice %146 {offsets = [0, 0], sizes = [128, 128], strides = [1, 1]} : vector<128x136xf32> to vector<128x128xf32>
    %148 = vector.extract_strided_slice %146 {offsets = [0, 128], sizes = [128, 4], strides = [1, 1]} : vector<128x136xf32> to vector<128x4xf32>
    %149 = vector.extract_strided_slice %146 {offsets = [0, 132], sizes = [128, 4], strides = [1, 1]} : vector<128x136xf32> to vector<128x4xf32>
    %150 = tpu.transpose %149, [1, 0] : vector<128x4xf32> -> vector<4x128xf32>
    %151 = arith.truncf %147 : vector<128x128xf32> to vector<128x128xbf16>
    %152 = vector.extract_strided_slice %148 {offsets = [0, 0], sizes = [128, 1], strides = [1, 1]} : vector<128x4xf32> to vector<128x1xf32>
    %153 = vector.extract_strided_slice %150 {offsets = [0, 0], sizes = [1, 128], strides = [1, 1]} : vector<4x128xf32> to vector<1x128xf32>
    %154 = vector.broadcast %152 : vector<128x1xf32> to vector<128x128xf32>
    %155 = vector.broadcast %153 : vector<1x128xf32> to vector<128x128xf32>
    %156 = arith.addf %154, %155 : vector<128x128xf32>
    %cst_53 = arith.constant 0.000000e+00 : f32
    %157 = vector.broadcast %cst_53 : f32 to vector<128x128xf32>
    %158 = arith.cmpf ogt, %156, %157 : vector<128x128xf32>
    %cst_54 = arith.constant 2.000000e-01 : f32
    %159 = vector.broadcast %cst_54 : f32 to vector<128x128xf32>
    %160 = arith.mulf %159, %156 : vector<128x128xf32>
    %161 = arith.select %158, %156, %160 : vector<128x128xi1>, vector<128x128xf32>
    %162 = arith.addf %161, %0 : vector<128x128xf32>
    %cst_55 = arith.constant dense<0xFF800000> : vector<128xf32>
    %163 = vector.multi_reduction <maximumf>, %162, %cst_55 [1] : vector<128x128xf32> to vector<128xf32>
    %164 = vector.shape_cast %163 : vector<128xf32> to vector<128x1xf32>
    %165 = vector.broadcast %164 : vector<128x1xf32> to vector<128x128xf32>
    %166 = arith.subf %162, %165 : vector<128x128xf32>
    %167 = math.exp %166 : vector<128x128xf32>
    %cst_56 = arith.constant dense<0.000000e+00> : vector<128xf32>
    %168 = vector.multi_reduction <add>, %167, %cst_56 [1] : vector<128x128xf32> to vector<128xf32>
    %169 = vector.shape_cast %168 : vector<128xf32> to vector<128x1xf32>
    %170 = tpu.reciprocal %169 {approx = true} : vector<128x1xf32> -> vector<128x1xf32>
    %171 = vector.broadcast %170 : vector<128x1xf32> to vector<128x128xf32>
    %172 = arith.mulf %167, %171 : vector<128x128xf32>
    %173 = arith.truncf %172 : vector<128x128xf32> to vector<128x128xbf16>
    %174 = vector.extract_strided_slice %151 {offsets = [0, 0], sizes = [128, 32], strides = [1, 1]} : vector<128x128xbf16> to vector<128x32xbf16>
    %cst_57 = arith.constant dense<0.000000e+00> : vector<128x32xf32>
    %175 = tpu.matmul %173, %174, %cst_57 {dimension_numbers = #tpu.dot_dimension_numbers<[1], [0], [0], [1], [0, 0, 1, 1], [], []>} : vector<128x128xbf16>, vector<128x32xbf16>, vector<128x32xf32> -> vector<128x32xf32>
    %c0_58 = arith.constant 0 : index
    %c0_59 = arith.constant 0 : index
    %176 = vector.load %arg10[%c0_58, %c0_59] : memref<128x128xf32, #tpu.memory_space<vmem>>, vector<128x32xf32>
    tpu.vector_store %arg10[%c0_58, %c0_59], %175 {strides = array<i32>} : memref<128x128xf32, #tpu.memory_space<vmem>>, vector<128x32xf32>,
    %177 = vector.extract_strided_slice %148 {offsets = [0, 1], sizes = [128, 1], strides = [1, 1]} : vector<128x4xf32> to vector<128x1xf32>
    %178 = vector.extract_strided_slice %150 {offsets = [1, 0], sizes = [1, 128], strides = [1, 1]} : vector<4x128xf32> to vector<1x128xf32>
    %179 = vector.broadcast %177 : vector<128x1xf32> to vector<128x128xf32>
    %180 = vector.broadcast %178 : vector<1x128xf32> to vector<128x128xf32>
    %181 = arith.addf %179, %180 : vector<128x128xf32>
    %cst_60 = arith.constant 0.000000e+00 : f32
    %182 = vector.broadcast %cst_60 : f32 to vector<128x128xf32>
    %183 = arith.cmpf ogt, %181, %182 : vector<128x128xf32>
    %cst_61 = arith.constant 2.000000e-01 : f32
    %184 = vector.broadcast %cst_61 : f32 to vector<128x128xf32>
    %185 = arith.mulf %184, %181 : vector<128x128xf32>
    %186 = arith.select %183, %181, %185 : vector<128x128xi1>, vector<128x128xf32>
    %187 = arith.addf %186, %0 : vector<128x128xf32>
    %cst_62 = arith.constant dense<0xFF800000> : vector<128xf32>
    %188 = vector.multi_reduction <maximumf>, %187, %cst_62 [1] : vector<128x128xf32> to vector<128xf32>
    %189 = vector.shape_cast %188 : vector<128xf32> to vector<128x1xf32>
    %190 = vector.broadcast %189 : vector<128x1xf32> to vector<128x128xf32>
    %191 = arith.subf %187, %190 : vector<128x128xf32>
    %192 = math.exp %191 : vector<128x128xf32>
    %cst_63 = arith.constant dense<0.000000e+00> : vector<128xf32>
    %193 = vector.multi_reduction <add>, %192, %cst_63 [1] : vector<128x128xf32> to vector<128xf32>
    %194 = vector.shape_cast %193 : vector<128xf32> to vector<128x1xf32>
    %195 = tpu.reciprocal %194 {approx = true} : vector<128x1xf32> -> vector<128x1xf32>
    %196 = vector.broadcast %195 : vector<128x1xf32> to vector<128x128xf32>
    %197 = arith.mulf %192, %196 : vector<128x128xf32>
    %198 = arith.truncf %197 : vector<128x128xf32> to vector<128x128xbf16>
    %199 = vector.extract_strided_slice %151 {offsets = [0, 32], sizes = [128, 32], strides = [1, 1]} : vector<128x128xbf16> to vector<128x32xbf16>
    %cst_64 = arith.constant dense<0.000000e+00> : vector<128x32xf32>
    %200 = tpu.matmul %198, %199, %cst_64 {dimension_numbers = #tpu.dot_dimension_numbers<[1], [0], [0], [1], [0, 0, 1, 1], [], []>} : vector<128x128xbf16>, vector<128x32xbf16>, vector<128x32xf32> -> vector<128x32xf32>
    %c0_65 = arith.constant 0 : index
    %c32_66 = arith.constant 32 : index
    %201 = vector.load %arg10[%c0_65, %c32_66] : memref<128x128xf32, #tpu.memory_space<vmem>>, vector<128x32xf32>
    tpu.vector_store %arg10[%c0_65, %c32_66], %200 {strides = array<i32>} : memref<128x128xf32, #tpu.memory_space<vmem>>, vector<128x32xf32>,
    %202 = vector.extract_strided_slice %148 {offsets = [0, 2], sizes = [128, 1], strides = [1, 1]} : vector<128x4xf32> to vector<128x1xf32>
    %203 = vector.extract_strided_slice %150 {offsets = [2, 0], sizes = [1, 128], strides = [1, 1]} : vector<4x128xf32> to vector<1x128xf32>
    %204 = vector.broadcast %202 : vector<128x1xf32> to vector<128x128xf32>
    %205 = vector.broadcast %203 : vector<1x128xf32> to vector<128x128xf32>
    %206 = arith.addf %204, %205 : vector<128x128xf32>
    %cst_67 = arith.constant 0.000000e+00 : f32
    %207 = vector.broadcast %cst_67 : f32 to vector<128x128xf32>
    %208 = arith.cmpf ogt, %206, %207 : vector<128x128xf32>
    %cst_68 = arith.constant 2.000000e-01 : f32
    %209 = vector.broadcast %cst_68 : f32 to vector<128x128xf32>
    %210 = arith.mulf %209, %206 : vector<128x128xf32>
    %211 = arith.select %208, %206, %210 : vector<128x128xi1>, vector<128x128xf32>
    %212 = arith.addf %211, %0 : vector<128x128xf32>
    %cst_69 = arith.constant dense<0xFF800000> : vector<128xf32>
    %213 = vector.multi_reduction <maximumf>, %212, %cst_69 [1] : vector<128x128xf32> to vector<128xf32>
    %214 = vector.shape_cast %213 : vector<128xf32> to vector<128x1xf32>
    %215 = vector.broadcast %214 : vector<128x1xf32> to vector<128x128xf32>
    %216 = arith.subf %212, %215 : vector<128x128xf32>
    %217 = math.exp %216 : vector<128x128xf32>
    %cst_70 = arith.constant dense<0.000000e+00> : vector<128xf32>
    %218 = vector.multi_reduction <add>, %217, %cst_70 [1] : vector<128x128xf32> to vector<128xf32>
    %219 = vector.shape_cast %218 : vector<128xf32> to vector<128x1xf32>
    %220 = tpu.reciprocal %219 {approx = true} : vector<128x1xf32> -> vector<128x1xf32>
    %221 = vector.broadcast %220 : vector<128x1xf32> to vector<128x128xf32>
    %222 = arith.mulf %217, %221 : vector<128x128xf32>
    %223 = arith.truncf %222 : vector<128x128xf32> to vector<128x128xbf16>
    %224 = vector.extract_strided_slice %151 {offsets = [0, 64], sizes = [128, 32], strides = [1, 1]} : vector<128x128xbf16> to vector<128x32xbf16>
    %cst_71 = arith.constant dense<0.000000e+00> : vector<128x32xf32>
    %225 = tpu.matmul %223, %224, %cst_71 {dimension_numbers = #tpu.dot_dimension_numbers<[1], [0], [0], [1], [0, 0, 1, 1], [], []>} : vector<128x128xbf16>, vector<128x32xbf16>, vector<128x32xf32> -> vector<128x32xf32>
    %c0_72 = arith.constant 0 : index
    %c64_73 = arith.constant 64 : index
    %226 = vector.load %arg10[%c0_72, %c64_73] : memref<128x128xf32, #tpu.memory_space<vmem>>, vector<128x32xf32>
    tpu.vector_store %arg10[%c0_72, %c64_73], %225 {strides = array<i32>} : memref<128x128xf32, #tpu.memory_space<vmem>>, vector<128x32xf32>,
    %227 = vector.extract_strided_slice %148 {offsets = [0, 3], sizes = [128, 1], strides = [1, 1]} : vector<128x4xf32> to vector<128x1xf32>
    %228 = vector.extract_strided_slice %150 {offsets = [3, 0], sizes = [1, 128], strides = [1, 1]} : vector<4x128xf32> to vector<1x128xf32>
    %229 = vector.broadcast %227 : vector<128x1xf32> to vector<128x128xf32>
    %230 = vector.broadcast %228 : vector<1x128xf32> to vector<128x128xf32>
    %231 = arith.addf %229, %230 : vector<128x128xf32>
    %cst_74 = arith.constant 0.000000e+00 : f32
    %232 = vector.broadcast %cst_74 : f32 to vector<128x128xf32>
    %233 = arith.cmpf ogt, %231, %232 : vector<128x128xf32>
    %cst_75 = arith.constant 2.000000e-01 : f32
    %234 = vector.broadcast %cst_75 : f32 to vector<128x128xf32>
    %235 = arith.mulf %234, %231 : vector<128x128xf32>
    %236 = arith.select %233, %231, %235 : vector<128x128xi1>, vector<128x128xf32>
    %237 = arith.addf %236, %0 : vector<128x128xf32>
    %cst_76 = arith.constant dense<0xFF800000> : vector<128xf32>
    %238 = vector.multi_reduction <maximumf>, %237, %cst_76 [1] : vector<128x128xf32> to vector<128xf32>
    %239 = vector.shape_cast %238 : vector<128xf32> to vector<128x1xf32>
    %240 = vector.broadcast %239 : vector<128x1xf32> to vector<128x128xf32>
    %241 = arith.subf %237, %240 : vector<128x128xf32>
    %242 = math.exp %241 : vector<128x128xf32>
    %cst_77 = arith.constant dense<0.000000e+00> : vector<128xf32>
    %243 = vector.multi_reduction <add>, %242, %cst_77 [1] : vector<128x128xf32> to vector<128xf32>
    %244 = vector.shape_cast %243 : vector<128xf32> to vector<128x1xf32>
    %245 = tpu.reciprocal %244 {approx = true} : vector<128x1xf32> -> vector<128x1xf32>
    %246 = vector.broadcast %245 : vector<128x1xf32> to vector<128x128xf32>
    %247 = arith.mulf %242, %246 : vector<128x128xf32>
    %248 = arith.truncf %247 : vector<128x128xf32> to vector<128x128xbf16>
    %249 = vector.extract_strided_slice %151 {offsets = [0, 96], sizes = [128, 32], strides = [1, 1]} : vector<128x128xbf16> to vector<128x32xbf16>
    %cst_78 = arith.constant dense<0.000000e+00> : vector<128x32xf32>
    %250 = tpu.matmul %248, %249, %cst_78 {dimension_numbers = #tpu.dot_dimension_numbers<[1], [0], [0], [1], [0, 0, 1, 1], [], []>} : vector<128x128xbf16>, vector<128x32xbf16>, vector<128x32xf32> -> vector<128x32xf32>
    %c0_79 = arith.constant 0 : index
    %c96_80 = arith.constant 96 : index
    %251 = vector.load %arg10[%c0_79, %c96_80] : memref<128x128xf32, #tpu.memory_space<vmem>>, vector<128x32xf32>
    tpu.vector_store %arg10[%c0_79, %c96_80], %250 {strides = array<i32>} : memref<128x128xf32, #tpu.memory_space<vmem>>, vector<128x32xf32>,
    return
  }
  func.func @transform_0(%arg0: i32) -> (i32, i32) {
    %c0_i32 = arith.constant 0 : i32
    %c0_i32_0 = arith.constant 0 : i32
    return %arg0, %c0_i32 : i32, i32
  }
  func.func @transform_1(%arg0: i32) -> (i32, i32) {
    %c0_i32 = arith.constant 0 : i32
    %c0_i32_0 = arith.constant 0 : i32
    return %arg0, %c0_i32 : i32, i32
  }
  func.func @transform_2(%arg0: i32) -> (i32, i32) {
    %c0_i32 = arith.constant 0 : i32
    %c0_i32_0 = arith.constant 0 : i32
    %c0_i32_1 = arith.constant 0 : i32
    return %c0_i32, %c0_i32_0 : i32, i32
  }
  func.func @transform_3(%arg0: i32) -> (i32, i32) {
    %c0_i32 = arith.constant 0 : i32
    %c0_i32_0 = arith.constant 0 : i32
    %c0_i32_1 = arith.constant 0 : i32
    return %c0_i32, %c0_i32_0 : i32, i32
  }
  func.func @transform_4(%arg0: i32) -> (i32, i32) {
    %c0_i32 = arith.constant 0 : i32
    %c0_i32_0 = arith.constant 0 : i32
    %c0_i32_1 = arith.constant 0 : i32
    return %c0_i32, %c0_i32_0 : i32, i32
  }
  func.func @transform_5(%arg0: i32) -> (i32, i32) {
    %c0_i32 = arith.constant 0 : i32
    %c0_i32_0 = arith.constant 0 : i32
    %c0_i32_1 = arith.constant 0 : i32
    return %c0_i32, %c0_i32_0 : i32, i32
  }
  func.func @transform_6(%arg0: i32) -> (i32, i32) {
    %c0_i32 = arith.constant 0 : i32
    %c0_i32_0 = arith.constant 0 : i32
    %c0_i32_1 = arith.constant 0 : i32
    return %c0_i32, %c0_i32_0 : i32, i32
  }
  func.func @transform_7(%arg0: i32) -> (i32, i32) {
    %c0_i32 = arith.constant 0 : i32
    %c0_i32_0 = arith.constant 0 : i32
    %c0_i32_1 = arith.constant 0 : i32
    return %c0_i32, %c0_i32_0 : i32, i32
  }
  func.func @transform_8(%arg0: i32) -> (i32, i32) {
    %c0_i32 = arith.constant 0 : i32
    %c0_i32_0 = arith.constant 0 : i32
    %c0_i32_1 = arith.constant 0 : i32
    return %c0_i32, %c0_i32_0 : i32, i32
  }
  func.func @transform_9(%arg0: i32) -> (i32, i32) {
    %c0_i32 = arith.constant 0 : i32
    %c0_i32_0 = arith.constant 0 : i32
    return %arg0, %c0_i32 : i32, i32
  }
}

</mosaic_0001>

<bundles_post_ra>
// kernel: _encoder_core.1
= control target key start
LH: loop header
LB: loop body
LE: loop exit
PB: predicated region body
PF: predicated region fallthrough
CT: control target
= control target key end

     0   :  { %14 = vsyncpa [#allocation4], 0  ;;  %s10359_s0 = inlined_call_operand.vmem [shape: f32[256,128], index: 0, kind: input, shape index: {}]   ;;  %s10360_s1 = inlined_call_operand.vmem [shape: f32[256,128], index: 1, kind: input, shape index: {}]   ;;  %s10361_s2 = inlined_call_operand.vmem [shape: f32[2,16], index: 2, kind: input, shape index: {}]   ;;  %s10362_s3 = inlined_call_operand.vmem [shape: f32[1,16], index: 3, kind: input, shape index: {}]   ;;  %s10363_s4 = inlined_call_operand.vmem [shape: f32[16,32], index: 4, kind: input, shape index: {}]   ;;  %s10364_s5 = inlined_call_operand.vmem [shape: f32[16,32], index: 5, kind: input, shape index: {}]   ;;  %s10365_s6 = inlined_call_operand.vmem [shape: f32[1,32], index: 6, kind: input, shape index: {}]   ;;  %s10366_s7 = inlined_call_operand.vmem [shape: bf16[32,136], index: 7, kind: input, shape index: {}]   ;;  %s10367_s8 = inlined_call_operand.vmem [shape: bf16[128,136], index: 8, kind: input, shape index: {}]   ;;  %s10368_s9 = inlined_call_operand.hbm [shape: f32[256,128], index: 9, kind: output, shape index: {}]  }
   0x1   :  { %16 = vsyncpa [#allocation4 + $0x1], 0  ;;  %s7082_s30 = smov 0   ;;  %s7084_s10 = smov 0  }
   0x2   :  { %s7086_s11 = smov 0   ;;  %s7088_s12 = smov 0  }
   0x3 LB: > { %s7103_s13 = sadd.s32 4294967295, %s7018_s12   ;;  %s5674_s14 = sadd.s32 4294967294, %s7018_s12   ;;  %s7018_s12 = sphi %s7088_s12, %s10813_s12   ;;  %s7014_s11 = sphi %s7086_s11, %s10812_s11   ;;  %s7010_s10 = sphi %s7084_s10, %s10811_s10   ;;  %s7006_s30 = sphi %s7082_s30, %s10810_s30  }
   0x4   : > { %s7107_s15 = sadd.s32 1, %s7018_s12   ;;  %s228_s16 = sadd.s32 1, %s7014_s11 }
   0x5   : > { %s225_s17 = ssub.s32 %s7018_s12, %s7107_s15  ;;  %p238_p0 = scmp.ne.s32.totalorder %s7014_s11, %s7010_s10 }
   0x6   : > { %p226_p1 = scmp.eq.s32.totalorder %s225_s17, 0  ;;  %p239_p2 = scmp.eq.s32.totalorder %s7103_s13, 1 }
   0x7   : > { %p244_p3 = scmp.ne.s32.totalorder %s7010_s10, %s7006_s30  ;;  %p245_p4 = scmp.eq.s32.totalorder %s5674_s14, 1 }
   0x8   : > { %s7118_s18 = scalar_select %p226_p1, %s7014_s11, %s228_s16  }
   0x9   : > { %p7120_p5 = por %p239_p2, %p238_p0  ;;  %p7124_p6 = por %p245_p4, %p244_p3 }
   0xa   : > { %p5677_p7 = scmp.ge.s32.totalorder %s7018_s12, 1  ;;  %p302_p8 = scmp.lt.s32.totalorder %s7018_s12, 3 }
   0xc   : > { %p303_p9 = pnand %p5677_p7, %p302_p8 }
   0xe   : > { %306 = sbr.rel (%p303_p9) target bundleno = 3470 (0xd8e), region = 56 }
  0x13   : > { %s5679_s21 = sshll.u32 %s7103_s13, 4  ;;  %v10375_v0 = vmov 0   ;;  %v10373_v3 = vmov 1   ;;  %v631_v4 = vld [vmem:[%s10363_s4 + $0x8] sm:$0xff]  ;;  %v630_v6 = vld [vmem:[%s10363_s4] sm:$0xff]  ;;  %s7022_s24 = smov 126  }
  0x14   : > { %6281 = vset.pattern.permute.xlu1 %v10375_v0  ;;  %6279 = vset.pattern.permute.xlu0 %v10375_v0  ;;  %p344_p10 = scmp.lt.s32.totalorder %s5679_s21, 31  ;;  %v633_v8 = vld [vmem:[%s10364_s5 + $0x8] sm:$0xff]  ;;  %v632_v9 = vld [vmem:[%s10364_s5] sm:$0xff]  ;;  %v6402_v22 = vld [vmem:[%s10366_s7 + $0x14] ss:$8 sps:$4 sm:$0xff]   ;;  %vm666_vm0 = vcmask 130048  }
  0x15   : > { %5945 = vmatprep.subr.mxu1 %v631_v4  ;;  %5917 = vmatprep.subr.mxu0 %v633_v8  ;;  %v7198_v25 = vld [vmem:[%s10361_s2] ss:$0 sm:$0xff]  ;;  %v7203_v26 = vld [vmem:[%s10361_s2 + $0x1] ss:$0 sm:$0xff]  ;;  %v6400_v53 = vld [vmem:[%s10366_s7 + $0x10] ss:$8 sps:$4 sm:$0xff]  }
  0x16   : > { %s10815_s21 = smov (!%p344_p10, %s5679_s21), 31  ;;  %5946 = vmatpush3.msra.mxu1 %v631_v4  ;;  %5918 = vmatpush3.msra.mxu0 %v633_v8  ;;  %v7212_v33 = vld [vmem:[%s10362_s3] ss:$0 sm:$0xff]  ;;  %vm1092_vm1 = vcmask 261120   ;;  %s7023_s16 = smov 124  }
  0x17   : > { %s5680_s22 = sshll.u32 %s10815_s21, 3  ;;  %5947 = vmatprep.subr.mxu1 %v630_v6  ;;  %5919 = vmatprep.subr.mxu0 %v632_v9  ;;  %s7026_s17 = smov 96  }
  0x18   : > { %s7141_s25 = scalar_lea.vmem %s10359_s0, %s5680_s22  ;;  %5948 = vmatpush3.msra.mxu1 %v630_v6  ;;  %5920 = vmatpush3.msra.mxu0 %v632_v9  ;;  %s10441_s23 = smov 64  }
  0x19   : > { %v374_v1 = vld [vmem:[%s7141_s25 + $0x8] sm:$0xff]  ;;  %v373_v2 = vld [vmem:[%s7141_s25] sm:$0xff]  ;;  %v375_v5 = vld [vmem:[%s7141_s25 + $0x10] sm:$0xff]  ;;  %1129 = vmatprep.subr.bf16.mxu0 %v6402_v22  ;;  %s10669_s28 = smov 64   ;;  %s7029_s21 = smov [#allocation3]  }
  0x1a   : > { %397 = vperm.xlu1 %6281, %v374_v1   ;;  %392 = vperm.xlu0 %6279, %v373_v2   ;;  %v376_v7 = vld [vmem:[%s7141_s25 + $0x18] sm:$0xff]  ;;  %v377_v10 = vld [vmem:[%s7141_s25 + $0x20] sm:$0xff]  ;;  %v378_v11 = vld [vmem:[%s7141_s25 + $0x28] sm:$0xff] }
  0x1b   : > { %v379_v12 = vld [vmem:[%s7141_s25 + $0x30] sm:$0xff]  ;;  %v380_v13 = vld [vmem:[%s7141_s25 + $0x38] sm:$0xff]  ;;  %v381_v14 = vld [vmem:[%s7141_s25 + $0x40] sm:$0xff] }
  0x1c   : > { %v382_v15 = vld [vmem:[%s7141_s25 + $0x48] sm:$0xff]  ;;  %v383_v16 = vld [vmem:[%s7141_s25 + $0x50] sm:$0xff]  ;;  %v384_v17 = vld [vmem:[%s7141_s25 + $0x58] sm:$0xff] }
  0x1d   : > { %v385_v18 = vld [vmem:[%s7141_s25 + $0x60] sm:$0xff]  ;;  %v386_v19 = vld [vmem:[%s7141_s25 + $0x68] sm:$0xff]  ;;  %v387_v20 = vld [vmem:[%s7141_s25 + $0x70] sm:$0xff] }
  0x1e   : > { %6282 = vset.pattern.permute.xlu1 %v10373_v3  ;;  %6280 = vset.pattern.permute.xlu0 %v10373_v3  ;;  %v388_v21 = vld [vmem:[%s7141_s25 + $0x78] sm:$0xff]  ;;  %s7718_s25 = scalar_lea.vmem %s10360_s1, %s5680_s22  ;;  %s6962_s22 = sshll.u32 %s7029_s21, 4  ;;  %s6963_s22 = int_to_ptr.vmem [resolvable:$false] %s6962_s22 }
  0x1f   : > { %496 = vperm.xlu1 %6282, %v374_v1   ;;  %492 = vperm.xlu0 %6280, %v373_v2  }
  0x23   : > { %6283 = vset.pattern.permute.xlu1 %v10375_v0  ;;  %500 = vperm.xlu0 %6280, %v375_v5  }
  0x24   : > { %402 = vperm.xlu1 %6283, %v375_v5  }
  0x27   : > { %504 = vperm.xlu0 %6280, %v376_v7  }
  0x28   : > { %407 = vperm.xlu1 %6283, %v376_v7  }
  0x2b   : > { %636 = vrot.lane.b32.xlu0 %v374_v1, %s7022_s24 }
  0x2c   : > { %634 = vrot.lane.b32.xlu1 %v373_v2, %s7022_s24 }
  0x2f   : > { %508 = vperm.xlu0 %6280, %v377_v10  }
  0x30   : > { %412 = vperm.xlu1 %6283, %v377_v10  }
  0x33   : > { %512 = vperm.xlu0 %6280, %v378_v11  }
  0x34   : > { %417 = vperm.xlu1 %6283, %v378_v11  }
  0x37   : > { %640 = vrot.lane.b32.xlu0 %v376_v7, %s7022_s24 }
  0x38   : > { %638 = vrot.lane.b32.xlu1 %v375_v5, %s7022_s24 }
  0x3b   : > { %516 = vperm.xlu0 %6280, %v379_v12  }
  0x3c   : > { %422 = vperm.xlu1 %6283, %v379_v12  }
  0x3f   : > { %520 = vperm.xlu0 %6280, %v380_v13  }
  0x40   : > { %427 = vperm.xlu1 %6283, %v380_v13  }
  0x43   : > { %644 = vrot.lane.b32.xlu0 %v378_v11, %s7022_s24 }
  0x44   : > { %642 = vrot.lane.b32.xlu1 %v377_v10, %s7022_s24 }
  0x47   : > { %524 = vperm.xlu0 %6280, %v381_v14  }
  0x48   : > { %432 = vperm.xlu1 %6283, %v381_v14  }
  0x4b   : > { %528 = vperm.xlu0 %6280, %v382_v15  }
  0x4c   : > { %437 = vperm.xlu1 %6283, %v382_v15  }
  0x4f   : > { %648 = vrot.lane.b32.xlu0 %v380_v13, %s7022_s24 }
  0x50   : > { %646 = vrot.lane.b32.xlu1 %v379_v12, %s7022_s24 }
  0x53   : > { %532 = vperm.xlu0 %6280, %v383_v16  }
  0x54   : > { %442 = vperm.xlu1 %6283, %v383_v16  }
  0x57   : > { %536 = vperm.xlu0 %6280, %v384_v17  }
  0x58   : > { %447 = vperm.xlu1 %6283, %v384_v17  }
  0x5b   : > { %652 = vrot.lane.b32.xlu0 %v382_v15, %s7022_s24 }
  0x5c   : > { %650 = vrot.lane.b32.xlu1 %v381_v14, %s7022_s24 }
  0x5f   : > { %540 = vperm.xlu0 %6280, %v385_v18  }
  0x60   : > { %452 = vperm.xlu1 %6283, %v385_v18  }
  0x63   : > { %544 = vperm.xlu0 %6280, %v386_v19  }
  0x64   : > { %457 = vperm.xlu1 %6283, %v386_v19  }
  0x67   : > { %656 = vrot.lane.b32.xlu0 %v384_v17, %s7022_s24 }
  0x68   : > { %654 = vrot.lane.b32.xlu1 %v383_v16, %s7022_s24 }
  0x6b   : > { %548 = vperm.xlu0 %6280, %v387_v20  }
  0x6c   : > { %462 = vperm.xlu1 %6283, %v387_v20  }
  0x6f   : > { %552 = vperm.xlu0 %6280, %v388_v21  }
  0x70   : > { %467 = vperm.xlu1 %6283, %v388_v21  }
  0x73   : > { %660 = vrot.lane.b32.xlu0 %v386_v19, %s7022_s24 }
  0x74   : > { %658 = vrot.lane.b32.xlu1 %v385_v18, %s7022_s24  ;;  %6284 = vset.pattern.permute.xlu0 %v10375_v0 }
  0x75   : > { %6285 = vset.pattern.permute.xlu1 %v10373_v3 }
  0x77   : > { %664 = vrot.lane.b32.xlu0 %v388_v21, %s7022_s24 }
  0x78   : > { %662 = vrot.lane.b32.xlu1 %v387_v20, %s7022_s24  ;;  %s7028_s24 = smov 32  }
  0x95   : > { %v398_v23 = vpop.permute.xlu1 %397  ;;  %v393_v24 = vpop.permute.xlu0 %392 }
  0x96   : > { %v475_v29 = vmul.f32 %v7198_v25, %v398_v23  ;;  %v474_v30 = vmul.f32 %v7198_v25, %v393_v24 }
  0x9a   : > { %v497_v27 = vpop.permute.xlu1 %496  ;;  %v493_v28 = vpop.permute.xlu0 %492 }
  0x9b   : > { %v560_v31 = vmul.f32 %v7203_v26, %v497_v27  ;;  %v559_v32 = vmul.f32 %v7203_v26, %v493_v28 }
  0x9d   : > { %v576_v34 = vadd.f32 %v560_v31, %v475_v29  ;;  %v575_v35 = vadd.f32 %v559_v32, %v474_v30 }
  0x9e   : > { %v501_v36 = vpop.permute.xlu0 %500 }
  0x9f   : > { %v599_v37 = vadd.f32 %v7212_v33, %v576_v34  ;;  %v561_v38 = vmul.f32 %v7203_v26, %v501_v36  ;;  %v403_v39 = vpop.permute.xlu1 %402  ;;  %v598_v40 = vadd.f32 %v7212_v33, %v575_v35 }
  0xa0   : > { %v476_v41 = vmul.f32 %v7198_v25, %v403_v39 }
  0xa1   : > { %v615_v42 = vmax.f32 %v599_v37, 0.0  ;;  %v614_v43 = vmax.f32 %v598_v40, 0.0 }
  0xa2   : > { %v577_v44 = vadd.f32 %v561_v38, %v476_v41  ;;  %v505_v45 = vpop.permute.xlu0 %504 }
  0xa3   : > { %v562_v46 = vmul.f32 %v7203_v26, %v505_v45  ;;  %v408_v47 = vpop.permute.xlu1 %407  ;;  %5949 = vmatprep.mubr.msk.f32.mxu1 %vm666_vm0, %v614_v43 }
  0xa4   : > { %v600_v48 = vadd.f32 %v7212_v33, %v577_v44  ;;  %v477_v49 = vmul.f32 %v7198_v25, %v408_v47  ;;  %5950 = vmatmul.mubr.msk.f32.vlgmr.msra.gmra.mxu1 %vm666_vm0, %v615_v42 }
  0xa6   : > { %v616_v50 = vmax.f32 %v600_v48, 0.0  ;;  %v578_v51 = vadd.f32 %v562_v46, %v477_v49  ;;  %v637_v52 = vpop.permute.xlu0 %636 }
  0xa7   : > { %v635_v54 = vpop.permute.xlu1 %634 }
  0xa8   : > { %v601_v55 = vadd.f32 %v7212_v33, %v578_v51  ;;  %5921 = vmatprep.mubr.msk.f32.mxu0 %vm666_vm0, %v635_v54  ;;  %5952 = vmatprep.mubr.msk.f32.mxu1 %vm666_vm0, %v616_v50 }
  0xa9   : > { %5922 = vmatmul.mubr.msk.f32.vlgmr.msra.gmra.mxu0 %vm666_vm0, %v637_v52 }
  0xaa   : > { %v617_v56 = vmax.f32 %v601_v55, 0.0  ;;  %v509_v57 = vpop.permute.xlu0 %508  ;;  %1130 = vmatpush1.bf16.msra.mxu0 %v6400_v53 }
  0xab   : > { %v563_v58 = vmul.f32 %v7203_v26, %v509_v57  ;;  %v413_v59 = vpop.permute.xlu1 %412 }
  0xac   : > { %v478_v60 = vmul.f32 %v7198_v25, %v413_v59  ;;  %5953 = vmatmul.mubr.msk.f32.gmra.mxu1 %vm666_vm0, %v617_v56 }
  0xae   : > { %v579_v61 = vadd.f32 %v563_v58, %v478_v60  ;;  %v513_v62 = vpop.permute.xlu0 %512 }
  0xaf   : > { %v564_v63 = vmul.f32 %v7203_v26, %v513_v62  ;;  %v418_v1 = vpop.permute.xlu1 %417 }
  0xb0   : > { %v602_v2 = vadd.f32 %v7212_v33, %v579_v61  ;;  %v479_v4 = vmul.f32 %v7198_v25, %v418_v1 }
  0xb2   : > { %v618_v5 = vmax.f32 %v602_v2, 0.0  ;;  %v580_v6 = vadd.f32 %v564_v63, %v479_v4  ;;  %v641_v7 = vpop.permute.xlu0 %640 }
  0xb3   : > { %v639_v8 = vpop.permute.xlu1 %638 }
  0xb4   : > { %v603_v9 = vadd.f32 %v7212_v33, %v580_v6  ;;  %5924 = vmatprep.mubr.msk.f32.mxu0 %vm666_vm0, %v639_v8  ;;  %5955 = vmatprep.mubr.msk.f32.mxu1 %vm666_vm0, %v618_v5 }
  0xb5   : > { %5925 = vmatmul.mubr.msk.f32.gmra.mxu0 %vm666_vm0, %v641_v7 }
  0xb6   : > { %v619_v10 = vmax.f32 %v603_v9, 0.0  ;;  %v517_v11 = vpop.permute.xlu0 %516 }
  0xb7   : > { %v565_v12 = vmul.f32 %v7203_v26, %v517_v11  ;;  %v423_v13 = vpop.permute.xlu1 %422 }
  0xb8   : > { %v480_v14 = vmul.f32 %v7198_v25, %v423_v13  ;;  %5956 = vmatmul.mubr.msk.f32.gmra.mxu1 %vm666_vm0, %v619_v10 }
  0xba   : > { %v581_v15 = vadd.f32 %v565_v12, %v480_v14  ;;  %v521_v16 = vpop.permute.xlu0 %520 }
  0xbb   : > { %v566_v17 = vmul.f32 %v7203_v26, %v521_v16  ;;  %v428_v18 = vpop.permute.xlu1 %427 }
  0xbc   : > { %v604_v19 = vadd.f32 %v7212_v33, %v581_v15  ;;  %v481_v20 = vmul.f32 %v7198_v25, %v428_v18  ;;  %v6405_v18 = vld [vmem:[%s10366_s7 + $0x4] ss:$8 sps:$4 sm:$0xff]  }
  0xbd   : > { %1131 = vmatprep.subr.bf16.mxu0 %v6405_v18 }
  0xbe   : > { %v620_v21 = vmax.f32 %v604_v19, 0.0  ;;  %v582_v22 = vadd.f32 %v566_v17, %v481_v20  ;;  %v645_v23 = vpop.permute.xlu0 %644  ;;  %v6403_v17 = vld [vmem:[%s10366_s7] ss:$8 sps:$4 sm:$0xff]  }
  0xbf   : > { %v643_v24 = vpop.permute.xlu1 %642  ;;  %1132 = vmatpush1.bf16.msra.mxu0 %v6403_v17 }
  0xc0   : > { %v605_v27 = vadd.f32 %v7212_v33, %v582_v22  ;;  %5927 = vmatprep.mubr.msk.f32.mxu0 %vm666_vm0, %v643_v24  ;;  %5958 = vmatprep.mubr.msk.f32.mxu1 %vm666_vm0, %v620_v21 }
  0xc1   : > { %5928 = vmatmul.mubr.msk.f32.gmra.mxu0 %vm666_vm0, %v645_v23 }
  0xc2   : > { %v621_v28 = vmax.f32 %v605_v27, 0.0  ;;  %v525_v29 = vpop.permute.xlu0 %524 }
  0xc3   : > { %v567_v30 = vmul.f32 %v7203_v26, %v525_v29  ;;  %v433_v31 = vpop.permute.xlu1 %432 }
  0xc4   : > { %v482_v32 = vmul.f32 %v7198_v25, %v433_v31  ;;  %5959 = vmatmul.mubr.msk.f32.gmra.mxu1 %vm666_vm0, %v621_v28 }
  0xc6   : > { %v583_v34 = vadd.f32 %v567_v30, %v482_v32  ;;  %v529_v35 = vpop.permute.xlu0 %528 }
  0xc7   : > { %v568_v36 = vmul.f32 %v7203_v26, %v529_v35  ;;  %v438_v37 = vpop.permute.xlu1 %437 }
  0xc8   : > { %v606_v38 = vadd.f32 %v7212_v33, %v583_v34  ;;  %v483_v39 = vmul.f32 %v7198_v25, %v438_v37 }
  0xca   : > { %v622_v40 = vmax.f32 %v606_v38, 0.0  ;;  %v584_v41 = vadd.f32 %v568_v36, %v483_v39  ;;  %v649_v42 = vpop.permute.xlu0 %648 }
  0xcb   : > { %v647_v43 = vpop.permute.xlu1 %646 }
  0xcc   : > { %v607_v44 = vadd.f32 %v7212_v33, %v584_v41  ;;  %5930 = vmatprep.mubr.msk.f32.mxu0 %vm666_vm0, %v647_v43  ;;  %5961 = vmatprep.mubr.msk.f32.mxu1 %vm666_vm0, %v622_v40  ;;  %v7303_v40 = vld [vmem:[%s10365_s6] ss:$0 sm:$0xff] }
  0xcd   : > { %5931 = vmatmul.mubr.msk.f32.gmra.mxu0 %vm666_vm0, %v649_v42 }
  0xce   : > { %v623_v45 = vmax.f32 %v607_v44, 0.0  ;;  %v533_v46 = vpop.permute.xlu0 %532 }
  0xcf   : > { %v569_v47 = vmul.f32 %v7203_v26, %v533_v46  ;;  %v443_v48 = vpop.permute.xlu1 %442 }
  0xd0   : > { %v484_v49 = vmul.f32 %v7198_v25, %v443_v48  ;;  %5962 = vmatmul.mubr.msk.f32.gmra.mxu1 %vm666_vm0, %v623_v45 }
  0xd2   : > { %v585_v50 = vadd.f32 %v569_v47, %v484_v49  ;;  %v537_v51 = vpop.permute.xlu0 %536 }
  0xd3   : > { %v570_v52 = vmul.f32 %v7203_v26, %v537_v51  ;;  %v448_v53 = vpop.permute.xlu1 %447 }
  0xd4   : > { %v608_v54 = vadd.f32 %v7212_v33, %v585_v50  ;;  %v485_v55 = vmul.f32 %v7198_v25, %v448_v53 }
  0xd6   : > { %v624_v56 = vmax.f32 %v608_v54, 0.0  ;;  %v586_v57 = vadd.f32 %v570_v52, %v485_v55  ;;  %v653_v58 = vpop.permute.xlu0 %652 }
  0xd7   : > { %v651_v59 = vpop.permute.xlu1 %650 }
  0xd8   : > { %v609_v60 = vadd.f32 %v7212_v33, %v586_v57  ;;  %5933 = vmatprep.mubr.msk.f32.mxu0 %vm666_vm0, %v651_v59  ;;  %5964 = vmatprep.mubr.msk.f32.mxu1 %vm666_vm0, %v624_v56 }
  0xd9   : > { %5934 = vmatmul.mubr.msk.f32.gmra.mxu0 %vm666_vm0, %v653_v58 }
  0xda   : > { %v625_v61 = vmax.f32 %v609_v60, 0.0  ;;  %v541_v62 = vpop.permute.xlu0 %540 }
  0xdb   : > { %v571_v63 = vmul.f32 %v7203_v26, %v541_v62  ;;  %v453_v1 = vpop.permute.xlu1 %452 }
  0xdc   : > { %v486_v2 = vmul.f32 %v7198_v25, %v453_v1  ;;  %5965 = vmatmul.mubr.msk.f32.gmra.mxu1 %vm666_vm0, %v625_v61 }
  0xde   : > { %v587_v4 = vadd.f32 %v571_v63, %v486_v2  ;;  %v545_v5 = vpop.permute.xlu0 %544 }
  0xdf   : > { %v572_v6 = vmul.f32 %v7203_v26, %v545_v5  ;;  %v458_v7 = vpop.permute.xlu1 %457 }
  0xe0   : > { %v610_v8 = vadd.f32 %v7212_v33, %v587_v4  ;;  %v487_v9 = vmul.f32 %v7198_v25, %v458_v7 }
  0xe2   : > { %v626_v10 = vmax.f32 %v610_v8, 0.0  ;;  %v588_v11 = vadd.f32 %v572_v6, %v487_v9  ;;  %v657_v12 = vpop.permute.xlu0 %656 }
  0xe3   : > { %v655_v13 = vpop.permute.xlu1 %654 }
  0xe4   : > { %v611_v14 = vadd.f32 %v7212_v33, %v588_v11  ;;  %5936 = vmatprep.mubr.msk.f32.mxu0 %vm666_vm0, %v655_v13  ;;  %5967 = vmatprep.mubr.msk.f32.mxu1 %vm666_vm0, %v626_v10 }
  0xe5   : > { %5937 = vmatmul.mubr.msk.f32.gmra.mxu0 %vm666_vm0, %v657_v12 }
  0xe6   : > { %v627_v15 = vmax.f32 %v611_v14, 0.0  ;;  %v549_v16 = vpop.permute.xlu0 %548 }
  0xe7   : > { %v573_v19 = vmul.f32 %v7203_v26, %v549_v16  ;;  %v463_v20 = vpop.permute.xlu1 %462 }
  0xe8   : > { %v488_v21 = vmul.f32 %v7198_v25, %v463_v20  ;;  %5968 = vmatmul.mubr.msk.f32.gmra.mxu1 %vm666_vm0, %v627_v15 }
  0xea   : > { %v589_v22 = vadd.f32 %v573_v19, %v488_v21  ;;  %v553_v23 = vpop.permute.xlu0 %552 }
  0xeb   : > { %v574_v24 = vmul.f32 %v7203_v26, %v553_v23  ;;  %v468_v27 = vpop.permute.xlu1 %467 }
  0xec   : > { %v612_v28 = vadd.f32 %v7212_v33, %v589_v22  ;;  %v489_v29 = vmul.f32 %v7198_v25, %v468_v27 }
  0xee   : > { %v628_v30 = vmax.f32 %v612_v28, 0.0  ;;  %v590_v31 = vadd.f32 %v574_v24, %v489_v29  ;;  %v661_v32 = vpop.permute.xlu0 %660 }
  0xef   : > { %v659_v34 = vpop.permute.xlu1 %658 }
  0xf0   : > { %v613_v35 = vadd.f32 %v7212_v33, %v590_v31  ;;  %5939 = vmatprep.mubr.msk.f32.mxu0 %vm666_vm0, %v659_v34  ;;  %5970 = vmatprep.mubr.msk.f32.mxu1 %vm666_vm0, %v628_v30 }
  0xf1   : > { %5940 = vmatmul.mubr.msk.f32.gmra.mxu0 %vm666_vm0, %v661_v32 }
  0xf2   : > { %v629_v36 = vmax.f32 %v613_v35, 0.0  ;;  %v665_v37 = vpop.permute.xlu0 %664 }
  0xf3   : > { %v663_v26 = vpop.permute.xlu1 %662 }
  0xf4   : > { %5942 = vmatprep.mubr.msk.f32.mxu0 %vm666_vm0, %v663_v26  ;;  %5971 = vmatmul.mubr.msk.f32.gmra.mxu1 %vm666_vm0, %v629_v36 }
  0xf5   : > { %5943 = vmatmul.mubr.msk.f32.gmra.mxu0 %vm666_vm0, %v665_v37 }
  0xf6   : > { %1149 = vmatprep.mubr.bf16.mxu0 %v10375_v0 }
 0x164   : > { %v5951_v25 = vpop.f32.mrf.mxu1 }
 0x166   : > { %v958_v39 = vpop.f32.mrf.mxu1 }
 0x169   : > { %v5923_v38 = vpop.f32.mrf.mxu0 }
 0x16a   : > { %v964_v33 = vadd.f32 %v5951_v25, %v5923_v38 }
 0x16b   : > { %v765_v41 = vpop.f32.mrf.mxu0 }
 0x16c   : > { %v959_v42 = vadd.f32 %v958_v39, %v765_v41  ;;  %v1045_v43 = vadd.f32 %v7303_v40, %v964_v33  ;;  %v5954_v46 = vpop.f32.mrf.mxu1 }
 0x16e   : > { %v1044_v44 = vadd.f32 %v7303_v40, %v959_v42  ;;  %v968_v49 = vpop.f32.mrf.mxu1 }
 0x170   : > { %v1060_v45 = vpack.c.bf16 %v1045_v43, %v1044_v44 }
 0x172   : > { %5723 = vmatmul.mubr.msk.bf16.vlgmr.msra.gmra.mxu0 %vm1092_vm1, %v1060_v45 }
 0x173   : > { %1159 = vmatprep.mubr.bf16.mxu0 %v10375_v0 }
 0x175   : > { %v5926_v47 = vpop.f32.mrf.mxu0 }
 0x176   : > { %v974_v48 = vadd.f32 %v5954_v46, %v5926_v47 }
 0x177   : > { %v775_v50 = vpop.f32.mrf.mxu0 }
 0x178   : > { %v969_v51 = vadd.f32 %v968_v49, %v775_v50  ;;  %v1047_v52 = vadd.f32 %v7303_v40, %v974_v48  ;;  %v5957_v55 = vpop.f32.mrf.mxu1 }
 0x17a   : > { %v1046_v53 = vadd.f32 %v7303_v40, %v969_v51  ;;  %v978_v58 = vpop.f32.mrf.mxu1  ;;  %v10371_v51 = vmov 2  }
 0x17c   : > { %v1061_v54 = vpack.c.bf16 %v1047_v52, %v1046_v53  ;;  %v10369_v53 = vmov 3  }
 0x17e   : > { %5724 = vmatmul.mubr.msk.bf16.gmra.mxu0 %vm1092_vm1, %v1061_v54 }
 0x17f   : > { %1169 = vmatprep.mubr.bf16.mxu0 %v10375_v0 }
 0x181   : > { %v5929_v56 = vpop.f32.mrf.mxu0 }
 0x182   : > { %v984_v57 = vadd.f32 %v5957_v55, %v5929_v56 }
 0x183   : > { %v785_v59 = vpop.f32.mrf.mxu0 }
 0x184   : > { %v979_v60 = vadd.f32 %v978_v58, %v785_v59  ;;  %v1049_v61 = vadd.f32 %v7303_v40, %v984_v57  ;;  %v5960_v1 = vpop.f32.mrf.mxu1 }
 0x186   : > { %v1048_v62 = vadd.f32 %v7303_v40, %v979_v60  ;;  %v988_v5 = vpop.f32.mrf.mxu1 }
 0x188   : > { %v1062_v63 = vpack.c.bf16 %v1049_v61, %v1048_v62 }
 0x18a   : > { %5725 = vmatmul.mubr.msk.bf16.gmra.mxu0 %vm1092_vm1, %v1062_v63 }
 0x18b   : > { %1179 = vmatprep.mubr.bf16.mxu0 %v10375_v0 }
 0x18d   : > { %v5932_v2 = vpop.f32.mrf.mxu0 }
 0x18e   : > { %v994_v4 = vadd.f32 %v5960_v1, %v5932_v2 }
 0x18f   : > { %v795_v6 = vpop.f32.mrf.mxu0 }
 0x190   : > { %v989_v7 = vadd.f32 %v988_v5, %v795_v6  ;;  %v1051_v8 = vadd.f32 %v7303_v40, %v994_v4  ;;  %v5963_v11 = vpop.f32.mrf.mxu1 }
 0x192   : > { %v1050_v9 = vadd.f32 %v7303_v40, %v989_v7  ;;  %v998_v14 = vpop.f32.mrf.mxu1 }
 0x194   : > { %v1063_v10 = vpack.c.bf16 %v1051_v8, %v1050_v9 }
 0x196   : > { %5726 = vmatmul.mubr.msk.bf16.gmra.mxu0 %vm1092_vm1, %v1063_v10 }
 0x197   : > { %1189 = vmatprep.mubr.bf16.mxu0 %v10375_v0 }
 0x199   : > { %v5935_v12 = vpop.f32.mrf.mxu0 }
 0x19a   : > { %v1004_v13 = vadd.f32 %v5963_v11, %v5935_v12 }
 0x19b   : > { %v805_v15 = vpop.f32.mrf.mxu0 }
 0x19c   : > { %v999_v16 = vadd.f32 %v998_v14, %v805_v15  ;;  %v1053_v17 = vadd.f32 %v7303_v40, %v1004_v13  ;;  %v5966_v20 = vpop.f32.mrf.mxu1 }
 0x19e   : > { %v1052_v18 = vadd.f32 %v7303_v40, %v999_v16  ;;  %v1008_v23 = vpop.f32.mrf.mxu1 }
 0x1a0   : > { %v1064_v19 = vpack.c.bf16 %v1053_v17, %v1052_v18 }
 0x1a2   : > { %5727 = vmatmul.mubr.msk.bf16.gmra.mxu0 %vm1092_vm1, %v1064_v19 }
 0x1a3   : > { %1199 = vmatprep.mubr.bf16.mxu0 %v10375_v0 }
 0x1a5   : > { %v5938_v21 = vpop.f32.mrf.mxu0 }
 0x1a6   : > { %v1014_v22 = vadd.f32 %v5966_v20, %v5938_v21 }
 0x1a7   : > { %v815_v24 = vpop.f32.mrf.mxu0 }
 0x1a8   : > { %v1009_v27 = vadd.f32 %v1008_v23, %v815_v24  ;;  %v1055_v28 = vadd.f32 %v7303_v40, %v1014_v22  ;;  %v5969_v31 = vpop.f32.mrf.mxu1 }
 0x1aa   : > { %v1054_v29 = vadd.f32 %v7303_v40, %v1009_v27  ;;  %v1018_v34 = vpop.f32.mrf.mxu1 }
 0x1ac   : > { %v1065_v30 = vpack.c.bf16 %v1055_v28, %v1054_v29 }
 0x1ae   : > { %5728 = vmatmul.mubr.msk.bf16.gmra.mxu0 %vm1092_vm1, %v1065_v30 }
 0x1af   : > { %1209 = vmatprep.mubr.bf16.mxu0 %v10375_v0 }
 0x1b1   : > { %v5941_v32 = vpop.f32.mrf.mxu0 }
 0x1b2   : > { %v1024_v35 = vadd.f32 %v5969_v31, %v5941_v32 }
 0x1b3   : > { %v825_v36 = vpop.f32.mrf.mxu0 }
 0x1b4   : > { %v1019_v37 = vadd.f32 %v1018_v34, %v825_v36  ;;  %v5972_v26 = vpop.f32.mrf.mxu1  ;;  %v1057_v38 = vadd.f32 %v7303_v40, %v1024_v35 }
 0x1b5   : > { %v5944_v25 = vpop.f32.mrf.mxu0 }
 0x1b6   : > { %v1056_v33 = vadd.f32 %v7303_v40, %v1019_v37  ;;  %v1028_v39 = vpop.f32.mrf.mxu1  ;;  %v1034_v44 = vadd.f32 %v5972_v26, %v5944_v25 }
 0x1b7   : > { %v835_v41 = vpop.f32.mrf.mxu0 }
 0x1b8   : > { %v1066_v42 = vpack.c.bf16 %v1057_v38, %v1056_v33  ;;  %v1029_v43 = vadd.f32 %v1028_v39, %v835_v41  ;;  %v1059_v46 = vadd.f32 %v7303_v40, %v1034_v44 }
 0x1ba   : > { %5729 = vmatmul.mubr.msk.bf16.gmra.mxu0 %vm1092_vm1, %v1066_v42  ;;  %v1058_v45 = vadd.f32 %v7303_v40, %v1029_v43 }
 0x1bb   : > { %1219 = vmatprep.mubr.bf16.mxu0 %v10375_v0 }
 0x1bc   : > { %v1067_v47 = vpack.c.bf16 %v1059_v46, %v1058_v45 }
 0x1c2   : > { %5730 = vmatmul.mubr.msk.bf16.gmra.mxu0 %vm1092_vm1, %v1067_v47 }
 0x232   : > { %v1151_v48 = vpop.f32.mrf.mxu0 }
 0x234   : > { %v1153_v49 = vpop.f32.mrf.mxu0 }
 0x235   : > { %1335 = vperm.xlu0 %6284, %v1153_v49   ;;  %1246 = vrot.lane.b32.xlu1 %v1153_v49, %s7023_s16 }
 0x236   : > { %v1155_v50 = vpop.f32.mrf.mxu0 }
 0x237   : > { %v7342_v56 = vpack.c.bf16 %v1155_v50, %v1151_v48 }
 0x238   : > { %v1157_v52 = vpop.f32.mrf.mxu0 }
 0x239   : > { %6286 = vset.pattern.permute.xlu0 %v10371_v51  ;;  %1764 = vperm.xlu1 %6285, %v1153_v49   ;;  %10504 = vst [vmem:[#allocation6_spill] sm:$0xff] %v7342_v56 }
 0x23a   : > { %2290 = vperm.xlu0 %6286, %v1153_v49  }
 0x23d   : > { %6287 = vset.pattern.permute.xlu1 %v10369_v53 }
 0x23e   : > { %2808 = vperm.xlu1 %6287, %v1153_v49   ;;  %1248 = vrot.lane.b32.xlu0 %v1157_v52, %s7023_s16  ;;  %v1161_v40 = vpop.f32.mrf.mxu0 }
 0x23f   : > { %6288 = vset.pattern.permute.xlu0 %v10375_v0 }
 0x240   : > { %v1163_v54 = vpop.f32.mrf.mxu0 }
 0x242   : > { %6290 = vset.pattern.permute.xlu1 %v10371_v51  ;;  %1339 = vperm.xlu0 %6288, %v1157_v52   ;;  %v1165_v55 = vpop.f32.mrf.mxu0 }
 0x243   : > { %2294 = vperm.xlu1 %6290, %v1157_v52   ;;  %v7360_v2 = vpack.c.bf16 %v1165_v55, %v1161_v40 }
 0x244   : > { %v1167_v57 = vpop.f32.mrf.mxu0 }
 0x245   : > { %10505 = vst [vmem:[#allocation7_spill] sm:$0xff] %v7360_v2 }
 0x246   : > { %6289 = vset.pattern.permute.xlu0 %v10373_v3 }
 0x247   : > { %2071 = vrot.lane.b32.xlu1 %v7342_v56, %s7026_s17  ;;  %1768 = vperm.xlu0 %6289, %v1157_v52  }
 0x248   : > { %6293 = vset.pattern.permute.xlu1 %v10373_v3 }
 0x24a   : > { %v1171_v58 = vpop.f32.mrf.mxu0 }
 0x24b   : > { %6291 = vset.pattern.permute.xlu0 %v10369_v53  ;;  %1250 = vrot.lane.b32.xlu1 %v1163_v54, %s7023_s16 }
 0x24c   : > { %2812 = vperm.xlu0 %6291, %v1157_v52   ;;  %v1173_v59 = vpop.f32.mrf.mxu0 }
 0x24e   : > { %v1175_v60 = vpop.f32.mrf.mxu0 }
 0x24f   : > { %1772 = vperm.xlu1 %6293, %v1163_v54   ;;  %v7385_v14 = vpack.c.bf16 %v1175_v60, %v1171_v58 }
 0x250   : > { %6292 = vset.pattern.permute.xlu0 %v10375_v0  ;;  %v1177_v61 = vpop.f32.mrf.mxu0 }
 0x251   : > { %1343 = vperm.xlu0 %6292, %v1163_v54   ;;  %10506 = vst [vmem:[#allocation8_spill] sm:$0xff] %v7385_v14 }
 0x253   : > { %6294 = vset.pattern.permute.xlu1 %v10371_v51 }
 0x254   : > { %2298 = vperm.xlu1 %6294, %v1163_v54  }
 0x255   : > { %1252 = vrot.lane.b32.xlu0 %v1167_v57, %s7023_s16 }
 0x256   : > { %v7353_v62 = vpop.f32.mrf.mxu0 }
 0x258   : > { %6295 = vset.pattern.permute.xlu1 %v10369_v53  ;;  %v7356_v63 = vpop.f32.mrf.mxu0 }
 0x259   : > { %2816 = vperm.xlu1 %6295, %v1163_v54   ;;  %1347 = vperm.xlu0 %6292, %v1167_v57  }
 0x25a   : > { %v1185_v1 = vpop.f32.mrf.mxu0 }
 0x25b   : > { %v7415_v23 = vpack.c.bf16 %v1185_v1, %v7353_v62 }
 0x25c   : > { %v7362_v4 = vpop.f32.mrf.mxu0 }
 0x25d   : > { %6296 = vset.pattern.permute.xlu1 %v10373_v3  ;;  %6297 = vset.pattern.permute.xlu0 %v10371_v51  ;;  %10507 = vst [vmem:[#allocation9_spill] sm:$0xff] %v7415_v23 }
 0x25e   : > { %1776 = vperm.xlu1 %6296, %v1167_v57   ;;  %2302 = vperm.xlu0 %6297, %v1167_v57  }
 0x262   : > { %6298 = vset.pattern.permute.xlu1 %v10369_v53  ;;  %2073 = vrot.lane.b32.xlu0 %v7360_v2, %s7026_s17  ;;  %v1191_v5 = vpop.f32.mrf.mxu0 }
 0x263   : > { %2820 = vperm.xlu1 %6298, %v1167_v57   ;;  %6299 = vset.pattern.permute.xlu0 %v10375_v0 }
 0x264   : > { %v7368_v6 = vpop.f32.mrf.mxu0 }
 0x266   : > { %1351 = vperm.xlu0 %6299, %v1173_v59   ;;  %v1195_v7 = vpop.f32.mrf.mxu0 }
 0x267   : > { %1254 = vrot.lane.b32.xlu1 %v1173_v59, %s7023_s16  ;;  %v1330_v27 = vpack.c.bf16 %v1195_v7, %v1191_v5 }
 0x268   : > { %6300 = vset.pattern.permute.xlu1 %v10373_v3  ;;  %v7373_v8 = vpop.f32.mrf.mxu0 }
 0x26a   : > { %6301 = vset.pattern.permute.xlu0 %v10371_v51 }
 0x26b   : > { %2306 = vperm.xlu0 %6301, %v1173_v59   ;;  %1780 = vperm.xlu1 %6300, %v1173_v59  }
 0x26e   : > { %v1201_v9 = vpop.f32.mrf.mxu0 }
 0x26f   : > { %6302 = vset.pattern.permute.xlu1 %v10369_v53  ;;  %1256 = vrot.lane.b32.xlu0 %v1177_v61, %s7023_s16 }
 0x270   : > { %2824 = vperm.xlu1 %6302, %v1173_v59   ;;  %v7377_v10 = vpop.f32.mrf.mxu0  ;;  %6303 = vset.pattern.permute.xlu0 %v10375_v0 }
 0x272   : > { %v1205_v11 = vpop.f32.mrf.mxu0 }
 0x273   : > { %1355 = vperm.xlu0 %6303, %v1177_v61   ;;  %v7418_v24 = vpack.c.bf16 %v1205_v11, %v1201_v9 }
 0x274   : > { %6304 = vset.pattern.permute.xlu1 %v10373_v3  ;;  %v7382_v12 = vpop.f32.mrf.mxu0 }
 0x275   : > { %1784 = vperm.xlu1 %6304, %v1177_v61  }
 0x277   : > { %6306 = vset.pattern.permute.xlu0 %v10369_v53 }
 0x278   : > { %2828 = vperm.xlu0 %6306, %v1177_v61  }
 0x279   : > { %6305 = vset.pattern.permute.xlu1 %v10371_v51 }
 0x27a   : > { %2310 = vperm.xlu1 %6305, %v1177_v61   ;;  %v1211_v13 = vpop.f32.mrf.mxu0 }
 0x27c   : > { %6307 = vset.pattern.permute.xlu0 %v10375_v0  ;;  %v7388_v15 = vpop.f32.mrf.mxu0 }
 0x27d   : > { %1359 = vperm.xlu0 %6307, %v7356_v63  }
 0x27e   : > { %2075 = vrot.lane.b32.xlu1 %v7385_v14, %s7026_s17  ;;  %v1215_v16 = vpop.f32.mrf.mxu0 }
 0x27f   : > { %6308 = vset.pattern.permute.xlu1 %v10373_v3  ;;  %v7408_v22 = vpack.c.bf16 %v1215_v16, %v1211_v13 }
 0x280   : > { %v7394_v17 = vpop.f32.mrf.mxu0 }
 0x281   : > { %1260 = vrot.lane.b32.xlu0 %v7362_v4, %s7023_s16 }
 0x282   : > { %1258 = vrot.lane.b32.xlu1 %v7356_v63, %s7023_s16  ;;  %v1221_v18 = vpop.f32.mrf.mxu0 }
 0x284   : > { %v7400_v19 = vpop.f32.mrf.mxu0 }
 0x285   : > { %1363 = vperm.xlu0 %6307, %v7362_v4  }
 0x286   : > { %1788 = vperm.xlu1 %6308, %v7356_v63   ;;  %v1225_v20 = vpop.f32.mrf.mxu0 }
 0x287   : > { %v7404_v21 = vpack.c.bf16 %v1225_v20, %v1221_v18 }
 0x288   : > { %v1227_v61 = vpop.f32.mrf.mxu0 }
 0x289   : > { %6312 = vset.pattern.permute.xlu0 %v10371_v51  ;;  %5973 = vmatprep.subr.bf16.mxu1 %v7404_v21 }
 0x28a   : > { %6309 = vset.pattern.permute.xlu1 %v10371_v51  ;;  %2318 = vperm.xlu0 %6312, %v7362_v4  }
 0x28b   : > { %5974 = vmatpush3.bf16.msra.mxu1 %v7404_v21  ;;  %2314 = vperm.xlu1 %6309, %v7356_v63  }
 0x28c   : > { %5975 = vmatprep.subr.bf16.mxu1 %v7408_v22 }
 0x28e   : > { %2595 = vrot.lane.b32.xlu0 %v7415_v23, %s10441_s23 }
 0x28f   : > { %5976 = vmatpush3.bf16.msra.mxu1 %v7408_v22  ;;  %6310 = vset.pattern.permute.xlu1 %v10369_v53 }
 0x290   : > { %5977 = vmatprep.subr.bf16.mxu1 %v7418_v24  ;;  %2832 = vperm.xlu1 %6310, %v7356_v63  }
 0x291   : > { %6314 = vset.pattern.permute.xlu0 %v10375_v0 }
 0x292   : > { %1367 = vperm.xlu0 %6314, %v7368_v6  }
 0x293   : > { %5978 = vmatpush3.bf16.msra.mxu1 %v7418_v24 }
 0x294   : > { %5979 = vmatprep.subr.bf16.mxu1 %v1330_v27  ;;  %6311 = vset.pattern.permute.xlu1 %v10373_v3 }
 0x295   : > { %1792 = vperm.xlu1 %6311, %v7362_v4  }
 0x296   : > { %6316 = vset.pattern.permute.xlu0 %v10371_v51 }
 0x297   : > { %5980 = vmatpush3.bf16.msra.mxu1 %v1330_v27  ;;  %2322 = vperm.xlu0 %6316, %v7368_v6  }
 0x298   : > { %5981 = vmatprep.subr.bf16.mxu1 %v7415_v23 }
 0x299   : > { %6313 = vset.pattern.permute.xlu1 %v10369_v53 }
 0x29a   : > { %2836 = vperm.xlu1 %6313, %v7362_v4  }
 0x29b   : > { %5982 = vmatpush3.bf16.msra.mxu1 %v7415_v23  ;;  %1264 = vrot.lane.b32.xlu0 %v7373_v8, %s7023_s16 }
 0x29c   : > { %5983 = vmatprep.subr.bf16.mxu1 %v7385_v14  ;;  %6318 = vset.pattern.permute.xlu0 %v10375_v0 }
 0x29e   : > { %2077 = vrot.lane.b32.xlu1 %v7415_v23, %s7026_s17 }
 0x29f   : > { %5984 = vmatpush3.bf16.msra.mxu1 %v7385_v14  ;;  %1371 = vperm.xlu0 %6318, %v7373_v8  }
 0x2a0   : > { %5985 = vmatprep.subr.bf16.mxu1 %v7360_v2  ;;  %6315 = vset.pattern.permute.xlu1 %v10373_v3 }
 0x2a2   : > { %1262 = vrot.lane.b32.xlu1 %v7368_v6, %s7023_s16 }
 0x2a3   : > { %5986 = vmatpush3.bf16.msra.mxu1 %v7360_v2  ;;  %6321 = vset.pattern.permute.xlu0 %v10369_v53 }
 0x2a4   : > { %5987 = vmatprep.subr.bf16.mxu1 %v7342_v56  ;;  %2844 = vperm.xlu0 %6321, %v7373_v8  }
 0x2a6   : > { %1796 = vperm.xlu1 %6315, %v7368_v6  }
 0x2a7   : > { %5988 = vmatpush3.bf16.msra.mxu1 %v7342_v56  ;;  %v7461_v28 = vpop.permute.xlu1 %1246 }
 0x2a8   : > { %2079 = vrot.lane.b32.xlu0 %v1330_v27, %s7026_s17 }
 0x2a9   : > { %6322 = vset.pattern.permute.xlu0 %v10375_v0 }
 0x2aa   : > { %6317 = vset.pattern.permute.xlu1 %v10369_v53 }
 0x2ab   : > { %2840 = vperm.xlu1 %6317, %v7368_v6  }
 0x2ac   : > { %3115 = vrot.lane.b32.xlu0 %v1330_v27, %s7028_s24 }
 0x2af   : > { %6319 = vset.pattern.permute.xlu1 %v10373_v3 }
 0x2b0   : > { %v7463_v29 = vpop.permute.xlu0 %1335  ;;  %1800 = vperm.xlu1 %6319, %v7373_v8   ;;  %1375 = vperm.xlu0 %6322, %v7377_v10  }
 0x2b4   : > { %v7467_v30 = vpop.permute.xlu1 %1764  ;;  %6320 = vset.pattern.permute.xlu1 %v10371_v51  ;;  %6323 = vset.pattern.permute.xlu0 %v10373_v3 }
 0x2b5   : > { %v7471_v31 = vpop.permute.xlu0 %2290  ;;  %2326 = vperm.xlu1 %6320, %v7373_v8   ;;  %1804 = vperm.xlu0 %6323, %v7377_v10  }
 0x2b6   : > { %10508 = vst [vmem:[#allocation10_spill] sm:$0xff] %v7471_v31  ;;  %v7758_v31 = vld [vmem:[%s7718_s25 + $0x10] sm:$0xff] }
 0x2b9   : > { %v7475_v32 = vpop.permute.xlu1 %2808  ;;  %v7477_v34 = vpop.permute.xlu0 %1248  ;;  %2597 = vrot.lane.b32.xlu1 %v1330_v27, %s10441_s23  ;;  %1268 = vrot.lane.b32.xlu0 %v7382_v12, %s7023_s16 }
 0x2ba   : > { %10509 = vst [vmem:[#allocation11_spill] sm:$0xff] %v7475_v32  ;;  %6325 = vset.pattern.permute.xlu0 %v10375_v0 }
 0x2bd   : > { %v7483_v35 = vpop.permute.xlu0 %1339  ;;  %1266 = vrot.lane.b32.xlu1 %v7377_v10, %s7023_s16  ;;  %1379 = vperm.xlu0 %6325, %v7382_v12  }
 0x2be   : > { %v7488_v36 = vpop.permute.xlu1 %2294 }
 0x2c1   : > { %2330 = vperm.xlu1 %6320, %v7377_v10   ;;  %6327 = vset.pattern.permute.xlu0 %v10371_v51 }
 0x2c2   : > { %v7492_v37 = vpop.permute.xlu1 %2071  ;;  %v7494_v26 = vpop.permute.xlu0 %1768  ;;  %2334 = vperm.xlu0 %6327, %v7382_v12  }
 0x2c3   : > { %10510 = vst [vmem:[#allocation12_spill] sm:$0xff] %v7492_v37 }
 0x2c5   : > { %6324 = vset.pattern.permute.xlu1 %v10369_v53 }
 0x2c6   : > { %v7498_v25 = vpop.permute.xlu1 %1250  ;;  %2848 = vperm.xlu1 %6324, %v7377_v10   ;;  %2081 = vrot.lane.b32.xlu0 %v7418_v24, %s7026_s17 }
 0x2c7   : > { %v7503_v38 = vpop.permute.xlu0 %2812  ;;  %6329 = vset.pattern.permute.xlu0 %v10375_v0 }
 0x2ca   : > { %v7506_v33 = vpop.permute.xlu1 %1772  ;;  %6326 = vset.pattern.permute.xlu1 %v10373_v3  ;;  %2599 = vrot.lane.b32.xlu0 %v7418_v24, %s10441_s23 }
 0x2cb   : > { %1808 = vperm.xlu1 %6326, %v7382_v12  }
 0x2cc   : > { %v7512_v39 = vpop.permute.xlu0 %1343 }
 0x2ce   : > { %3117 = vrot.lane.b32.xlu0 %v7418_v24, %s7028_s24 }
 0x2cf   : > { %v7516_v41 = vpop.permute.xlu1 %2298  ;;  %6328 = vset.pattern.permute.xlu1 %v10369_v53 }
 0x2d0   : > { %10511 = vst [vmem:[#allocation13_spill] sm:$0xff] %v7516_v41  ;;  %v7519_v42 = vpop.permute.xlu0 %1252  ;;  %2852 = vperm.xlu1 %6328, %v7382_v12  }
 0x2d2   : > { %1383 = vperm.xlu0 %6329, %v7388_v15  }
 0x2d4   : > { %v7523_v43 = vpop.permute.xlu1 %2816  ;;  %v7525_v44 = vpop.permute.xlu0 %1347  ;;  %1270 = vrot.lane.b32.xlu1 %v7388_v15, %s7023_s16 }
 0x2d5   : > { %10512 = vst [vmem:[#allocation14_spill] sm:$0xff] %v7523_v43  ;;  %6331 = vset.pattern.permute.xlu1 %v10371_v51 }
 0x2d6   : > { %6330 = vset.pattern.permute.xlu0 %v10373_v3 }
 0x2d7   : > { %1812 = vperm.xlu0 %6330, %v7388_v15  }
 0x2d8   : > { %2338 = vperm.xlu1 %6331, %v7388_v15  }
 0x2d9   : > { %v7533_v45 = vpop.permute.xlu1 %1776  ;;  %v7535_v46 = vpop.permute.xlu0 %2302 }
 0x2db   : > { %1272 = vrot.lane.b32.xlu0 %v7394_v17, %s7023_s16 }
 0x2dc   : > { %6332 = vset.pattern.permute.xlu1 %v10369_v53  ;;  %6333 = vset.pattern.permute.xlu0 %v10375_v0 }
 0x2dd   : > { %v7541_v47 = vpop.permute.xlu0 %2073  ;;  %2856 = vperm.xlu1 %6332, %v7388_v15  }
 0x2de   : > { %10513 = vst [vmem:[#allocation15_spill] sm:$0xff] %v7541_v47  ;;  %v7544_v48 = vpop.permute.xlu1 %2820 }
 0x2df   : > { %1387 = vperm.xlu0 %6333, %v7394_v17  }
 0x2e1   : > { %v7547_v49 = vpop.permute.xlu0 %1351  ;;  %6334 = vset.pattern.permute.xlu1 %v10373_v3 }
 0x2e2   : > { %v7550_v50 = vpop.permute.xlu1 %1254  ;;  %1816 = vperm.xlu1 %6334, %v7394_v17  }
 0x2e3   : > { %6335 = vset.pattern.permute.xlu0 %v10371_v51 }
 0x2e4   : > { %2342 = vperm.xlu0 %6335, %v7394_v17  }
 0x2e6   : > { %v7555_v52 = vpop.permute.xlu0 %2306  ;;  %v7557_v40 = vpop.permute.xlu1 %1780  ;;  %6336 = vset.pattern.permute.xlu1 %v10369_v53 }
 0x2e7   : > { %10514 = vst [vmem:[#allocation16_spill] sm:$0xff] %v7555_v52  ;;  %2860 = vperm.xlu1 %6336, %v7394_v17  }
 0x2e8   : > { %2601 = vrot.lane.b32.xlu0 %v7408_v22, %s10441_s23 }
 0x2e9   : > { %6337 = vset.pattern.permute.xlu0 %v10375_v0 }
 0x2ea   : > { %v7564_v54 = vpop.permute.xlu0 %1256 }
 0x2eb   : > { %v7566_v55 = vpop.permute.xlu1 %2824  ;;  %2083 = vrot.lane.b32.xlu1 %v7408_v22, %s7026_s17 }
 0x2ec   : > { %10515 = vst [vmem:[#allocation17_spill] sm:$0xff] %v7566_v55  ;;  %3119 = vrot.lane.b32.xlu0 %v7408_v22, %s7028_s24  ;;  %6339 = vset.pattern.permute.xlu1 %v10371_v51 }
 0x2ee   : > { %v7573_v57 = vpop.permute.xlu0 %1355 }
 0x2ef   : > { %1274 = vrot.lane.b32.xlu1 %v7400_v19, %s7023_s16 }
 0x2f0   : > { %v7577_v58 = vpop.permute.xlu1 %1784  ;;  %1391 = vperm.xlu0 %6337, %v7400_v19  }
 0x2f3   : > { %v7580_v59 = vpop.permute.xlu0 %2828  ;;  %2346 = vperm.xlu1 %6339, %v7400_v19  }
 0x2f4   : > { %6338 = vset.pattern.permute.xlu0 %v10373_v3 }
 0x2f5   : > { %v7584_v60 = vpop.permute.xlu1 %2310  ;;  %1820 = vperm.xlu0 %6338, %v7400_v19  }
 0x2f7   : > { %6340 = vset.pattern.permute.xlu1 %v10369_v53 }
 0x2f8   : > { %v7588_v62 = vpop.permute.xlu0 %1359  ;;  %2864 = vperm.xlu1 %6340, %v7400_v19  }
 0x2f9   : > { %v7591_v63 = vpop.permute.xlu1 %2075  ;;  %1276 = vrot.lane.b32.xlu0 %v1227_v61, %s7023_s16 }
 0x2fa   : > { %10516 = vst [vmem:[#allocation18_spill] sm:$0xff] %v7591_v63  ;;  %6341 = vset.pattern.permute.xlu0 %v10375_v0 }
 0x2fc   : > { %v1261_v1 = vpop.permute.xlu0 %1260  ;;  %6342 = vset.pattern.permute.xlu1 %v10373_v3 }
 0x2fd   : > { %v1259_v4 = vpop.permute.xlu1 %1258  ;;  %1824 = vperm.xlu1 %6342, %v1227_v61   ;;  %1395 = vperm.xlu0 %6341, %v1227_v61  }
 0x300   : > { %v7596_v5 = vpop.permute.xlu0 %1363 }
 0x301   : > { %v7598_v6 = vpop.permute.xlu1 %1788  ;;  %6343 = vset.pattern.permute.xlu1 %v10371_v51  ;;  %2085 = vrot.lane.b32.xlu0 %v7404_v21, %s7026_s17 }
 0x302   : > { %2350 = vperm.xlu1 %6343, %v1227_v61  }
 0x305   : > { %v7603_v7 = vpop.permute.xlu0 %2318  ;;  %2603 = vrot.lane.b32.xlu0 %v7404_v21, %s10441_s23 }
 0x306   : > { %v7607_v8 = vpop.permute.xlu1 %2314  ;;  %6344 = vset.pattern.permute.xlu1 %v10369_v53 }
 0x307   : > { %10517 = vst [vmem:[#allocation19_spill] sm:$0xff] %v7607_v8  ;;  %2868 = vperm.xlu1 %6344, %v1227_v61   ;;  %v7738_v8 = vld [vmem:[%s7718_s25 + $0x8] sm:$0xff] }
 0x309   : > { %v7610_v9 = vpop.permute.xlu0 %2595 }
 0x30b   : > { %v7612_v10 = vpop.permute.xlu1 %2832  ;;  %3121 = vrot.lane.b32.xlu1 %v7404_v21, %s7028_s24 }
 0x30c   : > { %10518 = vst [vmem:[#allocation20_spill] sm:$0xff] %v7612_v10 }
 0x30d   : > { %v7616_v11 = vpop.permute.xlu0 %1367 }
 0x310   : > { %v7618_v12 = vpop.permute.xlu1 %1792 }
 0x312   : > { %v7620_v13 = vpop.permute.xlu0 %2322 }
 0x313   : > { %10519 = vst [vmem:[#allocation21_spill] sm:$0xff] %v7620_v13 }
 0x315   : > { %v7622_v15 = vpop.permute.xlu1 %2836 }
 0x316   : > { %v1265_v16 = vpop.permute.xlu0 %1264 }
 0x319   : > { %v7624_v17 = vpop.permute.xlu1 %2077 }
 0x31a   : > { %10520 = vst [vmem:[#allocation22_spill] sm:$0xff] %v7624_v17  ;;  %v7626_v18 = vpop.permute.xlu0 %1371 }
 0x31d   : > { %v1263_v19 = vpop.permute.xlu1 %1262 }
 0x31f   : > { %v7628_v20 = vpop.permute.xlu0 %2844 }
 0x321   : > { %v7630_v22 = vpop.permute.xlu1 %1796 }
 0x323   : > { %v7632_v24 = vpop.permute.xlu0 %2079 }
 0x324   : > { %10521 = vst [vmem:[#allocation23_spill] sm:$0xff] %v7632_v24 }
 0x326   : > { %v7634_v21 = vpop.permute.xlu1 %2840 }
 0x327   : > { %10522 = vst [vmem:[#allocation24_spill] sm:$0xff] %v7634_v21  ;;  %v7636_v27 = vpop.permute.xlu0 %3115 }
 0x328   : > { %10523 = vst [vmem:[#allocation25_spill] sm:$0xff] %v7636_v27 }
 0x32b   : > { %v7638_v61 = vpop.permute.xlu1 %1800  ;;  %v7640_v53 = vpop.permute.xlu0 %1375 }
 0x330   : > { %v7642_v51 = vpop.permute.xlu1 %2326  ;;  %v7644_v3 = vpop.permute.xlu0 %1804 }
 0x334   : > { %v2598_v0 = vpop.permute.xlu1 %2597  ;;  %v1269_v37 = vpop.permute.xlu0 %1268  ;;  %1294 = vxpose.xlu1.b32.start [1/16] (narrow) %v7461_v28, 8 }
 0x338   : > { %v1267_v47 = vpop.permute.xlu1 %1266  ;;  %v7647_v63 = vpop.permute.xlu0 %1379  ;;  %1295 = vxpose.xlu1.b32.cont [2/16] (narrow) %v7477_v34, 8 }
 0x33c   : > { %v7650_v17 = vpop.permute.xlu1 %2330  ;;  %1296 = vxpose.xlu1.b32.cont [3/16] (narrow) %v7498_v25, 8 }
 0x33d   : > { %10524 = vst [vmem:[#allocation26_spill] sm:$0xff] %v7650_v17  ;;  %v7653_v27 = vpop.permute.xlu0 %2334 }
 0x340   : > { %1297 = vxpose.xlu1.b32.cont [4/16] (narrow) %v7519_v42, 8 }
 0x341   : > { %v7656_v24 = vpop.permute.xlu1 %2848  ;;  %v7658_v56 = vpop.permute.xlu0 %2081 }
 0x342   : > { %10525 = vst [vmem:[#allocation27_spill] sm:$0xff] %v7656_v24  ;;  %10526 = vst [vmem:[#allocation28_spill] sm:$0xff] %v7658_v56 }
 0x344   : > { %1298 = vxpose.xlu1.b32.cont [5/16] (narrow) %v7550_v50, 8 }
 0x345   : > { %v2600_v28 = vpop.permute.xlu0 %2599 }
 0x346   : > { %v7661_v2 = vpop.permute.xlu1 %1808 }
 0x348   : > { %1299 = vxpose.xlu1.b32.cont [6/16] (narrow) %v7564_v54, 8 }
 0x349   : > { %v7664_v34 = vpop.permute.xlu0 %3117 }
 0x34a   : > { %10527 = vst [vmem:[#allocation29_spill] sm:$0xff] %v7664_v34 }
 0x34b   : > { %v7666_v14 = vpop.permute.xlu1 %2852 }
 0x34c   : > { %1300 = vxpose.xlu1.b32.cont [7/16] (narrow) %v1259_v4, 8 }
 0x34d   : > { %v1384_v25 = vpop.permute.xlu0 %1383 }
 0x34f   : > { %v1271_v23 = vpop.permute.xlu1 %1270 }
 0x350   : > { %1301 = vxpose.xlu1.b32.cont [8/16] (narrow) %v1261_v1, 8 }
 0x352   : > { %v7668_v42 = vpop.permute.xlu0 %1812 }
 0x353   : > { %v7670_v24 = vpop.permute.xlu1 %2338 }
 0x354   : > { %10528 = vst [vmem:[#allocation30_spill] sm:$0xff] %v7670_v24  ;;  %1302 = vxpose.xlu1.b32.cont [9/16] (narrow) %v1263_v19, 8 }
 0x356   : > { %v1273_v56 = vpop.permute.xlu0 %1272 }
 0x358   : > { %v7672_v50 = vpop.permute.xlu1 %2856  ;;  %1303 = vxpose.xlu1.b32.cont [10/16] (narrow) %v1265_v16, 8 }
 0x359   : > { %10529 = vst [vmem:[#allocation31_spill] sm:$0xff] %v7672_v50 }
 0x35a   : > { %v7674_v21 = vpop.permute.xlu0 %1387 }
 0x35c   : > { %1304 = vxpose.xlu1.b32.cont [11/16] (narrow) %v1267_v47, 8 }
 0x35d   : > { %v7676_v54 = vpop.permute.xlu1 %1816 }
 0x35f   : > { %v7678_v34 = vpop.permute.xlu0 %2342 }
 0x360   : > { %10530 = vst [vmem:[#allocation32_spill] sm:$0xff] %v7678_v34  ;;  %1305 = vxpose.xlu1.b32.cont [12/16] (narrow) %v1269_v37, 8 }
 0x362   : > { %v7680_v4 = vpop.permute.xlu1 %2860 }
 0x363   : > { %10531 = vst [vmem:[#allocation33_spill] sm:$0xff] %v7680_v4  ;;  %v2602_v1 = vpop.permute.xlu0 %2601  ;;  %v7755_v4 = vld [vmem:[%s7718_s25 + $0x60] sm:$0xff] }
 0x364   : > { %1306 = vxpose.xlu1.b32.cont [13/16] (narrow) %v1271_v23, 8 }
 0x366   : > { %v7682_v17 = vpop.permute.xlu1 %2083 }
 0x367   : > { %10532 = vst [vmem:[#allocation34_spill] sm:$0xff] %v7682_v17  ;;  %v7684_v24 = vpop.permute.xlu0 %3119 }
 0x368   : > { %10533 = vst [vmem:[#allocation35_spill] sm:$0xff] %v7684_v24  ;;  %1307 = vxpose.xlu1.b32.cont [14/16] (narrow) %v1273_v56, 8 }
 0x36a   : > { %v1275_v19 = vpop.permute.xlu1 %1274 }
 0x36b   : > { %v1392_v50 = vpop.permute.xlu0 %1391 }
 0x36c   : > { %1308 = vxpose.xlu1.b32.cont [15/16] (narrow) %v1275_v19, 8 }
 0x36e   : > { %v7695_v56 = vpop.permute.xlu1 %2346 }
 0x36f   : > { %10535 = vst [vmem:[#allocation37_spill] sm:$0xff] %v7695_v56 }
 0x370   : > { %v7686_v16 = vpop.permute.xlu0 %1820 }
 0x373   : > { %v7697_v23 = vpop.permute.xlu1 %2864 }
 0x374   : > { %v1277_v47 = vpop.permute.xlu0 %1276  ;;  %10536 = vst [vmem:[#allocation38_spill] sm:$0xff] %v7697_v23 }
 0x375   : > { %1309 = vxpose.xlu1.b32.end [16/16] (narrow) %v1277_v47, 8 }
 0x378   : > { %v7688_v13 = vpop.permute.xlu0 %1395  ;;  %v7699_v19 = vpop.permute.xlu1 %1824 }
 0x37c   : > { %v7690_v10 = vpop.permute.xlu0 %2085 }
 0x37d   : > { %10534 = vst [vmem:[#allocation36_spill] sm:$0xff] %v7690_v10  ;;  %6005 = vmatprep.subr.bf16.mxu1 %v7690_v10  ;;  %v7701_v47 = vpop.permute.xlu1 %2350 }
 0x37e   : > { %10537 = vst [vmem:[#allocation39_spill] sm:$0xff] %v7701_v47 }
 0x380   : > { %v2604_v37 = vpop.permute.xlu0 %2603 }
 0x381   : > { %6037 = vmatprep.subr.bf16.mxu0 %v2604_v37 }
 0x382   : > { %6038 = vmatpush3.bf16.msra.mxu0 %v2604_v37  ;;  %v1398_v37 = vlaneseq  ;;  %v7703_v24 = vpop.permute.xlu1 %2868 }
 0x383   : > { %6039 = vmatprep.subr.bf16.mxu0 %v2602_v1  ;;  %10538 = vst [vmem:[#allocation40_spill] sm:$0xff] %v7703_v24 }
 0x386   : > { %6040 = vmatpush3.bf16.msra.mxu0 %v2602_v1  ;;  %v7705_v1 = vshrl.u32 %v1398_v37, 7 }
 0x387   : > { %6041 = vmatprep.subr.bf16.mxu0 %v2600_v28 }
 0x388   : > { %10539 = vst [vmem:[#allocation41_spill] sm:$0xff] %v7705_v1  ;;  %v10397_v17 = vsub.s32 1, %v7705_v1 }
 0x38a   : > { %6042 = vmatpush3.bf16.msra.mxu0 %v2600_v28  ;;  %v7707_v28 = vpop.permute.xlu1 %3121 }
 0x38b   : > { %6043 = vmatprep.subr.bf16.mxu0 %v2598_v0  ;;  %10540 = vst [vmem:[#allocation42_spill] sm:$0xff] %v7707_v28 }
 0x38e   : > { %6044 = vmatpush3.bf16.msra.mxu0 %v2598_v0  ;;  %v10396_v0 = vsub.s32 0, %v7705_v1 }
 0x38f   : > { %6045 = vmatprep.subr.bf16.mxu0 %v7610_v9 }
 0x392   : > { %6046 = vmatpush3.bf16.msra.mxu0 %v7610_v9 }
 0x3b5   : > { %v7711_v9 = vpop.trf.xlu1 }
 0x3b6   : > { %v7723_v37 = vrot.slane %v7711_v9, %v10396_v0  ;;  %v7728_v28 = vrot.slane %v7711_v9, %v10397_v17  ;;  %v7741_v0 = vld [vmem:[%s7718_s25] sm:$0xff] }
 0x3b8   : > { %v1403_v10 = vadd.f32 %v7723_v37, %v7483_v35  ;;  %v1402_v23 = vadd.f32 %v7723_v37, %v7463_v29  ;;  %v1414_v56 = vadd.f32 %v7723_v37, %v1384_v25  ;;  %v1404_v55 = vadd.f32 %v7723_v37, %v7512_v39 }
 0x3b9   : > { %v1416_v52 = vadd.f32 %v7723_v37, %v1392_v50  ;;  %v1405_v17 = vadd.f32 %v7723_v37, %v7525_v44  ;;  %v1832_v32 = vadd.f32 %v7728_v28, %v7494_v26 }
 0x3ba   : > { %vm1419_vm2 = vcmp.gt.f32.partialorder %v1403_v10, 0.0  ;;  %v1435_v35 = vmul.f32 0.2, %v1403_v10  ;;  %vm1418_vm3 = vcmp.gt.f32.partialorder %v1402_v23, 0.0  ;;  %v1434_v29 = vmul.f32 0.2, %v1402_v23 }
 0x3bb   : > { %vm1430_vm4 = vcmp.gt.f32.partialorder %v1414_v56, 0.0  ;;  %v1446_v25 = vmul.f32 0.2, %v1414_v56  ;;  %vm1420_vm5 = vcmp.gt.f32.partialorder %v1404_v55, 0.0  ;;  %v1436_v43 = vmul.f32 0.2, %v1404_v55 }
 0x3bc   : > { %v1451_v39 = vsel %vm1419_vm2, %v1403_v10, %v1435_v35  ;;  %v1450_v24 = vsel %vm1418_vm3, %v1402_v23, %v1434_v29  ;;  %v1448_v47 = vmul.f32 0.2, %v1416_v52  ;;  %vm1432_vm6 = vcmp.gt.f32.partialorder %v1416_v52, 0.0  ;;  %v7771_v23 = vld [vmem:[%s7718_s25 + $0x70] sm:$0xff] }
 0x3bd   : > { %v7749_v50 = vadd.f32 %v1451_v39, %v7738_v8  ;;  %v7752_v44 = vadd.f32 %v1450_v24, %v7741_v0  ;;  %v1462_v41 = vsel %vm1430_vm4, %v1414_v56, %v1446_v25  ;;  %v1452_v34 = vsel %vm1420_vm5, %v1404_v55, %v1436_v43  ;;  %v7776_v55 = vld [vmem:[%s7718_s25 + $0x18] sm:$0xff]  ;;  %v7791_v39 = vld [vmem:[%s7718_s25 + $0x20] sm:$0xff] }
 0x3be   : > { %v1406_v10 = vadd.f32 %v7723_v37, %v7547_v49  ;;  %vm1421_vm7 = vcmp.gt.f32.partialorder %v1405_v17, 0.0  ;;  %v1437_v26 = vmul.f32 0.2, %v1405_v17  ;;  %v7765_v24 = vadd.f32 %v1462_v41, %v7755_v4 }
 0x3bf   : > { %1484 = vmax.xlane.f32.xlu1 %v7749_v50  ;;  %1482 = vmax.xlane.f32.xlu0 %v7752_v44  ;;  %v7768_v56 = vadd.f32 %v1452_v34, %v7758_v31  ;;  %v1464_v35 = vsel %vm1432_vm6, %v1416_v52, %v1448_v47  ;;  %v1864_v43 = vmul.f32 0.2, %v1832_v32  ;;  %v1835_v49 = vadd.f32 %v7728_v28, %v7557_v40 }
 0x3c0   : > { %10541 = vst [vmem:[#allocation43_spill] sm:$0xff] %v7765_v24  ;;  %v1453_v29 = vsel %vm1421_vm7, %v1405_v17, %v1437_v26  ;;  %vm1848_vm8 = vcmp.gt.f32.partialorder %v1832_v32, 0.0  ;;  %v1438_v25 = vmul.f32 0.2, %v1406_v10  ;;  %v1407_v41 = vadd.f32 %v7723_v37, %v7573_v57 }
 0x3c1   : > { %vm1422_vm9 = vcmp.gt.f32.partialorder %v1406_v10, 0.0  ;;  %v7783_v52 = vadd.f32 %v1464_v35, %v7771_v23  ;;  %v7786_v34 = vadd.f32 %v1453_v29, %v7776_v55  ;;  %v1880_v40 = vsel %vm1848_vm8, %v1832_v32, %v1864_v43  ;;  %v7806_v29 = vld [vmem:[%s7718_s25 + $0x28] sm:$0xff] }
 0x3c2   : > { %v1867_v47 = vmul.f32 0.2, %v1835_v49  ;;  %v1837_v17 = vadd.f32 %v7728_v28, %v7598_v6  ;;  %v1454_v57 = vsel %vm1422_vm9, %v1406_v10, %v1438_v25  ;;  %vm1851_vm10 = vcmp.gt.f32.partialorder %v1835_v49, 0.0 }
 0x3c3   : > { %1506 = vmax.xlane.f32.xlu1 %v7765_v24  ;;  %1486 = vmax.xlane.f32.xlu0 %v7768_v56  ;;  %10542 = vst [vmem:[#allocation44_spill] sm:$0xff] %v7783_v52  ;;  %v1439_v26 = vmul.f32 0.2, %v1407_v41  ;;  %v1408_v24 = vadd.f32 %v7723_v37, %v7588_v62  ;;  %vm1423_vm11 = vcmp.gt.f32.partialorder %v1407_v41, 0.0  ;;  %v7798_v32 = vadd.f32 %v1880_v40, %v7738_v8 }
 0x3c4   : > { %v7801_v35 = vadd.f32 %v1454_v57, %v7791_v39  ;;  %v1883_v6 = vsel %vm1851_vm10, %v1835_v49, %v1867_v47  ;;  %v1869_v43 = vmul.f32 0.2, %v1837_v17  ;;  %v1839_v10 = vadd.f32 %v7728_v28, %v7630_v22  ;;  %v7819_v22 = vld [vmem:[%s7718_s25 + $0x30] sm:$0xff] }
 0x3c5   : > { %10543 = vst [vmem:[#allocation45_spill] sm:$0xff] %v7798_v32  ;;  %v1455_v62 = vsel %vm1423_vm11, %v1407_v41, %v1439_v26  ;;  %vm1853_vm12 = vcmp.gt.f32.partialorder %v1837_v17, 0.0  ;;  %v1440_v25 = vmul.f32 0.2, %v1408_v24  ;;  %vm1424_vm13 = vcmp.gt.f32.partialorder %v1408_v24, 0.0 }
 0x3c6   : > { %v7813_v40 = vadd.f32 %v1883_v6, %v7791_v39  ;;  %v7816_v49 = vadd.f32 %v1455_v62, %v7806_v29  ;;  %v1885_v47 = vsel %vm1853_vm12, %v1837_v17, %v1869_v43  ;;  %v1871_v41 = vmul.f32 0.2, %v1839_v10 }
 0x3c7   : > { %1510 = vmax.xlane.f32.xlu1 %v7783_v52  ;;  %1488 = vmax.xlane.f32.xlu0 %v7786_v34  ;;  %v1409_v52 = vadd.f32 %v7723_v37, %v7596_v5  ;;  %v1842_v5 = vadd.f32 %v7728_v28, %v7661_v2  ;;  %v1456_v57 = vsel %vm1424_vm13, %v1408_v24, %v1440_v25  ;;  %vm1855_vm14 = vcmp.gt.f32.partialorder %v1839_v10, 0.0  ;;  %v7840_v25 = vld [vmem:[%s7718_s25 + $0x38] sm:$0xff] }
 0x3c8   : > { %10544 = vst [vmem:[#allocation46_spill] sm:$0xff] %v7813_v40  ;;  %10545 = vst [vmem:[#allocation47_spill] sm:$0xff] %v7816_v49  ;;  %v10405_v6 = vsub.s32 2, %v7705_v1  ;;  %v7829_v17 = vadd.f32 %v1885_v47, %v7819_v22  ;;  %v7832_v43 = vadd.f32 %v1456_v57, %v7819_v22  ;;  %v1887_v2 = vsel %vm1855_vm14, %v1839_v10, %v1871_v41 }
 0x3c9   : > { %v1441_v26 = vmul.f32 0.2, %v1409_v52  ;;  %vm1425_vm15 = vcmp.gt.f32.partialorder %v1409_v52, 0.0  ;;  %v1874_v24 = vmul.f32 0.2, %v1842_v5  ;;  %v1844_v62 = vadd.f32 %v7728_v28, %v7676_v54 }
 0x3ca   : > { %10546 = vst [vmem:[#allocation48_spill] sm:$0xff] %v7829_v17  ;;  %10547 = vst [vmem:[#allocation49_spill] sm:$0xff] %v7832_v43  ;;  %vm1858_vm0 = vcmp.gt.f32.partialorder %v1842_v5, 0.0  ;;  %v1411_v47 = vadd.f32 %v7723_v37, %v7626_v18  ;;  %v7849_v10 = vrot.slane %v7711_v9, %v10405_v6  ;;  %v1846_v54 = vadd.f32 %v7728_v28, %v7699_v19  ;;  %v7860_v18 = vld [vmem:[%s7718_s25 + $0x58] sm:$0xff] }
 0x3cb   : > { %1913 = vmax.xlane.f32.xlu1 %v7798_v32  ;;  %1490 = vmax.xlane.f32.xlu0 %v7801_v35  ;;  %v1410_v32 = vadd.f32 %v7723_v37, %v7616_v11  ;;  %v7837_v11 = vld [vmem:[%s7718_s25 + $0x40] sm:$0xff]  ;;  %v1890_v57 = vsel %vm1858_vm0, %v1842_v5, %v1874_v24  ;;  %vm1860_vm3 = vcmp.gt.f32.partialorder %v1844_v62, 0.0  ;;  %v1412_v6 = vadd.f32 %v7723_v37, %v7640_v53  ;;  %v7879_v24 = vld [vmem:[%s7718_s25 + $0x48] sm:$0xff] }
 0x3cc   : > { %vm1427_vm4 = vcmp.gt.f32.partialorder %v1411_v47, 0.0  ;;  %v2358_v53 = vadd.f32 %v7849_v10, %v7488_v36  ;;  %vm1862_vm5 = vcmp.gt.f32.partialorder %v1846_v54, 0.0 }
 0x3cd   : > { %vm1426_vm2 = vcmp.gt.f32.partialorder %v1410_v32, 0.0  ;;  %v1444_v19 = vmul.f32 0.2, %v1412_v6  ;;  %vm1428_vm6 = vcmp.gt.f32.partialorder %v1412_v6, 0.0 }
 0x3ce   : > { %vm2374_vm7 = vcmp.gt.f32.partialorder %v2358_v53, 0.0 }
 0x3cf   : > { %1919 = vmax.xlane.f32.xlu1 %v7813_v40  ;;  %1492 = vmax.xlane.f32.xlu0 %v7816_v49  ;;  %v1457_v40 = vsel %vm1425_vm15, %v1409_v52, %v1441_v26  ;;  %v1442_v49 = vmul.f32 0.2, %v1410_v32  ;;  %v7854_v52 = vadd.f32 %v1887_v2, %v7837_v11  ;;  %v1876_v26 = vmul.f32 0.2, %v1844_v62 }
 0x3d0   : > { %v7857_v41 = vadd.f32 %v1457_v40, %v7840_v25  ;;  %v7868_v40 = vadd.f32 %v1890_v57, %v7860_v18  ;;  %v1878_v2 = vmul.f32 0.2, %v1846_v54  ;;  %v1413_v57 = vadd.f32 %v7723_v37, %v7647_v63 }
 0x3d1   : > { %10548 = vst [vmem:[#allocation50_spill] sm:$0xff] %v7854_v52  ;;  %v2390_v63 = vmul.f32 0.2, %v2358_v53 }
 0x3d2   : > { %10549 = vst [vmem:[#allocation51_spill] sm:$0xff] %v7857_v41  ;;  %10550 = vst [vmem:[#allocation52_spill] sm:$0xff] %v7868_v40  ;;  %vm1429_vm8 = vcmp.gt.f32.partialorder %v1413_v57, 0.0 }
 0x3d3   : > { %1923 = vmax.xlane.f32.xlu1 %v7829_v17  ;;  %1494 = vmax.xlane.f32.xlu0 %v7832_v43  ;;  %v1458_v17 = vsel %vm1426_vm2, %v1410_v32, %v1442_v49  ;;  %v1443_v43 = vmul.f32 0.2, %v1411_v47  ;;  %v7874_v32 = vld [vmem:[%s7718_s25 + $0x68] sm:$0xff]  ;;  %v1892_v49 = vsel %vm1860_vm3, %v1844_v62, %v1876_v26  ;;  %v1894_v26 = vsel %vm1862_vm5, %v1846_v54, %v1878_v2 }
 0x3d4   : > { %v7871_v5 = vadd.f32 %v1458_v17, %v7837_v11  ;;  %v10552_v17 = vsub.s32 3, %v7705_v1  ;;  %v7891_v36 = vadd.f32 %v1892_v49, %v7874_v32  ;;  %v1445_v1 = vmul.f32 0.2, %v1413_v57 }
 0x3d6   : > { %10551 = vst [vmem:[#allocation53_spill] sm:$0xff] %v7871_v5  ;;  %v7888_v62 = vrot.slane %v7711_v9, %v10552_v17  ;;  %v1415_v9 = vadd.f32 %v7723_v37, %v7674_v21  ;;  %v1417_v21 = vadd.f32 %v7723_v37, %v7688_v13  ;;  %v1831_v13 = vadd.f32 %v7728_v28, %v7467_v30 }
 0x3d7   : > { %1927 = vmax.xlane.f32.xlu1 %v7854_v52  ;;  %1496 = vmax.xlane.f32.xlu0 %v7857_v41  ;;  %v1459_v52 = vsel %vm1427_vm4, %v1411_v47, %v1443_v43  ;;  %v7897_v47 = vld [vmem:[%s7718_s25 + $0x78] sm:$0xff]  ;;  %v1460_v41 = vsel %vm1428_vm6, %v1412_v6, %v1444_v19  ;;  %v1461_v19 = vsel %vm1429_vm8, %v1413_v57, %v1445_v1 }
 0x3d8   : > { %v7894_v43 = vadd.f32 %v1459_v52, %v7879_v24  ;;  %v7909_v52 = vadd.f32 %v1894_v26, %v7897_v47  ;;  %v2876_v6 = vadd.f32 %v7888_v62, %v7503_v38  ;;  %v1447_v2 = vmul.f32 0.2, %v1415_v9 }
 0x3d9   : > { %vm1431_vm10 = vcmp.gt.f32.partialorder %v1415_v9, 0.0  ;;  %v1449_v57 = vmul.f32 0.2, %v1417_v21  ;;  %v2878_v26 = vadd.f32 %v7888_v62, %v7544_v48  ;;  %vm1433_vm12 = vcmp.gt.f32.partialorder %v1417_v21, 0.0 }
 0x3da   : > { %vm2892_vm11 = vcmp.gt.f32.partialorder %v2876_v6, 0.0  ;;  %v2908_v38 = vmul.f32 0.2, %v2876_v6  ;;  %v1463_v1 = vsel %vm1431_vm10, %v1415_v9, %v1447_v2  ;;  %v2362_v9 = vadd.f32 %v7849_v10, %v7584_v60 }
 0x3db   : > { %1933 = vmax.xlane.f32.xlu1 %v7868_v40  ;;  %1498 = vmax.xlane.f32.xlu0 %v7871_v5  ;;  %v2360_v40 = vadd.f32 %v7849_v10, %v7535_v46  ;;  %v7902_v5 = vld [vmem:[%s7718_s25 + $0x50] sm:$0xff]  ;;  %v2406_v46 = vsel %vm2374_vm7, %v2358_v53, %v2390_v63  ;;  %v2910_v48 = vmul.f32 0.2, %v2878_v26  ;;  %v1833_v30 = vadd.f32 %v7728_v28, %v7506_v33 }
 0x3dc   : > { %v7912_v54 = vadd.f32 %v1460_v41, %v7902_v5  ;;  %v7921_v17 = vadd.f32 %v2406_v46, %v7738_v8  ;;  %v7924_v41 = vadd.f32 %v1461_v19, %v7860_v18  ;;  %v2924_v63 = vsel %vm2892_vm11, %v2876_v6, %v2908_v38 }
 0x3dd   : > { %v2392_v49 = vmul.f32 0.2, %v2360_v40  ;;  %vm2376_vm9 = vcmp.gt.f32.partialorder %v2360_v40, 0.0  ;;  %v1465_v46 = vsel %vm1433_vm12, %v1417_v21, %v1449_v57  ;;  %vm2894_vm13 = vcmp.gt.f32.partialorder %v2878_v26, 0.0 }
 0x3de   : > { %vm1847_vm14 = vcmp.gt.f32.partialorder %v1831_v13, 0.0  ;;  %v2364_v19 = vadd.f32 %v7849_v10, %v7603_v7  ;;  %v7947_v6 = vadd.f32 %v2924_v63, %v7738_v8  ;;  %v7950_v60 = vadd.f32 %v1465_v46, %v7897_v47 }
 0x3df   : > { %1937 = vmax.xlane.f32.xlu1 %v7891_v36  ;;  %1500 = vmax.xlane.f32.xlu0 %v7894_v43  ;;  %v2408_v53 = vsel %vm2376_vm9, %v2360_v40, %v2392_v49  ;;  %v7936_v40 = vadd.f32 %v1463_v1, %v7874_v32  ;;  %v1863_v49 = vmul.f32 0.2, %v1831_v13  ;;  %v2394_v2 = vmul.f32 0.2, %v2362_v9 }
 0x3e0   : > { %v7933_v37 = vadd.f32 %v2408_v53, %v7776_v55  ;;  %v1834_v21 = vadd.f32 %v7728_v28, %v7533_v45  ;;  %v2926_v33 = vsel %vm2894_vm13, %v2878_v26, %v2910_v48  ;;  %vm2378_vm15 = vcmp.gt.f32.partialorder %v2362_v9, 0.0 }
 0x3e1   : > { %v1879_v53 = vsel %vm1847_vm14, %v1831_v13, %v1863_v49  ;;  %v1865_v38 = vmul.f32 0.2, %v1833_v30  ;;  %vm1849_vm0 = vcmp.gt.f32.partialorder %v1833_v30, 0.0  ;;  %v2396_v7 = vmul.f32 0.2, %v2364_v19 }
 0x3e2   : > { %v7957_v8 = vadd.f32 %v2926_v33, %v7776_v55  ;;  %v7960_v1 = vadd.f32 %v1879_v53, %v7741_v0  ;;  %v2410_v57 = vsel %vm2378_vm15, %v2362_v9, %v2394_v2  ;;  %v2880_v45 = vadd.f32 %v7888_v62, %v7580_v59 }
 0x3e3   : > { %1941 = vmax.xlane.f32.xlu1 %v7909_v52  ;;  %1502 = vmax.xlane.f32.xlu0 %v7912_v54  ;;  %v1881_v26 = vsel %vm1849_vm0, %v1833_v30, %v1865_v38  ;;  %vm2380_vm2 = vcmp.gt.f32.partialorder %v2364_v19, 0.0  ;;  %v1866_v13 = vmul.f32 0.2, %v1834_v21  ;;  %v1836_v63 = vadd.f32 %v7728_v28, %v7577_v58 }
 0x3e4   : > { %vm1850_vm3 = vcmp.gt.f32.partialorder %v1834_v21, 0.0  ;;  %v7969_v46 = vadd.f32 %v2410_v57, %v7806_v29  ;;  %v7972_v48 = vadd.f32 %v1881_v26, %v7758_v31  ;;  %v2412_v9 = vsel %vm2380_vm2, %v2364_v19, %v2396_v7 }
 0x3e5   : > { %v2912_v49 = vmul.f32 0.2, %v2880_v45  ;;  %v2882_v59 = vadd.f32 %v7888_v62, %v7622_v15  ;;  %v1882_v30 = vsel %vm1850_vm3, %v1834_v21, %v1866_v13  ;;  %vm2896_vm4 = vcmp.gt.f32.partialorder %v2880_v45, 0.0 }
 0x3e6   : > { %v1868_v2 = vmul.f32 0.2, %v1836_v63  ;;  %v1838_v58 = vadd.f32 %v7728_v28, %v7618_v12  ;;  %vm1852_vm5 = vcmp.gt.f32.partialorder %v1836_v63, 0.0  ;;  %v7981_v33 = vadd.f32 %v2412_v9, %v7840_v25 }
 0x3e7   : > { %2439 = vmax.xlane.f32.xlu1 %v7921_v17  ;;  %1504 = vmax.xlane.f32.xlu0 %v7924_v41  ;;  %v7984_v19 = vadd.f32 %v1882_v30, %v7776_v55  ;;  %v2928_v53 = vsel %vm2896_vm4, %v2880_v45, %v2912_v49  ;;  %v2914_v38 = vmul.f32 0.2, %v2882_v59  ;;  %v2366_v15 = vadd.f32 %v7849_v10, %v7642_v51 }
 0x3e8   : > { %v1884_v21 = vsel %vm1852_vm5, %v1836_v63, %v1868_v2  ;;  %vm2898_vm6 = vcmp.gt.f32.partialorder %v2882_v59, 0.0  ;;  %v1870_v7 = vmul.f32 0.2, %v1838_v58  ;;  %v1840_v12 = vadd.f32 %v7728_v28, %v7638_v61 }
 0x3e9   : > { %vm1854_vm7 = vcmp.gt.f32.partialorder %v1838_v58, 0.0  ;;  %v7993_v57 = vadd.f32 %v2928_v53, %v7806_v29  ;;  %v7996_v55 = vadd.f32 %v1884_v21, %v7806_v29  ;;  %v2930_v45 = vsel %vm2898_vm6, %v2882_v59, %v2914_v38 }
 0x3ea   : > { %vm2382_vm8 = vcmp.gt.f32.partialorder %v2366_v15, 0.0  ;;  %v2398_v51 = vmul.f32 0.2, %v2366_v15  ;;  %v1886_v26 = vsel %vm1854_vm7, %v1838_v58, %v1870_v7  ;;  %v1872_v13 = vmul.f32 0.2, %v1840_v12 }
 0x3eb   : > { %2443 = vmax.xlane.f32.xlu1 %v7933_v37  ;;  %1508 = vmax.xlane.f32.xlu0 %v7936_v40  ;;  %v2368_v63 = vadd.f32 %v7849_v10, %v7653_v27  ;;  %v1841_v61 = vadd.f32 %v7728_v28, %v7644_v3  ;;  %vm1856_vm9 = vcmp.gt.f32.partialorder %v1840_v12, 0.0  ;;  %v8005_v9 = vadd.f32 %v2930_v45, %v7840_v25 }
 0x3ec   : > { %v8008_v29 = vadd.f32 %v1886_v26, %v7840_v25  ;;  %v2414_v49 = vsel %vm2382_vm8, %v2366_v15, %v2398_v51  ;;  %v2884_v59 = vadd.f32 %v7888_v62, %v7628_v20  ;;  %v1888_v30 = vsel %vm1856_vm9, %v1840_v12, %v1872_v13  ;;  %v10554_v13 = vld [vmem:[#allocation32_spill] sm:$0xff] }
 0x3ed   : > { %v2400_v27 = vmul.f32 0.2, %v2368_v63  ;;  %v1873_v2 = vmul.f32 0.2, %v1841_v61  ;;  %v1843_v3 = vadd.f32 %v7728_v28, %v7668_v42  ;;  %vm2384_vm10 = vcmp.gt.f32.partialorder %v2368_v63, 0.0 }
 0x3ee   : > { %vm1857_vm11 = vcmp.gt.f32.partialorder %v1841_v61, 0.0  ;;  %v2886_v25 = vadd.f32 %v7888_v62, %v7666_v14  ;;  %v8019_v58 = vadd.f32 %v2414_v49, %v7879_v24  ;;  %v8022_v20 = vadd.f32 %v1888_v30, %v7879_v24  ;;  %v10556_v30 = vld [vmem:[#allocation39_spill] sm:$0xff] }
 0x3ef   : > { %2957 = vmax.xlane.f32.xlu1 %v7947_v6  ;;  %1512 = vmax.xlane.f32.xlu0 %v7950_v60  ;;  %vm2900_vm12 = vcmp.gt.f32.partialorder %v2884_v59, 0.0  ;;  %v2916_v53 = vmul.f32 0.2, %v2884_v59  ;;  %v2416_v38 = vsel %vm2384_vm10, %v2368_v63, %v2400_v27  ;;  %v1889_v15 = vsel %vm1857_vm11, %v1841_v61, %v1873_v2 }
 0x3f0   : > { %10553 = vst [vmem:[#allocation54_spill] sm:$0xff] %v8019_v58  ;;  %v1875_v42 = vmul.f32 0.2, %v1843_v3  ;;  %v1845_v21 = vadd.f32 %v7728_v28, %v7686_v16  ;;  %vm1859_vm13 = vcmp.gt.f32.partialorder %v1843_v3, 0.0  ;;  %vm2902_vm14 = vcmp.gt.f32.partialorder %v2886_v25, 0.0  ;;  %v10555_v16 = vld [vmem:[#allocation10_spill] sm:$0xff] }
 0x3f1   : > { %v8029_v14 = vadd.f32 %v2416_v38, %v7860_v18  ;;  %v8032_v7 = vadd.f32 %v1889_v15, %v7902_v5  ;;  %v2932_v12 = vsel %vm2900_vm12, %v2884_v59, %v2916_v53  ;;  %v2918_v45 = vmul.f32 0.2, %v2886_v25  ;;  %v10557_v38 = vld [vmem:[#allocation13_spill] sm:$0xff] }
 0x3f2   : > { %v1891_v51 = vsel %vm1859_vm13, %v1843_v3, %v1875_v42  ;;  %v1877_v26 = vmul.f32 0.2, %v1845_v21  ;;  %v2370_v63 = vadd.f32 %v7849_v10, %v10554_v13  ;;  %v2357_v28 = vadd.f32 %v7849_v10, %v10555_v16 }
 0x3f3   : > { %2961 = vmax.xlane.f32.xlu1 %v7957_v8  ;;  %1911 = vmax.xlane.f32.xlu0 %v7960_v1  ;;  %vm1861_vm15 = vcmp.gt.f32.partialorder %v1845_v21, 0.0  ;;  %v8041_v61 = vadd.f32 %v2932_v12, %v7879_v24  ;;  %v8044_v49 = vadd.f32 %v1891_v51, %v7755_v4  ;;  %v2934_v59 = vsel %vm2902_vm14, %v2886_v25, %v2918_v45  ;;  %v10558_v24 = vld [vmem:[#allocation33_spill] sm:$0xff]  ;;  %v10559_v45 = vld [vmem:[#allocation11_spill] sm:$0xff] }
 0x3f4   : > { %v2372_v27 = vadd.f32 %v7849_v10, %v10556_v30  ;;  %v1893_v2 = vsel %vm1861_vm15, %v1845_v21, %v1877_v26  ;;  %v2402_v3 = vmul.f32 0.2, %v2370_v63  ;;  %v2389_v53 = vmul.f32 0.2, %v2357_v28 }
 0x3f5   : > { %v2359_v15 = vadd.f32 %v7849_v10, %v10557_v38  ;;  %vm2386_vm0 = vcmp.gt.f32.partialorder %v2370_v63, 0.0  ;;  %vm2373_vm2 = vcmp.gt.f32.partialorder %v2357_v28, 0.0  ;;  %v2888_v42 = vadd.f32 %v7888_v62, %v10558_v24 }
 0x3f6   : > { %v8055_v25 = vadd.f32 %v2934_v59, %v7860_v18  ;;  %v8058_v12 = vadd.f32 %v1893_v2, %v7771_v23  ;;  %v2404_v21 = vmul.f32 0.2, %v2372_v27  ;;  %v2875_v51 = vadd.f32 %v7888_v62, %v10559_v45 }
 0x3f7   : > { %2447 = vmax.xlane.f32.xlu1 %v7969_v46  ;;  %1915 = vmax.xlane.f32.xlu0 %v7972_v48  ;;  %v2418_v26 = vsel %vm2386_vm0, %v2370_v63, %v2402_v3  ;;  %v2405_v13 = vsel %vm2373_vm2, %v2357_v28, %v2389_v53  ;;  %vm2388_vm3 = vcmp.gt.f32.partialorder %v2372_v27, 0.0  ;;  %v2391_v16 = vmul.f32 0.2, %v2359_v15  ;;  %v10560_v63 = vld [vmem:[#allocation40_spill] sm:$0xff]  ;;  %v10561_v3 = vld [vmem:[#allocation14_spill] sm:$0xff] }
 0x3f8   : > { %vm2375_vm4 = vcmp.gt.f32.partialorder %v2359_v15, 0.0  ;;  %vm2904_vm5 = vcmp.gt.f32.partialorder %v2888_v42, 0.0  ;;  %v8065_v18 = vadd.f32 %v2418_v26, %v7874_v32  ;;  %v8068_v59 = vadd.f32 %v2405_v13, %v7741_v0 }
 0x3f9   : > { %v2420_v30 = vsel %vm2388_vm3, %v2372_v27, %v2404_v21  ;;  %v2920_v2 = vmul.f32 0.2, %v2888_v42  ;;  %v2407_v38 = vsel %vm2375_vm4, %v2359_v15, %v2391_v16  ;;  %v2907_v24 = vmul.f32 0.2, %v2875_v51  ;;  %v10563_v16 = vld [vmem:[#allocation16_spill] sm:$0xff] }
 0x3fa   : > { %v2890_v28 = vadd.f32 %v7888_v62, %v10560_v63  ;;  %v2877_v53 = vadd.f32 %v7888_v62, %v10561_v3  ;;  %vm2891_vm6 = vcmp.gt.f32.partialorder %v2875_v51, 0.0  ;;  %v8077_v45 = vadd.f32 %v2420_v30, %v7897_v47 }
 0x3fb   : > { %2451 = vmax.xlane.f32.xlu1 %v7981_v33  ;;  %1917 = vmax.xlane.f32.xlu0 %v7984_v19  ;;  %v8080_v26 = vadd.f32 %v2407_v38, %v7758_v31  ;;  %v2936_v27 = vsel %vm2904_vm5, %v2888_v42, %v2920_v2  ;;  %v2923_v15 = vsel %vm2891_vm6, %v2875_v51, %v2907_v24  ;;  %v10565_v2 = vld [vmem:[#allocation19_spill] sm:$0xff]  ;;  %vm2272_vm6 = vcmask 523520  }
 0x3fc   : > { %10562 = vst [vmem:[#allocation32_spill] sm:$0xff] %v8077_v45  ;;  %v2922_v21 = vmul.f32 0.2, %v2890_v28  ;;  %v2909_v13 = vmul.f32 0.2, %v2877_v53  ;;  %v2361_v63 = vadd.f32 %v7849_v10, %v10563_v16  ;;  %vm2906_vm7 = vcmp.gt.f32.partialorder %v2890_v28, 0.0 }
 0x3fd   : > { %vm2893_vm8 = vcmp.gt.f32.partialorder %v2877_v53, 0.0  ;;  %v8087_v3 = vadd.f32 %v2936_v27, %v7874_v32  ;;  %v8090_v30 = vadd.f32 %v2923_v15, %v7741_v0  ;;  %v2363_v24 = vadd.f32 %v7849_v10, %v10565_v2  ;;  %v10567_v15 = vld [vmem:[#allocation17_spill] sm:$0xff] }
 0x3fe   : > { %v2938_v38 = vsel %vm2906_vm7, %v2890_v28, %v2922_v21  ;;  %v2925_v42 = vsel %vm2893_vm8, %v2877_v53, %v2909_v13  ;;  %v2393_v51 = vmul.f32 0.2, %v2361_v63  ;;  %vm2377_vm9 = vcmp.gt.f32.partialorder %v2361_v63, 0.0 }
 0x3ff   : > { %2965 = vmax.xlane.f32.xlu1 %v7993_v57  ;;  %1921 = vmax.xlane.f32.xlu0 %v7996_v55  ;;  %10564 = vst [vmem:[#allocation10_spill] sm:$0xff] %v8087_v3  ;;  %v8097_v16 = vadd.f32 %v2938_v38, %v7897_v47  ;;  %v8100_v32 = vadd.f32 %v2925_v42, %v7758_v31  ;;  %v2395_v0 = vmul.f32 0.2, %v2363_v24  ;;  %vm2379_vm10 = vcmp.gt.f32.partialorder %v2363_v24, 0.0  ;;  %v10568_v47 = vld [vmem:[#allocation20_spill] sm:$0xff] }
 0x400   : > { %v2409_v27 = vsel %vm2377_vm9, %v2361_v63, %v2393_v51  ;;  %v2879_v28 = vadd.f32 %v7888_v62, %v10567_v15  ;;  %v2881_v38 = vadd.f32 %v7888_v62, %v10568_v47  ;;  %v10569_v51 = vld [vmem:[#allocation21_spill] sm:$0xff]  ;;  %v10570_v15 = vld [vmem:[#allocation26_spill] sm:$0xff]  ;;  %vm2790_vm7 = vcmask 785920  }
 0x401   : > { %10566 = vst [vmem:[#allocation39_spill] sm:$0xff] %v8097_v16  ;;  %v8107_v53 = vadd.f32 %v2409_v27, %v7791_v39  ;;  %v2411_v21 = vsel %vm2379_vm10, %v2363_v24, %v2395_v0  ;;  %v2365_v2 = vadd.f32 %v7849_v10, %v10569_v51  ;;  %v2367_v47 = vadd.f32 %v7849_v10, %v10570_v15  ;;  %v10571_v51 = vld [vmem:[#allocation24_spill] sm:$0xff] }
 0x402   : > { %v2911_v13 = vmul.f32 0.2, %v2879_v28  ;;  %vm2895_vm11 = vcmp.gt.f32.partialorder %v2879_v28, 0.0  ;;  %v8113_v31 = vadd.f32 %v2411_v21, %v7819_v22  ;;  %v2913_v42 = vmul.f32 0.2, %v2881_v38 }
 0x403   : > { %2969 = vmax.xlane.f32.xlu1 %v8005_v9  ;;  %1925 = vmax.xlane.f32.xlu0 %v8008_v29  ;;  %vm2897_vm12 = vcmp.gt.f32.partialorder %v2881_v38, 0.0  ;;  %v2397_v0 = vmul.f32 0.2, %v2365_v2  ;;  %vm2381_vm13 = vcmp.gt.f32.partialorder %v2365_v2, 0.0  ;;  %vm2383_vm14 = vcmp.gt.f32.partialorder %v2367_v47, 0.0 }
 0x404   : > { %v2927_v63 = vsel %vm2895_vm11, %v2879_v28, %v2911_v13  ;;  %v2929_v27 = vsel %vm2897_vm12, %v2881_v38, %v2913_v42  ;;  %v2399_v13 = vmul.f32 0.2, %v2367_v47  ;;  %v10572_v42 = vld [vmem:[#allocation27_spill] sm:$0xff]  ;;  %vm3308_vm8 = vcmask 1048320  }
 0x405   : > { %v8119_v24 = vadd.f32 %v2927_v63, %v7791_v39  ;;  %v8125_v28 = vadd.f32 %v2929_v27, %v7819_v22  ;;  %v2413_v21 = vsel %vm2381_vm13, %v2365_v2, %v2397_v0  ;;  %v2885_v15 = vadd.f32 %v7888_v62, %v10572_v42  ;;  %v10573_v0 = vld [vmem:[#allocation30_spill] sm:$0xff]  ;;  %v10575_v42 = vld [vmem:[#allocation37_spill] sm:$0xff] }
 0x406   : > { %v8131_v39 = vadd.f32 %v2413_v21, %v7837_v11  ;;  %v2415_v38 = vsel %vm2383_vm14, %v2367_v47, %v2399_v13 }
 0x407   : > { %2455 = vmax.xlane.f32.xlu1 %v8019_v58  ;;  %1929 = vmax.xlane.f32.xlu0 %v8022_v20  ;;  %v8137_v22 = vadd.f32 %v2415_v38, %v7902_v5  ;;  %v2917_v27 = vmul.f32 0.2, %v2885_v15  ;;  %vm2901_vm0 = vcmp.gt.f32.partialorder %v2885_v15, 0.0 }
 0x409   : > { %v2933_v21 = vsel %vm2901_vm0, %v2885_v15, %v2917_v27 }
 0x40b   : > { %2459 = vmax.xlane.f32.xlu1 %v8029_v14  ;;  %1931 = vmax.xlane.f32.xlu0 %v8032_v7 }
 0x40f   : > { %2973 = vmax.xlane.f32.xlu1 %v8041_v61  ;;  %1935 = vmax.xlane.f32.xlu0 %v8044_v49 }
 0x413   : > { %2977 = vmax.xlane.f32.xlu1 %v8055_v25  ;;  %1939 = vmax.xlane.f32.xlu0 %v8058_v12 }
 0x417   : > { %2463 = vmax.xlane.f32.xlu1 %v8065_v18  ;;  %2437 = vmax.xlane.f32.xlu0 %v8068_v59 }
 0x41b   : > { %2467 = vmax.xlane.f32.xlu1 %v8077_v45  ;;  %2441 = vmax.xlane.f32.xlu0 %v8080_v26 }
 0x41f   : > { %2981 = vmax.xlane.f32.xlu1 %v8087_v3  ;;  %2955 = vmax.xlane.f32.xlu0 %v8090_v30  ;;  %v2371_v3 = vadd.f32 %v7849_v10, %v10575_v42 }
 0x421   : > { %vm2387_vm3 = vcmp.gt.f32.partialorder %v2371_v3, 0.0 }
 0x423   : > { %2985 = vmax.xlane.f32.xlu1 %v8097_v16  ;;  %2959 = vmax.xlane.f32.xlu0 %v8100_v32  ;;  %v2883_v16 = vadd.f32 %v7888_v62, %v10571_v51  ;;  %v2369_v51 = vadd.f32 %v7849_v10, %v10573_v0  ;;  %v10577_v0 = vld [vmem:[#allocation31_spill] sm:$0xff]  ;;  %v10579_v10 = vld [vmem:[#allocation38_spill] sm:$0xff] }
 0x424   : > { %v2887_v45 = vadd.f32 %v7888_v62, %v10577_v0  ;;  %v2889_v27 = vadd.f32 %v7888_v62, %v10579_v10 }
 0x425   : > { %v2915_v63 = vmul.f32 0.2, %v2883_v16  ;;  %vm2899_vm15 = vcmp.gt.f32.partialorder %v2883_v16, 0.0  ;;  %v2401_v13 = vmul.f32 0.2, %v2369_v51  ;;  %vm2385_vm2 = vcmp.gt.f32.partialorder %v2369_v51, 0.0 }
 0x426   : > { %vm2903_vm4 = vcmp.gt.f32.partialorder %v2887_v45, 0.0  ;;  %vm2905_vm5 = vcmp.gt.f32.partialorder %v2889_v27, 0.0 }
 0x427   : > { %2445 = vmax.xlane.f32.xlu0 %v8107_v53  ;;  %v2931_v2 = vsel %vm2899_vm15, %v2883_v16, %v2915_v63  ;;  %v8149_v16 = vadd.f32 %v2933_v21, %v7902_v5  ;;  %v2417_v38 = vsel %vm2385_vm2, %v2369_v51, %v2401_v13  ;;  %v2403_v63 = vmul.f32 0.2, %v2371_v3 }
 0x428   : > { %v8143_v47 = vadd.f32 %v2931_v2, %v7837_v11  ;;  %v8155_v11 = vadd.f32 %v2417_v38, %v7755_v4  ;;  %v2919_v2 = vmul.f32 0.2, %v2887_v45  ;;  %v2921_v38 = vmul.f32 0.2, %v2889_v27 }
 0x429   : > { %10576 = vst [vmem:[#allocation33_spill] sm:$0xff] %v8149_v16  ;;  %v2419_v15 = vsel %vm2387_vm3, %v2371_v3, %v2403_v63 }
 0x42a   : > { %10574 = vst [vmem:[#allocation13_spill] sm:$0xff] %v8143_v47  ;;  %10578 = vst [vmem:[#allocation11_spill] sm:$0xff] %v8155_v11  ;;  %v8163_v42 = vadd.f32 %v2419_v15, %v7771_v23  ;;  %v2935_v0 = vsel %vm2903_vm4, %v2887_v45, %v2919_v2 }
 0x42b   : > { %2449 = vmax.xlane.f32.xlu0 %v8113_v31  ;;  %v8168_v10 = vadd.f32 %v2935_v0, %v7755_v4 }
 0x42c   : > { %10580 = vst [vmem:[#allocation40_spill] sm:$0xff] %v8163_v42 }
 0x42d   : > { %10581 = vst [vmem:[#allocation14_spill] sm:$0xff] %v8168_v10 }
 0x42f   : > { %2963 = vmax.xlane.f32.xlu0 %v8119_v24 }
 0x433   : > { %2967 = vmax.xlane.f32.xlu0 %v8125_v28 }
 0x437   : > { %2453 = vmax.xlane.f32.xlu0 %v8131_v39 }
 0x43b   : > { %2457 = vmax.xlane.f32.xlu0 %v8137_v22 }
 0x43f   : > { %2971 = vmax.xlane.f32.xlu0 %v8143_v47 }
 0x443   : > { %2975 = vmax.xlane.f32.xlu0 %v8149_v16 }
 0x447   : > { %2461 = vmax.xlane.f32.xlu0 %v8155_v11 }
 0x448   : > { %v1485_v5 = vpop.xlane.xlu1 %1484  ;;  %v1483_v51 = vpop.xlane.xlu0 %1482 }
 0x449   : > { %v1515_v21 = vsub.f32 %v7749_v50, %v1485_v5  ;;  %v1514_v13 = vsub.f32 %v7752_v44, %v1483_v51  ;;  %v2937_v50 = vsel %vm2905_vm5, %v2889_v27, %v2921_v38 }
 0x44a   : > { %v8173_v5 = vadd.f32 %v2937_v50, %v7771_v23 }
 0x44b   : > { %v1532_v16 = vmul.f32 1.442695, %v1515_v21  ;;  %v1530_v3 = vmul.f32 1.442695, %v1514_v13  ;;  %2465 = vmax.xlane.f32.xlu0 %v8163_v42  ;;  %v10583_v13 = vld [vmem:[#allocation47_spill] sm:$0xff] }
 0x44c   : > { %v1487_v62 = vpop.xlane.xlu0 %1486  ;;  %v1507_v45 = vpop.xlane.xlu1 %1506  ;;  %10582 = vst [vmem:[#allocation16_spill] sm:$0xff] %v8173_v5 }
 0x44d   : > { %6430 = vpow2.f32 %v1532_v16  ;;  %v1516_v63 = vsub.f32 %v7768_v56, %v1487_v62 }
 0x44e   : > { %6432 = vpow2.f32 %v1530_v3 }
 0x44f   : > { %v1534_v44 = vmul.f32 1.442695, %v1516_v63  ;;  %2979 = vmax.xlane.f32.xlu0 %v8168_v10 }
 0x450   : > { %v1489_v15 = vpop.xlane.xlu0 %1488  ;;  %v1511_v16 = vpop.xlane.xlu1 %1510 }
 0x451   : > { %v1517_v2 = vsub.f32 %v7786_v34, %v1489_v15  ;;  %6434 = vpow2.f32 %v1534_v44 }
 0x453   : > { %v1536_v51 = vmul.f32 1.442695, %v1517_v2  ;;  %2983 = vmax.xlane.f32.xlu0 %v8173_v5  ;;  %v10585_v2 = vld [vmem:[#allocation51_spill] sm:$0xff] }
 0x454   : > { %v1491_v56 = vpop.xlane.xlu0 %1490  ;;  %v8184_v62 = vpop.xlane.xlu1 %1913  ;;  %v10587_v5 = vld [vmem:[#allocation43_spill] sm:$0xff] }
 0x455   : > { %v1518_v4 = vsub.f32 %v7801_v35, %v1491_v56  ;;  %6436 = vpow2.f32 %v1536_v51  ;;  %v10584_v35 = vld [vmem:[#allocation49_spill] sm:$0xff]  ;;  %v1526_v10 = vsub.f32 %v10587_v5, %v1507_v45 }
 0x457   : > { %v1538_v27 = vmul.f32 1.442695, %v1518_v4 }
 0x458   : > { %v1493_v21 = vpop.xlane.xlu0 %1492  ;;  %v1920_v4 = vpop.xlane.xlu1 %1919 }
 0x459   : > { %v1519_v0 = vsub.f32 %v10583_v13, %v1493_v21  ;;  %6438 = vpow2.f32 %v1538_v27  ;;  %v10586_v13 = vld [vmem:[#allocation53_spill] sm:$0xff] }
 0x45a   : > { %v8178_v38 = vpop.eup %6430 }
 0x45b   : > { %v8180_v34 = vpop.eup %6432  ;;  %v1540_v23 = vmul.f32 1.442695, %v1519_v0  ;;  %1564 = vadd.xlane.f32.xlu0 %v8178_v38 }
 0x45c   : > { %1562 = vadd.xlane.f32.xlu1 %v8180_v34  ;;  %v1495_v3 = vpop.xlane.xlu0 %1494 }
 0x45d   : > { %v1520_v63 = vsub.f32 %v10584_v35, %v1495_v3  ;;  %6440 = vpow2.f32 %v1540_v23 }
 0x45e   : > { %v8187_v50 = vpop.eup %6434 }
 0x45f   : > { %v1542_v44 = vmul.f32 1.442695, %v1520_v63  ;;  %v1924_v63 = vpop.xlane.xlu1 %1923 }
 0x460   : > { %1566 = vadd.xlane.f32.xlu1 %v8187_v50  ;;  %v1497_v15 = vpop.xlane.xlu0 %1496 }
 0x461   : > { %v1521_v51 = vsub.f32 %v10585_v2, %v1497_v15  ;;  %6442 = vpow2.f32 %v1542_v44 }
 0x462   : > { %v8191_v56 = vpop.eup %6436 }
 0x463   : > { %v1544_v27 = vmul.f32 1.442695, %v1521_v51  ;;  %1568 = vadd.xlane.f32.xlu0 %v8191_v56 }
 0x464   : > { %v1499_v21 = vpop.xlane.xlu0 %1498 }
 0x465   : > { %v1522_v0 = vsub.f32 %v10586_v13, %v1499_v21  ;;  %6444 = vpow2.f32 %v1544_v27  ;;  %v8206_v13 = vpop.xlane.xlu1 %1927 }
 0x466   : > { %v8195_v23 = vpop.eup %6438 }
 0x467   : > { %v1546_v3 = vmul.f32 1.442695, %v1522_v0  ;;  %1570 = vadd.xlane.f32.xlu1 %v8195_v23 }
 0x468   : > { %v1501_v35 = vpop.xlane.xlu0 %1500 }
 0x469   : > { %v1523_v15 = vsub.f32 %v7894_v43, %v1501_v35  ;;  %6446 = vpow2.f32 %v1546_v3  ;;  %v1554_v3 = vmul.f32 1.442695, %v1526_v10  ;;  %v10588_v35 = vld [vmem:[#allocation44_spill] sm:$0xff] }
 0x46a   : > { %v8199_v44 = vpop.eup %6440  ;;  %v1528_v42 = vsub.f32 %v10588_v35, %v1511_v16  ;;  %v10589_v16 = vld [vmem:[#allocation46_spill] sm:$0xff] }
 0x46b   : > { %v1548_v2 = vmul.f32 1.442695, %v1523_v15  ;;  %1572 = vadd.xlane.f32.xlu0 %v8199_v44 }
 0x46c   : > { %v1503_v51 = vpop.xlane.xlu0 %1502  ;;  %v1558_v5 = vmul.f32 1.442695, %v1528_v42 }
 0x46d   : > { %v1524_v27 = vsub.f32 %v7912_v54, %v1503_v51  ;;  %6448 = vpow2.f32 %v1548_v2  ;;  %v8214_v2 = vpop.xlane.xlu1 %1933 }
 0x46e   : > { %v8204_v21 = vpop.eup %6442 }
 0x46f   : > { %v1550_v0 = vmul.f32 1.442695, %v1524_v27  ;;  %1574 = vadd.xlane.f32.xlu1 %v8204_v21 }
 0x470   : > { %v1505_v43 = vpop.xlane.xlu0 %1504 }
 0x471   : > { %v1525_v15 = vsub.f32 %v7924_v41, %v1505_v43  ;;  %6450 = vpow2.f32 %v1550_v0  ;;  %v1947_v0 = vsub.f32 %v10589_v16, %v1920_v4  ;;  %v8224_v42 = vpop.xlane.xlu1 %1937 }
 0x472   : > { %v8211_v11 = vpop.eup %6444  ;;  %6452 = vpow2.f32 %v1554_v3 }
 0x473   : > { %v1552_v45 = vmul.f32 1.442695, %v1525_v15  ;;  %1576 = vadd.xlane.f32.xlu0 %v8211_v11  ;;  %v10590_v15 = vld [vmem:[#allocation45_spill] sm:$0xff] }
 0x474   : > { %v1509_v54 = vpop.xlane.xlu0 %1508 }
 0x475   : > { %v1527_v51 = vsub.f32 %v7936_v40, %v1509_v54  ;;  %6454 = vpow2.f32 %v1552_v45  ;;  %v1944_v45 = vsub.f32 %v10590_v15, %v8184_v62  ;;  %v1967_v54 = vmul.f32 1.442695, %v1947_v0  ;;  %v8234_v16 = vpop.xlane.xlu1 %1941 }
 0x476   : > { %v8217_v27 = vpop.eup %6446  ;;  %6456 = vpow2.f32 %v1558_v5  ;;  %v10591_v5 = vld [vmem:[#allocation48_spill] sm:$0xff] }
 0x477   : > { %v1556_v10 = vmul.f32 1.442695, %v1527_v51  ;;  %1578 = vadd.xlane.f32.xlu1 %v8217_v27  ;;  %v1949_v47 = vsub.f32 %v10591_v5, %v1924_v63 }
 0x478   : > { %v1513_v41 = vpop.xlane.xlu0 %1512 }
 0x479   : > { %v1529_v43 = vsub.f32 %v7950_v60, %v1513_v41  ;;  %6458 = vpow2.f32 %v1556_v10  ;;  %v1961_v41 = vmul.f32 1.442695, %v1944_v45  ;;  %v1971_v58 = vmul.f32 1.442695, %v1949_v47  ;;  %v8248_v47 = vpop.xlane.xlu1 %2439 }
 0x47a   : > { %v8222_v35 = vpop.eup %6448 }
 0x47b   : > { %v1560_v3 = vmul.f32 1.442695, %v1529_v43  ;;  %1580 = vadd.xlane.f32.xlu0 %v8222_v35 }
 0x47c   : > { %v1912_v40 = vpop.xlane.xlu0 %1911 }
 0x47d   : > { %v1943_v51 = vsub.f32 %v7960_v1, %v1912_v40  ;;  %6460 = vpow2.f32 %v1560_v3 }
 0x47e   : > { %v8231_v4 = vpop.eup %6450  ;;  %6462 = vpow2.f32 %v1967_v54 }
 0x47f   : > { %v1959_v60 = vmul.f32 1.442695, %v1943_v51  ;;  %1582 = vadd.xlane.f32.xlu1 %v8231_v4  ;;  %v8236_v43 = vpop.eup %6452 }
 0x480   : > { %v1916_v10 = vpop.xlane.xlu0 %1915 }
 0x481   : > { %6464 = vpow2.f32 %v1959_v60  ;;  %v1945_v62 = vsub.f32 %v7972_v48, %v1916_v10  ;;  %v8258_v60 = vpop.xlane.xlu1 %2443 }
 0x482   : > { %v8239_v1 = vpop.eup %6454  ;;  %6466 = vpow2.f32 %v1961_v41 }
 0x483   : > { %1586 = vadd.xlane.f32.xlu1 %v8236_v43  ;;  %1584 = vadd.xlane.f32.xlu0 %v8239_v1  ;;  %v8243_v0 = vpop.eup %6456  ;;  %6468 = vpow2.f32 %v1971_v58  ;;  %v1963_v3 = vmul.f32 1.442695, %v1945_v62 }
 0x484   : > { %v1918_v63 = vpop.xlane.xlu0 %1917 }
 0x485   : > { %v1946_v40 = vsub.f32 %v7984_v19, %v1918_v63  ;;  %6470 = vpow2.f32 %v1963_v3  ;;  %v10592_v19 = vld [vmem:[#allocation50_spill] sm:$0xff] }
 0x486   : > { %v8246_v15 = vpop.eup %6458  ;;  %v1951_v5 = vsub.f32 %v10592_v19, %v8206_v13  ;;  %v10595_v19 = vld [vmem:[#allocation52_spill] sm:$0xff] }
 0x487   : > { %1590 = vadd.xlane.f32.xlu1 %v8243_v0  ;;  %1588 = vadd.xlane.f32.xlu0 %v8246_v15  ;;  %v1965_v54 = vmul.f32 1.442695, %v1946_v40 }
 0x488   : > { %v1922_v48 = vpop.xlane.xlu0 %1921  ;;  %v1975_v40 = vmul.f32 1.442695, %v1951_v5  ;;  %v1954_v5 = vsub.f32 %v10595_v19, %v8214_v2 }
 0x489   : > { %v1948_v45 = vsub.f32 %v7996_v55, %v1922_v48  ;;  %6472 = vpow2.f32 %v1965_v54 }
 0x48a   : > { %v8253_v51 = vpop.eup %6460 }
 0x48b   : > { %1592 = vadd.xlane.f32.xlu0 %v8253_v51  ;;  %v1969_v10 = vmul.f32 1.442695, %v1948_v45  ;;  %v8261_v62 = vpop.eup %6462 }
 0x48c   : > { %v1926_v58 = vpop.xlane.xlu0 %1925  ;;  %10593 = vst [vmem:[#allocation19_spill] sm:$0xff] %v8261_v62 }
 0x48d   : > { %v1950_v41 = vsub.f32 %v8008_v29, %v1926_v58  ;;  %6474 = vpow2.f32 %v1969_v10  ;;  %v8272_v29 = vpop.xlane.xlu1 %2957 }
 0x48e   : > { %v8263_v63 = vpop.eup %6464 }
 0x48f   : > { %v1973_v55 = vmul.f32 1.442695, %v1950_v41  ;;  %1999 = vadd.xlane.f32.xlu0 %v8261_v62  ;;  %1991 = vadd.xlane.f32.xlu1 %v8263_v63  ;;  %v8268_v48 = vpop.eup %6466 }
 0x490   : > { %v1930_v3 = vpop.xlane.xlu0 %1929  ;;  %v8270_v45 = vpop.eup %6468 }
 0x491   : > { %v1952_v13 = vsub.f32 %v8022_v20, %v1930_v3  ;;  %6476 = vpow2.f32 %v1973_v55  ;;  %10594 = vst [vmem:[#allocation17_spill] sm:$0xff] %v8270_v45  ;;  %v1981_v3 = vmul.f32 1.442695, %v1954_v5 }
 0x492   : > { %6478 = vpow2.f32 %v1975_v40  ;;  %v8279_v20 = vpop.eup %6470 }
 0x493   : > { %v1977_v54 = vmul.f32 1.442695, %v1952_v13  ;;  %2003 = vadd.xlane.f32.xlu0 %v8270_v45  ;;  %1993 = vadd.xlane.f32.xlu1 %v8268_v48  ;;  %v1956_v13 = vsub.f32 %v7891_v36, %v8224_v42  ;;  %v8284_v45 = vpop.xlane.xlu1 %2961 }
 0x494   : > { %v1932_v58 = vpop.xlane.xlu0 %1931 }
 0x495   : > { %v1953_v10 = vsub.f32 %v8032_v7, %v1932_v58  ;;  %6480 = vpow2.f32 %v1977_v54  ;;  %v1985_v54 = vmul.f32 1.442695, %v1956_v13  ;;  %v1958_v58 = vsub.f32 %v7909_v52, %v8234_v16 }
 0x496   : > { %v8287_v62 = vpop.eup %6472  ;;  %v2470_v52 = vsub.f32 %v7921_v17, %v8248_v47  ;;  %v2472_v47 = vsub.f32 %v7933_v37, %v8258_v60 }
 0x497   : > { %v1979_v41 = vmul.f32 1.442695, %v1953_v10  ;;  %1995 = vadd.xlane.f32.xlu1 %v8279_v20 }
 0x498   : > { %v1936_v55 = vpop.xlane.xlu0 %1935 }
 0x499   : > { %v1955_v40 = vsub.f32 %v8044_v49, %v1936_v55  ;;  %6482 = vpow2.f32 %v1979_v41  ;;  %v2448_v49 = vpop.xlane.xlu1 %2447  ;;  %v1989_v41 = vmul.f32 1.442695, %v1958_v58 }
 0x49a   : > { %6484 = vpow2.f32 %v1981_v3  ;;  %v8293_v5 = vpop.eup %6474 }
 0x49b   : > { %v1983_v2 = vmul.f32 1.442695, %v1955_v40  ;;  %1997 = vadd.xlane.f32.xlu1 %v8287_v62 }
 0x49c   : > { %v1940_v7 = vpop.xlane.xlu0 %1939 }
 0x49d   : > { %v1957_v19 = vsub.f32 %v8058_v12, %v1940_v7  ;;  %6486 = vpow2.f32 %v1983_v2  ;;  %v2452_v40 = vpop.xlane.xlu1 %2451  ;;  %v2487_v2 = vmul.f32 1.442695, %v2470_v52 }
 0x49e   : > { %v8295_v36 = vpop.eup %6476  ;;  %6488 = vpow2.f32 %v1985_v54 }
 0x49f   : > { %v1987_v42 = vmul.f32 1.442695, %v1957_v19  ;;  %2001 = vadd.xlane.f32.xlu1 %v8293_v5  ;;  %2005 = vadd.xlane.f32.xlu0 %v8295_v36  ;;  %v8300_v3 = vpop.eup %6478 }
 0x4a0   : > { %v2438_v10 = vpop.xlane.xlu0 %2437 }
 0x4a1   : > { %v2469_v55 = vsub.f32 %v8068_v59, %v2438_v10  ;;  %6490 = vpow2.f32 %v1987_v42  ;;  %v8318_v42 = vpop.xlane.xlu1 %2965  ;;  %v2491_v10 = vmul.f32 1.442695, %v2472_v47 }
 0x4a2   : > { %v8304_v12 = vpop.eup %6480  ;;  %6492 = vpow2.f32 %v1989_v41  ;;  %v2474_v41 = vsub.f32 %v7969_v46, %v2448_v49  ;;  %v2988_v46 = vsub.f32 %v7947_v6, %v8272_v29 }
 0x4a3   : > { %v2485_v16 = vmul.f32 1.442695, %v2469_v55  ;;  %2007 = vadd.xlane.f32.xlu0 %v8300_v3  ;;  %2009 = vadd.xlane.f32.xlu1 %v8304_v12 }
 0x4a4   : > { %v2442_v13 = vpop.xlane.xlu0 %2441 }
 0x4a5   : > { %6494 = vpow2.f32 %v2485_v16  ;;  %v2471_v59 = vsub.f32 %v8080_v26, %v2442_v13 }
 0x4a6   : > { %v8309_v7 = vpop.eup %6482  ;;  %6496 = vpow2.f32 %v2487_v2  ;;  %v2495_v2 = vmul.f32 1.442695, %v2474_v41 }
 0x4a7   : > { %2011 = vadd.xlane.f32.xlu0 %v8309_v7  ;;  %v8314_v54 = vpop.eup %6484  ;;  %v2489_v58 = vmul.f32 1.442695, %v2471_v59  ;;  %v2970_v59 = vpop.xlane.xlu1 %2969 }
 0x4a8   : > { %v2956_v17 = vpop.xlane.xlu0 %2955 }
 0x4a9   : > { %6498 = vpow2.f32 %v2489_v58  ;;  %v2987_v37 = vsub.f32 %v8090_v30, %v2956_v17  ;;  %v2990_v17 = vsub.f32 %v7957_v8, %v8284_v45 }
 0x4aa   : > { %v8316_v19 = vpop.eup %6486  ;;  %6500 = vpow2.f32 %v2491_v10  ;;  %v2476_v10 = vsub.f32 %v7981_v33, %v2452_v40 }
 0x4ab   : > { %2013 = vadd.xlane.f32.xlu0 %v8314_v54  ;;  %2015 = vadd.xlane.f32.xlu1 %v8316_v19  ;;  %v8324_v52 = vpop.eup %6488  ;;  %v8345_v29 = vpop.xlane.xlu1 %2455 }
 0x4ac   : > { %v2960_v26 = vpop.xlane.xlu0 %2959  ;;  %v2499_v8 = vmul.f32 1.442695, %v2476_v10 }
 0x4ad   : > { %v2989_v55 = vsub.f32 %v8100_v32, %v2960_v26  ;;  %v3003_v32 = vmul.f32 1.442695, %v2987_v37  ;;  %v3005_v26 = vmul.f32 1.442695, %v2988_v46  ;;  %v3009_v37 = vmul.f32 1.442695, %v2990_v17 }
 0x4ae   : > { %v8327_v60 = vpop.eup %6490  ;;  %v2994_v17 = vsub.f32 %v8005_v9, %v2970_v59 }
 0x4af   : > { %10596 = vst [vmem:[#allocation20_spill] sm:$0xff] %v8327_v60  ;;  %v3007_v16 = vmul.f32 1.442695, %v2989_v55  ;;  %2017 = vadd.xlane.f32.xlu0 %v8324_v52  ;;  %2019 = vadd.xlane.f32.xlu1 %v8327_v60  ;;  %v8331_v47 = vpop.eup %6492  ;;  %v8353_v40 = vpop.xlane.xlu1 %2459 }
 0x4b0   : > { %v2446_v13 = vpop.xlane.xlu0 %2445  ;;  %10597 = vst [vmem:[#allocation21_spill] sm:$0xff] %v8331_v47 }
 0x4b1   : > { %6502 = vpow2.f32 %v3007_v16  ;;  %v2473_v16 = vsub.f32 %v8107_v53, %v2446_v13 }
 0x4b2   : > { %v8335_v49 = vpop.eup %6494  ;;  %6504 = vpow2.f32 %v2495_v2 }
 0x4b3   : > { %10598 = vst [vmem:[#allocation26_spill] sm:$0xff] %v8335_v49  ;;  %2021 = vadd.xlane.f32.xlu0 %v8331_v47  ;;  %2517 = vadd.xlane.f32.xlu1 %v8335_v49  ;;  %6506 = vpow2.f32 %v3003_v32  ;;  %v8343_v6 = vpop.eup %6496  ;;  %v2493_v2 = vmul.f32 1.442695, %v2473_v16  ;;  %v8369_v10 = vpop.xlane.xlu1 %2973  ;;  %v10616_v47 = vld [vmem:[#allocation6_spill] sm:$0xff] }
 0x4b4   : > { %v2450_v30 = vpop.xlane.xlu0 %2449  ;;  %10599 = vst [vmem:[#allocation24_spill] sm:$0xff] %v8343_v6 }
 0x4b5   : > { %v2475_v58 = vsub.f32 %v8113_v31, %v2450_v30 }
 0x4b6   : > { %v8350_v45 = vpop.eup %6498 }
 0x4b7   : > { %v2497_v41 = vmul.f32 1.442695, %v2475_v58  ;;  %2519 = vadd.xlane.f32.xlu0 %v8343_v6  ;;  %10600 = vst [vmem:[#allocation27_spill] sm:$0xff] %v8350_v45  ;;  %v8355_v46 = vpop.eup %6500  ;;  %v8383_v59 = vpop.xlane.xlu1 %2977 }
 0x4b8   : > { %v2964_v55 = vpop.xlane.xlu0 %2963  ;;  %10601 = vst [vmem:[#allocation30_spill] sm:$0xff] %v8355_v46 }
 0x4b9   : > { %6508 = vpow2.f32 %v2497_v41  ;;  %v2991_v31 = vsub.f32 %v8119_v24, %v2964_v55  ;;  %v3017_v55 = vmul.f32 1.442695, %v2994_v17 }
 0x4ba   : > { %6510 = vpow2.f32 %v3005_v26 }
 0x4bb   : > { %2521 = vadd.xlane.f32.xlu0 %v8350_v45  ;;  %6512 = vpow2.f32 %v3009_v37  ;;  %v3011_v32 = vmul.f32 1.442695, %v2991_v31 }
 0x4bc   : > { %v2968_v33 = vpop.xlane.xlu0 %2967  ;;  %6514 = vpow2.f32 %v2499_v8 }
 0x4bd   : > { %v2993_v53 = vsub.f32 %v8125_v28, %v2968_v33  ;;  %6516 = vpow2.f32 %v2493_v2 }
 0x4be   : > { %v8358_v13 = vpop.eup %6502  ;;  %6518 = vpow2.f32 %v3011_v32  ;;  %v8397_v32 = vpop.xlane.xlu1 %2463 }
 0x4bf   : > { %10602 = vst [vmem:[#allocation37_spill] sm:$0xff] %v8358_v13  ;;  %2523 = vadd.xlane.f32.xlu0 %v8355_v46  ;;  %3039 = vadd.xlane.f32.xlu1 %v8358_v13  ;;  %v8364_v30 = vpop.eup %6504  ;;  %v3015_v58 = vmul.f32 1.442695, %v2993_v53  ;;  %v10614_v46 = vld [vmem:[#allocation8_spill] sm:$0xff] }
 0x4c0   : > { %v8362_v24 = vpop.xlane.xlu0 %2453  ;;  %10603 = vst [vmem:[#allocation31_spill] sm:$0xff] %v8364_v30  ;;  %v8367_v26 = vpop.eup %6506 }
 0x4c1   : > { %10604 = vst [vmem:[#allocation38_spill] sm:$0xff] %v8367_v26  ;;  %6520 = vpow2.f32 %v3015_v58 }
 0x4c2   : > { %6522 = vpow2.f32 %v3017_v55  ;;  %v8408_v55 = vpop.xlane.xlu1 %2467 }
 0x4c3   : > { %3035 = vadd.xlane.f32.xlu0 %v8367_v26  ;;  %2527 = vadd.xlane.f32.xlu1 %v8364_v30 }
 0x4c4   : > { %v8373_v28 = vpop.xlane.xlu0 %2457 }
 0x4c6   : > { %v8375_v41 = vpop.eup %6508 }
 0x4c7   : > { %10605 = vst [vmem:[#allocation47_spill] sm:$0xff] %v8375_v41  ;;  %v8377_v37 = vpop.eup %6510  ;;  %2529 = vadd.xlane.f32.xlu1 %v8375_v41  ;;  %v8415_v41 = vpop.xlane.xlu1 %2981 }
 0x4c8   : > { %10606 = vst [vmem:[#allocation49_spill] sm:$0xff] %v8377_v37  ;;  %3037 = vadd.xlane.f32.xlu0 %v8377_v37  ;;  %v8381_v9 = vpop.xlane.xlu0 %2971  ;;  %v8385_v16 = vpop.eup %6512  ;;  %v2992_v37 = vsub.f32 %v7993_v57, %v8318_v42 }
 0x4c9   : > { %10607 = vst [vmem:[#allocation51_spill] sm:$0xff] %v8385_v16  ;;  %v8387_v8 = vpop.eup %6514 }
 0x4ca   : > { %10608 = vst [vmem:[#allocation53_spill] sm:$0xff] %v8387_v8  ;;  %v8393_v33 = vpop.eup %6516 }
 0x4cb   : > { %2531 = vadd.xlane.f32.xlu1 %v8387_v8  ;;  %10609 = vst [vmem:[#allocation43_spill] sm:$0xff] %v8393_v33  ;;  %v8395_v2 = vpop.eup %6518 }
 0x4cc   : > { %3041 = vadd.xlane.f32.xlu0 %v8385_v16  ;;  %v8391_v31 = vpop.xlane.xlu0 %2975  ;;  %10610 = vst [vmem:[#allocation44_spill] sm:$0xff] %v8395_v2 }
 0x4ce   : > { %v8403_v17 = vpop.eup %6520 }
 0x4cf   : > { %3043 = vadd.xlane.f32.xlu1 %v8395_v2  ;;  %10611 = vst [vmem:[#allocation46_spill] sm:$0xff] %v8403_v17  ;;  %v8410_v13 = vpop.eup %6522  ;;  %v8419_v2 = vpop.xlane.xlu1 %2985 }
 0x4d0   : > { %2525 = vadd.xlane.f32.xlu0 %v8393_v33  ;;  %v8401_v53 = vpop.xlane.xlu0 %2461  ;;  %10612 = vst [vmem:[#allocation45_spill] sm:$0xff] %v8410_v13 }
 0x4d3   : > { %3047 = vadd.xlane.f32.xlu1 %v8403_v17  ;;  %v10613_v17 = vld [vmem:[#allocation9_spill] sm:$0xff] }
 0x4d4   : > { %v8406_v58 = vpop.xlane.xlu0 %2465 }
 0x4d7   : > { %3049 = vadd.xlane.f32.xlu1 %v8410_v13 }
 0x4d8   : > { %v8413_v16 = vpop.xlane.xlu0 %2979 }
 0x4dc   : > { %v8417_v8 = vpop.xlane.xlu0 %2983 }
 0x4e4   : > { %v1565_v30 = vpop.xlane.xlu0 %1564 }
 0x4e5   : > { %v1563_v45 = vpop.xlane.xlu1 %1562  ;;  %6524 = vrcp.f32 %v1565_v30  ;;  %v10615_v30 = vld [vmem:[#allocation7_spill] sm:$0xff] }
 0x4e6   : > { %6526 = vrcp.f32 %v1563_v45  ;;  %3113 = vrot.lane.b32.xlu0 %v10613_v17, %s7028_s24  ;;  %v3013_v17 = vmul.f32 1.442695, %v2992_v37 }
 0x4e8   : > { %2593 = vrot.lane.b32.xlu1 %v10614_v46, %s10441_s23 }
 0x4e9   : > { %v1567_v33 = vpop.xlane.xlu1 %1566 }
 0x4ea   : > { %6528 = vrcp.f32 %v1567_v33 }
 0x4ec   : > { %3111 = vrot.lane.b32.xlu1 %v10614_v46, %s7028_s24  ;;  %v1569_v13 = vpop.xlane.xlu0 %1568 }
 0x4ed   : > { %6530 = vrcp.f32 %v1569_v13 }
 0x4f0   : > { %v1571_v26 = vpop.xlane.xlu1 %1570  ;;  %2591 = vrot.lane.b32.xlu1 %v10615_v30, %s10441_s23 }
 0x4f1   : > { %6532 = vrcp.f32 %v1571_v26 }
 0x4f2   : > { %v6525_v45 = vpop.eup %6524 }
 0x4f3   : > { %v6527_v6 = vpop.eup %6526  ;;  %v1611_v49 = vmul.f32 %v6525_v45, %v8178_v38  ;;  %v10617_v45 = vld [vmem:[#allocation36_spill] sm:$0xff] }
 0x4f4   : > { %v1610_v33 = vmul.f32 %v6527_v6, %v8180_v34  ;;  %2589 = vrot.lane.b32.xlu1 %v10616_v47, %s10441_s23  ;;  %v1573_v46 = vpop.xlane.xlu0 %1572 }
 0x4f5   : > { %6534 = vrcp.f32 %v1573_v46 }
 0x4f6   : > { %v1626_v13 = vpack.c.bf16 %v1611_v49, %v1610_v33  ;;  %6536 = vpow2.f32 %v3013_v17  ;;  %v10618_v17 = vld [vmem:[#allocation34_spill] sm:$0xff] }
 0x4f7   : > { %v6529_v57 = vpop.eup %6528 }
 0x4f8   : > { %5989 = vmatprep.mubr.bf16.mxu1 %v1626_v13  ;;  %v1575_v42 = vpop.xlane.xlu1 %1574  ;;  %3107 = vrot.lane.b32.xlu1 %v10616_v47, %s7028_s24  ;;  %v1612_v38 = vmul.f32 %v6529_v57, %v8187_v50  ;;  %v10619_v13 = vld [vmem:[#allocation28_spill] sm:$0xff] }
 0x4f9   : > { %6538 = vrcp.f32 %v1575_v42 }
 0x4fa   : > { %v6531_v60 = vpop.eup %6530 }
 0x4fb   : > { %v1613_v26 = vmul.f32 %v6531_v60, %v8191_v56  ;;  %v2477_v60 = vsub.f32 %v8131_v39, %v8362_v24 }
 0x4fc   : > { %v1577_v34 = vpop.xlane.xlu0 %1576 }
 0x4fd   : > { %6540 = vrcp.f32 %v1577_v34  ;;  %v1627_v6 = vpack.c.bf16 %v1613_v26, %v1612_v38  ;;  %v10620_v26 = vld [vmem:[#allocation23_spill] sm:$0xff] }
 0x4fe   : > { %v6533_v37 = vpop.eup %6532 }
 0x4ff   : > { %5990 = vmatmul.mubr.bf16.vlgmr.msra.gmra.mxu1 %v1627_v6  ;;  %v1614_v47 = vmul.f32 %v6533_v37, %v8195_v23  ;;  %v2501_v23 = vmul.f32 1.442695, %v2477_v60 }
 0x500   : > { %6006 = vmatpush3.bf16.msra.mxu1 %v10617_v45  ;;  %v1579_v49 = vpop.xlane.xlu1 %1578 }
 0x501   : > { %6007 = vmatprep.subr.bf16.mxu1 %v10618_v17  ;;  %6542 = vrcp.f32 %v1579_v49  ;;  %v10621_v49 = vld [vmem:[#allocation22_spill] sm:$0xff] }
 0x502   : > { %v6535_v33 = vpop.eup %6534 }
 0x503   : > { %v8441_v46 = vpop.eup %6536  ;;  %v1615_v50 = vmul.f32 %v6535_v33, %v8199_v44  ;;  %v2479_v44 = vsub.f32 %v8137_v22, %v8373_v28  ;;  %v2480_v22 = vsub.f32 %v8029_v14, %v8353_v40  ;;  %v10622_v33 = vld [vmem:[#allocation18_spill] sm:$0xff] }
 0x504   : > { %6008 = vmatpush3.bf16.msra.mxu1 %v10618_v17  ;;  %v1581_v56 = vpop.xlane.xlu0 %1580 }
 0x505   : > { %3045 = vadd.xlane.f32.xlu0 %v8441_v46  ;;  %6009 = vmatprep.subr.bf16.mxu1 %v10619_v13  ;;  %6544 = vrcp.f32 %v1581_v56  ;;  %v1628_v57 = vpack.c.bf16 %v1615_v50, %v1614_v47  ;;  %v2505_v45 = vmul.f32 1.442695, %v2479_v44  ;;  %v2507_v50 = vmul.f32 1.442695, %v2480_v22 }
 0x506   : > { %v6539_v42 = vpop.eup %6538  ;;  %v2996_v56 = vsub.f32 %v8041_v61, %v8369_v10  ;;  %v2482_v44 = vsub.f32 %v8065_v18, %v8397_v32  ;;  %v10626_v18 = vld [vmem:[#allocation42_spill] sm:$0xff] }
 0x507   : > { %5993 = vmatprep.mubr.bf16.mxu1 %v1628_v57  ;;  %v1616_v6 = vmul.f32 %v6539_v42, %v8204_v21 }
 0x508   : > { %6010 = vmatpush3.bf16.msra.mxu1 %v10619_v13  ;;  %v1583_v38 = vpop.xlane.xlu1 %1582  ;;  %v10623_v13 = vld [vmem:[#allocation15_spill] sm:$0xff]  ;;  %v3021_v42 = vmul.f32 1.442695, %v2996_v56 }
 0x509   : > { %6011 = vmatprep.subr.bf16.mxu1 %v10620_v26  ;;  %6546 = vrcp.f32 %v1583_v38  ;;  %v2998_v38 = vsub.f32 %v8055_v25, %v8383_v59  ;;  %v10625_v25 = vld [vmem:[#allocation54_spill] sm:$0xff] }
 0x50a   : > { %v6541_v34 = vpop.eup %6540  ;;  %6548 = vpow2.f32 %v2501_v23  ;;  %v2478_v59 = vsub.f32 %v10625_v25, %v8345_v29 }
 0x50b   : > { %v1617_v39 = vmul.f32 %v6541_v34, %v8211_v11  ;;  %v3025_v23 = vmul.f32 1.442695, %v2998_v38  ;;  %v10630_v38 = vld [vmem:[#allocation13_spill] sm:$0xff] }
 0x50c   : > { %6012 = vmatpush3.bf16.msra.mxu1 %v10620_v26  ;;  %v1587_v24 = vpop.xlane.xlu1 %1586  ;;  %v1585_v37 = vpop.xlane.xlu0 %1584 }
 0x50d   : > { %6013 = vmatprep.subr.bf16.mxu1 %v10621_v49  ;;  %v1629_v17 = vpack.c.bf16 %v1617_v39, %v1616_v6  ;;  %6550 = vrcp.f32 %v1585_v37  ;;  %v10627_v37 = vld [vmem:[#allocation32_spill] sm:$0xff] }
 0x50e   : > { %v6543_v28 = vpop.eup %6542  ;;  %6552 = vrcp.f32 %v1587_v24  ;;  %v2484_v29 = vsub.f32 %v10627_v37, %v8408_v55 }
 0x50f   : > { %5994 = vmatmul.mubr.bf16.gmra.mxu1 %v1629_v17  ;;  %6554 = vpow2.f32 %v2505_v45  ;;  %v1618_v14 = vmul.f32 %v6543_v28, %v8217_v27  ;;  %v10624_v27 = vld [vmem:[#allocation12_spill] sm:$0xff]  ;;  %v2503_v28 = vmul.f32 1.442695, %v2478_v59 }
 0x510   : > { %6014 = vmatpush3.bf16.msra.mxu1 %v10621_v49  ;;  %v1591_v11 = vpop.xlane.xlu1 %1590  ;;  %v1589_v21 = vpop.xlane.xlu0 %1588 }
 0x511   : > { %6015 = vmatprep.subr.bf16.mxu1 %v10622_v33  ;;  %6556 = vrcp.f32 %v1589_v21 }
 0x512   : > { %v6545_v47 = vpop.eup %6544  ;;  %6558 = vrcp.f32 %v1591_v11 }
 0x513   : > { %v1619_v40 = vmul.f32 %v6545_v47, %v8222_v35 }
 0x514   : > { %6016 = vmatpush3.bf16.msra.mxu1 %v10622_v33  ;;  %v1593_v60 = vpop.xlane.xlu0 %1592 }
 0x515   : > { %6017 = vmatprep.subr.bf16.mxu1 %v10623_v13  ;;  %6560 = vrcp.f32 %v1593_v60  ;;  %v1630_v57 = vpack.c.bf16 %v1619_v40, %v1618_v14  ;;  %v10629_v60 = vld [vmem:[#allocation39_spill] sm:$0xff] }
 0x516   : > { %6562 = vpow2.f32 %v2507_v50  ;;  %v6547_v10 = vpop.eup %6546  ;;  %v2515_v50 = vmul.f32 1.442695, %v2484_v29 }
 0x517   : > { %5997 = vmatprep.mubr.bf16.mxu1 %v1630_v57  ;;  %v8472_v35 = vpop.eup %6548  ;;  %6564 = vpow2.f32 %v3021_v42  ;;  %v1620_v6 = vmul.f32 %v6547_v10, %v8231_v4  ;;  %v10628_v4 = vld [vmem:[#allocation10_spill] sm:$0xff] }
 0x518   : > { %6018 = vmatpush3.bf16.msra.mxu1 %v10623_v13  ;;  %v1992_v61 = vpop.xlane.xlu1 %1991  ;;  %v2000_v45 = vpop.xlane.xlu0 %1999  ;;  %v3000_v11 = vsub.f32 %v10628_v4, %v8415_v41  ;;  %v3002_v13 = vsub.f32 %v10629_v60, %v8419_v2 }
 0x519   : > { %6019 = vmatprep.subr.bf16.mxu1 %v10624_v27  ;;  %6566 = vrcp.f32 %v1992_v61 }
 0x51a   : > { %v6551_v26 = vpop.eup %6550  ;;  %v3029_v41 = vmul.f32 1.442695, %v3000_v11  ;;  %v3033_v61 = vmul.f32 1.442695, %v3002_v13 }
 0x51b   : > { %3109 = vrot.lane.b32.xlu0 %v10615_v30, %s7028_s24  ;;  %v1621_v39 = vmul.f32 %v6551_v26, %v8239_v1  ;;  %v6553_v24 = vpop.eup %6552  ;;  %v2511_v30 = vmul.f32 1.442695, %v2482_v44 }
 0x51c   : > { %6020 = vmatpush3.bf16.msra.mxu1 %v10624_v27  ;;  %v1994_v34 = vpop.xlane.xlu1 %1993  ;;  %2533 = vadd.xlane.f32.xlu1 %v8472_v35  ;;  %v8485_v32 = vpop.eup %6554  ;;  %v1622_v21 = vmul.f32 %v6553_v24, %v8236_v43 }
 0x51d   : > { %6568 = vrcp.f32 %v1994_v34  ;;  %6069 = vmatprep.subr.bf16.mxu1 %v10626_v18  ;;  %v1631_v49 = vpack.c.bf16 %v1621_v39, %v1620_v6  ;;  %v2004_v57 = vpop.xlane.xlu0 %2003 }
 0x51e   : > { %6570 = vpow2.f32 %v3025_v23  ;;  %v6557_v17 = vpop.eup %6556  ;;  %v10631_v23 = vld [vmem:[#allocation33_spill] sm:$0xff] }
 0x51f   : > { %v6559_v22 = vpop.eup %6558  ;;  %5998 = vmatmul.mubr.bf16.gmra.mxu1 %v1631_v49  ;;  %v1623_v33 = vmul.f32 %v6557_v17, %v8246_v15  ;;  %6572 = vpow2.f32 %v2511_v30  ;;  %v2997_v44 = vsub.f32 %v10631_v23, %v8391_v31  ;;  %v10632_v31 = vld [vmem:[#allocation11_spill] sm:$0xff] }
 0x520   : > { %v1996_v1 = vpop.xlane.xlu1 %1995  ;;  %2537 = vadd.xlane.f32.xlu1 %v8485_v32  ;;  %v1624_v14 = vmul.f32 %v6559_v22, %v8243_v0  ;;  %v2995_v0 = vsub.f32 %v10630_v38, %v8381_v9  ;;  %v2481_v37 = vsub.f32 %v10632_v31, %v8401_v53  ;;  %v10633_v22 = vld [vmem:[#allocation40_spill] sm:$0xff] }
 0x521   : > { %v1632_v55 = vpack.c.bf16 %v1623_v33, %v1622_v21  ;;  %6574 = vrcp.f32 %v1996_v1  ;;  %v3023_v24 = vmul.f32 1.442695, %v2997_v44 }
 0x522   : > { %v6561_v47 = vpop.eup %6560  ;;  %6576 = vpow2.f32 %v2503_v28  ;;  %v3019_v25 = vmul.f32 1.442695, %v2995_v0  ;;  %v2509_v17 = vmul.f32 1.442695, %v2481_v37  ;;  %v2483_v28 = vsub.f32 %v10633_v22, %v8406_v58 }
 0x523   : > { %v8494_v56 = vpop.eup %6562  ;;  %v1625_v40 = vmul.f32 %v6561_v47, %v8253_v51  ;;  %6001 = vmatprep.mubr.bf16.mxu1 %v1632_v55  ;;  %v10634_v47 = vld [vmem:[#allocation14_spill] sm:$0xff] }
 0x524   : > { %v1998_v43 = vpop.xlane.xlu1 %1997  ;;  %2539 = vadd.xlane.f32.xlu1 %v8494_v56  ;;  %v8501_v42 = vpop.eup %6564  ;;  %v2513_v58 = vmul.f32 1.442695, %v2483_v28 }
 0x525   : > { %6578 = vrcp.f32 %v1998_v43  ;;  %v1633_v15 = vpack.c.bf16 %v1625_v40, %v1624_v14 }
 0x526   : > { %6580 = vpow2.f32 %v2515_v50  ;;  %v6567_v51 = vpop.eup %6566  ;;  %v2999_v50 = vsub.f32 %v10634_v47, %v8413_v16 }
 0x527   : > { %6582 = vrcp.f32 %v2000_v45  ;;  %6002 = vmatmul.mubr.bf16.gmra.mxu1 %v1633_v15  ;;  %v2039_v9 = vmul.f32 %v6567_v51, %v8263_v63  ;;  %v10636_v15 = vld [vmem:[#allocation35_spill] sm:$0xff] }
 0x528   : > { %6584 = vpow2.f32 %v3029_v41  ;;  %v2002_v10 = vpop.xlane.xlu1 %2001  ;;  %3053 = vadd.xlane.f32.xlu1 %v8501_v42  ;;  %v2006_v2 = vpop.xlane.xlu0 %2005  ;;  %v3027_v43 = vmul.f32 1.442695, %v2999_v50 }
 0x529   : > { %6586 = vrcp.f32 %v2002_v10  ;;  %v10638_v10 = vld [vmem:[#allocation17_spill] sm:$0xff] }
 0x52a   : > { %v6569_v27 = vpop.eup %6568  ;;  %6588 = vrcp.f32 %v2006_v2 }
 0x52b   : > { %v8508_v26 = vpop.eup %6570  ;;  %6590 = vrcp.f32 %v2004_v57  ;;  %v2040_v59 = vmul.f32 %v6569_v27, %v8268_v48 }
 0x52c   : > { %6592 = vpow2.f32 %v3033_v61  ;;  %v2010_v34 = vpop.xlane.xlu1 %2009  ;;  %3057 = vadd.xlane.f32.xlu1 %v8508_v26  ;;  %v2008_v6 = vpop.xlane.xlu0 %2007 }
 0x52d   : > { %6594 = vrcp.f32 %v2010_v34  ;;  %v2055_v39 = vpack.c.bf16 %v2040_v59, %v2039_v9  ;;  %v8513_v30 = vpop.eup %6572  ;;  %v10639_v9 = vld [vmem:[#allocation29_spill] sm:$0xff] }
 0x52e   : > { %6596 = vrcp.f32 %v2008_v6  ;;  %v6575_v29 = vpop.eup %6574 }
 0x52f   : > { %6598 = vpow2.f32 %v3019_v25  ;;  %6021 = vmatprep.mubr.bf16.mxu1 %v2055_v39  ;;  %v8518_v48 = vpop.eup %6576  ;;  %v2041_v4 = vmul.f32 %v6575_v29, %v8279_v20  ;;  %v10635_v20 = vld [vmem:[#allocation19_spill] sm:$0xff] }
 0x530   : > { %2543 = vadd.xlane.f32.xlu1 %v8513_v30  ;;  %v2012_v63 = vpop.xlane.xlu0 %2011  ;;  %6600 = vpow2.f32 %v3023_v24  ;;  %v10640_v24 = vld [vmem:[#allocation25_spill] sm:$0xff] }
 0x531   : > { %6602 = vrcp.f32 %v2012_v63 }
 0x532   : > { %v6579_v45 = vpop.eup %6578 }
 0x533   : > { %v8520_v49 = vpop.eup %6580  ;;  %v2042_v11 = vmul.f32 %v6579_v45, %v8287_v62 }
 0x534   : > { %v6583_v53 = vpop.eup %6582  ;;  %v2016_v1 = vpop.xlane.xlu1 %2015  ;;  %2547 = vadd.xlane.f32.xlu1 %v8520_v49 }
 0x535   : > { %v2014_v21 = vpop.xlane.xlu0 %2013  ;;  %v8527_v33 = vpop.eup %6584  ;;  %v2056_v55 = vpack.c.bf16 %v2042_v11, %v2041_v4  ;;  %v2043_v62 = vmul.f32 %v6583_v53, %v10635_v20  ;;  %v10642_v20 = vld [vmem:[#allocation21_spill] sm:$0xff] }
 0x536   : > { %v6587_v14 = vpop.eup %6586  ;;  %6604 = vrcp.f32 %v2014_v21 }
 0x537   : > { %v6589_v40 = vpop.eup %6588  ;;  %6606 = vpow2.f32 %v2509_v17  ;;  %6022 = vmatmul.mubr.bf16.vlgmr.msra.gmra.mxu1 %v2056_v55  ;;  %v2044_v41 = vmul.f32 %v6587_v14, %v8293_v5 }
 0x538   : > { %v6591_v60 = vpop.eup %6590  ;;  %6608 = vrcp.f32 %v2016_v1  ;;  %6070 = vmatpush3.bf16.msra.mxu1 %v10626_v18  ;;  %v2020_v13 = vpop.xlane.xlu1 %2019  ;;  %3061 = vadd.xlane.f32.xlu1 %v8527_v33  ;;  %v2046_v0 = vmul.f32 %v6589_v40, %v8295_v36  ;;  %v10637_v18 = vld [vmem:[#allocation16_spill] sm:$0xff] }
 0x539   : > { %v2018_v57 = vpop.xlane.xlu0 %2017  ;;  %v8535_v16 = vpop.eup %6592  ;;  %6071 = vmatprep.subr.bf16.mxu1 %v10636_v15  ;;  %v2057_v38 = vpack.c.bf16 %v2044_v41, %v2043_v62  ;;  %v3001_v61 = vsub.f32 %v10637_v18, %v8417_v8  ;;  %v2045_v2 = vmul.f32 %v6591_v60, %v10638_v10  ;;  %v10641_v40 = vld [vmem:[#allocation20_spill] sm:$0xff] }
 0x53a   : > { %2535 = vadd.xlane.f32.xlu0 %v8518_v48  ;;  %v6595_v51 = vpop.eup %6594  ;;  %6610 = vrcp.f32 %v2018_v57 }
 0x53b   : > { %v6597_v5 = vpop.eup %6596  ;;  %6612 = vpow2.f32 %v2513_v58  ;;  %6025 = vmatprep.mubr.bf16.mxu1 %v2057_v38  ;;  %v2048_v27 = vmul.f32 %v6595_v51, %v8304_v12  ;;  %v2058_v8 = vpack.c.bf16 %v2046_v0, %v2045_v2  ;;  %v3031_v34 = vmul.f32 1.442695, %v3001_v61 }
 0x53c   : > { %v8544_v23 = vpop.eup %6598  ;;  %6614 = vrcp.f32 %v2020_v13  ;;  %6072 = vmatpush3.bf16.msra.mxu1 %v10636_v15  ;;  %v2518_v44 = vpop.xlane.xlu1 %2517  ;;  %3065 = vadd.xlane.f32.xlu1 %v8535_v16  ;;  %v2047_v25 = vmul.f32 %v6597_v5, %v8300_v3  ;;  %v10644_v13 = vld [vmem:[#allocation24_spill] sm:$0xff] }
 0x53d   : > { %v2022_v36 = vpop.xlane.xlu0 %2021  ;;  %6616 = vpow2.f32 %v3027_v43  ;;  %6073 = vmatprep.subr.bf16.mxu1 %v10639_v9  ;;  %v8551_v12 = vpop.eup %6600 }
 0x53e   : > { %3051 = vadd.xlane.f32.xlu0 %v8544_v23  ;;  %6618 = vrcp.f32 %v2022_v36  ;;  %v2059_v59 = vpack.c.bf16 %v2048_v27, %v2047_v25  ;;  %v6603_v39 = vpop.eup %6602  ;;  %v10645_v25 = vld [vmem:[#allocation38_spill] sm:$0xff] }
 0x53f   : > { %6620 = vrcp.f32 %v2518_v44  ;;  %6026 = vmatmul.mubr.bf16.gmra.mxu1 %v2058_v8  ;;  %v2049_v29 = vmul.f32 %v6603_v39, %v8309_v7  ;;  %v10646_v8 = vld [vmem:[#allocation49_spill] sm:$0xff] }
 0x540   : > { %6074 = vmatpush3.bf16.msra.mxu1 %v10639_v9  ;;  %6029 = vmatprep.mubr.bf16.mxu1 %v2059_v59 }
 0x541   : > { %v2520_v6 = vpop.xlane.xlu0 %2519  ;;  %6075 = vmatprep.subr.bf16.mxu1 %v10640_v24 }
 0x542   : > { %6622 = vrcp.f32 %v2520_v6  ;;  %3055 = vadd.xlane.f32.xlu0 %v8551_v12 }
 0x543   : > { %v6605_v3 = vpop.eup %6604  ;;  %6624 = vpow2.f32 %v3031_v34 }
 0x544   : > { %v8556_v31 = vpop.eup %6606  ;;  %6076 = vmatpush3.bf16.msra.mxu1 %v10640_v24  ;;  %v2050_v63 = vmul.f32 %v6605_v3, %v8314_v54 }
 0x545   : > { %v2522_v37 = vpop.xlane.xlu0 %2521  ;;  %v6609_v45 = vpop.eup %6608 }
 0x546   : > { %2541 = vadd.xlane.f32.xlu0 %v8556_v31  ;;  %v2060_v17 = vpack.c.bf16 %v2050_v63, %v2049_v29  ;;  %v2051_v53 = vmul.f32 %v6609_v45, %v8316_v19 }
 0x547   : > { %v6611_v22 = vpop.eup %6610 }
 0x548   : > { %v8562_v28 = vpop.eup %6612  ;;  %6030 = vmatmul.mubr.bf16.gmra.mxu1 %v2060_v17  ;;  %v8564_v4 = vpop.xlane.xlu1 %3039  ;;  %v2052_v1 = vmul.f32 %v6611_v22, %v8324_v52  ;;  %v10643_v52 = vld [vmem:[#allocation26_spill] sm:$0xff] }
 0x549   : > { %v2524_v11 = vpop.xlane.xlu0 %2523  ;;  %v6615_v21 = vpop.eup %6614  ;;  %v10647_v17 = vld [vmem:[#allocation30_spill] sm:$0xff] }
 0x54a   : > { %2545 = vadd.xlane.f32.xlu0 %v8562_v28  ;;  %v8569_v7 = vpop.eup %6616  ;;  %v2061_v54 = vpack.c.bf16 %v2052_v1, %v2051_v53  ;;  %v2053_v58 = vmul.f32 %v6615_v21, %v10641_v40  ;;  %v10649_v1 = vld [vmem:[#allocation27_spill] sm:$0xff] }
 0x54b   : > { %v6619_v47 = vpop.eup %6618 }
 0x54c   : > { %v6621_v50 = vpop.eup %6620  ;;  %6033 = vmatprep.mubr.bf16.mxu1 %v2061_v54  ;;  %v2528_v55 = vpop.xlane.xlu1 %2527  ;;  %v2054_v62 = vmul.f32 %v6619_v47, %v10642_v20  ;;  %v10650_v54 = vld [vmem:[#allocation31_spill] sm:$0xff] }
 0x54d   : > { %v3036_v14 = vpop.xlane.xlu0 %3035  ;;  %v2565_v60 = vmul.f32 %v6621_v50, %v10643_v52 }
 0x54e   : > { %3059 = vadd.xlane.f32.xlu0 %v8569_v7  ;;  %v2062_v41 = vpack.c.bf16 %v2054_v62, %v2053_v58  ;;  %6626 = vrcp.f32 %v3036_v14  ;;  %v10651_v58 = vld [vmem:[#allocation53_spill] sm:$0xff]  ;;  %v10652_v62 = vld [vmem:[#allocation47_spill] sm:$0xff] }
 0x54f   : > { %v6623_v19 = vpop.eup %6622 }
 0x550   : > { %v2566_v57 = vmul.f32 %v6623_v19, %v10644_v13  ;;  %v8576_v43 = vpop.eup %6624  ;;  %6034 = vmatmul.mubr.bf16.gmra.mxu1 %v2062_v41  ;;  %v2530_v15 = vpop.xlane.xlu1 %2529 }
 0x551   : > { %v3038_v38 = vpop.xlane.xlu0 %3037 }
 0x552   : > { %3063 = vadd.xlane.f32.xlu0 %v8576_v43  ;;  %v2581_v0 = vpack.c.bf16 %v2566_v57, %v2565_v60  ;;  %6628 = vrcp.f32 %v3038_v38  ;;  %v10653_v38 = vld [vmem:[#allocation51_spill] sm:$0xff] }
 0x553   : > { %6630 = vrcp.f32 %v2524_v11  ;;  %v10648_v11 = vld [vmem:[#allocation43_spill] sm:$0xff] }
 0x554   : > { %6053 = vmatprep.mubr.bf16.mxu0 %v2581_v0  ;;  %v2532_v51 = vpop.xlane.xlu1 %2531 }
 0x555   : > { %v3042_v5 = vpop.xlane.xlu0 %3041 }
 0x558   : > { %v3044_v18 = vpop.xlane.xlu1 %3043 }
 0x559   : > { %v2526_v61 = vpop.xlane.xlu0 %2525 }
 0x55a   : > { %6632 = vrcp.f32 %v2526_v61 }
 0x55b   : > { %v6627_v27 = vpop.eup %6626  ;;  %6634 = vrcp.f32 %v2522_v37 }
 0x55c   : > { %v3048_v10 = vpop.xlane.xlu1 %3047  ;;  %v3083_v9 = vmul.f32 %v6627_v27, %v10645_v25  ;;  %6636 = vrcp.f32 %v2528_v55  ;;  %v10655_v27 = vld [vmem:[#allocation44_spill] sm:$0xff]  ;;  %v10656_v25 = vld [vmem:[#allocation45_spill] sm:$0xff] }
 0x55d   : > { %v3114_v2 = vpop.permute.xlu0 %3113  ;;  %6638 = vrcp.f32 %v2532_v51  ;;  %v10654_v51 = vld [vmem:[#allocation37_spill] sm:$0xff] }
 0x55e   : > { %6077 = vmatprep.subr.bf16.mxu1 %v3114_v2  ;;  %6640 = vrcp.f32 %v2530_v15 }
 0x55f   : > { %6078 = vmatpush3.bf16.msra.mxu1 %v3114_v2  ;;  %v6629_v44 = vpop.eup %6628  ;;  %6642 = vrcp.f32 %v3042_v5 }
 0x560   : > { %v3050_v36 = vpop.xlane.xlu1 %3049  ;;  %v3084_v59 = vmul.f32 %v6629_v44, %v10646_v8  ;;  %v6631_v24 = vpop.eup %6630  ;;  %6644 = vrcp.f32 %v8564_v4 }
 0x561   : > { %v2568_v37 = vmul.f32 %v6631_v24, %v10647_v17  ;;  %6646 = vrcp.f32 %v3044_v18 }
 0x562   : > { %v3099_v34 = vpack.c.bf16 %v3084_v59, %v3083_v9  ;;  %6648 = vrcp.f32 %v3050_v36  ;;  %v10657_v59 = vld [vmem:[#allocation46_spill] sm:$0xff] }
 0x563   : > { %6650 = vrcp.f32 %v3048_v10 }
 0x564   : > { %6085 = vmatprep.mubr.bf16.mxu1 %v3099_v34  ;;  %v2594_v6 = vpop.permute.xlu1 %2593 }
 0x565   : > { %6047 = vmatprep.subr.bf16.mxu0 %v2594_v6 }
 0x566   : > { %6048 = vmatpush3.bf16.msra.mxu0 %v2594_v6 }
 0x567   : > { %v6633_v29 = vpop.eup %6632 }
 0x568   : > { %v3112_v39 = vpop.permute.xlu1 %3111  ;;  %v6635_v63 = vpop.eup %6634  ;;  %v2569_v53 = vmul.f32 %v6633_v29, %v10648_v11 }
 0x569   : > { %6079 = vmatprep.subr.bf16.mxu1 %v3112_v39  ;;  %v6637_v45 = vpop.eup %6636  ;;  %v2567_v21 = vmul.f32 %v6635_v63, %v10649_v1 }
 0x56a   : > { %6080 = vmatpush3.bf16.msra.mxu1 %v3112_v39  ;;  %v2570_v47 = vmul.f32 %v6637_v45, %v10650_v54  ;;  %v6639_v55 = vpop.eup %6638 }
 0x56b   : > { %v2582_v50 = vpack.c.bf16 %v2568_v37, %v2567_v21  ;;  %v6641_v40 = vpop.eup %6640  ;;  %v2572_v20 = vmul.f32 %v6639_v55, %v10651_v58 }
 0x56c   : > { %v2592_v3 = vpop.permute.xlu1 %2591  ;;  %v2583_v14 = vpack.c.bf16 %v2570_v47, %v2569_v53  ;;  %v2571_v19 = vmul.f32 %v6641_v40, %v10652_v62  ;;  %v6643_v60 = vpop.eup %6642 }
 0x56d   : > { %6049 = vmatprep.subr.bf16.mxu0 %v2592_v3  ;;  %v6645_v57 = vpop.eup %6644  ;;  %v3086_v0 = vmul.f32 %v6643_v60, %v10653_v38 }
 0x56e   : > { %6050 = vmatpush3.bf16.msra.mxu0 %v2592_v3  ;;  %v2584_v41 = vpack.c.bf16 %v2572_v20, %v2571_v19  ;;  %v3085_v61 = vmul.f32 %v6645_v57, %v10654_v51  ;;  %v6647_v5 = vpop.eup %6646 }
 0x56f   : > { %v6649_v4 = vpop.eup %6648  ;;  %v3087_v44 = vmul.f32 %v6647_v5, %v10655_v27 }
 0x570   : > { %v2590_v22 = vpop.permute.xlu1 %2589  ;;  %v3100_v2 = vpack.c.bf16 %v3086_v0, %v3085_v61  ;;  %v6651_v18 = vpop.eup %6650  ;;  %v3090_v9 = vmul.f32 %v6649_v4, %v10656_v25 }
 0x571   : > { %6051 = vmatprep.subr.bf16.mxu0 %v2590_v22  ;;  %v3089_v34 = vmul.f32 %v6651_v18, %v10657_v59 }
 0x572   : > { %6052 = vmatpush3.bf16.msra.mxu0 %v2590_v22 }
 0x573   : > { %v3102_v6 = vpack.c.bf16 %v3090_v9, %v3089_v34 }
 0x574   : > { %v3108_v15 = vpop.permute.xlu1 %3107 }
 0x575   : > { %6054 = vmatmul.mubr.bf16.vlgmr.msra.gmra.mxu0 %v2582_v50 }
 0x576   : > { %6057 = vmatprep.mubr.bf16.mxu0 %v2583_v14 }
 0x57d   : > { %6058 = vmatmul.mubr.bf16.gmra.mxu0 %v2584_v41 }
 0x58e   : > { %v3046_v52 = vpop.xlane.xlu0 %3045 }
 0x58f   : > { %6652 = vrcp.f32 %v3046_v52 }
 0x592   : > { %v3110_v13 = vpop.permute.xlu0 %3109 }
 0x593   : > { %6081 = vmatprep.subr.bf16.mxu1 %v3110_v13 }
 0x594   : > { %6082 = vmatpush3.bf16.msra.mxu1 %v3110_v13 }
 0x595   : > { %6083 = vmatprep.subr.bf16.mxu1 %v3108_v15 }
 0x598   : > { %6084 = vmatpush3.bf16.msra.mxu1 %v3108_v15 }
 0x59b   : > { %6086 = vmatmul.mubr.bf16.vlgmr.msra.gmra.mxu1 %v3100_v2 }
 0x59c   : > { %v6653_v10 = vpop.eup %6652 }
 0x59d   : > { %v3088_v36 = vmul.f32 %v6653_v10, %v8441_v46 }
 0x59f   : > { %v3101_v8 = vpack.c.bf16 %v3088_v36, %v3087_v44 }
 0x5a1   : > { %6089 = vmatprep.mubr.bf16.mxu1 %v3101_v8 }
 0x5a3   : > { %6090 = vmatmul.mubr.bf16.gmra.mxu1 %v3102_v6 }
 0x5a5   : > { %v2534_v39 = vpop.xlane.xlu1 %2533 }
 0x5a9   : > { %v2538_v24 = vpop.xlane.xlu1 %2537 }
 0x5ad   : > { %v2540_v3 = vpop.xlane.xlu1 %2539 }
 0x5ae   : > { %6654 = vrcp.f32 %v2540_v3 }
 0x5af   : > { %6656 = vrcp.f32 %v2534_v39 }
 0x5b0   : > { %6658 = vrcp.f32 %v2538_v24 }
 0x5b1   : > { %v3054_v29 = vpop.xlane.xlu1 %3053 }
 0x5b5   : > { %v3058_v63 = vpop.xlane.xlu1 %3057 }
 0x5b9   : > { %v2544_v53 = vpop.xlane.xlu1 %2543 }
 0x5bb   : > { %v6655_v14 = vpop.eup %6654 }
 0x5bc   : > { %v6657_v40 = vpop.eup %6656  ;;  %v2576_v60 = vmul.f32 %v6655_v14, %v8494_v56 }
 0x5bd   : > { %v2548_v50 = vpop.xlane.xlu1 %2547  ;;  %v6659_v20 = vpop.eup %6658  ;;  %v2573_v57 = vmul.f32 %v6657_v40, %v8472_v35 }
 0x5be   : > { %v2575_v61 = vmul.f32 %v6659_v20, %v8485_v32 }
 0x5bf   : > { %v5991_v45 = vpop.f32.mrf.mxu1 }
 0x5c0   : > { %v1733_v17 = vmax.f32 %v5991_v45, 0.0  ;;  %v2586_v18 = vpack.c.bf16 %v2576_v60, %v2575_v61 }
 0x5c1   : > { %v1668_v37 = vpop.f32.mrf.mxu1  ;;  %v3062_v41 = vpop.xlane.xlu1 %3061 }
 0x5c2   : > { %1749 = vst.msk [vmem:[#allocation2 + $0x10] sm:$0xff] %vm1092_vm1, %v1733_v17  ;;  %v1731_v46 = vmax.f32 %v1668_v37, 0.0 }
 0x5c3   : > { %v2536_v22 = vpop.xlane.xlu0 %2535  ;;  %v5992_v11 = vpop.f32.mrf.mxu1 }
 0x5c4   : > { %6660 = vrcp.f32 %v2536_v22  ;;  %1747 = vst.msk [vmem:[#allocation2] sm:$0xff] %vm1092_vm1, %v1731_v46  ;;  %v1734_v1 = vmax.f32 %v5992_v11, 0.0 }
 0x5c5   : > { %6662 = vrcp.f32 %v3054_v29  ;;  %v1671_v21 = vpop.f32.mrf.mxu1  ;;  %v3066_v44 = vpop.xlane.xlu1 %3065 }
 0x5c6   : > { %1750 = vst.msk [vmem:[#allocation2 + $0x18] sm:$0xff] %vm1092_vm1, %v1734_v1  ;;  %v1732_v54 = vmax.f32 %v1671_v21, 0.0 }
 0x5c7   : > { %v3052_v47 = vpop.xlane.xlu0 %3051 }
 0x5c8   : > { %6664 = vrcp.f32 %v3052_v47  ;;  %1748 = vst.msk [vmem:[#allocation2 + $0x8] sm:$0xff] %vm1092_vm1, %v1732_v54  ;;  %v10658_v47 = vmov 0  }
 0x5c9   : > { %6666 = vrcp.f32 %v3058_v63 }
 0x5cb   : > { %v3056_v55 = vpop.xlane.xlu0 %3055 }
 0x5cc   : > { %6668 = vrcp.f32 %v3056_v55 }
 0x5cd   : > { %6670 = vrcp.f32 %v2544_v53 }
 0x5cf   : > { %v2542_v58 = vpop.xlane.xlu0 %2541  ;;  %v5995_v62 = vpop.f32.mrf.mxu1 }
 0x5d0   : > { %6672 = vrcp.f32 %v2542_v58  ;;  %v1737_v52 = vmax.f32 %v5995_v62, 0.0 }
 0x5d1   : > { %v6661_v19 = vpop.eup %6660  ;;  %6674 = vrcp.f32 %v2548_v50  ;;  %v1684_v13 = vpop.f32.mrf.mxu1 }
 0x5d2   : > { %v2574_v15 = vmul.f32 %v6661_v19, %v8518_v48  ;;  %v6663_v38 = vpop.eup %6662  ;;  %1753 = vst.msk [vmem:[#allocation2 + $0x30] sm:$0xff] %vm1092_vm1, %v1737_v52  ;;  %v1735_v0 = vmax.f32 %v1684_v13, 0.0 }
 0x5d3   : > { %v2546_v51 = vpop.xlane.xlu0 %2545  ;;  %v5996_v5 = vpop.f32.mrf.mxu1  ;;  %v3092_v48 = vmul.f32 %v6663_v38, %v8501_v42 }
 0x5d4   : > { %6676 = vrcp.f32 %v2546_v51  ;;  %v2585_v2 = vpack.c.bf16 %v2574_v15, %v2573_v57  ;;  %1751 = vst.msk [vmem:[#allocation2 + $0x20] sm:$0xff] %vm1092_vm1, %v1735_v0  ;;  %v1738_v56 = vmax.f32 %v5996_v5, 0.0 }
 0x5d5   : > { %v6665_v4 = vpop.eup %6664  ;;  %6678 = vrcp.f32 %v3062_v41  ;;  %v1687_v10 = vpop.f32.mrf.mxu1 }
 0x5d6   : > { %6061 = vmatprep.mubr.bf16.mxu0 %v2585_v2  ;;  %v3091_v35 = vmul.f32 %v6665_v4, %v8544_v23  ;;  %v6667_v27 = vpop.eup %6666  ;;  %1754 = vst.msk [vmem:[#allocation2 + $0x38] sm:$0xff] %vm1092_vm1, %v1738_v56  ;;  %v1736_v32 = vmax.f32 %v1687_v10, 0.0 }
 0x5d7   : > { %6062 = vmatmul.mubr.bf16.gmra.mxu0 %v2586_v18  ;;  %v3060_v36 = vpop.xlane.xlu0 %3059  ;;  %v3094_v23 = vmul.f32 %v6667_v27, %v8508_v26 }
 0x5d8   : > { %6680 = vrcp.f32 %v3060_v36  ;;  %v3103_v25 = vpack.c.bf16 %v3092_v48, %v3091_v35  ;;  %1752 = vst.msk [vmem:[#allocation2 + $0x28] sm:$0xff] %vm1092_vm1, %v1736_v32 }
 0x5d9   : > { %v6669_v9 = vpop.eup %6668  ;;  %6682 = vrcp.f32 %v3066_v44 }
 0x5da   : > { %6093 = vmatprep.mubr.bf16.mxu1 %v3103_v25  ;;  %v3093_v8 = vmul.f32 %v6669_v9, %v8551_v12  ;;  %v6671_v59 = vpop.eup %6670 }
 0x5db   : > { %v3064_v42 = vpop.xlane.xlu0 %3063  ;;  %v2578_v24 = vmul.f32 %v6671_v59, %v8513_v30 }
 0x5dc   : > { %6684 = vrcp.f32 %v3064_v42  ;;  %v3104_v34 = vpack.c.bf16 %v3094_v23, %v3093_v8 }
 0x5dd   : > { %v6673_v6 = vpop.eup %6672 }
 0x5de   : > { %6094 = vmatmul.mubr.bf16.gmra.mxu1 %v3104_v34  ;;  %v2577_v39 = vmul.f32 %v6673_v6, %v8556_v31  ;;  %v6675_v3 = vpop.eup %6674 }
 0x5df   : > { %v5999_v45 = vpop.f32.mrf.mxu1  ;;  %v2580_v26 = vmul.f32 %v6675_v3, %v8520_v49 }
 0x5e0   : > { %v2587_v29 = vpack.c.bf16 %v2578_v24, %v2577_v39  ;;  %v1741_v17 = vmax.f32 %v5999_v45, 0.0 }
 0x5e1   : > { %v6677_v63 = vpop.eup %6676  ;;  %v1700_v46 = vpop.f32.mrf.mxu1 }
 0x5e2   : > { %6065 = vmatprep.mubr.bf16.mxu0 %v2587_v29  ;;  %v2579_v12 = vmul.f32 %v6677_v63, %v8562_v28  ;;  %v6679_v37 = vpop.eup %6678  ;;  %1757 = vst.msk [vmem:[#allocation2 + $0x50] sm:$0xff] %vm1092_vm1, %v1741_v17  ;;  %v1739_v22 = vmax.f32 %v1700_v46, 0.0 }
 0x5e3   : > { %v6000_v31 = vpop.f32.mrf.mxu1  ;;  %v3096_v21 = vmul.f32 %v6679_v37, %v8527_v33 }
 0x5e4   : > { %v2588_v11 = vpack.c.bf16 %v2580_v26, %v2579_v12  ;;  %1755 = vst.msk [vmem:[#allocation2 + $0x40] sm:$0xff] %vm1092_vm1, %v1739_v22  ;;  %v1742_v30 = vmax.f32 %v6000_v31, 0.0 }
 0x5e5   : > { %v6681_v53 = vpop.eup %6680  ;;  %v1703_v28 = vpop.f32.mrf.mxu1 }
 0x5e6   : > { %6066 = vmatmul.mubr.bf16.gmra.mxu0 %v2588_v11  ;;  %v3095_v1 = vmul.f32 %v6681_v53, %v8569_v7  ;;  %v6683_v54 = vpop.eup %6682  ;;  %1758 = vst.msk [vmem:[#allocation2 + $0x58] sm:$0xff] %vm1092_vm1, %v1742_v30  ;;  %v1740_v49 = vmax.f32 %v1703_v28, 0.0 }
 0x5e7   : > { %3477 = vmatprep.mubr.bf16.mxu0 %v10658_v47  ;;  %v6003_v14 = vpop.f32.mrf.mxu1  ;;  %v3098_v7 = vmul.f32 %v6683_v54, %v8535_v16 }
 0x5e8   : > { %v3105_v50 = vpack.c.bf16 %v3096_v21, %v3095_v1  ;;  %1756 = vst.msk [vmem:[#allocation2 + $0x48] sm:$0xff] %vm1092_vm1, %v1740_v49  ;;  %v1745_v40 = vmax.f32 %v6003_v14, 0.0  ;;  %v6406_v14 = vld [vmem:[%s10367_s8 + $0x70] ss:$8 sps:$4 sm:$0xff]  }
 0x5e9   : > { %v6685_v55 = vpop.eup %6684  ;;  %v1716_v20 = vpop.f32.mrf.mxu1 }
 0x5ea   : > { %6097 = vmatprep.mubr.bf16.mxu1 %v3105_v50  ;;  %v3097_v58 = vmul.f32 %v6685_v55, %v8576_v43  ;;  %1761 = vst.msk [vmem:[#allocation2 + $0x70] sm:$0xff] %vm1092_vm1, %v1745_v40  ;;  %v1743_v33 = vmax.f32 %v1716_v20, 0.0  ;;  %v6408_v40 = vld [vmem:[%s10367_s8 + $0x74] ss:$8 sps:$4 sm:$0xff]  }
 0x5eb   : > { %v6004_v19 = vpop.f32.mrf.mxu1  ;;  %3445 = vmatprep.subr.bf16.mxu0 %v6408_v40 }
 0x5ec   : > { %v3106_v62 = vpack.c.bf16 %v3098_v7, %v3097_v58  ;;  %1759 = vst.msk [vmem:[#allocation2 + $0x60] sm:$0xff] %vm1092_vm1, %v1743_v33  ;;  %v1746_v41 = vmax.f32 %v6004_v19, 0.0  ;;  %3446 = vmatpush1.bf16.msra.mxu0 %v6406_v14  ;;  %v6409_v33 = vld [vmem:[%s10367_s8 + $0x60] ss:$8 sps:$4 sm:$0xff]  }
 0x5ed   : > { %v1719_v52 = vpop.f32.mrf.mxu1 }
 0x5ee   : > { %6098 = vmatmul.mubr.bf16.gmra.mxu1 %v3106_v62  ;;  %1762 = vst.msk [vmem:[#allocation2 + $0x78] sm:$0xff] %vm1092_vm1, %v1746_v41  ;;  %v1744_v60 = vmax.f32 %v1719_v52, 0.0  ;;  %v6411_v62 = vld [vmem:[%s10367_s8 + $0x64] ss:$8 sps:$4 sm:$0xff]  }
 0x5ef   : > { %3447 = vmatprep.subr.bf16.mxu0 %v6411_v62 }
 0x5f0   : > { %1760 = vst.msk [vmem:[#allocation2 + $0x68] sm:$0xff] %vm1092_vm1, %v1744_v60  ;;  %3448 = vmatpush1.bf16.msra.mxu0 %v6409_v33  ;;  %v6412_v60 = vld [vmem:[%s10367_s8 + $0x50] ss:$8 sps:$4 sm:$0xff]  }
 0x5f7   : > { %v6023_v48 = vpop.f32.mrf.mxu1 }
 0x5f8   : > { %v2194_v21 = vmax.f32 %v6023_v48, 0.0 }
 0x5f9   : > { %v2129_v27 = vpop.f32.mrf.mxu1 }
 0x5fa   : > { %v2192_v49 = vmax.f32 %v2129_v27, 0.0 }
 0x5fb   : > { %v6024_v44 = vpop.f32.mrf.mxu1 }
 0x5fc   : > { %v2195_v58 = vmax.f32 %v6024_v44, 0.0 }
 0x5fd   : > { %v2132_v32 = vpop.f32.mrf.mxu1 }
 0x5fe   : > { %v2193_v50 = vmax.f32 %v2132_v32, 0.0  ;;  %v6424_v32 = vld [vmem:[%s10367_s8 + $0x10] ss:$8 sps:$4 sm:$0xff]  }
 0x5ff   : > { %v6027_v36 = vpop.f32.mrf.mxu1 }
 0x600   : > { %v2198_v7 = vmax.f32 %v6027_v36, 0.0  ;;  %v6426_v36 = vld [vmem:[%s10367_s8 + $0x14] ss:$8 sps:$4 sm:$0xff]  }
 0x601   : > { %v2145_v25 = vpop.f32.mrf.mxu1 }
 0x602   : > { %v2196_v19 = vmax.f32 %v2145_v25, 0.0 }
 0x603   : > { %v6028_v9 = vpop.f32.mrf.mxu1 }
 0x604   : > { %v2199_v41 = vmax.f32 %v6028_v9, 0.0 }
 0x605   : > { %v8635_v8 = vpop.f32.mrf.mxu1 }
 0x608   : > { %v8637_v23 = vpop.f32.mrf.mxu1 }
 0x60a   : > { %v8639_v6 = vpop.f32.mrf.mxu1 }
 0x60c   : > { %v8642_v63 = vpop.f32.mrf.mxu1 }
 0x60e   : > { %v8646_v17 = vpop.f32.mrf.mxu1 }
 0x610   : > { %v8649_v12 = vpop.f32.mrf.mxu1 }
 0x612   : > { %v8652_v22 = vpop.f32.mrf.mxu1 }
 0x613   : > { %v2204_v48 = vmax.f32 %v8652_v22, 0.0 }
 0x614   : > { %v8656_v1 = vpop.f32.mrf.mxu1 }
 0x615   : > { %v2207_v27 = vmax.f32 %v8656_v1, 0.0 }
 0x616   : > { %v8660_v28 = vpop.f32.mrf.mxu1 }
 0x617   : > { %v2205_v25 = vmax.f32 %v8660_v28, 0.0 }
 0x635   : > { %v6055_v13 = vpop.f32.mrf.mxu0 }
 0x636   : > { %v2712_v43 = vmax.f32 %v6055_v13, 0.0  ;;  %v6414_v13 = vld [vmem:[%s10367_s8 + $0x54] ss:$8 sps:$4 sm:$0xff]  }
 0x637   : > { %v2647_v57 = vpop.f32.mrf.mxu0  ;;  %3449 = vmatprep.subr.bf16.mxu0 %v6414_v13 }
 0x638   : > { %2746 = vrot.lane.b32.xlu1 %v2712_v43, %s10441_s23  ;;  %v2710_v15 = vmax.f32 %v2647_v57, 0.0  ;;  %v2197_v43 = vmax.f32 %v8635_v8, 0.0  ;;  %v2202_v57 = vmax.f32 %v8637_v23, 0.0  ;;  %3450 = vmatpush1.bf16.msra.mxu0 %v6412_v60  ;;  %v6427_v23 = vld [vmem:[%s10367_s8] ss:$8 sps:$4 sm:$0xff]  }
 0x639   : > { %v6056_v16 = vpop.f32.mrf.mxu0 }
 0x63a   : > { %v2713_v38 = vmax.f32 %v6056_v16, 0.0 }
 0x63b   : > { %v2650_v0 = vpop.f32.mrf.mxu0 }
 0x63c   : > { %2742 = vrot.lane.b32.xlu1 %v2710_v15, %s10441_s23  ;;  %2748 = vrot.lane.b32.xlu0 %v2713_v38, %s10441_s23  ;;  %v2711_v61 = vmax.f32 %v2650_v0, 0.0  ;;  %v6415_v15 = vld [vmem:[%s10367_s8 + $0x40] ss:$8 sps:$4 sm:$0xff]   ;;  %v6417_v38 = vld [vmem:[%s10367_s8 + $0x44] ss:$8 sps:$4 sm:$0xff]   ;;  %v2200_v0 = vmax.f32 %v8639_v6, 0.0 }
 0x63d   : > { %v6059_v51 = vpop.f32.mrf.mxu0  ;;  %3451 = vmatprep.subr.bf16.mxu0 %v6417_v38 }
 0x63e   : > { %v2716_v5 = vmax.f32 %v6059_v51, 0.0  ;;  %v2203_v51 = vmax.f32 %v8642_v63, 0.0  ;;  %3452 = vmatpush1.bf16.msra.mxu0 %v6415_v15 }
 0x63f   : > { %v2663_v2 = vpop.f32.mrf.mxu0 }
 0x640   : > { %2744 = vrot.lane.b32.xlu0 %v2711_v61, %s10441_s23  ;;  %2754 = vrot.lane.b32.xlu1 %v2716_v5, %s10441_s23  ;;  %v2714_v56 = vmax.f32 %v2663_v2, 0.0  ;;  %v6418_v5 = vld [vmem:[%s10367_s8 + $0x30] ss:$8 sps:$4 sm:$0xff]   ;;  %v6420_v2 = vld [vmem:[%s10367_s8 + $0x34] ss:$8 sps:$4 sm:$0xff]  }
 0x641   : > { %v6060_v4 = vpop.f32.mrf.mxu0  ;;  %3453 = vmatprep.subr.bf16.mxu0 %v6420_v2 }
 0x642   : > { %v2717_v18 = vmax.f32 %v6060_v4, 0.0  ;;  %v2201_v4 = vmax.f32 %v8646_v17, 0.0  ;;  %3454 = vmatpush1.bf16.msra.mxu0 %v6418_v5 }
 0x643   : > { %v2666_v10 = vpop.f32.mrf.mxu0 }
 0x644   : > { %2750 = vrot.lane.b32.xlu1 %v2714_v56, %s10441_s23  ;;  %2756 = vrot.lane.b32.xlu0 %v2717_v18, %s10441_s23  ;;  %v2715_v35 = vmax.f32 %v2666_v10, 0.0  ;;  %v2206_v56 = vmax.f32 %v8649_v12, 0.0  ;;  %v6421_v10 = vld [vmem:[%s10367_s8 + $0x20] ss:$8 sps:$4 sm:$0xff]  }
 0x648   : > { %2752 = vrot.lane.b32.xlu0 %v2715_v35, %s10441_s23  ;;  %v6423_v35 = vld [vmem:[%s10367_s8 + $0x24] ss:$8 sps:$4 sm:$0xff]  }
 0x649   : > { %3455 = vmatprep.subr.bf16.mxu0 %v6423_v35 }
 0x64a   : > { %3456 = vmatpush1.bf16.msra.mxu0 %v6421_v10 }
 0x64b   : > { %3457 = vmatprep.subr.bf16.mxu0 %v6426_v36 }
 0x64e   : > { %3458 = vmatpush1.bf16.msra.mxu0 %v6424_v32 }
 0x65b   : > { %v8662_v55 = vpop.f32.mrf.mxu1 }
 0x65c   : > { %v3230_v9 = vmax.f32 %v8662_v55, 0.0 }
 0x65d   : > { %v8672_v20 = vpop.f32.mrf.mxu1 }
 0x65f   : > { %v6088_v52 = vpop.f32.mrf.mxu1 }
 0x660   : > { %v3231_v6 = vmax.f32 %v6088_v52, 0.0 }
 0x661   : > { %v3168_v16 = vpop.f32.mrf.mxu1 }
 0x663   : > { %v6091_v61 = vpop.f32.mrf.mxu1 }
 0x665   : > { %v3181_v18 = vpop.f32.mrf.mxu1 }
 0x666   : > { %v3232_v63 = vmax.f32 %v3181_v18, 0.0 }
 0x667   : > { %v6092_v44 = vpop.f32.mrf.mxu1 }
 0x669   : > { %v3184_v8 = vpop.f32.mrf.mxu1 }
 0x66a   : > { %v3233_v12 = vmax.f32 %v3184_v8, 0.0 }
 0x697   : > { %v6063_v59 = vpop.f32.mrf.mxu0 }
 0x698   : > { %v2720_v42 = vmax.f32 %v6063_v59, 0.0  ;;  %v6429_v59 = vld [vmem:[%s10367_s8 + $0x4] ss:$8 sps:$4 sm:$0xff]  }
 0x699   : > { %v2679_v34 = vpop.f32.mrf.mxu0  ;;  %3459 = vmatprep.subr.bf16.mxu0 %v6429_v59 }
 0x69a   : > { %2762 = vrot.lane.b32.xlu1 %v2720_v42, %s10441_s23  ;;  %v2718_v24 = vmax.f32 %v2679_v34, 0.0  ;;  %v3228_v34 = vmax.f32 %v8672_v20, 0.0  ;;  %3460 = vmatpush1.bf16.msra.mxu0 %v6427_v23 }
 0x69b   : > { %v6064_v39 = vpop.f32.mrf.mxu0 }
 0x69c   : > { %v2721_v3 = vmax.f32 %v6064_v39, 0.0 }
 0x69d   : > { %v2682_v29 = vpop.f32.mrf.mxu0 }
 0x69e   : > { %2758 = vrot.lane.b32.xlu1 %v2718_v24, %s10441_s23  ;;  %2764 = vrot.lane.b32.xlu0 %v2721_v3, %s10441_s23  ;;  %v2719_v45 = vmax.f32 %v2682_v29, 0.0  ;;  %v6095_v42 = vpop.f32.mrf.mxu1  ;;  %v3229_v24 = vmax.f32 %v3168_v16, 0.0  ;;  %v3234_v3 = vmax.f32 %v6091_v61, 0.0 }
 0x6a0   : > { %v3197_v39 = vpop.f32.mrf.mxu1 }
 0x6a2   : > { %2760 = vrot.lane.b32.xlu0 %v2719_v45, %s10441_s23  ;;  %v6096_v29 = vpop.f32.mrf.mxu1  ;;  %v3235_v45 = vmax.f32 %v6092_v44, 0.0 }
 0x6a3   : > { %v3239_v22 = vmax.f32 %v6096_v29, 0.0 }
 0x6a4   : > { %v3200_v17 = vpop.f32.mrf.mxu1 }
 0x6a6   : > { %v6067_v26 = vpop.f32.mrf.mxu0 }
 0x6a7   : > { %v2724_v37 = vmax.f32 %v6067_v26, 0.0  ;;  %v3238_v26 = vmax.f32 %v6095_v42, 0.0 }
 0x6a8   : > { %v2695_v46 = vpop.f32.mrf.mxu0 }
 0x6a9   : > { %2770 = vrot.lane.b32.xlu1 %v2724_v37, %s10441_s23  ;;  %v2722_v53 = vmax.f32 %v2695_v46, 0.0  ;;  %v3236_v46 = vmax.f32 %v3197_v39, 0.0 }
 0x6aa   : > { %v6068_v11 = vpop.f32.mrf.mxu0 }
 0x6ab   : > { %v2725_v31 = vmax.f32 %v6068_v11, 0.0 }
 0x6ac   : > { %v2698_v30 = vpop.f32.mrf.mxu0 }
 0x6ad   : > { %2766 = vrot.lane.b32.xlu1 %v2722_v53, %s10441_s23  ;;  %2772 = vrot.lane.b32.xlu0 %v2725_v31, %s10441_s23  ;;  %v2723_v54 = vmax.f32 %v2698_v30, 0.0  ;;  %v3237_v53 = vmax.f32 %v3200_v17, 0.0 }
 0x6ae   : > { %v6099_v37 = vpop.f32.mrf.mxu1 }
 0x6af   : > { %v3242_v31 = vmax.f32 %v6099_v37, 0.0 }
 0x6b0   : > { %v3213_v11 = vpop.f32.mrf.mxu1 }
 0x6b1   : > { %2228 = vrot.lane.b32.xlu1 %v2194_v21, %s7028_s24  ;;  %2768 = vrot.lane.b32.xlu0 %v2723_v54, %s10441_s23  ;;  %v3240_v1 = vmax.f32 %v3213_v11, 0.0 }
 0x6b2   : > { %v6100_v30 = vpop.f32.mrf.mxu1 }
 0x6b3   : > { %v3243_v21 = vmax.f32 %v6100_v30, 0.0 }
 0x6b4   : > { %v3216_v54 = vpop.f32.mrf.mxu1 }
 0x6b5   : > { %2226 = vrot.lane.b32.xlu1 %v2193_v50, %s7028_s24  ;;  %2224 = vrot.lane.b32.xlu0 %v2192_v49, %s7028_s24  ;;  %v3241_v28 = vmax.f32 %v3216_v54, 0.0  ;;  %v2747_v49 = vpop.permute.xlu1 %2746  ;;  %v2749_v50 = vpop.permute.xlu0 %2748 }
 0x6b9   : > { %2236 = vrot.lane.b32.xlu1 %v2198_v7, %s7028_s24  ;;  %2230 = vrot.lane.b32.xlu0 %v2195_v58, %s7028_s24  ;;  %v2743_v55 = vpop.permute.xlu1 %2742  ;;  %v2745_v14 = vpop.permute.xlu0 %2744 }
 0x6bd   : > { %2232 = vrot.lane.b32.xlu1 %v2196_v19, %s7028_s24  ;;  %2238 = vrot.lane.b32.xlu0 %v2199_v41, %s7028_s24  ;;  %v2755_v40 = vpop.permute.xlu1 %2754  ;;  %v2757_v58 = vpop.permute.xlu0 %2756 }
 0x6c1   : > { %2244 = vrot.lane.b32.xlu1 %v2202_v57, %s7028_s24  ;;  %2234 = vrot.lane.b32.xlu0 %v2197_v43, %s7028_s24  ;;  %v2751_v7 = vpop.permute.xlu1 %2750  ;;  %v2753_v20 = vpop.permute.xlu0 %2752 }
 0x6c5   : > { %2240 = vrot.lane.b32.xlu1 %v2200_v0, %s7028_s24  ;;  %2246 = vrot.lane.b32.xlu0 %v2203_v51, %s7028_s24 }
 0x6c9   : > { %2252 = vrot.lane.b32.xlu1 %v2206_v56, %s7028_s24  ;;  %2242 = vrot.lane.b32.xlu0 %v2201_v4, %s7028_s24 }
 0x6cd   : > { %2248 = vrot.lane.b32.xlu1 %v2204_v48, %s7028_s24  ;;  %2254 = vrot.lane.b32.xlu0 %v2207_v27, %s7028_s24 }
 0x6d1   : > { %3264 = vrot.lane.b32.xlu1 %v3230_v9, %s7026_s17  ;;  %2250 = vrot.lane.b32.xlu0 %v2205_v25, %s7028_s24 }
 0x6d5   : > { %3260 = vrot.lane.b32.xlu1 %v3228_v34, %s7026_s17  ;;  %3266 = vrot.lane.b32.xlu0 %v3231_v6, %s7026_s17 }
 0x6d9   : > { %3272 = vrot.lane.b32.xlu1 %v3234_v3, %s7026_s17  ;;  %3262 = vrot.lane.b32.xlu0 %v3229_v24, %s7026_s17 }
 0x6dd   : > { %3268 = vrot.lane.b32.xlu1 %v3232_v63, %s7026_s17  ;;  %3274 = vrot.lane.b32.xlu0 %v3235_v45, %s7026_s17 }
 0x6e1   : > { %3280 = vrot.lane.b32.xlu1 %v3238_v26, %s7026_s17  ;;  %3270 = vrot.lane.b32.xlu0 %v3233_v12, %s7026_s17 }
 0x6e5   : > { %3276 = vrot.lane.b32.xlu1 %v3236_v46, %s7026_s17  ;;  %3282 = vrot.lane.b32.xlu0 %v3239_v22, %s7026_s17 }
 0x6e9   : > { %3278 = vrot.lane.b32.xlu0 %v3237_v53, %s7026_s17  ;;  %3288 = vrot.lane.b32.xlu1 %v3242_v31, %s7026_s17 }
 0x6ed   : > { %3284 = vrot.lane.b32.xlu1 %v3240_v1, %s7026_s17  ;;  %3290 = vrot.lane.b32.xlu0 %v3243_v21, %s7026_s17 }
 0x6f1   : > { %3286 = vrot.lane.b32.xlu0 %v3241_v28, %s7026_s17 }
 0x70c   : > { %v2763_v33 = vpop.permute.xlu1 %2762 }
 0x710   : > { %v2765_v62 = vpop.permute.xlu0 %2764  ;;  %v2759_v19 = vpop.permute.xlu1 %2758 }
 0x714   : > { %v2761_v41 = vpop.permute.xlu0 %2760 }
 0x71b   : > { %v2771_v52 = vpop.permute.xlu1 %2770 }
 0x71f   : > { %v2767_v60 = vpop.permute.xlu1 %2766  ;;  %v2773_v13 = vpop.permute.xlu0 %2772 }
 0x723   : > { %v2229_v43 = vpop.permute.xlu1 %2228  ;;  %v2769_v57 = vpop.permute.xlu0 %2768 }
 0x724   : > { %2275 = vst.msk [vmem:[#allocation2 + $0x10] sm:$0xff] %vm2272_vm6, %v2229_v43 }
 0x725   : > { %2793 = vst.msk [vmem:[#allocation2 + $0x10] sm:$0xff] %vm2790_vm7, %v2747_v49 }
 0x727   : > { %v2227_v16 = vpop.permute.xlu1 %2226  ;;  %v2225_v15 = vpop.permute.xlu0 %2224 }
 0x728   : > { %2274 = vst.msk [vmem:[#allocation2 + $0x8] sm:$0xff] %vm2272_vm6, %v2227_v16  ;;  %2273 = vst.msk [vmem:[#allocation2] sm:$0xff] %vm2272_vm6, %v2225_v15 }
 0x729   : > { %2791 = vst.msk [vmem:[#allocation2] sm:$0xff] %vm2790_vm7, %v2743_v55  ;;  %2792 = vst.msk [vmem:[#allocation2 + $0x8] sm:$0xff] %vm2790_vm7, %v2745_v14 }
 0x72b   : > { %v2237_v38 = vpop.permute.xlu1 %2236  ;;  %v2231_v0 = vpop.permute.xlu0 %2230 }
 0x72c   : > { %2279 = vst.msk [vmem:[#allocation2 + $0x30] sm:$0xff] %vm2272_vm6, %v2237_v38  ;;  %2276 = vst.msk [vmem:[#allocation2 + $0x18] sm:$0xff] %vm2272_vm6, %v2231_v0 }
 0x72d   : > { %2794 = vst.msk [vmem:[#allocation2 + $0x18] sm:$0xff] %vm2790_vm7, %v2749_v50  ;;  %2797 = vst.msk [vmem:[#allocation2 + $0x30] sm:$0xff] %vm2790_vm7, %v2755_v40 }
 0x72f   : > { %v2233_v51 = vpop.permute.xlu1 %2232  ;;  %v2239_v61 = vpop.permute.xlu0 %2238 }
 0x730   : > { %2277 = vst.msk [vmem:[#allocation2 + $0x20] sm:$0xff] %vm2272_vm6, %v2233_v51  ;;  %2280 = vst.msk [vmem:[#allocation2 + $0x38] sm:$0xff] %vm2272_vm6, %v2239_v61 }
 0x731   : > { %2795 = vst.msk [vmem:[#allocation2 + $0x20] sm:$0xff] %vm2790_vm7, %v2751_v7  ;;  %2798 = vst.msk [vmem:[#allocation2 + $0x38] sm:$0xff] %vm2790_vm7, %v2757_v58 }
 0x733   : > { %v2245_v5 = vpop.permute.xlu1 %2244  ;;  %v2235_v2 = vpop.permute.xlu0 %2234 }
 0x734   : > { %2283 = vst.msk [vmem:[#allocation2 + $0x50] sm:$0xff] %vm2272_vm6, %v2245_v5  ;;  %2278 = vst.msk [vmem:[#allocation2 + $0x28] sm:$0xff] %vm2272_vm6, %v2235_v2 }
 0x735   : > { %2796 = vst.msk [vmem:[#allocation2 + $0x28] sm:$0xff] %vm2790_vm7, %v2753_v20  ;;  %2801 = vst.msk [vmem:[#allocation2 + $0x50] sm:$0xff] %vm2790_vm7, %v2763_v33 }
 0x737   : > { %v2241_v4 = vpop.permute.xlu1 %2240  ;;  %v2247_v56 = vpop.permute.xlu0 %2246 }
 0x738   : > { %2281 = vst.msk [vmem:[#allocation2 + $0x40] sm:$0xff] %vm2272_vm6, %v2241_v4  ;;  %2284 = vst.msk [vmem:[#allocation2 + $0x58] sm:$0xff] %vm2272_vm6, %v2247_v56  ;;  %v10662_v56 = vmov 3  }
 0x739   : > { %2799 = vst.msk [vmem:[#allocation2 + $0x40] sm:$0xff] %vm2790_vm7, %v2759_v19  ;;  %2802 = vst.msk [vmem:[#allocation2 + $0x58] sm:$0xff] %vm2790_vm7, %v2765_v62 }
 0x73b   : > { %v2253_v18 = vpop.permute.xlu1 %2252  ;;  %v2243_v10 = vpop.permute.xlu0 %2242 }
 0x73c   : > { %2287 = vst.msk [vmem:[#allocation2 + $0x70] sm:$0xff] %vm2272_vm6, %v2253_v18  ;;  %2282 = vst.msk [vmem:[#allocation2 + $0x48] sm:$0xff] %vm2272_vm6, %v2243_v10 }
 0x73d   : > { %2800 = vst.msk [vmem:[#allocation2 + $0x48] sm:$0xff] %vm2790_vm7, %v2761_v41  ;;  %2805 = vst.msk [vmem:[#allocation2 + $0x70] sm:$0xff] %vm2790_vm7, %v2771_v52 }
 0x73f   : > { %v2249_v35 = vpop.permute.xlu1 %2248  ;;  %v2255_v48 = vpop.permute.xlu0 %2254 }
 0x740   : > { %2285 = vst.msk [vmem:[#allocation2 + $0x60] sm:$0xff] %vm2272_vm6, %v2249_v35  ;;  %2288 = vst.msk [vmem:[#allocation2 + $0x78] sm:$0xff] %vm2272_vm6, %v2255_v48 }
 0x741   : > { %2803 = vst.msk [vmem:[#allocation2 + $0x60] sm:$0xff] %vm2790_vm7, %v2767_v60  ;;  %2806 = vst.msk [vmem:[#allocation2 + $0x78] sm:$0xff] %vm2790_vm7, %v2773_v13  ;;  %v10659_v60 = vmov 1  }
 0x743   : > { %v3265_v27 = vpop.permute.xlu1 %3264  ;;  %v2251_v44 = vpop.permute.xlu0 %2250 }
 0x744   : > { %3311 = vst.msk [vmem:[#allocation2 + $0x10] sm:$0xff] %vm3308_vm8, %v3265_v27 }
 0x745   : > { %2286 = vst.msk [vmem:[#allocation2 + $0x68] sm:$0xff] %vm2272_vm6, %v2251_v44 }
 0x746   : > { %2804 = vst.msk [vmem:[#allocation2 + $0x68] sm:$0xff] %vm2790_vm7, %v2769_v57  ;;  %v10660_v57 = vmov 2  }
 0x747   : > { %v3261_v32 = vpop.permute.xlu1 %3260  ;;  %v3267_v36 = vpop.permute.xlu0 %3266 }
 0x748   : > { %3309 = vst.msk [vmem:[#allocation2] sm:$0xff] %vm3308_vm8, %v3261_v32  ;;  %3312 = vst.msk [vmem:[#allocation2 + $0x18] sm:$0xff] %vm3308_vm8, %v3267_v36 }
 0x74b   : > { %v3273_v25 = vpop.permute.xlu1 %3272  ;;  %v3263_v9 = vpop.permute.xlu0 %3262  ;;  %v3327_v17 = vld [vmem:[#allocation2 + $0x10] sm:$0xff] }
 0x74c   : > { %3315 = vst.msk [vmem:[#allocation2 + $0x30] sm:$0xff] %vm3308_vm8, %v3273_v25  ;;  %3310 = vst.msk [vmem:[#allocation2 + $0x8] sm:$0xff] %vm3308_vm8, %v3263_v9 }
 0x74f   : > { %v3269_v8 = vpop.permute.xlu1 %3268  ;;  %v3275_v23 = vpop.permute.xlu0 %3274  ;;  %v3325_v34 = vld [vmem:[#allocation2] sm:$0xff]  ;;  %v3328_v29 = vld [vmem:[#allocation2 + $0x18] sm:$0xff] }
 0x750   : > { %3313 = vst.msk [vmem:[#allocation2 + $0x20] sm:$0xff] %vm3308_vm8, %v3269_v8  ;;  %3316 = vst.msk [vmem:[#allocation2 + $0x38] sm:$0xff] %vm3308_vm8, %v3275_v23  ;;  %v3342_v12 = vpack.c.bf16 %v3328_v29, %v3327_v17 }
 0x753   : > { %v3281_v59 = vpop.permute.xlu1 %3280  ;;  %v3271_v42 = vpop.permute.xlu0 %3270  ;;  %v3326_v6 = vld [vmem:[#allocation2 + $0x8] sm:$0xff]  ;;  %v3331_v30 = vld [vmem:[#allocation2 + $0x30] sm:$0xff] }
 0x754   : > { %3319 = vst.msk [vmem:[#allocation2 + $0x50] sm:$0xff] %vm3308_vm8, %v3281_v59  ;;  %3314 = vst.msk [vmem:[#allocation2 + $0x28] sm:$0xff] %vm3308_vm8, %v3271_v42  ;;  %v3341_v39 = vpack.c.bf16 %v3326_v6, %v3325_v34 }
 0x756   : > { %3478 = vmatmul.mubr.bf16.vlgmr.msra.gmra.mxu0 %v3341_v39 }
 0x757   : > { %v3277_v24 = vpop.permute.xlu1 %3276  ;;  %v3283_v3 = vpop.permute.xlu0 %3282  ;;  %3487 = vmatprep.mubr.bf16.mxu0 %v10658_v47  ;;  %v3329_v11 = vld [vmem:[#allocation2 + $0x20] sm:$0xff]  ;;  %v3332_v31 = vld [vmem:[#allocation2 + $0x38] sm:$0xff] }
 0x758   : > { %3317 = vst.msk [vmem:[#allocation2 + $0x40] sm:$0xff] %vm3308_vm8, %v3277_v24  ;;  %3320 = vst.msk [vmem:[#allocation2 + $0x58] sm:$0xff] %vm3308_vm8, %v3283_v3  ;;  %v3344_v1 = vpack.c.bf16 %v3332_v31, %v3331_v30 }
 0x75b   : > { %v3289_v63 = vpop.permute.xlu1 %3288  ;;  %v3279_v45 = vpop.permute.xlu0 %3278  ;;  %v3330_v46 = vld [vmem:[#allocation2 + $0x28] sm:$0xff]  ;;  %v3335_v50 = vld [vmem:[#allocation2 + $0x50] sm:$0xff] }
 0x75c   : > { %3323 = vst.msk [vmem:[#allocation2 + $0x70] sm:$0xff] %vm3308_vm8, %v3289_v63  ;;  %3318 = vst.msk [vmem:[#allocation2 + $0x48] sm:$0xff] %vm3308_vm8, %v3279_v45  ;;  %v3343_v53 = vpack.c.bf16 %v3330_v46, %v3329_v11 }
 0x75e   : > { %3488 = vmatmul.mubr.bf16.gmra.mxu0 %v3342_v12 }
 0x75f   : > { %v3285_v26 = vpop.permute.xlu1 %3284  ;;  %v3291_v37 = vpop.permute.xlu0 %3290  ;;  %3497 = vmatprep.mubr.bf16.mxu0 %v10658_v47  ;;  %v3333_v54 = vld [vmem:[#allocation2 + $0x40] sm:$0xff]  ;;  %v3336_v49 = vld [vmem:[#allocation2 + $0x58] sm:$0xff] }
 0x760   : > { %3321 = vst.msk [vmem:[#allocation2 + $0x60] sm:$0xff] %vm3308_vm8, %v3285_v26  ;;  %3324 = vst.msk [vmem:[#allocation2 + $0x78] sm:$0xff] %vm3308_vm8, %v3291_v37  ;;  %v3346_v55 = vpack.c.bf16 %v3336_v49, %v3335_v50 }
 0x763   : > { %v3287_v22 = vpop.permute.xlu0 %3286  ;;  %v3334_v21 = vld [vmem:[#allocation2 + $0x48] sm:$0xff]  ;;  %v3339_v20 = vld [vmem:[#allocation2 + $0x70] sm:$0xff] }
 0x764   : > { %3322 = vst.msk [vmem:[#allocation2 + $0x68] sm:$0xff] %vm3308_vm8, %v3287_v22  ;;  %v3345_v28 = vpack.c.bf16 %v3334_v21, %v3333_v54 }
 0x766   : > { %3498 = vmatmul.mubr.bf16.gmra.mxu0 %v3343_v53 }
 0x767   : > { %3507 = vmatprep.mubr.bf16.mxu0 %v10658_v47  ;;  %v3337_v40 = vld [vmem:[#allocation2 + $0x60] sm:$0xff]  ;;  %v3340_v7 = vld [vmem:[#allocation2 + $0x78] sm:$0xff] }
 0x768   : > { %v3348_v33 = vpack.c.bf16 %v3340_v7, %v3339_v20 }
 0x76b   : > { %v3338_v14 = vld [vmem:[#allocation2 + $0x68] sm:$0xff] }
 0x76c   : > { %v3347_v58 = vpack.c.bf16 %v3338_v14, %v3337_v40 }
 0x76e   : > { %3508 = vmatmul.mubr.bf16.gmra.mxu0 %v3344_v1 }
 0x76f   : > { %3517 = vmatprep.mubr.bf16.mxu0 %v10658_v47 }
 0x776   : > { %3518 = vmatmul.mubr.bf16.gmra.mxu0 %v3345_v28 }
 0x777   : > { %3527 = vmatprep.mubr.bf16.mxu0 %v10658_v47 }
 0x77e   : > { %3528 = vmatmul.mubr.bf16.gmra.mxu0 %v3346_v55 }
 0x77f   : > { %3537 = vmatprep.mubr.bf16.mxu0 %v10658_v47 }
 0x786   : > { %3538 = vmatmul.mubr.bf16.gmra.mxu0 %v3347_v58 }
 0x787   : > { %3547 = vmatprep.mubr.bf16.mxu0 %v10658_v47 }
 0x78e   : > { %3548 = vmatmul.mubr.bf16.gmra.mxu0 %v3348_v33 }
 0x816   : > { %v3479_v62 = vpop.f32.mrf.mxu0 }
 0x818   : > { %v3481_v19 = vpop.f32.mrf.mxu0 }
 0x819   : > { %3663 = vperm.xlu0 %6341, %v3481_v19   ;;  %3574 = vrot.lane.b32.xlu1 %v3481_v19, %s7023_s16 }
 0x81a   : > { %v3483_v41 = vpop.f32.mrf.mxu0 }
 0x81b   : > { %v8817_v15 = vpack.c.bf16 %v3483_v41, %v3479_v62 }
 0x81c   : > { %v3485_v52 = vpop.f32.mrf.mxu0 }
 0x81d   : > { %6345 = vset.pattern.permute.xlu0 %v10659_v60  ;;  %5086 = vperm.xlu1 %6344, %v3481_v19   ;;  %10661 = vst [vmem:[#allocation48_spill] sm:$0xff] %v8817_v15 }
 0x81e   : > { %4076 = vperm.xlu0 %6345, %v3481_v19   ;;  %v8813_v13 = vpop.f32.mrf.mxu0 }
 0x820   : > { %v3491_v43 = vpop.f32.mrf.mxu0 }
 0x821   : > { %6349 = vset.pattern.permute.xlu1 %v10660_v57 }
 0x822   : > { %6346 = vset.pattern.permute.xlu0 %v10660_v57  ;;  %4589 = vperm.xlu1 %6349, %v3485_v52   ;;  %v3493_v16 = vpop.f32.mrf.mxu0 }
 0x823   : > { %4585 = vperm.xlu0 %6346, %v3481_v19   ;;  %v8874_v3 = vpack.c.bf16 %v3493_v16, %v8813_v13 }
 0x824   : > { %v3495_v38 = vpop.f32.mrf.mxu0 }
 0x825   : > { %10664 = vst [vmem:[#allocation52_spill] sm:$0xff] %v8874_v3 }
 0x826   : > { %4383 = vrot.lane.b32.xlu1 %v8817_v15, %s7026_s17  ;;  %v3499_v0 = vpop.f32.mrf.mxu0 }
 0x827   : > { %3576 = vrot.lane.b32.xlu0 %v3485_v52, %s7023_s16 }
 0x828   : > { %v8822_v51 = vpop.f32.mrf.mxu0  ;;  %6347 = vset.pattern.permute.xlu0 %v10658_v47 }
 0x82a   : > { %3578 = vrot.lane.b32.xlu1 %v3491_v43, %s7023_s16  ;;  %v3503_v61 = vpop.f32.mrf.mxu0 }
 0x82b   : > { %3667 = vperm.xlu0 %6347, %v3485_v52   ;;  %v8860_v42 = vpack.c.bf16 %v3503_v61, %v3499_v0 }
 0x82c   : > { %v8826_v5 = vpop.f32.mrf.mxu0 }
 0x82d   : > { %10663 = vst [vmem:[#allocation50_spill] sm:$0xff] %v8860_v42 }
 0x82e   : > { %4593 = vperm.xlu1 %6349, %v3491_v43   ;;  %v8828_v2 = vpop.f32.mrf.mxu0 }
 0x82f   : > { %6348 = vset.pattern.permute.xlu0 %v10659_v60 }
 0x830   : > { %4080 = vperm.xlu0 %6348, %v3485_v52   ;;  %v8831_v4 = vpop.f32.mrf.mxu0 }
 0x832   : > { %6353 = vset.pattern.permute.xlu1 %v10662_v56  ;;  %v8834_v18 = vpop.f32.mrf.mxu0 }
 0x833   : > { %5094 = vperm.xlu1 %6353, %v3491_v43   ;;  %v8904_v12 = vpack.c.bf16 %v8834_v18, %v8828_v2 }
 0x834   : > { %6350 = vset.pattern.permute.xlu0 %v10662_v56  ;;  %v8837_v10 = vpop.f32.mrf.mxu0 }
 0x835   : > { %5090 = vperm.xlu0 %6350, %v3485_v52   ;;  %10666 = vst [vmem:[#allocation8_spill] sm:$0xff] %v8904_v12 }
 0x836   : > { %v3519_v35 = vpop.f32.mrf.mxu0 }
 0x837   : > { %5098 = vperm.xlu1 %6353, %v3495_v38  }
 0x838   : > { %v8839_v48 = vpop.f32.mrf.mxu0 }
 0x839   : > { %6351 = vset.pattern.permute.xlu0 %v10658_v47 }
 0x83a   : > { %3671 = vperm.xlu0 %6351, %v3491_v43   ;;  %v3523_v27 = vpop.f32.mrf.mxu0 }
 0x83b   : > { %3582 = vrot.lane.b32.xlu1 %v8822_v51, %s7023_s16  ;;  %v8895_v17 = vpack.c.bf16 %v3523_v27, %v3519_v35 }
 0x83c   : > { %v8844_v44 = vpop.f32.mrf.mxu0 }
 0x83d   : > { %10665 = vst [vmem:[#allocation9_spill] sm:$0xff] %v8895_v17 }
 0x83e   : > { %6352 = vset.pattern.permute.xlu0 %v10659_v60  ;;  %v3529_v32 = vpop.f32.mrf.mxu0 }
 0x83f   : > { %4084 = vperm.xlu0 %6352, %v3491_v43   ;;  %5102 = vperm.xlu1 %6353, %v8822_v51  }
 0x840   : > { %v8848_v36 = vpop.f32.mrf.mxu0 }
 0x842   : > { %v3533_v25 = vpop.f32.mrf.mxu0 }
 0x843   : > { %3580 = vrot.lane.b32.xlu0 %v3495_v38, %s7023_s16  ;;  %6362 = vset.pattern.permute.xlu1 %v10660_v57  ;;  %v8889_v45 = vpack.c.bf16 %v3533_v25, %v3529_v32 }
 0x844   : > { %4605 = vperm.xlu1 %6362, %v8826_v5   ;;  %v8853_v9 = vpop.f32.mrf.mxu0  ;;  %6354 = vset.pattern.permute.xlu0 %v10658_v47 }
 0x846   : > { %v3539_v8 = vpop.f32.mrf.mxu0 }
 0x847   : > { %3675 = vperm.xlu0 %6354, %v3495_v38  }
 0x848   : > { %6363 = vset.pattern.permute.xlu1 %v10662_v56  ;;  %v8857_v23 = vpop.f32.mrf.mxu0 }
 0x849   : > { %5106 = vperm.xlu1 %6363, %v8826_v5  }
 0x84a   : > { %v3543_v59 = vpop.f32.mrf.mxu0 }
 0x84b   : > { %6355 = vset.pattern.permute.xlu0 %v10659_v60  ;;  %v8881_v63 = vpack.c.bf16 %v3543_v59, %v3539_v8 }
 0x84c   : > { %4088 = vperm.xlu0 %6355, %v3495_v38   ;;  %v8863_v34 = vpop.f32.mrf.mxu0 }
 0x84d   : > { %4387 = vrot.lane.b32.xlu1 %v8860_v42, %s7026_s17 }
 0x84e   : > { %v3549_v6 = vpop.f32.mrf.mxu0  ;;  %6366 = vset.pattern.permute.xlu1 %v10660_v57 }
 0x850   : > { %6356 = vset.pattern.permute.xlu0 %v10660_v57  ;;  %v8869_v39 = vpop.f32.mrf.mxu0 }
 0x851   : > { %4597 = vperm.xlu0 %6356, %v3495_v38   ;;  %3586 = vrot.lane.b32.xlu1 %v8831_v4, %s7023_s16 }
 0x852   : > { %v3553_v24 = vpop.f32.mrf.mxu0 }
 0x853   : > { %v8876_v29 = vpack.c.bf16 %v3553_v24, %v3549_v6 }
 0x854   : > { %v9019_v40 = vpop.f32.mrf.mxu0 }
 0x855   : > { %4385 = vrot.lane.b32.xlu0 %v8874_v3, %s7026_s17  ;;  %4609 = vperm.xlu1 %6366, %v8831_v4  }
 0x856   : > { %6101 = vmatprep.subr.bf16.mxu1 %v8876_v29  ;;  %6357 = vset.pattern.permute.xlu0 %v10658_v47 }
 0x857   : > { %6102 = vmatpush3.bf16.msra.mxu1 %v8876_v29 }
 0x858   : > { %6103 = vmatprep.subr.bf16.mxu1 %v8881_v63 }
 0x859   : > { %3679 = vperm.xlu0 %6357, %v8822_v51   ;;  %6367 = vset.pattern.permute.xlu1 %v10662_v56 }
 0x85a   : > { %5110 = vperm.xlu1 %6367, %v8831_v4  }
 0x85b   : > { %6104 = vmatpush3.bf16.msra.mxu1 %v8881_v63 }
 0x85c   : > { %6105 = vmatprep.subr.bf16.mxu1 %v8889_v45 }
 0x85d   : > { %6358 = vset.pattern.permute.xlu0 %v10659_v60 }
 0x85e   : > { %4092 = vperm.xlu0 %6358, %v8822_v51   ;;  %6369 = vset.pattern.permute.xlu1 %v10659_v60 }
 0x85f   : > { %6106 = vmatpush3.bf16.msra.mxu1 %v8889_v45  ;;  %4104 = vperm.xlu1 %6369, %v8837_v10  }
 0x860   : > { %6107 = vmatprep.subr.bf16.mxu1 %v8895_v17 }
 0x862   : > { %6359 = vset.pattern.permute.xlu0 %v10660_v57 }
 0x863   : > { %6108 = vmatpush3.bf16.msra.mxu1 %v8895_v17  ;;  %4601 = vperm.xlu0 %6359, %v8822_v51  }
 0x864   : > { %6370 = vset.pattern.permute.xlu1 %v10660_v57  ;;  %6109 = vmatprep.subr.bf16.mxu1 %v8904_v12 }
 0x865   : > { %4613 = vperm.xlu1 %6370, %v8837_v10  }
 0x867   : > { %6110 = vmatpush3.bf16.msra.mxu1 %v8904_v12  ;;  %3584 = vrot.lane.b32.xlu0 %v8826_v5, %s7023_s16 }
 0x868   : > { %6111 = vmatprep.subr.bf16.mxu1 %v8860_v42  ;;  %6360 = vset.pattern.permute.xlu0 %v10658_v47 }
 0x869   : > { %6371 = vset.pattern.permute.xlu1 %v10662_v56 }
 0x86a   : > { %5114 = vperm.xlu1 %6371, %v8837_v10  }
 0x86b   : > { %6112 = vmatpush3.bf16.msra.mxu1 %v8860_v42  ;;  %3683 = vperm.xlu0 %6360, %v8826_v5  }
 0x86c   : > { %6113 = vmatprep.subr.bf16.mxu1 %v8874_v3 }
 0x86e   : > { %4389 = vrot.lane.b32.xlu1 %v8904_v12, %s7026_s17 }
 0x86f   : > { %6114 = vmatpush3.bf16.msra.mxu1 %v8874_v3  ;;  %6361 = vset.pattern.permute.xlu0 %v10659_v60 }
 0x870   : > { %6115 = vmatprep.subr.bf16.mxu1 %v8817_v15  ;;  %4096 = vperm.xlu0 %6361, %v8826_v5  }
 0x872   : > { %3590 = vrot.lane.b32.xlu1 %v8839_v48, %s7023_s16 }
 0x873   : > { %6116 = vmatpush3.bf16.msra.mxu1 %v8817_v15 }
 0x874   : > { %6364 = vset.pattern.permute.xlu0 %v10658_v47 }
 0x875   : > { %3687 = vperm.xlu0 %6364, %v8831_v4  }
 0x876   : > { %5118 = vperm.xlu1 %6371, %v8839_v48  }
 0x879   : > { %6365 = vset.pattern.permute.xlu0 %v10659_v60 }
 0x87a   : > { %6376 = vset.pattern.permute.xlu1 %v10660_v57  ;;  %4100 = vperm.xlu0 %6365, %v8831_v4  }
 0x87b   : > { %4621 = vperm.xlu1 %6376, %v8844_v44  }
 0x87e   : > { %3588 = vrot.lane.b32.xlu0 %v8837_v10, %s7023_s16 }
 0x87f   : > { %3594 = vrot.lane.b32.xlu1 %v8848_v36, %s7023_s16  ;;  %6368 = vset.pattern.permute.xlu0 %v10658_v47 }
 0x882   : > { %3691 = vperm.xlu0 %6368, %v8837_v10  }
 0x883   : > { %4625 = vperm.xlu1 %6376, %v8848_v36  }
 0x886   : > { %3695 = vperm.xlu0 %6368, %v8839_v48  }
 0x887   : > { %6380 = vset.pattern.permute.xlu1 %v10662_v56 }
 0x888   : > { %5126 = vperm.xlu1 %6380, %v8848_v36  }
 0x88a   : > { %6372 = vset.pattern.permute.xlu0 %v10659_v60 }
 0x88b   : > { %4108 = vperm.xlu0 %6372, %v8839_v48   ;;  %v8956_v26 = vpop.permute.xlu1 %3574 }
 0x88c   : > { %5130 = vperm.xlu1 %6380, %v8853_v9  }
 0x88f   : > { %6373 = vset.pattern.permute.xlu0 %v10660_v57 }
 0x890   : > { %5395 = vrot.lane.b32.xlu1 %v8889_v45, %s7028_s24  ;;  %4617 = vperm.xlu0 %6373, %v8839_v48  }
 0x891   : > { %6386 = vset.pattern.permute.xlu1 %v10660_v57 }
 0x894   : > { %3598 = vrot.lane.b32.xlu1 %v8857_v23, %s7023_s16  ;;  %3592 = vrot.lane.b32.xlu0 %v8844_v44, %s7023_s16  ;;  %v8962_v37 = vpop.permute.xlu0 %3663 }
 0x895   : > { %6374 = vset.pattern.permute.xlu0 %v10658_v47 }
 0x898   : > { %4633 = vperm.xlu1 %6386, %v8857_v23   ;;  %v8966_v46 = vpop.permute.xlu1 %5086  ;;  %3699 = vperm.xlu0 %6374, %v8844_v44  }
 0x899   : > { %v8969_v22 = vpop.permute.xlu0 %4076 }
 0x89c   : > { %6387 = vset.pattern.permute.xlu1 %v10662_v56  ;;  %6375 = vset.pattern.permute.xlu0 %v10659_v60 }
 0x89d   : > { %5134 = vperm.xlu1 %6387, %v8857_v23   ;;  %v8974_v11 = vpop.permute.xlu1 %4589  ;;  %4112 = vperm.xlu0 %6375, %v8844_v44  }
 0x89e   : > { %v8977_v53 = vpop.permute.xlu0 %4585 }
 0x8a1   : > { %5138 = vperm.xlu1 %6387, %v8863_v34   ;;  %v8980_v31 = vpop.permute.xlu1 %4383  ;;  %6377 = vset.pattern.permute.xlu0 %v10662_v56 }
 0x8a2   : > { %10667 = vst [vmem:[#allocation7_spill] sm:$0xff] %v8980_v31  ;;  %5122 = vperm.xlu0 %6377, %v8844_v44   ;;  %v8984_v30 = vpop.permute.xlu0 %3576 }
 0x8a5   : > { %4395 = vrot.lane.b32.xlu1 %v8881_v63, %s7026_s17  ;;  %v8988_v1 = vpop.permute.xlu1 %3578 }
 0x8a6   : > { %4391 = vrot.lane.b32.xlu0 %v8895_v17, %s7026_s17  ;;  %v8992_v21 = vpop.permute.xlu0 %3667  ;;  %6393 = vset.pattern.permute.xlu1 %v10660_v57 }
 0x8a7   : > { %6378 = vset.pattern.permute.xlu0 %v10658_v47 }
 0x8a9   : > { %3602 = vrot.lane.b32.xlu1 %v8869_v39, %s7023_s16  ;;  %v8998_v54 = vpop.permute.xlu1 %4593 }
 0x8aa   : > { %3703 = vperm.xlu0 %6378, %v8848_v36  }
 0x8ab   : > { %v9001_v28 = vpop.permute.xlu0 %4080 }
 0x8ad   : > { %4641 = vperm.xlu1 %6393, %v8869_v39  }
 0x8ae   : > { %v9004_v49 = vpop.permute.xlu1 %5094  ;;  %6379 = vset.pattern.permute.xlu0 %v10659_v60 }
 0x8af   : > { %4116 = vperm.xlu0 %6379, %v8848_v36  }
 0x8b0   : > { %v9008_v50 = vpop.permute.xlu0 %5090 }
 0x8b1   : > { %6394 = vset.pattern.permute.xlu1 %v10662_v56 }
 0x8b2   : > { %5142 = vperm.xlu1 %6394, %v8869_v39   ;;  %v9014_v55 = vpop.permute.xlu1 %5098 }
 0x8b3   : > { %3596 = vrot.lane.b32.xlu0 %v8853_v9, %s7023_s16 }
 0x8b4   : > { %6381 = vset.pattern.permute.xlu0 %v10658_v47 }
 0x8b5   : > { %v9017_v14 = vpop.permute.xlu0 %3671 }
 0x8b6   : > { %6396 = vset.pattern.permute.xlu1 %v10659_v60  ;;  %v3583_v58 = vpop.permute.xlu1 %3582 }
 0x8b7   : > { %4136 = vperm.xlu1 %6396, %v9019_v40   ;;  %3707 = vperm.xlu0 %6381, %v8853_v9  }
 0x8ba   : > { %v9024_v7 = vpop.permute.xlu0 %4084  ;;  %v9030_v33 = vpop.permute.xlu1 %5102 }
 0x8bb   : > { %6397 = vset.pattern.permute.xlu1 %v10660_v57  ;;  %6382 = vset.pattern.permute.xlu0 %v10659_v60  ;;  %10668 = vst [vmem:[#allocation6_spill] sm:$0xff] %v9030_v33 }
 0x8bc   : > { %4645 = vperm.xlu1 %6397, %v9019_v40   ;;  %4120 = vperm.xlu0 %6382, %v8853_v9  }
 0x8be   : > { %v3581_v20 = vpop.permute.xlu0 %3580 }
 0x8bf   : > { %v9042_v19 = vpop.permute.xlu1 %4605 }
 0x8c0   : > { %6398 = vset.pattern.permute.xlu1 %v10662_v56  ;;  %6383 = vset.pattern.permute.xlu0 %v10660_v57 }
 0x8c1   : > { %5146 = vperm.xlu1 %6398, %v9019_v40   ;;  %4629 = vperm.xlu0 %6383, %v8853_v9  }
 0x8c2   : > { %v9036_v62 = vpop.permute.xlu0 %3675 }
 0x8c4   : > { %v9049_v52 = vpop.permute.xlu1 %5106 }
 0x8c5   : > { %5399 = vrot.lane.b32.xlu1 %v8876_v29, %s7028_s24  ;;  %4393 = vrot.lane.b32.xlu0 %v8889_v45, %s7026_s17 }
 0x8c6   : > { %6384 = vset.pattern.permute.xlu0 %v10658_v47 }
 0x8c7   : > { %v9045_v41 = vpop.permute.xlu0 %4088 }
 0x8c8   : > { %v9057_v16 = vpop.permute.xlu1 %4387 }
 0x8c9   : > { %4894 = vrot.lane.b32.xlu0 %v8889_v45, %s10669_s28  ;;  %10671 = vst [vmem:[#allocation34_spill] sm:$0xff] %v9057_v16 }
 0x8cc   : > { %v9051_v13 = vpop.permute.xlu0 %4597  ;;  %v3587_v0 = vpop.permute.xlu1 %3586 }
 0x8cd   : > { %3711 = vperm.xlu0 %6384, %v8857_v23  }
 0x8d0   : > { %v9054_v43 = vpop.permute.xlu0 %4385  ;;  %v9068_v61 = vpop.permute.xlu1 %4609 }
 0x8d1   : > { %10670 = vst [vmem:[#allocation36_spill] sm:$0xff] %v9054_v43  ;;  %6385 = vset.pattern.permute.xlu0 %v10659_v60 }
 0x8d2   : > { %4124 = vperm.xlu0 %6385, %v8857_v23  }
 0x8d4   : > { %v9060_v38 = vpop.permute.xlu0 %3679 }
 0x8d5   : > { %v9075_v4 = vpop.permute.xlu1 %5110 }
 0x8d6   : > { %3600 = vrot.lane.b32.xlu0 %v8863_v34, %s7023_s16  ;;  %10672 = vst [vmem:[#allocation28_spill] sm:$0xff] %v9075_v4 }
 0x8d7   : > { %6388 = vset.pattern.permute.xlu0 %v10658_v47 }
 0x8d9   : > { %v9065_v51 = vpop.permute.xlu0 %4092 }
 0x8da   : > { %3715 = vperm.xlu0 %6388, %v8863_v34   ;;  %v9083_v10 = vpop.permute.xlu1 %4104 }
 0x8de   : > { %6389 = vset.pattern.permute.xlu0 %v10659_v60  ;;  %v9071_v5 = vpop.permute.xlu0 %4601 }
 0x8df   : > { %4128 = vperm.xlu0 %6389, %v8863_v34  }
 0x8e2   : > { %v3585_v2 = vpop.permute.xlu0 %3584 }
 0x8e3   : > { %6390 = vset.pattern.permute.xlu0 %v10660_v57  ;;  %v9090_v57 = vpop.permute.xlu1 %4613 }
 0x8e4   : > { %4637 = vperm.xlu0 %6390, %v8863_v34  }
 0x8e6   : > { %v9078_v18 = vpop.permute.xlu0 %3683 }
 0x8e7   : > { %v9100_v44 = vpop.permute.xlu1 %5114 }
 0x8e8   : > { %4896 = vrot.lane.b32.xlu0 %v8881_v63, %s10669_s28 }
 0x8e9   : > { %6391 = vset.pattern.permute.xlu0 %v10658_v47 }
 0x8eb   : > { %v9085_v35 = vpop.permute.xlu0 %4096  ;;  %v9106_v36 = vpop.permute.xlu1 %4389 }
 0x8ec   : > { %5397 = vrot.lane.b32.xlu0 %v8881_v63, %s7028_s24  ;;  %10673 = vst [vmem:[#allocation23_spill] sm:$0xff] %v9106_v36 }
 0x8ee   : > { %3622 = vxpose.xlu1.b32.start [1/16] (narrow) %v8956_v26, 8 }
 0x8ef   : > { %v3591_v9 = vpop.permute.xlu1 %3590 }
 0x8f0   : > { %3719 = vperm.xlu0 %6391, %v8869_v39   ;;  %v9093_v48 = vpop.permute.xlu0 %3687 }
 0x8f2   : > { %3623 = vxpose.xlu1.b32.cont [2/16] (narrow) %v8984_v30, 8 }
 0x8f3   : > { %v9120_v8 = vpop.permute.xlu1 %5118 }
 0x8f4   : > { %6392 = vset.pattern.permute.xlu0 %v10659_v60  ;;  %10674 = vst [vmem:[#allocation22_spill] sm:$0xff] %v9120_v8 }
 0x8f5   : > { %4132 = vperm.xlu0 %6392, %v8869_v39   ;;  %v9098_v27 = vpop.permute.xlu0 %4100 }
 0x8f6   : > { %3624 = vxpose.xlu1.b32.cont [3/16] (narrow) %v8988_v1, 8 }
 0x8f7   : > { %v9124_v59 = vpop.permute.xlu1 %4621 }
 0x8f9   : > { %3604 = vrot.lane.b32.xlu0 %v9019_v40, %s7023_s16  ;;  %v3589_v32 = vpop.permute.xlu0 %3588  ;;  %s340_s16 = sand.u32 1, %s7010_s10  }
 0x8fa   : > { %3625 = vxpose.xlu1.b32.cont [4/16] (narrow) %v3581_v20, 8  ;;  %6395 = vset.pattern.permute.xlu0 %v10658_v47  ;;  %s10319_s27 = scalar_lea.sflag [#allocation4], %s340_s16 }
 0x8fb   : > { %v3595_v39 = vpop.permute.xlu1 %3594 }
 0x8fd   : > { %3723 = vperm.xlu0 %6395, %v9019_v40   ;;  %v9109_v60 = vpop.permute.xlu0 %3691 }
 0x8fe   : > { %3626 = vxpose.xlu1.b32.cont [5/16] (narrow) %v3583_v58, 8 }
 0x8ff   : > { %v9130_v24 = vpop.permute.xlu1 %4625 }
 0x900   : > { %10676 = vst [vmem:[#allocation15_spill] sm:$0xff] %v9130_v24  ;;  %v10696_v24 = vld [vmem:[#allocation41_spill] sm:$0xff] }
 0x901   : > { %4397 = vrot.lane.b32.xlu0 %v8876_v29, %s7026_s17  ;;  %v9113_v25 = vpop.permute.xlu0 %3695 }
 0x902   : > { %3627 = vxpose.xlu1.b32.cont [6/16] (narrow) %v3585_v2, 8  ;;  %6399 = vset.pattern.permute.xlu0 %v10662_v56 }
 0x903   : > { %v9134_v63 = vpop.permute.xlu1 %5126 }
 0x904   : > { %10678 = vst [vmem:[#allocation54_spill] sm:$0xff] %v9134_v63 }
 0x905   : > { %4898 = vrot.lane.b32.xlu0 %v8876_v29, %s10669_s28 }
 0x906   : > { %3628 = vxpose.xlu1.b32.cont [7/16] (narrow) %v3587_v0, 8  ;;  %v9118_v47 = vpop.permute.xlu0 %4108 }
 0x907   : > { %v9140_v30 = vpop.permute.xlu1 %5130 }
 0x908   : > { %10680 = vst [vmem:[#allocation32_spill] sm:$0xff] %v9140_v30  ;;  %v9217_v30 = vld [vmem:[%s7718_s25 + $0x8] sm:$0xff] }
 0x90a   : > { %3629 = vxpose.xlu1.b32.cont [8/16] (narrow) %v3589_v32, 8 }
 0x90b   : > { %v9122_v23 = vpop.permute.xlu0 %4617  ;;  %v9144_v40 = vpop.permute.xlu1 %5395 }
 0x90c   : > { %10675 = vst [vmem:[#allocation18_spill] sm:$0xff] %v9122_v23  ;;  %10681 = vst [vmem:[#allocation10_spill] sm:$0xff] %v9144_v40 }
 0x90e   : > { %3630 = vxpose.xlu1.b32.cont [9/16] (narrow) %v3591_v9, 8 }
 0x90f   : > { %v3593_v34 = vpop.permute.xlu0 %3592  ;;  %v3599_v20 = vpop.permute.xlu1 %3598 }
 0x912   : > { %3631 = vxpose.xlu1.b32.cont [10/16] (narrow) %v3593_v34, 8 }
 0x913   : > { %v9126_v6 = vpop.permute.xlu0 %3699  ;;  %v9152_v9 = vpop.permute.xlu1 %4633 }
 0x914   : > { %10683 = vst [vmem:[#allocation13_spill] sm:$0xff] %v9152_v9 }
 0x916   : > { %3632 = vxpose.xlu1.b32.cont [11/16] (narrow) %v3595_v39, 8 }
 0x918   : > { %v9128_v56 = vpop.permute.xlu0 %4112  ;;  %v9156_v39 = vpop.permute.xlu1 %5134 }
 0x919   : > { %10685 = vst [vmem:[#allocation11_spill] sm:$0xff] %v9156_v39 }
 0x91c   : > { %v9160_v40 = vpop.permute.xlu1 %5138 }
 0x91d   : > { %v9132_v29 = vpop.permute.xlu0 %5122  ;;  %10686 = vst [vmem:[#allocation40_spill] sm:$0xff] %v9160_v40 }
 0x91e   : > { %10677 = vst [vmem:[#allocation12_spill] sm:$0xff] %v9132_v29 }
 0x920   : > { %v9164_v31 = vpop.permute.xlu1 %4395 }
 0x921   : > { %v9136_v45 = vpop.permute.xlu0 %4391  ;;  %10687 = vst [vmem:[#allocation14_spill] sm:$0xff] %v9164_v31 }
 0x922   : > { %10679 = vst [vmem:[#allocation42_spill] sm:$0xff] %v9136_v45 }
 0x924   : > { %v3603_v43 = vpop.permute.xlu1 %3602 }
 0x925   : > { %v9138_v26 = vpop.permute.xlu0 %3703 }
 0x92a   : > { %v9142_v1 = vpop.permute.xlu0 %4116 }
 0x92e   : > { %v3597_v58 = vpop.permute.xlu0 %3596 }
 0x92f   : > { %3633 = vxpose.xlu1.b32.cont [12/16] (narrow) %v3597_v58, 8 }
 0x932   : > { %v9146_v0 = vpop.permute.xlu0 %3707 }
 0x933   : > { %3634 = vxpose.xlu1.b32.cont [13/16] (narrow) %v3599_v20, 8 }
 0x937   : > { %v9148_v2 = vpop.permute.xlu0 %4120 }
 0x93c   : > { %v9150_v32 = vpop.permute.xlu0 %4629 }
 0x93d   : > { %10682 = vst [vmem:[#allocation39_spill] sm:$0xff] %v9150_v32 }
 0x940   : > { %v9154_v34 = vpop.permute.xlu0 %4393 }
 0x941   : > { %10684 = vst [vmem:[#allocation33_spill] sm:$0xff] %v9154_v34 }
 0x944   : > { %v4895_v15 = vpop.permute.xlu0 %4894 }
 0x948   : > { %v9158_v3 = vpop.permute.xlu0 %3711 }
 0x94d   : > { %v9162_v58 = vpop.permute.xlu0 %4124 }
 0x951   : > { %v3601_v20 = vpop.permute.xlu0 %3600 }
 0x952   : > { %3635 = vxpose.xlu1.b32.cont [14/16] (narrow) %v3601_v20, 8 }
 0x955   : > { %v9166_v42 = vpop.permute.xlu0 %3715 }
 0x956   : > { %3636 = vxpose.xlu1.b32.cont [15/16] (narrow) %v3603_v43, 8 }
 0x95a   : > { %v9168_v16 = vpop.permute.xlu0 %4128 }
 0x95f   : > { %v9170_v36 = vpop.permute.xlu0 %4637 }
 0x960   : > { %10688 = vst [vmem:[#allocation19_spill] sm:$0xff] %v9170_v36 }
 0x963   : > { %v4897_v45 = vpop.permute.xlu0 %4896 }
 0x967   : > { %v9172_v34 = vpop.permute.xlu0 %5397 }
 0x968   : > { %10689 = vst [vmem:[#allocation35_spill] sm:$0xff] %v9172_v34  ;;  %v9183_v34 = vpop.permute.xlu1 %4641 }
 0x969   : > { %10691 = vst [vmem:[#allocation17_spill] sm:$0xff] %v9183_v34 }
 0x96b   : > { %v9174_v12 = vpop.permute.xlu0 %3719 }
 0x96c   : > { %v9185_v9 = vpop.permute.xlu1 %5142 }
 0x96d   : > { %10692 = vst [vmem:[#allocation29_spill] sm:$0xff] %v9185_v9 }
 0x970   : > { %v9176_v17 = vpop.permute.xlu0 %4132  ;;  %v9187_v63 = vpop.permute.xlu1 %4136 }
 0x974   : > { %v3605_v39 = vpop.permute.xlu0 %3604 }
 0x975   : > { %3637 = vxpose.xlu1.b32.end [16/16] (narrow) %v3605_v39, 8  ;;  %v9189_v39 = vpop.permute.xlu1 %4645 }
 0x976   : > { %10693 = vst [vmem:[#allocation25_spill] sm:$0xff] %v9189_v39 }
 0x978   : > { %v9178_v31 = vpop.permute.xlu0 %3723 }
 0x979   : > { %v9191_v40 = vpop.permute.xlu1 %5146 }
 0x97a   : > { %10694 = vst [vmem:[#allocation20_spill] sm:$0xff] %v9191_v40 }
 0x97c   : > { %v9180_v20 = vpop.permute.xlu0 %4397 }
 0x97d   : > { %10690 = vst [vmem:[#allocation16_spill] sm:$0xff] %v9180_v20  ;;  %6133 = vmatprep.subr.bf16.mxu1 %v9180_v20  ;;  %v9193_v8 = vpop.permute.xlu1 %5399 }
 0x97e   : > { %10695 = vst [vmem:[#allocation21_spill] sm:$0xff] %v9193_v8 }
 0x980   : > { %v4899_v43 = vpop.permute.xlu0 %4898 }
 0x981   : > { %6165 = vmatprep.subr.bf16.mxu0 %v4899_v43 }
 0x982   : > { %6166 = vmatpush3.bf16.msra.mxu0 %v4899_v43  ;;  %v10697_v43 = vsub.s32 0, %v10696_v24 }
 0x983   : > { %6167 = vmatprep.subr.bf16.mxu0 %v4897_v45 }
 0x986   : > { %6168 = vmatpush3.bf16.msra.mxu0 %v4897_v45 }
 0x987   : > { %6169 = vmatprep.subr.bf16.mxu0 %v4895_v15 }
 0x98a   : > { %6170 = vmatpush3.bf16.msra.mxu0 %v4895_v15 }
 0x9b5   : > { %v9195_v20 = vpop.trf.xlu1 }
 0x9b6   : > { %v9200_v45 = vrot.slane %v9195_v20, %v10697_v43 }
 0x9b8   : > { %v3731_v15 = vadd.f32 %v9200_v45, %v8992_v21  ;;  %v3730_v9 = vadd.f32 %v9200_v45, %v8962_v37  ;;  %v3734_v34 = vadd.f32 %v9200_v45, %v9060_v38  ;;  %v3732_v8 = vadd.f32 %v9200_v45, %v9017_v14 }
 0x9b9   : > { %v3737_v40 = vadd.f32 %v9200_v45, %v9109_v60  ;;  %v3733_v43 = vadd.f32 %v9200_v45, %v9036_v62  ;;  %v3739_v14 = vadd.f32 %v9200_v45, %v9126_v6  ;;  %v9223_v62 = vld [vmem:[%s7718_s25] sm:$0xff] }
 0x9ba   : > { %vm3747_vm9 = vcmp.gt.f32.partialorder %v3731_v15, 0.0  ;;  %v3763_v39 = vmul.f32 0.2, %v3731_v15  ;;  %vm3746_vm10 = vcmp.gt.f32.partialorder %v3730_v9, 0.0  ;;  %v3762_v21 = vmul.f32 0.2, %v3730_v9 }
 0x9bb   : > { %vm3750_vm11 = vcmp.gt.f32.partialorder %v3734_v34, 0.0  ;;  %v3766_v37 = vmul.f32 0.2, %v3734_v34  ;;  %vm3748_vm12 = vcmp.gt.f32.partialorder %v3732_v8, 0.0  ;;  %v3764_v36 = vmul.f32 0.2, %v3732_v8 }
 0x9bc   : > { %v3779_v23 = vsel %vm3747_vm9, %v3731_v15, %v3763_v39  ;;  %v3778_v38 = vsel %vm3746_vm10, %v3730_v9, %v3762_v21  ;;  %v3769_v33 = vmul.f32 0.2, %v3737_v40  ;;  %vm3753_vm13 = vcmp.gt.f32.partialorder %v3737_v40, 0.0 }
 0x9bd   : > { %v9220_v60 = vadd.f32 %v9217_v30, %v3779_v23  ;;  %v9226_v4 = vadd.f32 %v9223_v62, %v3778_v38  ;;  %v3782_v29 = vsel %vm3750_vm11, %v3734_v34, %v3766_v37  ;;  %v3780_v32 = vsel %vm3748_vm12, %v3732_v8, %v3764_v36  ;;  %v9233_v23 = vld [vmem:[%s7718_s25 + $0x20] sm:$0xff]  ;;  %v9239_v34 = vld [vmem:[%s7718_s25 + $0x10] sm:$0xff] }
 0x9be   : > { %v3735_v9 = vadd.f32 %v9200_v45, %v9078_v18  ;;  %vm3749_vm14 = vcmp.gt.f32.partialorder %v3733_v43, 0.0  ;;  %v3765_v6 = vmul.f32 0.2, %v3733_v43  ;;  %v9236_v39 = vadd.f32 %v9233_v23, %v3782_v29 }
 0x9bf   : > { %10698 = vst [vmem:[#allocation26_spill] sm:$0xff] %v9226_v4  ;;  %3812 = vmax.xlane.f32.xlu1 %v9220_v60  ;;  %3810 = vmax.xlane.f32.xlu0 %v9226_v4  ;;  %v9242_v36 = vadd.f32 %v9239_v34, %v3780_v32  ;;  %v3785_v8 = vsel %vm3753_vm13, %v3737_v40, %v3769_v33  ;;  %v3771_v18 = vmul.f32 0.2, %v3739_v14  ;;  %vm3755_vm15 = vcmp.gt.f32.partialorder %v3739_v14, 0.0  ;;  %v9256_v40 = vld [vmem:[%s7718_s25 + $0x38] sm:$0xff] }
 0x9c0   : > { %10699 = vst [vmem:[#allocation24_spill] sm:$0xff] %v9236_v39  ;;  %v3742_v15 = vadd.f32 %v9200_v45, %v9158_v3  ;;  %v3781_v21 = vsel %vm3749_vm14, %v3733_v43, %v3765_v6  ;;  %v3767_v37 = vmul.f32 0.2, %v3735_v9  ;;  %v3736_v38 = vadd.f32 %v9200_v45, %v9093_v48  ;;  %v9262_v32 = vld [vmem:[%s7718_s25 + $0x18] sm:$0xff] }
 0x9c1   : > { %10700 = vst [vmem:[#allocation38_spill] sm:$0xff] %v9242_v36  ;;  %vm3751_vm0 = vcmp.gt.f32.partialorder %v3735_v9, 0.0  ;;  %v10701_v29 = vsub.s32 1, %v10696_v24  ;;  %v9259_v3 = vadd.f32 %v9256_v40, %v3785_v8  ;;  %v9265_v48 = vadd.f32 %v9262_v32, %v3781_v21  ;;  %v9274_v8 = vld [vmem:[%s7718_s25 + $0x48] sm:$0xff] }
 0x9c2   : > { %v3787_v43 = vsel %vm3755_vm15, %v3739_v14, %v3771_v18  ;;  %v3774_v6 = vmul.f32 0.2, %v3742_v15  ;;  %vm3758_vm2 = vcmp.gt.f32.partialorder %v3742_v15, 0.0  ;;  %v3745_v4 = vadd.f32 %v9200_v45, %v9178_v31  ;;  %v9280_v18 = vld [vmem:[%s7718_s25 + $0x28] sm:$0xff] }
 0x9c3   : > { %3818 = vmax.xlane.f32.xlu1 %v9236_v39  ;;  %3814 = vmax.xlane.f32.xlu0 %v9242_v36  ;;  %v9253_v33 = vrot.slane %v9195_v20, %v10701_v29  ;;  %10702 = vst [vmem:[#allocation49_spill] sm:$0xff] %v9259_v3  ;;  %10703 = vst [vmem:[#allocation30_spill] sm:$0xff] %v9265_v48  ;;  %v3738_v36 = vadd.f32 %v9200_v45, %v9113_v25  ;;  %v3768_v29 = vmul.f32 0.2, %v3736_v38 }
 0x9c4   : > { %v3783_v39 = vsel %vm3751_vm0, %v3735_v9, %v3767_v37  ;;  %vm3752_vm3 = vcmp.gt.f32.partialorder %v3736_v38, 0.0  ;;  %v9277_v14 = vadd.f32 %v9274_v8, %v3787_v43  ;;  %v3790_v9 = vsel %vm3758_vm2, %v3742_v15, %v3774_v6  ;;  %v9292_v43 = vld [vmem:[%s7718_s25 + $0x60] sm:$0xff]  ;;  %v9298_v15 = vld [vmem:[%s7718_s25 + $0x30] sm:$0xff] }
 0x9c5   : > { %v9283_v25 = vadd.f32 %v9280_v18, %v3783_v39  ;;  %v3770_v21 = vmul.f32 0.2, %v3738_v36  ;;  %v3740_v31 = vadd.f32 %v9200_v45, %v9138_v26  ;;  %v3784_v37 = vsel %vm3752_vm3, %v3736_v38, %v3768_v29 }
 0x9c6   : > { %10704 = vst [vmem:[#allocation43_spill] sm:$0xff] %v9277_v14  ;;  %vm3754_vm4 = vcmp.gt.f32.partialorder %v3738_v36, 0.0  ;;  %vm3761_vm5 = vcmp.gt.f32.partialorder %v3745_v4, 0.0  ;;  %v9295_v39 = vadd.f32 %v9292_v43, %v3790_v9  ;;  %v9301_v26 = vadd.f32 %v9298_v15, %v3784_v37  ;;  %v9310_v9 = vld [vmem:[%s7718_s25 + $0x40] sm:$0xff] }
 0x9c7   : > { %3824 = vmax.xlane.f32.xlu1 %v9259_v3  ;;  %3816 = vmax.xlane.f32.xlu0 %v9265_v48  ;;  %10705 = vst [vmem:[#allocation27_spill] sm:$0xff] %v9283_v25  ;;  %v3777_v3 = vmul.f32 0.2, %v3745_v4  ;;  %v4144_v48 = vadd.f32 %v9253_v33, %v9001_v28  ;;  %v3786_v38 = vsel %vm3754_vm4, %v3738_v36, %v3770_v21  ;;  %v3772_v6 = vmul.f32 0.2, %v3740_v31  ;;  %v9316_v21 = vld [vmem:[%s7718_s25 + $0x78] sm:$0xff] }
 0x9c8   : > { %10706 = vst [vmem:[#allocation31_spill] sm:$0xff] %v9295_v39  ;;  %10707 = vst [vmem:[#allocation53_spill] sm:$0xff] %v9301_v26  ;;  %v3741_v28 = vadd.f32 %v9200_v45, %v9146_v0  ;;  %vm3756_vm9 = vcmp.gt.f32.partialorder %v3740_v31, 0.0  ;;  %v9313_v36 = vadd.f32 %v9310_v9, %v3786_v38  ;;  %v3744_v38 = vadd.f32 %v9200_v45, %v9174_v12  ;;  %v9343_v12 = vld [vmem:[%s7718_s25 + $0x58] sm:$0xff] }
 0x9c9   : > { %v3793_v29 = vsel %vm3761_vm5, %v3745_v4, %v3777_v3  ;;  %vm4160_vm10 = vcmp.gt.f32.partialorder %v4144_v48, 0.0  ;;  %v3788_v0 = vsel %vm3756_vm9, %v3740_v31, %v3772_v6  ;;  %v9330_v31 = vld [vmem:[%s7718_s25 + $0x50] sm:$0xff] }
 0x9ca   : > { %v9319_v4 = vadd.f32 %v9316_v21, %v3793_v29  ;;  %v3773_v3 = vmul.f32 0.2, %v3741_v28  ;;  %vm3757_vm11 = vcmp.gt.f32.partialorder %v3741_v28, 0.0  ;;  %v9333_v6 = vadd.f32 %v9330_v31, %v3788_v0 }
 0x9cb   : > { %3828 = vmax.xlane.f32.xlu1 %v9277_v14  ;;  %3820 = vmax.xlane.f32.xlu0 %v9283_v25  ;;  %v4176_v14 = vmul.f32 0.2, %v4144_v48  ;;  %v4146_v25 = vadd.f32 %v9253_v33, %v9045_v41  ;;  %v3743_v41 = vadd.f32 %v9200_v45, %v9166_v42  ;;  %v4143_v0 = vadd.f32 %v9253_v33, %v8969_v22 }
 0x9cc   : > { %10708 = vst [vmem:[#allocation47_spill] sm:$0xff] %v9319_v4  ;;  %vm3760_vm15 = vcmp.gt.f32.partialorder %v3744_v38, 0.0 }
 0x9cd   : > { %v4192_v37 = vsel %vm4160_vm10, %v4144_v48, %v4176_v14  ;;  %vm4162_vm12 = vcmp.gt.f32.partialorder %v4146_v25, 0.0  ;;  %v3789_v48 = vsel %vm3757_vm11, %v3741_v28, %v3773_v3  ;;  %v3775_v14 = vmul.f32 0.2, %v3743_v41 }
 0x9ce   : > { %v9336_v42 = vadd.f32 %v9217_v30, %v4192_v37  ;;  %vm3759_vm13 = vcmp.gt.f32.partialorder %v3743_v41, 0.0  ;;  %v9346_v45 = vadd.f32 %v9343_v12, %v3789_v48  ;;  %v4152_v37 = vadd.f32 %v9253_v33, %v9128_v56  ;;  %v9358_v48 = vld [vmem:[%s7718_s25 + $0x68] sm:$0xff] }
 0x9cf   : > { %3834 = vmax.xlane.f32.xlu1 %v9295_v39  ;;  %3822 = vmax.xlane.f32.xlu0 %v9301_v26  ;;  %v4178_v39 = vmul.f32 0.2, %v4146_v25  ;;  %v4148_v26 = vadd.f32 %v9253_v33, %v9085_v35  ;;  %vm4159_vm2 = vcmp.gt.f32.partialorder %v4143_v0, 0.0 }
 0x9d0   : > { %10709 = vst [vmem:[#allocation51_spill] sm:$0xff] %v9336_v42  ;;  %vm4168_vm3 = vcmp.gt.f32.partialorder %v4152_v37, 0.0 }
 0x9d1   : > { %v4194_v35 = vsel %vm4162_vm12, %v4146_v25, %v4178_v39  ;;  %v4180_v29 = vmul.f32 0.2, %v4148_v26  ;;  %vm4164_vm14 = vcmp.gt.f32.partialorder %v4148_v26, 0.0  ;;  %v3791_v25 = vsel %vm3759_vm13, %v3743_v41, %v3775_v14 }
 0x9d2   : > { %v9349_v28 = vadd.f32 %v9262_v32, %v4194_v35  ;;  %v3776_v39 = vmul.f32 0.2, %v3744_v38  ;;  %v9361_v41 = vadd.f32 %v9358_v48, %v3791_v25  ;;  %v4145_v35 = vadd.f32 %v9253_v33, %v9024_v7  ;;  %v9373_v25 = vld [vmem:[%s7718_s25 + $0x70] sm:$0xff]  ;;  %s5678_s25 = sshll.u32 %s340_s16, 7 }
 0x9d3   : > { %3826 = vmax.xlane.f32.xlu0 %v9313_v36  ;;  %3840 = vmax.xlane.f32.xlu1 %v9319_v4  ;;  %v4150_v4 = vadd.f32 %v9253_v33, %v9083_v10  ;;  %v4196_v10 = vsel %vm4164_vm14, %v4148_v26, %v4180_v29  ;;  %v4175_v26 = vmul.f32 0.2, %v4143_v0  ;;  %v4184_v29 = vmul.f32 0.2, %v4152_v37  ;;  %s10089_s29 = scalar_lea.vmem [#allocation3], %s5678_s25 }
 0x9d4   : > { %10710 = vst [vmem:[#allocation37_spill] sm:$0xff] %v9349_v28  ;;  %v9364_v14 = vadd.f32 %v9280_v18, %v4196_v10  ;;  %v3792_v22 = vsel %vm3760_vm15, %v3744_v38, %v3776_v39  ;;  %v4147_v39 = vadd.f32 %v9253_v33, %v9065_v51  ;;  %vm4161_vm4 = vcmp.gt.f32.partialorder %v4145_v35, 0.0 }
 0x9d5   : > { %v4182_v3 = vmul.f32 0.2, %v4150_v4  ;;  %vm4166_vm0 = vcmp.gt.f32.partialorder %v4150_v4, 0.0  ;;  %v9376_v10 = vadd.f32 %v9373_v25, %v3792_v22  ;;  %v4191_v7 = vsel %vm4159_vm2, %v4143_v0, %v4175_v26 }
 0x9d6   : > { %10711 = vst [vmem:[#allocation44_spill] sm:$0xff] %v9364_v14  ;;  %v10713_v22 = vsub.s32 2, %v10696_v24  ;;  %v9393_v0 = vadd.f32 %v9223_v62, %v4191_v7  ;;  %vm4163_vm9 = vcmp.gt.f32.partialorder %v4147_v39, 0.0  ;;  %v4179_v26 = vmul.f32 0.2, %v4147_v39 }
 0x9d7   : > { %3830 = vmax.xlane.f32.xlu0 %v9333_v6  ;;  %4225 = vmax.xlane.f32.xlu1 %v9336_v42  ;;  %v4198_v56 = vsel %vm4166_vm0, %v4150_v4, %v4182_v3  ;;  %v4177_v4 = vmul.f32 0.2, %v4145_v35  ;;  %v4200_v3 = vsel %vm4168_vm3, %v4152_v37, %v4184_v29  ;;  %v4158_v42 = vadd.f32 %v9253_v33, %v9187_v63 }
 0x9d8   : > { %v9379_v38 = vadd.f32 %v9256_v40, %v4198_v56  ;;  %v9390_v56 = vrot.slane %v9195_v20, %v10713_v22  ;;  %v9396_v51 = vadd.f32 %v9274_v8, %v4200_v3  ;;  %v10714_v22 = vsub.s32 3, %v10696_v24 }
 0x9d9   : > { %v4193_v37 = vsel %vm4161_vm4, %v4145_v35, %v4177_v4  ;;  %v4195_v4 = vsel %vm4163_vm9, %v4147_v39, %v4179_v26  ;;  %vm4174_vm12 = vcmp.gt.f32.partialorder %v4158_v42, 0.0 }
 0x9da   : > { %10712 = vst [vmem:[#allocation45_spill] sm:$0xff] %v9379_v38  ;;  %v9405_v7 = vadd.f32 %v9239_v34, %v4193_v37  ;;  %v4653_v63 = vadd.f32 %v9390_v56, %v8974_v11  ;;  %v9419_v37 = vrot.slane %v9195_v20, %v10714_v22  ;;  %v4655_v26 = vadd.f32 %v9390_v56, %v9051_v13 }
 0x9db   : > { %3832 = vmax.xlane.f32.xlu0 %v9346_v45  ;;  %4229 = vmax.xlane.f32.xlu1 %v9349_v28  ;;  %v4154_v28 = vadd.f32 %v9253_v33, %v9148_v2  ;;  %v4155_v13 = vadd.f32 %v9253_v33, %v9162_v58  ;;  %v4157_v58 = vadd.f32 %v9253_v33, %v9176_v17 }
 0x9dc   : > { %v4685_v24 = vmul.f32 0.2, %v4653_v63  ;;  %vm4669_vm14 = vcmp.gt.f32.partialorder %v4653_v63, 0.0  ;;  %vm4671_vm0 = vcmp.gt.f32.partialorder %v4655_v26, 0.0  ;;  %v4652_v17 = vadd.f32 %v9390_v56, %v8977_v53 }
 0x9dd   : > { %v4186_v2 = vmul.f32 0.2, %v4154_v28  ;;  %vm4170_vm5 = vcmp.gt.f32.partialorder %v4154_v28, 0.0  ;;  %vm4171_vm2 = vcmp.gt.f32.partialorder %v4155_v13, 0.0  ;;  %vm4173_vm4 = vcmp.gt.f32.partialorder %v4157_v58, 0.0 }
 0x9de   : > { %vm4668_vm9 = vcmp.gt.f32.partialorder %v4652_v17, 0.0  ;;  %v4684_v53 = vmul.f32 0.2, %v4652_v17 }
 0x9df   : > { %3836 = vmax.xlane.f32.xlu0 %v9361_v41  ;;  %4233 = vmax.xlane.f32.xlu1 %v9364_v14  ;;  %v4156_v14 = vadd.f32 %v9253_v33, %v9168_v16  ;;  %v4202_v16 = vsel %vm4170_vm5, %v4154_v28, %v4186_v2  ;;  %v4151_v28 = vadd.f32 %v9253_v33, %v9118_v47  ;;  %v4190_v2 = vmul.f32 0.2, %v4158_v42 }
 0x9e0   : > { %v9408_v35 = vadd.f32 %v9343_v12, %v4202_v16  ;;  %v4153_v47 = vadd.f32 %v9253_v33, %v9142_v1 }
 0x9e1   : > { %v4188_v29 = vmul.f32 0.2, %v4156_v14  ;;  %vm4172_vm10 = vcmp.gt.f32.partialorder %v4156_v14, 0.0  ;;  %v4183_v11 = vmul.f32 0.2, %v4151_v28  ;;  %vm4167_vm13 = vcmp.gt.f32.partialorder %v4151_v28, 0.0 }
 0x9e2   : > { %v4185_v1 = vmul.f32 0.2, %v4153_v47  ;;  %vm4169_vm15 = vcmp.gt.f32.partialorder %v4153_v47, 0.0 }
 0x9e3   : > { %3838 = vmax.xlane.f32.xlu0 %v9376_v10  ;;  %4237 = vmax.xlane.f32.xlu1 %v9379_v38  ;;  %v4149_v38 = vadd.f32 %v9253_v33, %v9098_v27  ;;  %v4204_v3 = vsel %vm4172_vm10, %v4156_v14, %v4188_v29  ;;  %v9424_v14 = vadd.f32 %v9233_v23, %v4195_v4 }
 0x9e4   : > { %v9427_v39 = vadd.f32 %v9358_v48, %v4204_v3  ;;  %v4206_v29 = vsel %vm4174_vm12, %v4158_v42, %v4190_v2  ;;  %v4199_v3 = vsel %vm4167_vm13, %v4151_v28, %v4183_v11  ;;  %v4687_v42 = vmul.f32 0.2, %v4655_v26 }
 0x9e5   : > { %v4181_v27 = vmul.f32 0.2, %v4149_v38  ;;  %vm4165_vm11 = vcmp.gt.f32.partialorder %v4149_v38, 0.0  ;;  %v9437_v4 = vadd.f32 %v9316_v21, %v4206_v29  ;;  %v9446_v2 = vadd.f32 %v9310_v9, %v4199_v3 }
 0x9e6   : > { %v4201_v28 = vsel %vm4169_vm15, %v4153_v47, %v4185_v1  ;;  %v4187_v11 = vmul.f32 0.2, %v4155_v13  ;;  %v4189_v1 = vmul.f32 0.2, %v4157_v58 }
 0x9e7   : > { %4223 = vmax.xlane.f32.xlu0 %v9393_v0  ;;  %4241 = vmax.xlane.f32.xlu1 %v9396_v51  ;;  %v4197_v16 = vsel %vm4165_vm11, %v4149_v38, %v4181_v27  ;;  %v4701_v38 = vsel %vm4669_vm14, %v4653_v63, %v4685_v24  ;;  %v5154_v27 = vadd.f32 %v9419_v37, %v9008_v50 }
 0x9e8   : > { %v9434_v20 = vadd.f32 %v9298_v15, %v4197_v16  ;;  %v9449_v22 = vadd.f32 %v9217_v30, %v4701_v38  ;;  %v4703_v63 = vsel %vm4671_vm0, %v4655_v26, %v4687_v42  ;;  %v5156_v50 = vadd.f32 %v9419_v37, %v9014_v55 }
 0x9e9   : > { %v5186_v16 = vmul.f32 0.2, %v5154_v27  ;;  %vm5170_vm3 = vcmp.gt.f32.partialorder %v5154_v27, 0.0  ;;  %v9458_v29 = vadd.f32 %v9330_v31, %v4201_v28  ;;  %v9461_v47 = vadd.f32 %v9262_v32, %v4703_v63 }
 0x9ea   : > { %v4203_v24 = vsel %vm4171_vm2, %v4155_v13, %v4187_v11  ;;  %v5188_v26 = vmul.f32 0.2, %v5156_v50  ;;  %v4657_v55 = vadd.f32 %v9390_v56, %v9042_v19  ;;  %vm5172_vm5 = vcmp.gt.f32.partialorder %v5156_v50, 0.0 }
 0x9eb   : > { %4227 = vmax.xlane.f32.xlu0 %v9405_v7  ;;  %4245 = vmax.xlane.f32.xlu1 %v9408_v35  ;;  %v5202_v33 = vsel %vm5170_vm3, %v5154_v27, %v5186_v16  ;;  %v9470_v3 = vadd.f32 %v9292_v43, %v4203_v24  ;;  %v4205_v38 = vsel %vm4173_vm4, %v4157_v58, %v4189_v1 }
 0x9ec   : > { %v9473_v13 = vadd.f32 %v9217_v30, %v5202_v33  ;;  %v5204_v42 = vsel %vm5172_vm5, %v5156_v50, %v5188_v26  ;;  %v4689_v27 = vmul.f32 0.2, %v4657_v55  ;;  %v4654_v28 = vadd.f32 %v9390_v56, %v8998_v54 }
 0x9ed   : > { %v4659_v19 = vadd.f32 %v9390_v56, %v9090_v57  ;;  %vm4673_vm10 = vcmp.gt.f32.partialorder %v4657_v55, 0.0  ;;  %v9482_v11 = vadd.f32 %v9373_v25, %v4205_v38  ;;  %v9485_v30 = vadd.f32 %v9262_v32, %v5204_v42 }
 0x9ee   : > { %v4700_v58 = vsel %vm4668_vm9, %v4652_v17, %v4684_v53  ;;  %v5153_v63 = vadd.f32 %v9419_v37, %v8966_v46  ;;  %v4705_v16 = vsel %vm4673_vm10, %v4657_v55, %v4689_v27  ;;  %v4686_v54 = vmul.f32 0.2, %v4654_v28 }
 0x9ef   : > { %4231 = vmax.xlane.f32.xlu0 %v9424_v14  ;;  %4249 = vmax.xlane.f32.xlu1 %v9427_v39  ;;  %v4691_v50 = vmul.f32 0.2, %v4659_v19  ;;  %v5158_v57 = vadd.f32 %v9419_v37, %v9049_v52  ;;  %vm4670_vm11 = vcmp.gt.f32.partialorder %v4654_v28, 0.0  ;;  %vm4675_vm12 = vcmp.gt.f32.partialorder %v4659_v19, 0.0 }
 0x9f0   : > { %v5155_v32 = vadd.f32 %v9419_v37, %v9004_v49  ;;  %v9496_v24 = vadd.f32 %v9223_v62, %v4700_v58  ;;  %v9499_v46 = vadd.f32 %v9280_v18, %v4705_v16  ;;  %vm5169_vm13 = vcmp.gt.f32.partialorder %v5153_v63, 0.0 }
 0x9f1   : > { %v5185_v1 = vmul.f32 0.2, %v5153_v63  ;;  %v4702_v17 = vsel %vm4670_vm11, %v4654_v28, %v4686_v54  ;;  %v4707_v33 = vsel %vm4675_vm12, %v4659_v19, %v4691_v50  ;;  %v5190_v52 = vmul.f32 0.2, %v5158_v57 }
 0x9f2   : > { %v5160_v26 = vadd.f32 %v9419_v37, %v9100_v44  ;;  %vm5174_vm14 = vcmp.gt.f32.partialorder %v5158_v57, 0.0  ;;  %vm5171_vm15 = vcmp.gt.f32.partialorder %v5155_v32, 0.0  ;;  %v9506_v49 = vadd.f32 %v9239_v34, %v4702_v17  ;;  %v10717_v17 = vld [vmem:[#allocation12_spill] sm:$0xff] }
 0x9f3   : > { %4235 = vmax.xlane.f32.xlu0 %v9434_v20  ;;  %4253 = vmax.xlane.f32.xlu1 %v9437_v4  ;;  %v9509_v55 = vadd.f32 %v9256_v40, %v4707_v33  ;;  %v5201_v38 = vsel %vm5169_vm13, %v5153_v63, %v5185_v1  ;;  %v5187_v53 = vmul.f32 0.2, %v5155_v32  ;;  %v5206_v42 = vsel %vm5174_vm14, %v5158_v57, %v5190_v52  ;;  %v10715_v57 = vld [vmem:[#allocation39_spill] sm:$0xff] }
 0x9f4   : > { %v5192_v27 = vmul.f32 0.2, %v5160_v26  ;;  %v4656_v28 = vadd.f32 %v9390_v56, %v9071_v5  ;;  %v4661_v44 = vadd.f32 %v9390_v56, %v9124_v59  ;;  %vm5176_vm0 = vcmp.gt.f32.partialorder %v5160_v26, 0.0 }
 0x9f5   : > { %v9518_v19 = vadd.f32 %v9223_v62, %v5201_v38  ;;  %v9521_v58 = vadd.f32 %v9280_v18, %v5206_v42  ;;  %v5203_v63 = vsel %vm5171_vm15, %v5155_v32, %v5187_v53  ;;  %v4658_v16 = vadd.f32 %v9390_v56, %v9068_v61  ;;  %v10716_v62 = vld [vmem:[#allocation6_spill] sm:$0xff] }
 0x9f6   : > { %v5208_v54 = vsel %vm5176_vm0, %v5160_v26, %v5192_v27  ;;  %v4688_v5 = vmul.f32 0.2, %v4656_v28  ;;  %v4693_v50 = vmul.f32 0.2, %v4661_v44  ;;  %v4663_v59 = vadd.f32 %v9390_v56, %v10715_v57  ;;  %v10719_v27 = vld [vmem:[#allocation28_spill] sm:$0xff] }
 0x9f7   : > { %4239 = vmax.xlane.f32.xlu0 %v9446_v2  ;;  %4734 = vmax.xlane.f32.xlu1 %v9449_v22  ;;  %vm4672_vm2 = vcmp.gt.f32.partialorder %v4656_v28, 0.0  ;;  %vm4677_vm3 = vcmp.gt.f32.partialorder %v4661_v44, 0.0  ;;  %v5157_v18 = vadd.f32 %v9419_v37, %v10716_v62  ;;  %v9532_v32 = vadd.f32 %v9239_v34, %v5203_v63 }
 0x9f8   : > { %v9535_v61 = vadd.f32 %v9256_v40, %v5208_v54  ;;  %v4690_v1 = vmul.f32 0.2, %v4658_v16  ;;  %v5162_v33 = vadd.f32 %v9419_v37, %v10717_v17  ;;  %v4704_v52 = vsel %vm4672_vm2, %v4656_v28, %v4688_v5  ;;  %v10720_v54 = vld [vmem:[#allocation32_spill] sm:$0xff] }
 0x9f9   : > { %v4709_v26 = vsel %vm4677_vm3, %v4661_v44, %v4693_v50  ;;  %vm4674_vm4 = vcmp.gt.f32.partialorder %v4658_v16, 0.0  ;;  %v4695_v38 = vmul.f32 0.2, %v4663_v59  ;;  %vm4679_vm5 = vcmp.gt.f32.partialorder %v4663_v59, 0.0 }
 0x9fa   : > { %v5189_v53 = vmul.f32 0.2, %v5157_v18  ;;  %v9542_v34 = vadd.f32 %v9233_v23, %v4704_v52  ;;  %v9545_v40 = vadd.f32 %v9274_v8, %v4709_v26  ;;  %v4706_v42 = vsel %vm4674_vm4, %v4658_v16, %v4690_v1  ;;  %v10721_v1 = vld [vmem:[#allocation18_spill] sm:$0xff]  ;;  %v10722_v26 = vld [vmem:[#allocation19_spill] sm:$0xff] }
 0x9fb   : > { %4243 = vmax.xlane.f32.xlu0 %v9458_v29  ;;  %4738 = vmax.xlane.f32.xlu1 %v9461_v47  ;;  %v5159_v63 = vadd.f32 %v9419_v37, %v10719_v27  ;;  %v4711_v28 = vsel %vm4679_vm5, %v4663_v59, %v4695_v38  ;;  %vm5173_vm9 = vcmp.gt.f32.partialorder %v5157_v18, 0.0  ;;  %v5194_v44 = vmul.f32 0.2, %v5162_v33  ;;  %v10723_v27 = vld [vmem:[#allocation15_spill] sm:$0xff] }
 0x9fc   : > { %10718 = vst [vmem:[#allocation46_spill] sm:$0xff] %v9545_v40  ;;  %v5164_v5 = vadd.f32 %v9419_v37, %v10720_v54  ;;  %vm5178_vm10 = vcmp.gt.f32.partialorder %v5162_v33, 0.0  ;;  %v9554_v50 = vadd.f32 %v9298_v15, %v4706_v42  ;;  %v9557_v57 = vadd.f32 %v9343_v12, %v4711_v28 }
 0x9fd   : > { %v5205_v16 = vsel %vm5173_vm9, %v5157_v18, %v5189_v53  ;;  %v5191_v62 = vmul.f32 0.2, %v5159_v63  ;;  %v4660_v59 = vadd.f32 %v9390_v56, %v10721_v1  ;;  %v5210_v17 = vsel %vm5178_vm10, %v5162_v33, %v5194_v44  ;;  %v10724_v1 = vld [vmem:[#allocation25_spill] sm:$0xff] }
 0x9fe   : > { %vm5175_vm11 = vcmp.gt.f32.partialorder %v5159_v63, 0.0  ;;  %v5196_v52 = vmul.f32 0.2, %v5164_v5  ;;  %v4665_v38 = vadd.f32 %v9390_v56, %v10722_v26  ;;  %vm5180_vm12 = vcmp.gt.f32.partialorder %v5164_v5, 0.0 }
 0x9ff   : > { %4247 = vmax.xlane.f32.xlu0 %v9470_v3  ;;  %5235 = vmax.xlane.f32.xlu1 %v9473_v13  ;;  %v9566_v42 = vadd.f32 %v9233_v23, %v5205_v16  ;;  %v9569_v18 = vadd.f32 %v9274_v8, %v5210_v17  ;;  %v5207_v53 = vsel %vm5175_vm11, %v5159_v63, %v5191_v62  ;;  %v4692_v44 = vmul.f32 0.2, %v4660_v59 }
 0xa00   : > { %v4662_v33 = vadd.f32 %v9390_v56, %v10723_v27  ;;  %v5212_v28 = vsel %vm5180_vm12, %v5164_v5, %v5196_v52  ;;  %v4697_v54 = vmul.f32 0.2, %v4665_v38  ;;  %v4667_v26 = vadd.f32 %v9390_v56, %v10724_v1  ;;  %v10726_v5 = vld [vmem:[#allocation22_spill] sm:$0xff]  ;;  %v10727_v27 = vld [vmem:[#allocation40_spill] sm:$0xff] }
 0xa01   : > { %vm4676_vm13 = vcmp.gt.f32.partialorder %v4660_v59, 0.0  ;;  %vm4681_vm14 = vcmp.gt.f32.partialorder %v4665_v38, 0.0  ;;  %v9578_v23 = vadd.f32 %v9298_v15, %v5207_v53  ;;  %v9581_v8 = vadd.f32 %v9343_v12, %v5212_v28 }
 0xa02   : > { %vm4678_vm15 = vcmp.gt.f32.partialorder %v4662_v33, 0.0  ;;  %v4694_v63 = vmul.f32 0.2, %v4662_v33  ;;  %v5161_v16 = vadd.f32 %v9419_v37, %v10726_v5  ;;  %v4708_v62 = vsel %vm4676_vm13, %v4660_v59, %v4692_v44 }
 0xa03   : > { %4251 = vmax.xlane.f32.xlu0 %v9482_v11  ;;  %5239 = vmax.xlane.f32.xlu1 %v9485_v30  ;;  %10725 = vst [vmem:[#allocation41_spill] sm:$0xff] %v9581_v8  ;;  %v4713_v17 = vsel %vm4681_vm14, %v4665_v38, %v4697_v54  ;;  %v4699_v52 = vmul.f32 0.2, %v4667_v26  ;;  %v5166_v1 = vadd.f32 %v9419_v37, %v10727_v27  ;;  %vm4683_vm0 = vcmp.gt.f32.partialorder %v4667_v26, 0.0  ;;  %v10729_v38 = vld [vmem:[#allocation54_spill] sm:$0xff]  ;;  %v10730_v54 = vld [vmem:[#allocation20_spill] sm:$0xff] }
 0xa04   : > { %v9590_v15 = vadd.f32 %v9310_v9, %v4708_v62  ;;  %v9593_v12 = vadd.f32 %v9358_v48, %v4713_v17  ;;  %v4710_v53 = vsel %vm4678_vm15, %v4662_v33, %v4694_v63  ;;  %v5193_v28 = vmul.f32 0.2, %v5161_v16 }
 0xa05   : > { %v4715_v5 = vsel %vm4683_vm0, %v4667_v26, %v4699_v52  ;;  %v5198_v59 = vmul.f32 0.2, %v5166_v1  ;;  %v5163_v44 = vadd.f32 %v9419_v37, %v10729_v38  ;;  %v5168_v27 = vadd.f32 %v9419_v37, %v10730_v54  ;;  %v10732_v26 = vld [vmem:[#allocation13_spill] sm:$0xff] }
 0xa06   : > { %10728 = vst [vmem:[#allocation39_spill] sm:$0xff] %v9593_v12  ;;  %vm5177_vm2 = vcmp.gt.f32.partialorder %v5161_v16, 0.0  ;;  %vm5182_vm3 = vcmp.gt.f32.partialorder %v5166_v1, 0.0  ;;  %v9602_v62 = vadd.f32 %v9330_v31, %v4710_v53  ;;  %v9605_v33 = vadd.f32 %v9316_v21, %v4715_v5 }
 0xa07   : > { %4732 = vmax.xlane.f32.xlu0 %v9496_v24  ;;  %4742 = vmax.xlane.f32.xlu1 %v9499_v46  ;;  %v4664_v63 = vadd.f32 %v9390_v56, %v10732_v26  ;;  %v5209_v17 = vsel %vm5177_vm2, %v5161_v16, %v5193_v28  ;;  %v5214_v52 = vsel %vm5182_vm3, %v5166_v1, %v5198_v59  ;;  %v5195_v38 = vmul.f32 0.2, %v5163_v44  ;;  %v10734_v26 = vld [vmem:[#allocation17_spill] sm:$0xff]  ;;  %v10736_v59 = vld [vmem:[#allocation11_spill] sm:$0xff] }
 0xa08   : > { %10731 = vst [vmem:[#allocation6_spill] sm:$0xff] %v9605_v33  ;;  %vm5179_vm4 = vcmp.gt.f32.partialorder %v5163_v44, 0.0  ;;  %vm5184_vm5 = vcmp.gt.f32.partialorder %v5168_v27, 0.0  ;;  %v9612_v54 = vadd.f32 %v9310_v9, %v5209_v17  ;;  %v9615_v53 = vadd.f32 %v9358_v48, %v5214_v52 }
 0xa09   : > { %v5211_v5 = vsel %vm5179_vm4, %v5163_v44, %v5195_v38  ;;  %v4666_v16 = vadd.f32 %v9390_v56, %v10734_v26  ;;  %vm4680_vm9 = vcmp.gt.f32.partialorder %v4664_v63, 0.0 }
 0xa0a   : > { %10733 = vst [vmem:[#allocation12_spill] sm:$0xff] %v9615_v53  ;;  %v9622_v1 = vadd.f32 %v9330_v31, %v5211_v5  ;;  %v10738_v31 = vld [vmem:[#allocation29_spill] sm:$0xff] }
 0xa0b   : > { %4736 = vmax.xlane.f32.xlu0 %v9506_v49  ;;  %4746 = vmax.xlane.f32.xlu1 %v9509_v55  ;;  %v4698_v48 = vmul.f32 0.2, %v4666_v16  ;;  %vm4682_vm10 = vcmp.gt.f32.partialorder %v4666_v16, 0.0  ;;  %v5167_v17 = vadd.f32 %v9419_v37, %v10738_v31  ;;  %v10744_v31 = vld [vmem:[#allocation38_spill] sm:$0xff] }
 0xa0d   : > { %v4714_v44 = vsel %vm4682_vm10, %v4666_v16, %v4698_v48  ;;  %vm5183_vm12 = vcmp.gt.f32.partialorder %v5167_v17, 0.0  ;;  %v10742_v16 = vld [vmem:[#allocation26_spill] sm:$0xff] }
 0xa0f   : > { %5233 = vmax.xlane.f32.xlu0 %v9518_v19  ;;  %5243 = vmax.xlane.f32.xlu1 %v9521_v58 }
 0xa13   : > { %5237 = vmax.xlane.f32.xlu0 %v9532_v32  ;;  %5247 = vmax.xlane.f32.xlu1 %v9535_v61 }
 0xa17   : > { %4740 = vmax.xlane.f32.xlu0 %v9542_v34  ;;  %4750 = vmax.xlane.f32.xlu1 %v9545_v40  ;;  %v5200_v40 = vmul.f32 0.2, %v5168_v27 }
 0xa1b   : > { %4744 = vmax.xlane.f32.xlu0 %v9554_v50  ;;  %4754 = vmax.xlane.f32.xlu1 %v9557_v57 }
 0xa1f   : > { %5241 = vmax.xlane.f32.xlu0 %v9566_v42  ;;  %5251 = vmax.xlane.f32.xlu1 %v9569_v18 }
 0xa23   : > { %5245 = vmax.xlane.f32.xlu0 %v9578_v23  ;;  %5255 = vmax.xlane.f32.xlu1 %v9581_v8  ;;  %v4696_v8 = vmul.f32 0.2, %v4664_v63 }
 0xa25   : > { %v4712_v28 = vsel %vm4680_vm9, %v4664_v63, %v4696_v8 }
 0xa26   : > { %v9632_v56 = vadd.f32 %v9292_v43, %v4712_v28 }
 0xa27   : > { %4748 = vmax.xlane.f32.xlu0 %v9590_v15  ;;  %4758 = vmax.xlane.f32.xlu1 %v9593_v12  ;;  %v5216_v12 = vsel %vm5184_vm5, %v5168_v27, %v5200_v40  ;;  %v5165_v40 = vadd.f32 %v9419_v37, %v10736_v59 }
 0xa28   : > { %v9625_v9 = vadd.f32 %v9316_v21, %v5216_v12  ;;  %10737 = vst [vmem:[#allocation32_spill] sm:$0xff] %v9632_v56  ;;  %v9638_v21 = vadd.f32 %v9373_v25, %v4714_v44  ;;  %v5199_v12 = vmul.f32 0.2, %v5167_v17 }
 0xa29   : > { %v5197_v27 = vmul.f32 0.2, %v5165_v40  ;;  %vm5181_vm11 = vcmp.gt.f32.partialorder %v5165_v40, 0.0 }
 0xa2a   : > { %10735 = vst [vmem:[#allocation28_spill] sm:$0xff] %v9625_v9  ;;  %10739 = vst [vmem:[#allocation18_spill] sm:$0xff] %v9638_v21  ;;  %v5215_v52 = vsel %vm5183_vm12, %v5167_v17, %v5199_v12 }
 0xa2b   : > { %4752 = vmax.xlane.f32.xlu0 %v9602_v62  ;;  %4762 = vmax.xlane.f32.xlu1 %v9605_v33  ;;  %v5213_v8 = vsel %vm5181_vm11, %v5165_v40, %v5197_v27  ;;  %v9646_v38 = vadd.f32 %v9373_v25, %v5215_v52 }
 0xa2c   : > { %v9642_v63 = vadd.f32 %v9292_v43, %v5213_v8  ;;  %v10743_v43 = vld [vmem:[#allocation24_spill] sm:$0xff] }
 0xa2d   : > { %10741 = vst [vmem:[#allocation15_spill] sm:$0xff] %v9646_v38 }
 0xa2e   : > { %10740 = vst [vmem:[#allocation19_spill] sm:$0xff] %v9642_v63 }
 0xa2f   : > { %5249 = vmax.xlane.f32.xlu0 %v9612_v54  ;;  %5259 = vmax.xlane.f32.xlu1 %v9615_v53 }
 0xa33   : > { %5253 = vmax.xlane.f32.xlu0 %v9622_v1  ;;  %5263 = vmax.xlane.f32.xlu1 %v9625_v9  ;;  %v10749_v9 = vld [vmem:[#allocation53_spill] sm:$0xff] }
 0xa37   : > { %4756 = vmax.xlane.f32.xlu0 %v9632_v56 }
 0xa3b   : > { %4760 = vmax.xlane.f32.xlu0 %v9638_v21 }
 0xa3f   : > { %5257 = vmax.xlane.f32.xlu0 %v9642_v63  ;;  %v10745_v63 = vld [vmem:[#allocation30_spill] sm:$0xff] }
 0xa43   : > { %5261 = vmax.xlane.f32.xlu0 %v9646_v38 }
 0xa48   : > { %v3813_v37 = vpop.xlane.xlu1 %3812  ;;  %v3811_v5 = vpop.xlane.xlu0 %3810 }
 0xa49   : > { %v3843_v26 = vsub.f32 %v9220_v60, %v3813_v37  ;;  %v3842_v28 = vsub.f32 %v10742_v16, %v3811_v5 }
 0xa4b   : > { %v3860_v48 = vmul.f32 1.442695, %v3843_v26  ;;  %v3858_v59 = vmul.f32 1.442695, %v3842_v28  ;;  %v10746_v26 = vld [vmem:[#allocation49_spill] sm:$0xff]  ;;  %v10747_v28 = vld [vmem:[#allocation27_spill] sm:$0xff] }
 0xa4c   : > { %v3819_v40 = vpop.xlane.xlu1 %3818  ;;  %v3815_v44 = vpop.xlane.xlu0 %3814 }
 0xa4d   : > { %6686 = vpow2.f32 %v3860_v48  ;;  %v3846_v27 = vsub.f32 %v10743_v43, %v3819_v40  ;;  %v3844_v17 = vsub.f32 %v10744_v31, %v3815_v44  ;;  %v10748_v31 = vld [vmem:[#allocation43_spill] sm:$0xff] }
 0xa4e   : > { %6688 = vpow2.f32 %v3858_v59 }
 0xa4f   : > { %v3862_v25 = vmul.f32 1.442695, %v3844_v17  ;;  %v3866_v52 = vmul.f32 1.442695, %v3846_v27 }
 0xa50   : > { %v3825_v8 = vpop.xlane.xlu1 %3824  ;;  %v3817_v12 = vpop.xlane.xlu0 %3816 }
 0xa51   : > { %v3845_v56 = vsub.f32 %v10745_v63, %v3817_v12  ;;  %6690 = vpow2.f32 %v3862_v25  ;;  %v3849_v16 = vsub.f32 %v10746_v26, %v3825_v8  ;;  %v10750_v26 = vld [vmem:[#allocation31_spill] sm:$0xff] }
 0xa52   : > { %6692 = vpow2.f32 %v3866_v52 }
 0xa53   : > { %v3864_v60 = vmul.f32 1.442695, %v3845_v56  ;;  %v3872_v59 = vmul.f32 1.442695, %v3849_v16 }
 0xa54   : > { %v3829_v37 = vpop.xlane.xlu1 %3828  ;;  %v3821_v5 = vpop.xlane.xlu0 %3820 }
 0xa55   : > { %v3847_v48 = vsub.f32 %v10747_v28, %v3821_v5  ;;  %6694 = vpow2.f32 %v3864_v60  ;;  %v3851_v17 = vsub.f32 %v10748_v31, %v3829_v37 }
 0xa57   : > { %v3868_v40 = vmul.f32 1.442695, %v3847_v48  ;;  %v3876_v12 = vmul.f32 1.442695, %v3851_v17 }
 0xa58   : > { %v3835_v43 = vpop.xlane.xlu1 %3834  ;;  %v3823_v44 = vpop.xlane.xlu0 %3822 }
 0xa59   : > { %v3848_v27 = vsub.f32 %v10749_v9, %v3823_v44  ;;  %6696 = vpow2.f32 %v3868_v40  ;;  %v3854_v16 = vsub.f32 %v10750_v26, %v3835_v43 }
 0xa5a   : > { %v9658_v38 = vpop.eup %6686  ;;  %6698 = vpow2.f32 %v3872_v59 }
 0xa5b   : > { %v9660_v56 = vpop.eup %6688  ;;  %v3870_v63 = vmul.f32 1.442695, %v3848_v27  ;;  %3892 = vadd.xlane.f32.xlu1 %v9658_v38  ;;  %v3882_v31 = vmul.f32 1.442695, %v3854_v16 }
 0xa5c   : > { %3890 = vadd.xlane.f32.xlu0 %v9660_v56  ;;  %v3841_v25 = vpop.xlane.xlu1 %3840  ;;  %v3827_v8 = vpop.xlane.xlu0 %3826 }
 0xa5d   : > { %v3850_v52 = vsub.f32 %v9313_v36, %v3827_v8  ;;  %6700 = vpow2.f32 %v3870_v63  ;;  %v10751_v8 = vld [vmem:[#allocation47_spill] sm:$0xff] }
 0xa5e   : > { %v9665_v60 = vpop.eup %6690  ;;  %6702 = vpow2.f32 %v3876_v12  ;;  %v3857_v12 = vsub.f32 %v10751_v8, %v3841_v25 }
 0xa5f   : > { %v3874_v9 = vmul.f32 1.442695, %v3850_v52  ;;  %v9670_v48 = vpop.eup %6692 }
 0xa60   : > { %3894 = vadd.xlane.f32.xlu0 %v9665_v60  ;;  %v4226_v37 = vpop.xlane.xlu1 %4225  ;;  %v3831_v5 = vpop.xlane.xlu0 %3830 }
 0xa61   : > { %v3852_v28 = vsub.f32 %v9333_v6, %v3831_v5  ;;  %6704 = vpow2.f32 %v3874_v9 }
 0xa62   : > { %v9672_v40 = vpop.eup %6694 }
 0xa63   : > { %v3878_v44 = vmul.f32 1.442695, %v3852_v28  ;;  %3896 = vadd.xlane.f32.xlu1 %v9672_v40  ;;  %v3888_v28 = vmul.f32 1.442695, %v3857_v12 }
 0xa64   : > { %3898 = vadd.xlane.f32.xlu0 %v9670_v48  ;;  %v4230_v36 = vpop.xlane.xlu1 %4229  ;;  %v3833_v59 = vpop.xlane.xlu0 %3832 }
 0xa65   : > { %v3853_v17 = vsub.f32 %v9346_v45, %v3833_v59  ;;  %6706 = vpow2.f32 %v3878_v44 }
 0xa66   : > { %v9677_v27 = vpop.eup %6696  ;;  %6708 = vpow2.f32 %v3882_v31 }
 0xa67   : > { %v3880_v43 = vmul.f32 1.442695, %v3853_v17  ;;  %3900 = vadd.xlane.f32.xlu1 %v9677_v27  ;;  %v9684_v9 = vpop.eup %6698 }
 0xa68   : > { %v9680_v6 = vpop.xlane.xlu1 %4233  ;;  %v3837_v63 = vpop.xlane.xlu0 %3836 }
 0xa69   : > { %v3855_v52 = vsub.f32 %v9361_v41, %v3837_v63  ;;  %6710 = vpow2.f32 %v3880_v43  ;;  %v10752_v63 = vld [vmem:[#allocation51_spill] sm:$0xff] }
 0xa6a   : > { %v9686_v5 = vpop.eup %6700  ;;  %v4256_v8 = vsub.f32 %v10752_v63, %v4226_v37  ;;  %v10755_v37 = vld [vmem:[#allocation37_spill] sm:$0xff] }
 0xa6b   : > { %v3884_v45 = vmul.f32 1.442695, %v3855_v52  ;;  %3904 = vadd.xlane.f32.xlu1 %v9684_v9  ;;  %3902 = vadd.xlane.f32.xlu0 %v9686_v5  ;;  %v9691_v59 = vpop.eup %6702 }
 0xa6c   : > { %v4238_v26 = vpop.xlane.xlu1 %4237  ;;  %v3839_v16 = vpop.xlane.xlu0 %3838  ;;  %v4273_v53 = vmul.f32 1.442695, %v4256_v8 }
 0xa6d   : > { %v3856_v44 = vsub.f32 %v9376_v10, %v3839_v16  ;;  %6712 = vpow2.f32 %v3884_v45 }
 0xa6e   : > { %v9693_v25 = vpop.eup %6704  ;;  %6714 = vpow2.f32 %v3888_v28  ;;  %v4258_v28 = vsub.f32 %v10755_v37, %v4230_v36  ;;  %v10757_v36 = vld [vmem:[#allocation45_spill] sm:$0xff] }
 0xa6f   : > { %v3886_v41 = vmul.f32 1.442695, %v3856_v44  ;;  %3908 = vadd.xlane.f32.xlu1 %v9691_v59  ;;  %3906 = vadd.xlane.f32.xlu0 %v9693_v25 }
 0xa70   : > { %v4242_v31 = vpop.xlane.xlu1 %4241  ;;  %v4224_v17 = vpop.xlane.xlu0 %4223 }
 0xa71   : > { %v4255_v43 = vsub.f32 %v9393_v0, %v4224_v17  ;;  %6716 = vpow2.f32 %v3886_v41 }
 0xa72   : > { %v9699_v12 = vpop.eup %6706 }
 0xa73   : > { %v4271_v10 = vmul.f32 1.442695, %v4255_v43  ;;  %3910 = vadd.xlane.f32.xlu0 %v9699_v12  ;;  %v9703_v44 = vpop.eup %6708 }
 0xa74   : > { %v4246_v52 = vpop.xlane.xlu1 %4245  ;;  %v4228_v45 = vpop.xlane.xlu0 %4227  ;;  %10753 = vst [vmem:[#allocation25_spill] sm:$0xff] %v9703_v44 }
 0xa75   : > { %v4257_v16 = vsub.f32 %v9405_v7, %v4228_v45  ;;  %6718 = vpow2.f32 %v4271_v10  ;;  %v4277_v10 = vmul.f32 1.442695, %v4258_v28  ;;  %v10756_v45 = vld [vmem:[#allocation44_spill] sm:$0xff] }
 0xa76   : > { %v9705_v33 = vpop.eup %6710  ;;  %6720 = vpow2.f32 %v4273_v53  ;;  %v4260_v21 = vsub.f32 %v10756_v45, %v9680_v6  ;;  %v4264_v6 = vsub.f32 %v9396_v51, %v4242_v31 }
 0xa77   : > { %10754 = vst [vmem:[#allocation22_spill] sm:$0xff] %v9705_v33  ;;  %3914 = vadd.xlane.f32.xlu0 %v9703_v44  ;;  %3912 = vadd.xlane.f32.xlu1 %v9705_v33  ;;  %v4275_v41 = vmul.f32 1.442695, %v4257_v16  ;;  %v4262_v16 = vsub.f32 %v10757_v36, %v4238_v26 }
 0xa78   : > { %v4232_v0 = vpop.xlane.xlu0 %4231  ;;  %v4250_v43 = vpop.xlane.xlu1 %4249  ;;  %v4281_v28 = vmul.f32 1.442695, %v4260_v21 }
 0xa79   : > { %v4259_v17 = vsub.f32 %v9424_v14, %v4232_v0  ;;  %6722 = vpow2.f32 %v4275_v41  ;;  %v4285_v41 = vmul.f32 1.442695, %v4262_v16 }
 0xa7a   : > { %v9711_v63 = vpop.eup %6712 }
 0xa7b   : > { %v4279_v7 = vmul.f32 1.442695, %v4259_v17  ;;  %3916 = vadd.xlane.f32.xlu1 %v9711_v63  ;;  %v9717_v33 = vpop.eup %6714 }
 0xa7c   : > { %v4236_v8 = vpop.xlane.xlu0 %4235  ;;  %v4254_v0 = vpop.xlane.xlu1 %4253 }
 0xa7d   : > { %v4261_v44 = vsub.f32 %v9434_v20, %v4236_v8  ;;  %6724 = vpow2.f32 %v4279_v7 }
 0xa7e   : > { %v9720_v14 = vpop.eup %6716  ;;  %6726 = vpow2.f32 %v4277_v10 }
 0xa7f   : > { %v4283_v53 = vmul.f32 1.442695, %v4261_v44  ;;  %3920 = vadd.xlane.f32.xlu1 %v9717_v33  ;;  %3918 = vadd.xlane.f32.xlu0 %v9720_v14  ;;  %v4289_v44 = vmul.f32 1.442695, %v4264_v6  ;;  %v4268_v6 = vsub.f32 %v9427_v39, %v4250_v43  ;;  %v4270_v39 = vsub.f32 %v9437_v4, %v4254_v0 }
 0xa80   : > { %v4240_v37 = vpop.xlane.xlu0 %4239  ;;  %v4735_v8 = vpop.xlane.xlu1 %4734 }
 0xa81   : > { %6728 = vpow2.f32 %v4283_v53  ;;  %v4263_v20 = vsub.f32 %v9446_v2, %v4240_v37  ;;  %v4266_v2 = vsub.f32 %v9408_v35, %v4246_v52 }
 0xa82   : > { %v9726_v17 = vpop.eup %6718  ;;  %6730 = vpow2.f32 %v4281_v28 }
 0xa83   : > { %4303 = vadd.xlane.f32.xlu1 %v9726_v17  ;;  %6732 = vpow2.f32 %v4285_v41  ;;  %v4287_v45 = vmul.f32 1.442695, %v4263_v20  ;;  %v9730_v10 = vpop.eup %6720  ;;  %v4293_v28 = vmul.f32 1.442695, %v4266_v2 }
 0xa84   : > { %v4244_v26 = vpop.xlane.xlu0 %4243  ;;  %6734 = vpow2.f32 %v4289_v44  ;;  %v4739_v53 = vpop.xlane.xlu1 %4738 }
 0xa85   : > { %v4265_v7 = vsub.f32 %v9458_v29, %v4244_v26  ;;  %6736 = vpow2.f32 %v4287_v45  ;;  %v4297_v26 = vmul.f32 1.442695, %v4268_v6 }
 0xa86   : > { %v9735_v36 = vpop.eup %6722 }
 0xa87   : > { %4305 = vadd.xlane.f32.xlu1 %v9730_v10  ;;  %v4291_v21 = vmul.f32 1.442695, %v4265_v7 }
 0xa88   : > { %v4248_v51 = vpop.xlane.xlu0 %4247 }
 0xa89   : > { %v4267_v31 = vsub.f32 %v9470_v3, %v4248_v51  ;;  %6738 = vpow2.f32 %v4291_v21  ;;  %v4301_v21 = vmul.f32 1.442695, %v4270_v39 }
 0xa8a   : > { %v9737_v16 = vpop.eup %6724 }
 0xa8b   : > { %v4295_v29 = vmul.f32 1.442695, %v4267_v31  ;;  %4307 = vadd.xlane.f32.xlu1 %v9735_v36  ;;  %4311 = vadd.xlane.f32.xlu0 %v9737_v16  ;;  %v9743_v52 = vpop.eup %6726 }
 0xa8c   : > { %v4252_v37 = vpop.xlane.xlu0 %4251 }
 0xa8d   : > { %v4269_v35 = vsub.f32 %v9482_v11, %v4252_v37  ;;  %6740 = vpow2.f32 %v4295_v29  ;;  %v5236_v11 = vpop.xlane.xlu1 %5235 }
 0xa8e   : > { %v9745_v3 = vpop.eup %6728  ;;  %6742 = vpow2.f32 %v4293_v28 }
 0xa8f   : > { %v4299_v41 = vmul.f32 1.442695, %v4269_v35  ;;  %4309 = vadd.xlane.f32.xlu1 %v9743_v52  ;;  %4315 = vadd.xlane.f32.xlu0 %v9745_v3  ;;  %v9750_v7 = vpop.eup %6730 }
 0xa90   : > { %v4733_v20 = vpop.xlane.xlu0 %4732  ;;  %v9753_v43 = vpop.eup %6732 }
 0xa91   : > { %v4764_v44 = vsub.f32 %v9496_v24, %v4733_v20  ;;  %6744 = vpow2.f32 %v4299_v41  ;;  %v9757_v2 = vpop.eup %6734  ;;  %v4765_v24 = vsub.f32 %v9449_v22, %v4735_v8  ;;  %v5240_v4 = vpop.xlane.xlu1 %5239  ;;  %v4767_v8 = vsub.f32 %v9461_v47, %v4739_v53 }
 0xa92   : > { %6746 = vpow2.f32 %v4297_v26  ;;  %v9760_v31 = vpop.eup %6736 }
 0xa93   : > { %v4780_v45 = vmul.f32 1.442695, %v4764_v44  ;;  %4313 = vadd.xlane.f32.xlu1 %v9750_v7  ;;  %4317 = vadd.xlane.f32.xlu0 %v9753_v43  ;;  %v4782_v28 = vmul.f32 1.442695, %v4765_v24 }
 0xa94   : > { %v4737_v51 = vpop.xlane.xlu0 %4736 }
 0xa95   : > { %6748 = vpow2.f32 %v4780_v45  ;;  %v4766_v29 = vsub.f32 %v9506_v49, %v4737_v51  ;;  %v4743_v49 = vpop.xlane.xlu1 %4742  ;;  %v4786_v45 = vmul.f32 1.442695, %v4767_v8 }
 0xa96   : > { %v9765_v37 = vpop.eup %6738  ;;  %6750 = vpow2.f32 %v4301_v21 }
 0xa97   : > { %4321 = vadd.xlane.f32.xlu0 %v9757_v2  ;;  %4319 = vadd.xlane.f32.xlu1 %v9760_v31  ;;  %v4784_v35 = vmul.f32 1.442695, %v4766_v29  ;;  %6752 = vpow2.f32 %v4782_v28 }
 0xa98   : > { %v5234_v0 = vpop.xlane.xlu0 %5233 }
 0xa99   : > { %6754 = vpow2.f32 %v4784_v35  ;;  %v5265_v51 = vsub.f32 %v9518_v19, %v5234_v0  ;;  %v4747_v24 = vpop.xlane.xlu1 %4746  ;;  %v5266_v19 = vsub.f32 %v9473_v13, %v5236_v11  ;;  %v5268_v35 = vsub.f32 %v9485_v30, %v5240_v4 }
 0xa9a   : > { %v9767_v6 = vpop.eup %6740  ;;  %v4769_v11 = vsub.f32 %v9499_v46, %v4743_v49 }
 0xa9b   : > { %4323 = vadd.xlane.f32.xlu0 %v9765_v37  ;;  %4327 = vadd.xlane.f32.xlu1 %v9767_v6  ;;  %v9773_v20 = vpop.eup %6742  ;;  %v5281_v28 = vmul.f32 1.442695, %v5265_v51  ;;  %v5283_v8 = vmul.f32 1.442695, %v5266_v19  ;;  %v5287_v13 = vmul.f32 1.442695, %v5268_v35 }
 0xa9c   : > { %v5238_v22 = vpop.xlane.xlu0 %5237 }
 0xa9d   : > { %v5267_v41 = vsub.f32 %v9532_v32, %v5238_v22 }
 0xa9e   : > { %v9775_v26 = vpop.eup %6744 }
 0xa9f   : > { %v5285_v44 = vmul.f32 1.442695, %v5267_v41  ;;  %4325 = vadd.xlane.f32.xlu0 %v9773_v20  ;;  %4331 = vadd.xlane.f32.xlu1 %v9775_v26  ;;  %v9781_v53 = vpop.eup %6746  ;;  %v5244_v41 = vpop.xlane.xlu1 %5243 }
 0xaa0   : > { %v4741_v39 = vpop.xlane.xlu0 %4740 }
 0xaa1   : > { %v4768_v47 = vsub.f32 %v9542_v34, %v4741_v39  ;;  %6756 = vpow2.f32 %v5285_v44 }
 0xaa2   : > { %v9783_v32 = vpop.eup %6748  ;;  %6758 = vpow2.f32 %v4786_v45 }
 0xaa3   : > { %v4788_v21 = vmul.f32 1.442695, %v4768_v47  ;;  %4329 = vadd.xlane.f32.xlu0 %v9781_v53  ;;  %4812 = vadd.xlane.f32.xlu1 %v9783_v32  ;;  %v9789_v34 = vpop.eup %6750  ;;  %v5248_v51 = vpop.xlane.xlu1 %5247  ;;  %v4790_v47 = vmul.f32 1.442695, %v4769_v11 }
 0xaa4   : > { %v4745_v29 = vpop.xlane.xlu0 %4744  ;;  %v9793_v44 = vpop.eup %6752 }
 0xaa5   : > { %v4770_v22 = vsub.f32 %v9554_v50, %v4745_v29  ;;  %6760 = vpow2.f32 %v4788_v21  ;;  %v4771_v21 = vsub.f32 %v9509_v55, %v4747_v24  ;;  %v5270_v55 = vsub.f32 %v9521_v58, %v5244_v41 }
 0xaa6   : > { %6762 = vpow2.f32 %v5281_v28  ;;  %v9796_v50 = vpop.eup %6754 }
 0xaa7   : > { %v4792_v0 = vmul.f32 1.442695, %v4770_v22  ;;  %4333 = vadd.xlane.f32.xlu0 %v9789_v34  ;;  %v4794_v49 = vmul.f32 1.442695, %v4771_v21  ;;  %v9812_v28 = vpop.xlane.xlu1 %4750  ;;  %v5291_v11 = vmul.f32 1.442695, %v5270_v55 }
 0xaa8   : > { %v5242_v39 = vpop.xlane.xlu0 %5241 }
 0xaa9   : > { %6764 = vpow2.f32 %v4792_v0  ;;  %v5269_v22 = vsub.f32 %v9566_v42, %v5242_v39 }
 0xaaa   : > { %6766 = vpow2.f32 %v5283_v8 }
 0xaab   : > { %4814 = vadd.xlane.f32.xlu0 %v9793_v44  ;;  %6768 = vpow2.f32 %v5287_v13  ;;  %v5289_v24 = vmul.f32 1.442695, %v5269_v22  ;;  %v4755_v35 = vpop.xlane.xlu1 %4754 }
 0xaac   : > { %v5246_v30 = vpop.xlane.xlu0 %5245  ;;  %6770 = vpow2.f32 %v4790_v47  ;;  %v5272_v47 = vsub.f32 %v9535_v61, %v5248_v51 }
 0xaad   : > { %6772 = vpow2.f32 %v4794_v49  ;;  %v5271_v42 = vsub.f32 %v9578_v23, %v5246_v30  ;;  %v10766_v30 = vld [vmem:[#allocation9_spill] sm:$0xff] }
 0xaae   : > { %v9799_v45 = vpop.eup %6756  ;;  %6774 = vpow2.f32 %v5289_v24  ;;  %v5295_v22 = vmul.f32 1.442695, %v5272_v47 }
 0xaaf   : > { %10758 = vst [vmem:[#allocation40_spill] sm:$0xff] %v9799_v45  ;;  %4816 = vadd.xlane.f32.xlu0 %v9796_v50  ;;  %5317 = vadd.xlane.f32.xlu1 %v9799_v45  ;;  %v9803_v4 = vpop.eup %6758  ;;  %6776 = vpow2.f32 %v5291_v11  ;;  %v5252_v21 = vpop.xlane.xlu1 %5251  ;;  %v5293_v58 = vmul.f32 1.442695, %v5271_v42 }
 0xab0   : > { %v4749_v0 = vpop.xlane.xlu0 %4748 }
 0xab1   : > { %6778 = vpow2.f32 %v5293_v58 }
 0xab2   : > { %v9806_v29 = vpop.eup %6760  ;;  %6780 = vpow2.f32 %v5295_v22 }
 0xab3   : > { %10759 = vst [vmem:[#allocation54_spill] sm:$0xff] %v9806_v29  ;;  %4818 = vadd.xlane.f32.xlu0 %v9803_v4  ;;  %4820 = vadd.xlane.f32.xlu1 %v9806_v29  ;;  %v9810_v46 = vpop.eup %6762  ;;  %v5256_v24 = vpop.xlane.xlu1 %5255 }
 0xab4   : > { %10760 = vst [vmem:[#allocation20_spill] sm:$0xff] %v9810_v46  ;;  %v4753_v13 = vpop.xlane.xlu0 %4752 }
 0xab5   : > { %v4774_v29 = vsub.f32 %v9602_v62, %v4753_v13  ;;  %v5274_v62 = vsub.f32 %v9569_v18, %v5252_v21 }
 0xab6   : > { %v9815_v19 = vpop.eup %6764 }
 0xab7   : > { %10761 = vst [vmem:[#allocation13_spill] sm:$0xff] %v9815_v19  ;;  %5313 = vadd.xlane.f32.xlu0 %v9810_v46  ;;  %4824 = vadd.xlane.f32.xlu1 %v9815_v19  ;;  %v9820_v8 = vpop.eup %6766  ;;  %v9839_v51 = vpop.xlane.xlu1 %4758  ;;  %v4800_v45 = vmul.f32 1.442695, %v4774_v29 }
 0xab8   : > { %10762 = vst [vmem:[#allocation17_spill] sm:$0xff] %v9820_v8  ;;  %v9824_v39 = vpop.eup %6768  ;;  %v5250_v49 = vpop.xlane.xlu0 %5249 }
 0xab9   : > { %10763 = vst [vmem:[#allocation11_spill] sm:$0xff] %v9824_v39  ;;  %v9828_v41 = vpop.eup %6770 }
 0xaba   : > { %10764 = vst [vmem:[#allocation29_spill] sm:$0xff] %v9828_v41  ;;  %v9831_v55 = vpop.eup %6772 }
 0xabb   : > { %5315 = vadd.xlane.f32.xlu0 %v9820_v8  ;;  %10765 = vst [vmem:[#allocation26_spill] sm:$0xff] %v9831_v55  ;;  %v9836_v61 = vpop.eup %6774  ;;  %v9848_v58 = vpop.xlane.xlu1 %4762 }
 0xabc   : > { %v5254_v23 = vpop.xlane.xlu0 %5253  ;;  %10767 = vst [vmem:[#allocation24_spill] sm:$0xff] %v9836_v61  ;;  %v9841_v11 = vpop.eup %6776 }
 0xabd   : > { %10768 = vst [vmem:[#allocation38_spill] sm:$0xff] %v9841_v11  ;;  %v5275_v29 = vsub.f32 %v9622_v1, %v5254_v23 }
 0xabe   : > { %v9846_v47 = vpop.eup %6778 }
 0xabf   : > { %5319 = vadd.xlane.f32.xlu0 %v9824_v39  ;;  %10769 = vst [vmem:[#allocation30_spill] sm:$0xff] %v9846_v47  ;;  %v9853_v22 = vpop.eup %6780  ;;  %v9857_v19 = vpop.xlane.xlu1 %5259  ;;  %v4775_v39 = vsub.f32 %v9557_v57, %v4755_v35  ;;  %v5299_v57 = vmul.f32 1.442695, %v5274_v62  ;;  %v5301_v18 = vmul.f32 1.442695, %v5275_v29 }
 0xac0   : > { %v9843_v42 = vpop.xlane.xlu0 %4756  ;;  %10770 = vst [vmem:[#allocation49_spill] sm:$0xff] %v9853_v22 }
 0xac1   : > { %v4802_v46 = vmul.f32 1.442695, %v4775_v39  ;;  %v10771_v39 = vld [vmem:[#allocation41_spill] sm:$0xff] }
 0xac3   : > { %4822 = vadd.xlane.f32.xlu0 %v9828_v41 }
 0xac7   : > { %4826 = vadd.xlane.f32.xlu0 %v9831_v55  ;;  %v9851_v55 = vpop.xlane.xlu0 %4760 }
 0xac8   : > { %5393 = vrot.lane.b32.xlu1 %v10766_v30, %s7028_s24 }
 0xacb   : > { %5321 = vadd.xlane.f32.xlu0 %v9836_v61  ;;  %v4772_v61 = vsub.f32 %v9590_v15, %v4749_v0  ;;  %v5273_v15 = vsub.f32 %v9612_v54, %v5250_v49 }
 0xacd   : > { %v4796_v41 = vmul.f32 1.442695, %v4772_v61  ;;  %v5297_v13 = vmul.f32 1.442695, %v5273_v15 }
 0xacf   : > { %5323 = vadd.xlane.f32.xlu0 %v9841_v11  ;;  %v9860_v11 = vpop.xlane.xlu0 %5257  ;;  %6782 = vpow2.f32 %v4796_v41 }
 0xad0   : > { %6784 = vpow2.f32 %v4800_v45  ;;  %v5276_v45 = vsub.f32 %v10771_v39, %v5256_v24  ;;  %v10772_v24 = vld [vmem:[#allocation8_spill] sm:$0xff] }
 0xad2   : > { %v5303_v21 = vmul.f32 1.442695, %v5276_v45 }
 0xad3   : > { %5325 = vadd.xlane.f32.xlu0 %v9846_v47  ;;  %v9863_v47 = vpop.xlane.xlu1 %5263  ;;  %v9865_v8 = vpop.xlane.xlu0 %5261 }
 0xad7   : > { %5327 = vadd.xlane.f32.xlu0 %v9853_v22 }
 0xadc   : > { %v9870_v35 = vpop.eup %6782 }
 0xae4   : > { %v3893_v0 = vpop.xlane.xlu1 %3892 }
 0xae5   : > { %6786 = vrcp.f32 %v3893_v0  ;;  %v3891_v22 = vpop.xlane.xlu0 %3890 }
 0xae6   : > { %6788 = vrcp.f32 %v3891_v22 }
 0xae7   : > { %6790 = vpow2.f32 %v4802_v46  ;;  %v9876_v46 = vpop.eup %6784 }
 0xae8   : > { %6792 = vpow2.f32 %v5297_v13 }
 0xae9   : > { %v3895_v61 = vpop.xlane.xlu0 %3894 }
 0xaea   : > { %6794 = vrcp.f32 %v3895_v61 }
 0xaec   : > { %v3897_v41 = vpop.xlane.xlu1 %3896  ;;  %4828 = vadd.xlane.f32.xlu1 %v9870_v35 }
 0xaed   : > { %v3899_v54 = vpop.xlane.xlu0 %3898  ;;  %6796 = vrcp.f32 %v3897_v41  ;;  %4892 = vrot.lane.b32.xlu0 %v10766_v30, %s10669_s28 }
 0xaee   : > { %6798 = vpow2.f32 %v5299_v57 }
 0xaef   : > { %6800 = vrcp.f32 %v3899_v54 }
 0xaf0   : > { %v3901_v1 = vpop.xlane.xlu1 %3900  ;;  %4832 = vadd.xlane.f32.xlu1 %v9876_v46 }
 0xaf1   : > { %6802 = vrcp.f32 %v3901_v1  ;;  %4890 = vrot.lane.b32.xlu0 %v10772_v24, %s10669_s28 }
 0xaf2   : > { %v6787_v49 = vpop.eup %6786  ;;  %6804 = vpow2.f32 %v5301_v18 }
 0xaf3   : > { %v6789_v23 = vpop.eup %6788  ;;  %v3939_v22 = vmul.f32 %v6787_v49, %v9658_v38  ;;  %6806 = vpow2.f32 %v5303_v21 }
 0xaf4   : > { %v9882_v15 = vpop.eup %6790  ;;  %v3938_v30 = vmul.f32 %v6789_v23, %v9660_v56  ;;  %v3905_v0 = vpop.xlane.xlu1 %3904  ;;  %v10773_v56 = vld [vmem:[#allocation46_spill] sm:$0xff] }
 0xaf5   : > { %4834 = vadd.xlane.f32.xlu1 %v9882_v15  ;;  %v3903_v62 = vpop.xlane.xlu0 %3902  ;;  %6808 = vrcp.f32 %v3905_v0  ;;  %v9886_v61 = vpop.eup %6792  ;;  %v4773_v45 = vsub.f32 %v10773_v56, %v9812_v28 }
 0xaf6   : > { %v3954_v13 = vpack.c.bf16 %v3939_v22, %v3938_v30  ;;  %6810 = vrcp.f32 %v3903_v62  ;;  %v10774_v62 = vld [vmem:[#allocation16_spill] sm:$0xff] }
 0xaf7   : > { %v6795_v57 = vpop.eup %6794  ;;  %v4798_v22 = vmul.f32 1.442695, %v4773_v45  ;;  %v10776_v45 = vld [vmem:[#allocation33_spill] sm:$0xff] }
 0xaf8   : > { %6117 = vmatprep.mubr.bf16.mxu1 %v3954_v13  ;;  %v3909_v29 = vpop.xlane.xlu1 %3908  ;;  %v3940_v54 = vmul.f32 %v6795_v57, %v9665_v60  ;;  %v10775_v57 = vld [vmem:[#allocation14_spill] sm:$0xff] }
 0xaf9   : > { %5329 = vadd.xlane.f32.xlu1 %v9886_v61  ;;  %v3907_v38 = vpop.xlane.xlu0 %3906  ;;  %6812 = vrcp.f32 %v3909_v29 }
 0xafa   : > { %v6797_v39 = vpop.eup %6796  ;;  %6814 = vrcp.f32 %v3907_v38 }
 0xafb   : > { %v9891_v41 = vpop.eup %6798  ;;  %v3941_v18 = vmul.f32 %v6797_v39, %v9672_v40 }
 0xafc   : > { %v6801_v21 = vpop.eup %6800 }
 0xafd   : > { %5331 = vadd.xlane.f32.xlu1 %v9891_v41  ;;  %v3911_v1 = vpop.xlane.xlu0 %3910  ;;  %v3955_v49 = vpack.c.bf16 %v3941_v18, %v3940_v54  ;;  %v3942_v28 = vmul.f32 %v6801_v21, %v9670_v48 }
 0xafe   : > { %v6803_v23 = vpop.eup %6802  ;;  %6816 = vrcp.f32 %v3911_v1 }
 0xaff   : > { %v9896_v30 = vpop.eup %6804  ;;  %6118 = vmatmul.mubr.bf16.vlgmr.msra.gmra.mxu1 %v3955_v49  ;;  %v3943_v0 = vmul.f32 %v6803_v23, %v9677_v27 }
 0xb00   : > { %6134 = vmatpush3.bf16.msra.mxu1 %v10774_v62  ;;  %v3913_v60 = vpop.xlane.xlu1 %3912  ;;  %v9902_v13 = vpop.eup %6806 }
 0xb01   : > { %5333 = vadd.xlane.f32.xlu1 %v9896_v30  ;;  %v3915_v40 = vpop.xlane.xlu0 %3914  ;;  %6818 = vrcp.f32 %v3913_v60  ;;  %6135 = vmatprep.subr.bf16.mxu1 %v10775_v57  ;;  %v3956_v29 = vpack.c.bf16 %v3943_v0, %v3942_v28  ;;  %v10778_v60 = vld [vmem:[#allocation23_spill] sm:$0xff] }
 0xb02   : > { %v6809_v38 = vpop.eup %6808  ;;  %6820 = vpow2.f32 %v4798_v22  ;;  %v10777_v22 = vld [vmem:[#allocation42_spill] sm:$0xff] }
 0xb03   : > { %v6811_v39 = vpop.eup %6810  ;;  %6822 = vrcp.f32 %v3915_v40  ;;  %6121 = vmatprep.mubr.bf16.mxu1 %v3956_v29  ;;  %v3945_v48 = vmul.f32 %v6809_v38, %v9684_v9  ;;  %v10779_v40 = vld [vmem:[#allocation22_spill] sm:$0xff] }
 0xb04   : > { %6136 = vmatpush3.bf16.msra.mxu1 %v10775_v57  ;;  %v3917_v27 = vpop.xlane.xlu1 %3916  ;;  %v3944_v56 = vmul.f32 %v6811_v39, %v9686_v5 }
 0xb05   : > { %5335 = vadd.xlane.f32.xlu1 %v9902_v13  ;;  %6824 = vrcp.f32 %v3917_v27  ;;  %6137 = vmatprep.subr.bf16.mxu1 %v10776_v45  ;;  %v10780_v27 = vld [vmem:[#allocation34_spill] sm:$0xff] }
 0xb06   : > { %v6813_v54 = vpop.eup %6812  ;;  %v3957_v18 = vpack.c.bf16 %v3945_v48, %v3944_v56  ;;  %v10781_v56 = vld [vmem:[#allocation25_spill] sm:$0xff] }
 0xb07   : > { %v6815_v21 = vpop.eup %6814  ;;  %v3947_v1 = vmul.f32 %v6813_v54, %v9691_v59 }
 0xb08   : > { %6122 = vmatmul.mubr.bf16.gmra.mxu1 %v3957_v18  ;;  %v3921_v49 = vpop.xlane.xlu1 %3920  ;;  %v3919_v23 = vpop.xlane.xlu0 %3918  ;;  %v3946_v9 = vmul.f32 %v6815_v21, %v9693_v25  ;;  %v10782_v21 = vld [vmem:[#allocation50_spill] sm:$0xff] }
 0xb09   : > { %6138 = vmatpush3.bf16.msra.mxu1 %v10776_v45  ;;  %6826 = vrcp.f32 %v3921_v49 }
 0xb0a   : > { %6139 = vmatprep.subr.bf16.mxu1 %v10777_v22  ;;  %6828 = vrcp.f32 %v3919_v23  ;;  %v3958_v5 = vpack.c.bf16 %v3947_v1, %v3946_v9  ;;  %v10783_v23 = vld [vmem:[#allocation36_spill] sm:$0xff] }
 0xb0b   : > { %v6817_v28 = vpop.eup %6816 }
 0xb0c   : > { %6125 = vmatprep.mubr.bf16.mxu1 %v3958_v5  ;;  %v4304_v0 = vpop.xlane.xlu1 %4303  ;;  %v3948_v25 = vmul.f32 %v6817_v28, %v9699_v12 }
 0xb0d   : > { %6140 = vmatpush3.bf16.msra.mxu1 %v10777_v22  ;;  %6830 = vrcp.f32 %v4304_v0  ;;  %v10784_v0 = vld [vmem:[#allocation7_spill] sm:$0xff] }
 0xb0e   : > { %v6819_v62 = vpop.eup %6818  ;;  %6141 = vmatprep.subr.bf16.mxu1 %v10778_v60 }
 0xb0f   : > { %v9916_v59 = vpop.eup %6820  ;;  %v3949_v57 = vmul.f32 %v6819_v62, %v10779_v40 }
 0xb10   : > { %v6823_v29 = vpop.eup %6822  ;;  %v4306_v38 = vpop.xlane.xlu1 %4305  ;;  %4830 = vadd.xlane.f32.xlu0 %v9916_v59 }
 0xb11   : > { %6142 = vmatpush3.bf16.msra.mxu1 %v10778_v60  ;;  %6832 = vrcp.f32 %v4306_v38  ;;  %v3959_v39 = vpack.c.bf16 %v3949_v57, %v3948_v25  ;;  %v3950_v45 = vmul.f32 %v6823_v29, %v10781_v56 }
 0xb12   : > { %v6825_v48 = vpop.eup %6824  ;;  %6143 = vmatprep.subr.bf16.mxu1 %v10780_v27 }
 0xb13   : > { %6126 = vmatmul.mubr.bf16.gmra.mxu1 %v3959_v39  ;;  %v3951_v54 = vmul.f32 %v6825_v48, %v9711_v63 }
 0xb14   : > { %v4308_v18 = vpop.xlane.xlu1 %4307  ;;  %v4312_v12 = vpop.xlane.xlu0 %4311 }
 0xb15   : > { %6144 = vmatpush3.bf16.msra.mxu1 %v10780_v27  ;;  %v3960_v1 = vpack.c.bf16 %v3951_v54, %v3950_v45  ;;  %6834 = vrcp.f32 %v4308_v18  ;;  %v10786_v27 = vld [vmem:[#allocation39_spill] sm:$0xff] }
 0xb16   : > { %5389 = vrot.lane.b32.xlu1 %v10782_v21, %s7028_s24  ;;  %v6827_v49 = vpop.eup %6826  ;;  %6145 = vmatprep.subr.bf16.mxu1 %v10783_v23  ;;  %v4777_v56 = vsub.f32 %v10786_v27, %v9839_v51  ;;  %v10792_v27 = vld [vmem:[#allocation10_spill] sm:$0xff] }
 0xb17   : > { %v6829_v9 = vpop.eup %6828  ;;  %6129 = vmatprep.mubr.bf16.mxu1 %v3960_v1  ;;  %v3953_v22 = vmul.f32 %v6827_v49, %v9717_v33  ;;  %v10785_v33 = vld [vmem:[#allocation21_spill] sm:$0xff] }
 0xb18   : > { %v4310_v5 = vpop.xlane.xlu1 %4309  ;;  %v4316_v28 = vpop.xlane.xlu0 %4315  ;;  %v3952_v63 = vmul.f32 %v6829_v9, %v9720_v14 }
 0xb19   : > { %6146 = vmatpush3.bf16.msra.mxu1 %v10783_v23  ;;  %6836 = vrcp.f32 %v4310_v5 }
 0xb1a   : > { %6147 = vmatprep.subr.bf16.mxu1 %v10784_v0  ;;  %v3961_v62 = vpack.c.bf16 %v3953_v22, %v3952_v63  ;;  %6838 = vrcp.f32 %v4312_v12  ;;  %v6831_v60 = vpop.eup %6830  ;;  %v10787_v12 = vld [vmem:[#allocation18_spill] sm:$0xff] }
 0xb1b   : > { %v4351_v14 = vmul.f32 %v6831_v60, %v9726_v17  ;;  %v4778_v1 = vsub.f32 %v10787_v12, %v9851_v55  ;;  %v4806_v17 = vmul.f32 1.442695, %v4777_v56  ;;  %v10788_v63 = vld [vmem:[#allocation6_spill] sm:$0xff]  ;;  %v10794_v12 = vld [vmem:[#allocation28_spill] sm:$0xff] }
 0xb1c   : > { %6130 = vmatmul.mubr.bf16.gmra.mxu1 %v3961_v62  ;;  %v4314_v25 = vpop.xlane.xlu1 %4313  ;;  %v4318_v40 = vpop.xlane.xlu0 %4317 }
 0xb1d   : > { %6148 = vmatpush3.bf16.msra.mxu1 %v10784_v0  ;;  %6840 = vrcp.f32 %v4314_v25  ;;  %v4808_v51 = vmul.f32 1.442695, %v4778_v1  ;;  %v4779_v0 = vsub.f32 %v10788_v63, %v9848_v58  ;;  %v10789_v25 = vld [vmem:[#allocation35_spill] sm:$0xff] }
 0xb1e   : > { %v6833_v57 = vpop.eup %6832  ;;  %6197 = vmatprep.subr.bf16.mxu1 %v10785_v33  ;;  %6842 = vrcp.f32 %v4318_v40 }
 0xb1f   : > { %6844 = vrcp.f32 %v4316_v28  ;;  %v4352_v29 = vmul.f32 %v6833_v57, %v9730_v10 }
 0xb20   : > { %v4320_v38 = vpop.xlane.xlu1 %4319  ;;  %v4322_v39 = vpop.xlane.xlu0 %4321 }
 0xb21   : > { %6846 = vrcp.f32 %v4320_v38  ;;  %v4367_v48 = vpack.c.bf16 %v4352_v29, %v4351_v14  ;;  %v10790_v14 = vld [vmem:[#allocation52_spill] sm:$0xff] }
 0xb22   : > { %6848 = vrcp.f32 %v4322_v39  ;;  %v6835_v45 = vpop.eup %6834 }
 0xb23   : > { %6149 = vmatprep.mubr.bf16.mxu1 %v4367_v48  ;;  %v4353_v10 = vmul.f32 %v6835_v45, %v9735_v36 }
 0xb24   : > { %v4328_v54 = vpop.xlane.xlu1 %4327  ;;  %v4324_v18 = vpop.xlane.xlu0 %4323 }
 0xb25   : > { %6850 = vrcp.f32 %v4324_v18 }
 0xb26   : > { %v6837_v49 = vpop.eup %6836  ;;  %5391 = vrot.lane.b32.xlu0 %v10772_v24, %s7028_s24 }
 0xb27   : > { %v4354_v23 = vmul.f32 %v6837_v49, %v9743_v52  ;;  %v6839_v9 = vpop.eup %6838  ;;  %v10795_v49 = vld [vmem:[#allocation32_spill] sm:$0xff] }
 0xb28   : > { %v4326_v22 = vpop.xlane.xlu0 %4325  ;;  %v4332_v62 = vpop.xlane.xlu1 %4331  ;;  %v4355_v36 = vmul.f32 %v6839_v9, %v9737_v16 }
 0xb29   : > { %v4368_v5 = vpack.c.bf16 %v4354_v23, %v4353_v10  ;;  %6852 = vrcp.f32 %v4326_v22 }
 0xb2a   : > { %v6841_v28 = vpop.eup %6840  ;;  %4888 = vrot.lane.b32.xlu0 %v10782_v21, %s10669_s28  ;;  %6854 = vpow2.f32 %v4806_v17  ;;  %v4810_v21 = vmul.f32 1.442695, %v4779_v0  ;;  %v4776_v17 = vsub.f32 %v10795_v49, %v9843_v42 }
 0xb2b   : > { %v6843_v55 = vpop.eup %6842  ;;  %6150 = vmatmul.mubr.bf16.vlgmr.msra.gmra.mxu1 %v4368_v5  ;;  %v4356_v52 = vmul.f32 %v6841_v28, %v9750_v7  ;;  %6856 = vrcp.f32 %v4328_v54  ;;  %v10791_v7 = vld [vmem:[#allocation12_spill] sm:$0xff] }
 0xb2c   : > { %v6845_v24 = vpop.eup %6844  ;;  %6198 = vmatpush3.bf16.msra.mxu1 %v10785_v33  ;;  %v4330_v60 = vpop.xlane.xlu0 %4329  ;;  %6858 = vpow2.f32 %v4808_v51  ;;  %v4358_v40 = vmul.f32 %v6843_v55, %v9753_v43  ;;  %v5278_v29 = vsub.f32 %v10791_v7, %v9857_v19  ;;  %v10793_v19 = vld [vmem:[#allocation15_spill] sm:$0xff] }
 0xb2d   : > { %6199 = vmatprep.subr.bf16.mxu1 %v10789_v25  ;;  %v4369_v58 = vpack.c.bf16 %v4356_v52, %v4355_v36  ;;  %6860 = vrcp.f32 %v4330_v60  ;;  %v4357_v33 = vmul.f32 %v6845_v24, %v9745_v3  ;;  %v4813_v39 = vpop.xlane.xlu1 %4812  ;;  %v5279_v18 = vsub.f32 %v10793_v19, %v9865_v8 }
 0xb2e   : > { %v6847_v57 = vpop.eup %6846  ;;  %4886 = vrot.lane.b32.xlu0 %v10790_v14, %s10669_s28  ;;  %6862 = vrcp.f32 %v4332_v62  ;;  %v5307_v54 = vmul.f32 1.442695, %v5278_v29  ;;  %v4804_v62 = vmul.f32 1.442695, %v4776_v17 }
 0xb2f   : > { %v6849_v16 = vpop.eup %6848  ;;  %6153 = vmatprep.mubr.bf16.mxu1 %v4369_v58  ;;  %v4359_v38 = vmul.f32 %v6847_v57, %v9760_v31  ;;  %v4370_v56 = vpack.c.bf16 %v4358_v40, %v4357_v33  ;;  %v5309_v10 = vmul.f32 1.442695, %v5279_v18 }
 0xb30   : > { %6200 = vmatpush3.bf16.msra.mxu1 %v10789_v25  ;;  %v4334_v43 = vpop.xlane.xlu0 %4333  ;;  %v4360_v48 = vmul.f32 %v6849_v16, %v9757_v2  ;;  %v5280_v2 = vsub.f32 %v10794_v12, %v9863_v47 }
 0xb31   : > { %6201 = vmatprep.subr.bf16.mxu1 %v10792_v27  ;;  %6864 = vrcp.f32 %v4334_v43 }
 0xb32   : > { %6866 = vpow2.f32 %v4810_v21  ;;  %v4371_v45 = vpack.c.bf16 %v4360_v48, %v4359_v38  ;;  %v6851_v31 = vpop.eup %6850  ;;  %v5311_v28 = vmul.f32 1.442695, %v5280_v2 }
 0xb33   : > { %6868 = vrcp.f32 %v4813_v39  ;;  %6154 = vmatmul.mubr.bf16.gmra.mxu1 %v4370_v56  ;;  %v4361_v22 = vmul.f32 %v6851_v31, %v9765_v37  ;;  %v10796_v31 = vld [vmem:[#allocation20_spill] sm:$0xff] }
 0xb34   : > { %6202 = vmatpush3.bf16.msra.mxu1 %v10792_v27  ;;  %6157 = vmatprep.mubr.bf16.mxu1 %v4371_v45  ;;  %v4815_v3 = vpop.xlane.xlu0 %4814 }
 0xb35   : > { %6870 = vrcp.f32 %v4815_v3 }
 0xb36   : > { %v6853_v1 = vpop.eup %6852  ;;  %6872 = vpow2.f32 %v5307_v54 }
 0xb37   : > { %v9970_v23 = vpop.eup %6854  ;;  %v4362_v51 = vmul.f32 %v6853_v1, %v9773_v20  ;;  %6874 = vpow2.f32 %v5309_v10  ;;  %v10798_v10 = vld [vmem:[#allocation40_spill] sm:$0xff] }
 0xb38   : > { %v5318_v8 = vpop.xlane.xlu1 %5317  ;;  %v4817_v9 = vpop.xlane.xlu0 %4816 }
 0xb39   : > { %v6857_v5 = vpop.eup %6856  ;;  %v4372_v63 = vpack.c.bf16 %v4362_v51, %v4361_v22  ;;  %6876 = vrcp.f32 %v4817_v9  ;;  %v10799_v9 = vld [vmem:[#allocation11_spill] sm:$0xff] }
 0xb3a   : > { %4838 = vadd.xlane.f32.xlu1 %v9970_v23  ;;  %v9975_v47 = vpop.eup %6858  ;;  %v4363_v52 = vmul.f32 %v6857_v5, %v9767_v6  ;;  %6878 = vpow2.f32 %v5311_v28 }
 0xb3b   : > { %v6861_v0 = vpop.eup %6860  ;;  %6158 = vmatmul.mubr.bf16.gmra.mxu1 %v4372_v63 }
 0xb3c   : > { %v6863_v42 = vpop.eup %6862  ;;  %v4821_v55 = vpop.xlane.xlu1 %4820  ;;  %v4364_v37 = vmul.f32 %v6861_v0, %v9781_v53  ;;  %v10800_v0 = vld [vmem:[#allocation54_spill] sm:$0xff] }
 0xb3d   : > { %v4819_v36 = vpop.xlane.xlu0 %4818  ;;  %v4365_v25 = vmul.f32 %v6863_v42, %v9775_v26  ;;  %v10801_v42 = vld [vmem:[#allocation29_spill] sm:$0xff] }
 0xb3e   : > { %4840 = vadd.xlane.f32.xlu1 %v9975_v47  ;;  %v6865_v20 = vpop.eup %6864  ;;  %6880 = vrcp.f32 %v4819_v36  ;;  %v4373_v24 = vpack.c.bf16 %v4364_v37, %v4363_v52 }
 0xb3f   : > { %v9980_v60 = vpop.eup %6866  ;;  %6882 = vpow2.f32 %v4804_v62  ;;  %v4366_v58 = vmul.f32 %v6865_v20, %v9789_v34 }
 0xb40   : > { %v6869_v40 = vpop.eup %6868  ;;  %6161 = vmatprep.mubr.bf16.mxu1 %v4373_v24  ;;  %v4825_v57 = vpop.xlane.xlu1 %4824  ;;  %v10802_v24 = vld [vmem:[#allocation48_spill] sm:$0xff] }
 0xb41   : > { %v5314_v21 = vpop.xlane.xlu0 %5313  ;;  %v4374_v6 = vpack.c.bf16 %v4366_v58, %v4365_v25  ;;  %v4860_v16 = vmul.f32 %v6869_v40, %v9783_v32  ;;  %v10803_v25 = vld [vmem:[#allocation13_spill] sm:$0xff]  ;;  %v10804_v40 = vld [vmem:[#allocation26_spill] sm:$0xff] }
 0xb42   : > { %4842 = vadd.xlane.f32.xlu1 %v9980_v60  ;;  %v6871_v53 = vpop.eup %6870  ;;  %6884 = vrcp.f32 %v5314_v21 }
 0xb43   : > { %v4861_v7 = vmul.f32 %v6871_v53, %v9793_v44  ;;  %v9987_v29 = vpop.eup %6872  ;;  %6162 = vmatmul.mubr.bf16.gmra.mxu1 %v4374_v6 }
 0xb44   : > { %v5394_v33 = vpop.permute.xlu1 %5393  ;;  %v9990_v38 = vpop.eup %6874 }
 0xb45   : > { %v5316_v26 = vpop.xlane.xlu0 %5315  ;;  %6203 = vmatprep.subr.bf16.mxu1 %v5394_v33  ;;  %v4876_v34 = vpack.c.bf16 %v4861_v7, %v4860_v16 }
 0xb46   : > { %6886 = vrcp.f32 %v5316_v26  ;;  %5339 = vadd.xlane.f32.xlu1 %v9987_v29  ;;  %6204 = vmatpush3.bf16.msra.mxu1 %v5394_v33  ;;  %v6877_v43 = vpop.eup %6876  ;;  %v10805_v33 = vld [vmem:[#allocation24_spill] sm:$0xff] }
 0xb47   : > { %6888 = vrcp.f32 %v5318_v8  ;;  %6181 = vmatprep.mubr.bf16.mxu0 %v4876_v34  ;;  %v9993_v32 = vpop.eup %6878  ;;  %v9998_v56 = vmul.f32 %v6877_v43, %v9796_v50  ;;  %v10797_v50 = vld [vmem:[#allocation17_spill] sm:$0xff]  ;;  %v10806_v34 = vld [vmem:[#allocation38_spill] sm:$0xff] }
 0xb49   : > { %v5320_v39 = vpop.xlane.xlu0 %5319 }
 0xb4a   : > { %6890 = vrcp.f32 %v5320_v39  ;;  %5341 = vadd.xlane.f32.xlu1 %v9990_v38 }
 0xb4b   : > { %v6881_v44 = vpop.eup %6880  ;;  %6892 = vrcp.f32 %v4821_v55 }
 0xb4c   : > { %v9995_v48 = vpop.eup %6882  ;;  %v10001_v45 = vmul.f32 %v6881_v44, %v9803_v4 }
 0xb4d   : > { %v4823_v27 = vpop.xlane.xlu0 %4822  ;;  %4836 = vadd.xlane.f32.xlu0 %v9995_v48 }
 0xb4e   : > { %6894 = vrcp.f32 %v4823_v27  ;;  %5343 = vadd.xlane.f32.xlu1 %v9993_v32  ;;  %v4877_v54 = vpack.c.bf16 %v10001_v45, %v9998_v56 }
 0xb4f   : > { %6896 = vrcp.f32 %v4825_v57  ;;  %v6885_v19 = vpop.eup %6884 }
 0xb50   : > { %v5361_v12 = vmul.f32 %v6885_v19, %v10796_v31 }
 0xb51   : > { %v4827_v18 = vpop.xlane.xlu0 %4826 }
 0xb52   : > { %6898 = vrcp.f32 %v4827_v18 }
 0xb53   : > { %v6887_v3 = vpop.eup %6886 }
 0xb54   : > { %v5362_v2 = vmul.f32 %v6887_v3, %v10797_v50  ;;  %v6889_v1 = vpop.eup %6888  ;;  %v10808_v3 = vld [vmem:[#allocation30_spill] sm:$0xff] }
 0xb55   : > { %v5322_v4 = vpop.xlane.xlu0 %5321  ;;  %v10010_v8 = vmul.f32 %v6889_v1, %v10798_v10 }
 0xb56   : > { %v5377_v49 = vpack.c.bf16 %v5362_v2, %v5361_v12  ;;  %6900 = vrcp.f32 %v5322_v4  ;;  %v10809_v12 = vld [vmem:[#allocation49_spill] sm:$0xff] }
 0xb57   : > { %v6891_v17 = vpop.eup %6890 }
 0xb58   : > { %6213 = vmatprep.mubr.bf16.mxu1 %v5377_v49  ;;  %v10013_v22 = vmul.f32 %v6891_v17, %v10799_v9  ;;  %v6893_v51 = vpop.eup %6892 }
 0xb59   : > { %v5324_v5 = vpop.xlane.xlu0 %5323  ;;  %v10018_v62 = vmul.f32 %v6893_v51, %v10800_v0 }
 0xb5a   : > { %6902 = vrcp.f32 %v5324_v5  ;;  %v5378_v28 = vpack.c.bf16 %v10013_v22, %v10010_v8 }
 0xb5b   : > { %v6895_v63 = vpop.eup %6894 }
 0xb5c   : > { %v10021_v55 = vmul.f32 %v6895_v63, %v10801_v42  ;;  %v6897_v36 = vpop.eup %6896 }
 0xb5d   : > { %v5326_v52 = vpop.xlane.xlu0 %5325  ;;  %v10028_v58 = vmul.f32 %v6897_v36, %v10803_v25 }
 0xb5e   : > { %v4878_v37 = vpack.c.bf16 %v10021_v55, %v10018_v62  ;;  %6904 = vrcp.f32 %v5326_v52 }
 0xb5f   : > { %v6899_v20 = vpop.eup %6898  ;;  %4884 = vrot.lane.b32.xlu1 %v10802_v24, %s10669_s28 }
 0xb60   : > { %v10031_v57 = vmul.f32 %v6899_v20, %v10804_v40 }
 0xb61   : > { %v5328_v21 = vpop.xlane.xlu0 %5327 }
 0xb62   : > { %6906 = vrcp.f32 %v5328_v21  ;;  %v4879_v6 = vpack.c.bf16 %v10031_v57, %v10028_v58 }
 0xb63   : > { %5387 = vrot.lane.b32.xlu0 %v10790_v14, %s7028_s24  ;;  %v6901_v53 = vpop.eup %6900  ;;  %v10807_v14 = vld [vmem:[#allocation19_spill] sm:$0xff] }
 0xb64   : > { %v10038_v26 = vmul.f32 %v6901_v53, %v10805_v33  ;;  %v5277_v19 = vsub.f32 %v10807_v14, %v9860_v11 }
 0xb65   : > { %v4893_v16 = vpop.permute.xlu0 %4892 }
 0xb66   : > { %6171 = vmatprep.subr.bf16.mxu0 %v4893_v16  ;;  %v5305_v2 = vmul.f32 1.442695, %v5277_v19 }
 0xb67   : > { %v6903_v7 = vpop.eup %6902  ;;  %6172 = vmatpush3.bf16.msra.mxu0 %v4893_v16 }
 0xb68   : > { %v10041_v39 = vmul.f32 %v6903_v7, %v10806_v34  ;;  %6908 = vpow2.f32 %v5305_v2 }
 0xb69   : > { %v4891_v43 = vpop.permute.xlu0 %4890 }
 0xb6a   : > { %6173 = vmatprep.subr.bf16.mxu0 %v4891_v43  ;;  %v5379_v44 = vpack.c.bf16 %v10041_v39, %v10038_v26 }
 0xb6b   : > { %6174 = vmatpush3.bf16.msra.mxu0 %v4891_v43  ;;  %v6905_v27 = vpop.eup %6904 }
 0xb6c   : > { %v10048_v31 = vmul.f32 %v6905_v27, %v10808_v3 }
 0xb6f   : > { %v6907_v18 = vpop.eup %6906 }
 0xb70   : > { %v10051_v50 = vmul.f32 %v6907_v18, %v10809_v12 }
 0xb72   : > { %v5380_v1 = vpack.c.bf16 %v10051_v50, %v10048_v31 }
 0xb75   : > { %v10055_v4 = vpop.xlane.xlu1 %4828  ;;  %v10057_v10 = vpop.eup %6908 }
 0xb79   : > { %v4833_v49 = vpop.xlane.xlu1 %4832 }
 0xb7a   : > { %6910 = vrcp.f32 %v4833_v49 }
 0xb7e   : > { %v4835_v17 = vpop.xlane.xlu1 %4834 }
 0xb7f   : > { %6912 = vrcp.f32 %v4835_v17 }
 0xb82   : > { %v5330_v11 = vpop.xlane.xlu1 %5329  ;;  %5337 = vadd.xlane.f32.xlu0 %v10057_v10 }
 0xb83   : > { %6914 = vrcp.f32 %v5330_v11 }
 0xb86   : > { %v5332_v9 = vpop.xlane.xlu1 %5331 }
 0xb87   : > { %6916 = vrcp.f32 %v5332_v9  ;;  %v6911_v51 = vpop.eup %6910 }
 0xb88   : > { %v10061_v0 = vmul.f32 %v6911_v51, %v9876_v46 }
 0xb8a   : > { %v5334_v5 = vpop.xlane.xlu1 %5333 }
 0xb8b   : > { %6918 = vrcp.f32 %v5334_v5 }
 0xb8c   : > { %v6913_v63 = vpop.eup %6912 }
 0xb8d   : > { %v10064_v42 = vmul.f32 %v6913_v63, %v9882_v15 }
 0xb8e   : > { %v5336_v36 = vpop.xlane.xlu1 %5335 }
 0xb8f   : > { %6920 = vrcp.f32 %v5336_v36  ;;  %v4881_v52 = vpack.c.bf16 %v10064_v42, %v10061_v0 }
 0xb90   : > { %v6915_v20 = vpop.eup %6914 }
 0xb91   : > { %v10069_v40 = vmul.f32 %v6915_v20, %v9886_v61 }
 0xb92   : > { %v5390_v34 = vpop.permute.xlu1 %5389 }
 0xb94   : > { %v6917_v25 = vpop.eup %6916 }
 0xb95   : > { %v10072_v21 = vmul.f32 %v6917_v25, %v9891_v41 }
 0xb97   : > { %v5381_v46 = vpack.c.bf16 %v10072_v21, %v10069_v40 }
 0xb98   : > { %5385 = vrot.lane.b32.xlu0 %v10802_v24, %s7028_s24  ;;  %v6919_v15 = vpop.eup %6918 }
 0xb99   : > { %v4831_v53 = vpop.xlane.xlu0 %4830  ;;  %v10079_v7 = vmul.f32 %v6919_v15, %v9896_v30 }
 0xb9a   : > { %6922 = vrcp.f32 %v4831_v53 }
 0xb9b   : > { %6924 = vrcp.f32 %v10055_v4 }
 0xb9c   : > { %v6921_v16 = vpop.eup %6920 }
 0xb9d   : > { %v10082_v61 = vmul.f32 %v6921_v16, %v9902_v13  ;;  %v5392_v33 = vpop.permute.xlu0 %5391 }
 0xb9e   : > { %6205 = vmatprep.subr.bf16.mxu1 %v5392_v33 }
 0xb9f   : > { %v5382_v41 = vpack.c.bf16 %v10082_v61, %v10079_v7  ;;  %6206 = vmatpush3.bf16.msra.mxu1 %v5392_v33 }
 0xba0   : > { %6207 = vmatprep.subr.bf16.mxu1 %v5390_v34 }
 0xba1   : > { %v4889_v24 = vpop.permute.xlu0 %4888 }
 0xba2   : > { %6175 = vmatprep.subr.bf16.mxu0 %v4889_v24 }
 0xba3   : > { %6176 = vmatpush3.bf16.msra.mxu0 %v4889_v24  ;;  %6208 = vmatpush3.bf16.msra.mxu1 %v5390_v34 }
 0xba5   : > { %v4887_v43 = vpop.permute.xlu0 %4886 }
 0xba6   : > { %6177 = vmatprep.subr.bf16.mxu0 %v4887_v43 }
 0xba7   : > { %6178 = vmatpush3.bf16.msra.mxu0 %v4887_v43  ;;  %v6923_v33 = vpop.eup %6922 }
 0xba8   : > { %v6925_v24 = vpop.eup %6924 }
 0xba9   : > { %v4868_v56 = vmul.f32 %v6925_v24, %v9870_v35 }
 0xbbf   : > { %v6119_v30 = vpop.f32.mrf.mxu1 }
 0xbc0   : > { %4061 = vst.msk [vmem:[%s10089_s29 + $0x10] sm:$0xff] %vm1092_vm1, %v6119_v30 }
 0xbc1   : > { %v3996_v13 = vpop.f32.mrf.mxu1 }
 0xbc2   : > { %4059 = vst.msk [vmem:[%s10089_s29] sm:$0xff] %vm1092_vm1, %v3996_v13  ;;  %v4869_v13 = vmul.f32 %v6923_v33, %v9916_v59 }
 0xbc3   : > { %v4839_v27 = vpop.xlane.xlu1 %4838  ;;  %v6120_v14 = vpop.f32.mrf.mxu1 }
 0xbc4   : > { %4062 = vst.msk [vmem:[%s10089_s29 + $0x18] sm:$0xff] %vm1092_vm1, %v6120_v14  ;;  %v4880_v62 = vpack.c.bf16 %v4869_v13, %v4868_v56 }
 0xbc5   : > { %v3999_v19 = vpop.f32.mrf.mxu1 }
 0xbc6   : > { %4060 = vst.msk [vmem:[%s10089_s29 + $0x8] sm:$0xff] %vm1092_vm1, %v3999_v19 }
 0xbc7   : > { %v4841_v18 = vpop.xlane.xlu1 %4840 }
 0xbc8   : > { %v6123_v3 = vpop.f32.mrf.mxu1 }
 0xbc9   : > { %4065 = vst.msk [vmem:[%s10089_s29 + $0x30] sm:$0xff] %vm1092_vm1, %v6123_v3 }
 0xbca   : > { %v4012_v12 = vpop.f32.mrf.mxu1 }
 0xbcb   : > { %v4843_v2 = vpop.xlane.xlu1 %4842  ;;  %4063 = vst.msk [vmem:[%s10089_s29 + $0x20] sm:$0xff] %vm1092_vm1, %v4012_v12 }
 0xbcc   : > { %v6124_v49 = vpop.f32.mrf.mxu1 }
 0xbcd   : > { %4066 = vst.msk [vmem:[%s10089_s29 + $0x38] sm:$0xff] %vm1092_vm1, %v6124_v49 }
 0xbce   : > { %v4015_v17 = vpop.f32.mrf.mxu1 }
 0xbcf   : > { %v10105_v11 = vpop.xlane.xlu1 %5339  ;;  %4064 = vst.msk [vmem:[%s10089_s29 + $0x28] sm:$0xff] %vm1092_vm1, %v4015_v17 }
 0xbd3   : > { %v5342_v9 = vpop.xlane.xlu1 %5341  ;;  %v6127_v51 = vpop.f32.mrf.mxu1 }
 0xbd4   : > { %4069 = vst.msk [vmem:[%s10089_s29 + $0x50] sm:$0xff] %vm1092_vm1, %v6127_v51  ;;  %6926 = vrcp.f32 %v5342_v9 }
 0xbd5   : > { %v4028_v5 = vpop.f32.mrf.mxu1 }
 0xbd6   : > { %4067 = vst.msk [vmem:[%s10089_s29 + $0x40] sm:$0xff] %vm1092_vm1, %v4028_v5  ;;  %v4837_v36 = vpop.xlane.xlu0 %4836 }
 0xbd7   : > { %v5344_v63 = vpop.xlane.xlu1 %5343  ;;  %v6128_v20 = vpop.f32.mrf.mxu1 }
 0xbd8   : > { %6928 = vrcp.f32 %v5344_v63  ;;  %4070 = vst.msk [vmem:[%s10089_s29 + $0x58] sm:$0xff] %vm1092_vm1, %v6128_v20 }
 0xbd9   : > { %v4031_v25 = vpop.f32.mrf.mxu1  ;;  %6930 = vrcp.f32 %v4837_v36 }
 0xbda   : > { %4068 = vst.msk [vmem:[%s10089_s29 + $0x48] sm:$0xff] %vm1092_vm1, %v4031_v25  ;;  %v5388_v4 = vpop.permute.xlu0 %5387  ;;  %6932 = vrcp.f32 %v4839_v27 }
 0xbdb   : > { %v4885_v15 = vpop.permute.xlu1 %4884  ;;  %6209 = vmatprep.subr.bf16.mxu1 %v5388_v4  ;;  %6934 = vrcp.f32 %v4843_v2 }
 0xbdc   : > { %6179 = vmatprep.subr.bf16.mxu0 %v4885_v15  ;;  %v6131_v53 = vpop.f32.mrf.mxu1  ;;  %6210 = vmatpush3.bf16.msra.mxu1 %v5388_v4  ;;  %6936 = vrcp.f32 %v4841_v18 }
 0xbdd   : > { %6180 = vmatpush3.bf16.msra.mxu0 %v4885_v15  ;;  %4073 = vst.msk [vmem:[%s10089_s29 + $0x70] sm:$0xff] %vm1092_vm1, %v6131_v53 }
 0xbde   : > { %v4044_v16 = vpop.f32.mrf.mxu1 }
 0xbdf   : > { %4071 = vst.msk [vmem:[%s10089_s29 + $0x60] sm:$0xff] %vm1092_vm1, %v4044_v16 }
 0xbe0   : > { %6182 = vmatmul.mubr.bf16.vlgmr.msra.gmra.mxu0 %v4877_v54  ;;  %v6132_v34 = vpop.f32.mrf.mxu1 }
 0xbe1   : > { %6185 = vmatprep.mubr.bf16.mxu0 %v4878_v37  ;;  %4074 = vst.msk [vmem:[%s10089_s29 + $0x78] sm:$0xff] %vm1092_vm1, %v6132_v34  ;;  %v6927_v43 = vpop.eup %6926 }
 0xbe2   : > { %v4047_v30 = vpop.f32.mrf.mxu1  ;;  %v5375_v45 = vmul.f32 %v6927_v43, %v9990_v38 }
 0xbe3   : > { %4072 = vst.msk [vmem:[%s10089_s29 + $0x68] sm:$0xff] %vm1092_vm1, %v4047_v30 }
 0xbe5   : > { %v6929_v27 = vpop.eup %6928 }
 0xbe6   : > { %v5376_v54 = vmul.f32 %v6929_v27, %v9993_v32  ;;  %v6931_v55 = vpop.eup %6930 }
 0xbe7   : > { %v6933_v14 = vpop.eup %6932  ;;  %v4872_v59 = vmul.f32 %v6931_v55, %v9995_v48 }
 0xbe8   : > { %6186 = vmatmul.mubr.bf16.gmra.mxu0 %v4879_v6  ;;  %v5384_v37 = vpack.c.bf16 %v5376_v54, %v5375_v45  ;;  %v4873_v19 = vmul.f32 %v6933_v14, %v9970_v23  ;;  %v6935_v18 = vpop.eup %6934 }
 0xbe9   : > { %6189 = vmatprep.mubr.bf16.mxu0 %v4880_v62  ;;  %v6937_v35 = vpop.eup %6936  ;;  %v4875_v38 = vmul.f32 %v6935_v18, %v9980_v60 }
 0xbea   : > { %v4882_v3 = vpack.c.bf16 %v4873_v19, %v4872_v59  ;;  %v4874_v32 = vmul.f32 %v6937_v35, %v9975_v47 }
 0xbeb   : > { %v6151_v22 = vpop.f32.mrf.mxu1 }
 0xbec   : > { %v4883_v58 = vpack.c.bf16 %v4875_v38, %v4874_v32 }
 0xbf0   : > { %6190 = vmatmul.mubr.bf16.gmra.mxu0 %v4881_v52 }
 0xbf1   : > { %6193 = vmatprep.mubr.bf16.mxu0 %v4882_v3 }
 0xbf8   : > { %6194 = vmatmul.mubr.bf16.gmra.mxu0 %v4883_v58 }
 0xc0b   : > { %v5338_v57 = vpop.xlane.xlu0 %5337 }
 0xc0c   : > { %6938 = vrcp.f32 %v5338_v57 }
 0xc0d   : > { %6940 = vrcp.f32 %v10105_v11 }
 0xc0f   : > { %v5386_v6 = vpop.permute.xlu0 %5385 }
 0xc10   : > { %6211 = vmatprep.subr.bf16.mxu1 %v5386_v6 }
 0xc11   : > { %6212 = vmatpush3.bf16.msra.mxu1 %v5386_v6 }
 0xc14   : > { %6214 = vmatmul.mubr.bf16.vlgmr.msra.gmra.mxu1 %v5378_v28  ;;  %v4441_v28 = vpop.f32.mrf.mxu1 }
 0xc15   : > { %6217 = vmatprep.mubr.bf16.mxu1 %v5379_v44 }
 0xc16   : > { %v6152_v26 = vpop.f32.mrf.mxu1 }
 0xc18   : > { %v4444_v31 = vpop.f32.mrf.mxu1 }
 0xc19   : > { %v6939_v23 = vpop.eup %6938 }
 0xc1a   : > { %v6941_v47 = vpop.eup %6940  ;;  %v5373_v60 = vmul.f32 %v6939_v23, %v10057_v10 }
 0xc1b   : > { %v5374_v48 = vmul.f32 %v6941_v47, %v9987_v29 }
 0xc1c   : > { %6218 = vmatmul.mubr.bf16.gmra.mxu1 %v5380_v1  ;;  %v6155_v1 = vpop.f32.mrf.mxu1 }
 0xc1d   : > { %6221 = vmatprep.mubr.bf16.mxu1 %v5381_v46  ;;  %v5383_v8 = vpack.c.bf16 %v5374_v48, %v5373_v60 }
 0xc1e   : > { %v4457_v42 = vpop.f32.mrf.mxu1 }
 0xc20   : > { %v6156_v21 = vpop.f32.mrf.mxu1 }
 0xc22   : > { %v4460_v61 = vpop.f32.mrf.mxu1 }
 0xc24   : > { %6222 = vmatmul.mubr.bf16.gmra.mxu1 %v5382_v41  ;;  %v6159_v2 = vpop.f32.mrf.mxu1 }
 0xc25   : > { %6225 = vmatprep.mubr.bf16.mxu1 %v5383_v8 }
 0xc26   : > { %v4473_v11 = vpop.f32.mrf.mxu1 }
 0xc28   : > { %v6160_v51 = vpop.f32.mrf.mxu1 }
 0xc2a   : > { %v4476_v63 = vpop.f32.mrf.mxu1 }
 0xc2c   : > { %6226 = vmatmul.mubr.bf16.gmra.mxu1 %v5384_v37  ;;  %v6163_v36 = vpop.f32.mrf.mxu1 }
 0xc2e   : > { %v4489_v20 = vpop.f32.mrf.mxu1 }
 0xc30   : > { %v6164_v25 = vpop.f32.mrf.mxu1 }
 0xc32   : > { %v4492_v15 = vpop.f32.mrf.mxu1 }
 0xca0   : > { %v6183_v39 = vpop.f32.mrf.mxu0 }
 0xca1   : > { %5025 = vrot.lane.b32.xlu0 %v6183_v39, %s10669_s28 }
 0xca2   : > { %v4942_v44 = vpop.f32.mrf.mxu0 }
 0xca4   : > { %v6184_v50 = vpop.f32.mrf.mxu0 }
 0xca5   : > { %5021 = vrot.lane.b32.xlu0 %v4942_v44, %s10669_s28  ;;  %5027 = vrot.lane.b32.xlu1 %v6184_v50, %s10669_s28 }
 0xca6   : > { %v4945_v29 = vpop.f32.mrf.mxu0 }
 0xca8   : > { %v6187_v10 = vpop.f32.mrf.mxu0 }
 0xca9   : > { %5023 = vrot.lane.b32.xlu1 %v4945_v29, %s10669_s28  ;;  %5033 = vrot.lane.b32.xlu0 %v6187_v10, %s10669_s28 }
 0xcaa   : > { %v4958_v0 = vpop.f32.mrf.mxu0 }
 0xcac   : > { %v6188_v52 = vpop.f32.mrf.mxu0 }
 0xcad   : > { %5029 = vrot.lane.b32.xlu0 %v4958_v0, %s10669_s28  ;;  %5035 = vrot.lane.b32.xlu1 %v6188_v52, %s10669_s28 }
 0xcae   : > { %v4961_v40 = vpop.f32.mrf.mxu0 }
 0xcb0   : > { %v6191_v46 = vpop.f32.mrf.mxu0 }
 0xcb1   : > { %5031 = vrot.lane.b32.xlu1 %v4961_v40, %s10669_s28  ;;  %5041 = vrot.lane.b32.xlu0 %v6191_v46, %s10669_s28 }
 0xcb2   : > { %v4974_v7 = vpop.f32.mrf.mxu0 }
 0xcb4   : > { %v6192_v41 = vpop.f32.mrf.mxu0 }
 0xcb5   : > { %5037 = vrot.lane.b32.xlu0 %v4974_v7, %s10669_s28  ;;  %5043 = vrot.lane.b32.xlu1 %v6192_v41, %s10669_s28 }
 0xcb6   : > { %v4977_v12 = vpop.f32.mrf.mxu0 }
 0xcb8   : > { %v6195_v49 = vpop.f32.mrf.mxu0 }
 0xcb9   : > { %5039 = vrot.lane.b32.xlu1 %v4977_v12, %s10669_s28  ;;  %5049 = vrot.lane.b32.xlu0 %v6195_v49, %s10669_s28 }
 0xcba   : > { %v4990_v17 = vpop.f32.mrf.mxu0 }
 0xcbc   : > { %v6196_v9 = vpop.f32.mrf.mxu0 }
 0xcbd   : > { %5045 = vrot.lane.b32.xlu0 %v4990_v17, %s10669_s28  ;;  %5051 = vrot.lane.b32.xlu1 %v6196_v9, %s10669_s28 }
 0xcbe   : > { %v4993_v5 = vpop.f32.mrf.mxu0 }
 0xcc1   : > { %4532 = vrot.lane.b32.xlu0 %v6155_v1, %s7028_s24  ;;  %5047 = vrot.lane.b32.xlu1 %v4993_v5, %s10669_s28  ;;  %s6964_s28 = scalar_lea.vmem %s6963_s22, 4096 }
 0xcc5   : > { %4540 = vrot.lane.b32.xlu0 %v6159_v2, %s7028_s24  ;;  %4524 = vrot.lane.b32.xlu1 %v6151_v22, %s7028_s24 }
 0xcc9   : > { %4536 = vrot.lane.b32.xlu0 %v4473_v11, %s7028_s24  ;;  %4520 = vrot.lane.b32.xlu1 %v4441_v28, %s7028_s24 }
 0xccd   : > { %4548 = vrot.lane.b32.xlu0 %v6163_v36, %s7028_s24  ;;  %4526 = vrot.lane.b32.xlu1 %v6152_v26, %s7028_s24 }
 0xcd1   : > { %4544 = vrot.lane.b32.xlu0 %v4489_v20, %s7028_s24  ;;  %4522 = vrot.lane.b32.xlu1 %v4444_v31, %s7028_s24 }
 0xcd4   : > { %v6215_v4 = vpop.f32.mrf.mxu1 }
 0xcd5   : > { %4528 = vrot.lane.b32.xlu1 %v4457_v42, %s7028_s24  ;;  %5526 = vrot.lane.b32.xlu0 %v6215_v4, %s7026_s17 }
 0xcd6   : > { %v5443_v53 = vpop.f32.mrf.mxu1 }
 0xcd8   : > { %v6216_v16 = vpop.f32.mrf.mxu1 }
 0xcd9   : > { %4534 = vrot.lane.b32.xlu1 %v6156_v21, %s7028_s24  ;;  %5522 = vrot.lane.b32.xlu0 %v5443_v53, %s7026_s17 }
 0xcda   : > { %v5446_v33 = vpop.f32.mrf.mxu1 }
 0xcdc   : > { %v6219_v34 = vpop.f32.mrf.mxu1 }
 0xcdd   : > { %4530 = vrot.lane.b32.xlu1 %v4460_v61, %s7028_s24  ;;  %5534 = vrot.lane.b32.xlu0 %v6219_v34, %s7026_s17 }
 0xcde   : > { %v5459_v24 = vpop.f32.mrf.mxu1 }
 0xce0   : > { %v6220_v43 = vpop.f32.mrf.mxu1 }
 0xce1   : > { %4542 = vrot.lane.b32.xlu1 %v6160_v51, %s7028_s24  ;;  %5530 = vrot.lane.b32.xlu0 %v5459_v24, %s7026_s17 }
 0xce2   : > { %v5462_v30 = vpop.f32.mrf.mxu1 }
 0xce4   : > { %v6223_v13 = vpop.f32.mrf.mxu1 }
 0xce5   : > { %4538 = vrot.lane.b32.xlu1 %v4476_v63, %s7028_s24  ;;  %5542 = vrot.lane.b32.xlu0 %v6223_v13, %s7026_s17 }
 0xce6   : > { %v5475_v27 = vpop.f32.mrf.mxu1 }
 0xce8   : > { %v6224_v56 = vpop.f32.mrf.mxu1 }
 0xce9   : > { %4550 = vrot.lane.b32.xlu1 %v6164_v25, %s7028_s24  ;;  %5538 = vrot.lane.b32.xlu0 %v5475_v27, %s7026_s17 }
 0xcea   : > { %v5478_v45 = vpop.f32.mrf.mxu1 }
 0xcec   : > { %v6227_v54 = vpop.f32.mrf.mxu1 }
 0xced   : > { %4546 = vrot.lane.b32.xlu1 %v4492_v15, %s7028_s24  ;;  %s5600_s24 = sshll.u32 %s10089_s29, 4  ;;  %s10313_s24 = int_to_ptr.vmem [resolvable:$true] %s5600_s24 }
 0xcee   : > { %v5491_v62 = vpop.f32.mrf.mxu1  ;;  %p6965_p0 = scmp.lt.s32.totalorder %s10313_s24, %s6963_s22 }
 0xcef   : > { %5546 = vrot.lane.b32.xlu0 %v5491_v62, %s7026_s17 }
 0xcf0   : > { %v6228_v55 = vpop.f32.mrf.mxu1 }
 0xcf1   : > { %5528 = vrot.lane.b32.xlu1 %v6216_v16, %s7026_s17 }
 0xcf2   : > { %v5494_v37 = vpop.f32.mrf.mxu1 }
 0xcf3   : > { %5550 = vrot.lane.b32.xlu0 %v6227_v54, %s7026_s17 }
 0xcf5   : > { %5524 = vrot.lane.b32.xlu1 %v5446_v33, %s7026_s17 }
 0xcf9   : > { %5536 = vrot.lane.b32.xlu1 %v6220_v43, %s7026_s17 }
 0xcfd   : > { %5532 = vrot.lane.b32.xlu1 %v5462_v30, %s7026_s17 }
 0xd01   : > { %5544 = vrot.lane.b32.xlu1 %v6224_v56, %s7026_s17 }
 0xd05   : > { %5540 = vrot.lane.b32.xlu1 %v5478_v45, %s7026_s17 }
 0xd09   : > { %5548 = vrot.lane.b32.xlu1 %v5494_v37, %s7026_s17 }
 0xd0d   : > { %5552 = vrot.lane.b32.xlu1 %v6228_v55, %s7026_s17  ;;  %s5752_s17 = sshll.u32 %s7103_s13, 11  ;;  %s6958_s13 = scalar_lea.vmem %s10313_s24, 2048 }
 0xd0e   : > { %s10311_s23 = scalar_lea.hbm %s10368_s9, %s5752_s17  ;;  %p6959_p11 = scmp.ne.s32.totalorder %s10313_s24, %s6958_s13 }
 0xd0f   : > { %p6966_p1 = scmp.lt.s32.totalorder %s6964_s28, %s6958_s13 }
 0xd10   : > { %p6960_p12 = pnand %p6959_p11, %p7120_p5 }
 0xd11   : > { %p6967_p2 = por %p6966_p1, %p6965_p0 }
 0xd12   : > { %p6961_p13 = pneg %p6960_p12 }
 0xd13   : > { %v5026_v14 = vpop.permute.xlu0 %5025 }
 0xd14   : > { %p6968_p3 = pnand %p6967_p2, %p6961_p13 }
 0xd17   : > { %v5028_v59 = vpop.permute.xlu1 %5027  ;;  %v5022_v19 = vpop.permute.xlu0 %5021 }
 0xd1b   : > { %v5024_v18 = vpop.permute.xlu1 %5023  ;;  %v5034_v3 = vpop.permute.xlu0 %5033 }
 0xd1f   : > { %v5036_v35 = vpop.permute.xlu1 %5035  ;;  %v5030_v38 = vpop.permute.xlu0 %5029 }
 0xd23   : > { %v5032_v32 = vpop.permute.xlu1 %5031  ;;  %v5042_v58 = vpop.permute.xlu0 %5041 }
 0xd27   : > { %v5044_v57 = vpop.permute.xlu1 %5043  ;;  %v5038_v6 = vpop.permute.xlu0 %5037 }
 0xd2b   : > { %v5040_v23 = vpop.permute.xlu1 %5039  ;;  %v5050_v47 = vpop.permute.xlu0 %5049 }
 0xd2f   : > { %v5052_v60 = vpop.permute.xlu1 %5051  ;;  %v5046_v48 = vpop.permute.xlu0 %5045 }
 0xd33   : > { %v5048_v8 = vpop.permute.xlu1 %5047  ;;  %v4533_v22 = vpop.permute.xlu0 %4532 }
 0xd34   : > { %4574 = vst.msk [vmem:[%s10089_s29 + $0x30] sm:$0xff] %vm2272_vm6, %v4533_v22 }
 0xd35   : > { %5075 = vst.msk [vmem:[%s10089_s29 + $0x30] sm:$0xff] %vm2790_vm7, %v5034_v3 }
 0xd37   : > { %v4525_v28 = vpop.permute.xlu1 %4524  ;;  %v4541_v26 = vpop.permute.xlu0 %4540 }
 0xd38   : > { %4570 = vst.msk [vmem:[%s10089_s29 + $0x10] sm:$0xff] %vm2272_vm6, %v4525_v28  ;;  %4578 = vst.msk [vmem:[%s10089_s29 + $0x50] sm:$0xff] %vm2272_vm6, %v4541_v26 }
 0xd39   : > { %5071 = vst.msk [vmem:[%s10089_s29 + $0x10] sm:$0xff] %vm2790_vm7, %v5026_v14  ;;  %5079 = vst.msk [vmem:[%s10089_s29 + $0x50] sm:$0xff] %vm2790_vm7, %v5042_v58 }
 0xd3b   : > { %v4521_v39 = vpop.permute.xlu1 %4520  ;;  %v4537_v44 = vpop.permute.xlu0 %4536 }
 0xd3c   : > { %4568 = vst.msk [vmem:[%s10089_s29] sm:$0xff] %vm2272_vm6, %v4521_v39  ;;  %4576 = vst.msk [vmem:[%s10089_s29 + $0x40] sm:$0xff] %vm2272_vm6, %v4537_v44 }
 0xd3d   : > { %5069 = vst.msk [vmem:[%s10089_s29] sm:$0xff] %vm2790_vm7, %v5022_v19  ;;  %5077 = vst.msk [vmem:[%s10089_s29 + $0x40] sm:$0xff] %vm2790_vm7, %v5038_v6 }
 0xd3f   : > { %v4527_v31 = vpop.permute.xlu1 %4526  ;;  %v4549_v50 = vpop.permute.xlu0 %4548 }
 0xd40   : > { %4571 = vst.msk [vmem:[%s10089_s29 + $0x18] sm:$0xff] %vm2272_vm6, %v4527_v31  ;;  %4582 = vst.msk [vmem:[%s10089_s29 + $0x70] sm:$0xff] %vm2272_vm6, %v4549_v50 }
 0xd41   : > { %5072 = vst.msk [vmem:[%s10089_s29 + $0x18] sm:$0xff] %vm2790_vm7, %v5028_v59  ;;  %5083 = vst.msk [vmem:[%s10089_s29 + $0x70] sm:$0xff] %vm2790_vm7, %v5050_v47 }
 0xd43   : > { %v4523_v29 = vpop.permute.xlu1 %4522  ;;  %v4545_v1 = vpop.permute.xlu0 %4544 }
 0xd44   : > { %4569 = vst.msk [vmem:[%s10089_s29 + $0x8] sm:$0xff] %vm2272_vm6, %v4523_v29  ;;  %4580 = vst.msk [vmem:[%s10089_s29 + $0x60] sm:$0xff] %vm2272_vm6, %v4545_v1 }
 0xd45   : > { %5070 = vst.msk [vmem:[%s10089_s29 + $0x8] sm:$0xff] %vm2790_vm7, %v5024_v18  ;;  %5081 = vst.msk [vmem:[%s10089_s29 + $0x60] sm:$0xff] %vm2790_vm7, %v5046_v48 }
 0xd47   : > { %v4529_v10 = vpop.permute.xlu1 %4528  ;;  %v5527_v0 = vpop.permute.xlu0 %5526 }
 0xd48   : > { %4572 = vst.msk [vmem:[%s10089_s29 + $0x20] sm:$0xff] %vm2272_vm6, %v4529_v10 }
 0xd49   : > { %5073 = vst.msk [vmem:[%s10089_s29 + $0x20] sm:$0xff] %vm2790_vm7, %v5030_v38 }
 0xd4a   : > { %5572 = vst.msk [vmem:[%s10089_s29 + $0x10] sm:$0xff] %vm3308_vm8, %v5527_v0 }
 0xd4b   : > { %v4535_v42 = vpop.permute.xlu1 %4534  ;;  %v5523_v52 = vpop.permute.xlu0 %5522 }
 0xd4c   : > { %4575 = vst.msk [vmem:[%s10089_s29 + $0x38] sm:$0xff] %vm2272_vm6, %v4535_v42 }
 0xd4d   : > { %5076 = vst.msk [vmem:[%s10089_s29 + $0x38] sm:$0xff] %vm2790_vm7, %v5036_v35 }
 0xd4e   : > { %5570 = vst.msk [vmem:[%s10089_s29] sm:$0xff] %vm3308_vm8, %v5523_v52 }
 0xd4f   : > { %v4531_v40 = vpop.permute.xlu1 %4530  ;;  %v5535_v21 = vpop.permute.xlu0 %5534 }
 0xd50   : > { %4573 = vst.msk [vmem:[%s10089_s29 + $0x28] sm:$0xff] %vm2272_vm6, %v4531_v40 }
 0xd51   : > { %5074 = vst.msk [vmem:[%s10089_s29 + $0x28] sm:$0xff] %vm2790_vm7, %v5032_v32 }
 0xd52   : > { %5576 = vst.msk [vmem:[%s10089_s29 + $0x30] sm:$0xff] %vm3308_vm8, %v5535_v21 }
 0xd53   : > { %v4543_v46 = vpop.permute.xlu1 %4542  ;;  %v5531_v7 = vpop.permute.xlu0 %5530 }
 0xd54   : > { %4579 = vst.msk [vmem:[%s10089_s29 + $0x58] sm:$0xff] %vm2272_vm6, %v4543_v46 }
 0xd55   : > { %5080 = vst.msk [vmem:[%s10089_s29 + $0x58] sm:$0xff] %vm2790_vm7, %v5044_v57 }
 0xd56   : > { %5574 = vst.msk [vmem:[%s10089_s29 + $0x20] sm:$0xff] %vm3308_vm8, %v5531_v7 }
 0xd57   : > { %v4539_v61 = vpop.permute.xlu1 %4538  ;;  %v5543_v41 = vpop.permute.xlu0 %5542 }
 0xd58   : > { %4577 = vst.msk [vmem:[%s10089_s29 + $0x48] sm:$0xff] %vm2272_vm6, %v4539_v61 }
 0xd59   : > { %5078 = vst.msk [vmem:[%s10089_s29 + $0x48] sm:$0xff] %vm2790_vm7, %v5040_v23 }
 0xd5a   : > { %5580 = vst.msk [vmem:[%s10089_s29 + $0x50] sm:$0xff] %vm3308_vm8, %v5543_v41 }
 0xd5b   : > { %v4551_v12 = vpop.permute.xlu1 %4550  ;;  %v5539_v2 = vpop.permute.xlu0 %5538 }
 0xd5c   : > { %4583 = vst.msk [vmem:[%s10089_s29 + $0x78] sm:$0xff] %vm2272_vm6, %v4551_v12 }
 0xd5d   : > { %5084 = vst.msk [vmem:[%s10089_s29 + $0x78] sm:$0xff] %vm2790_vm7, %v5052_v60 }
 0xd5e   : > { %5578 = vst.msk [vmem:[%s10089_s29 + $0x40] sm:$0xff] %vm3308_vm8, %v5539_v2 }
 0xd5f   : > { %v4547_v49 = vpop.permute.xlu1 %4546 }
 0xd60   : > { %4581 = vst.msk [vmem:[%s10089_s29 + $0x68] sm:$0xff] %vm2272_vm6, %v4547_v49 }
 0xd61   : > { %5082 = vst.msk [vmem:[%s10089_s29 + $0x68] sm:$0xff] %vm2790_vm7, %v5048_v8  ;;  %v5547_v17 = vpop.permute.xlu0 %5546 }
 0xd62   : > { %5582 = vst.msk [vmem:[%s10089_s29 + $0x60] sm:$0xff] %vm3308_vm8, %v5547_v17 }
 0xd63   : > { %v5529_v11 = vpop.permute.xlu1 %5528 }
 0xd64   : > { %5573 = vst.msk [vmem:[%s10089_s29 + $0x18] sm:$0xff] %vm3308_vm8, %v5529_v11 }
 0xd65   : > { %v5551_v9 = vpop.permute.xlu0 %5550 }
 0xd66   : > { %5584 = vst.msk [vmem:[%s10089_s29 + $0x70] sm:$0xff] %vm3308_vm8, %v5551_v9 }
 0xd67   : > { %v5525_v51 = vpop.permute.xlu1 %5524 }
 0xd68   : > { %5571 = vst.msk [vmem:[%s10089_s29 + $0x8] sm:$0xff] %vm3308_vm8, %v5525_v51 }
 0xd6b   : > { %v5537_v5 = vpop.permute.xlu1 %5536 }
 0xd6c   : > { %5577 = vst.msk [vmem:[%s10089_s29 + $0x38] sm:$0xff] %vm3308_vm8, %v5537_v5 }
 0xd6f   : > { %v5533_v63 = vpop.permute.xlu1 %5532 }
 0xd70   : > { %5575 = vst.msk [vmem:[%s10089_s29 + $0x28] sm:$0xff] %vm3308_vm8, %v5533_v63 }
 0xd73   : > { %v5545_v36 = vpop.permute.xlu1 %5544 }
 0xd74   : > { %5581 = vst.msk [vmem:[%s10089_s29 + $0x58] sm:$0xff] %vm3308_vm8, %v5545_v36 }
 0xd77   : > { %v5541_v20 = vpop.permute.xlu1 %5540 }
 0xd78   : > { %5579 = vst.msk [vmem:[%s10089_s29 + $0x48] sm:$0xff] %vm3308_vm8, %v5541_v20 }
 0xd7b   : > { %v5549_v25 = vpop.permute.xlu1 %5548 }
 0xd7c   : > { %5583 = vst.msk [vmem:[%s10089_s29 + $0x68] sm:$0xff] %vm3308_vm8, %v5549_v25 }
 0xd7f   : > { %v5553_v15 = vpop.permute.xlu1 %5552 }
 0xd80   : > { %5585 = vst.msk [vmem:[%s10089_s29 + $0x78] sm:$0xff] %vm3308_vm8, %v5553_v15 }
 0xd81   : > { %6971 = shalt.err (!%p6968_p3)
}
 0xd82   : > { %s6972_s16 = scalar_lea.hbm %s10311_s23, 2048  ;;  %s6976_s17 = scalar_lea.hbm %s10368_s9, 4096 }
 0xd83   : > { %p6973_p4 = scmp.ne.s32.totalorder %s10311_s23, %s6972_s16  ;;  %p6977_p9 = scmp.lt.s32.totalorder %s10311_s23, %s10368_s9 }
 0xd84   : > { %p6978_p10 = scmp.lt.s32.totalorder %s6976_s17, %s6972_s16 }
 0xd85   : > { %p6974_p7 = pnand %p6973_p4, %p7120_p5 }
 0xd86   : > { %p6979_p11 = por %p6978_p10, %p6977_p9 }
 0xd87   : > { %p6975_p8 = pneg %p6974_p7 }
 0xd89   : > { %p6980_p12 = pnand %p6979_p11, %p6975_p8 }
 0xd8b   : > { %6983 = shalt.err (!%p6980_p12)
}
 0xd8c   : > { %s7030_s13 = smov 128   ;;  %s7031_s21 = smov 8  }
 0xd8d   : > { %6229 = dma.vmem_to_hbm [thread:$0]  (%p7120_p5), %s10313_s24, 2048, %s10311_s23, %s10319_s27, %s7030_s13, %s7030_s13, %s7031_s21  }
 0xd8e PF: > { %p6235_p13 = scmp.ge.s32.totalorder %s7018_s12, 2  ;;  %s5615_s22 = sand.u32 1, %s7006_s30  }
 0xd8f   : > { %s5616_s28 = scalar_lea.sflag [#allocation4], %s5615_s22 }
 0xd90   : > { %p6232_p0 = pnand %p6235_p13, %p7124_p6 }
 0xd92   : > { %p6233_p1 = pneg %p6232_p0 }
 0xd94   : > { %7001 = dma.done.wait (%p6233_p1), %s5616_s28, 2048  }
 0xd95   : > { %7003 = vsyncadd (%p6233_p1), %s5616_s28, 4294965248  ;;  %p19_p2 = scmp.ge.s32.totalorder %s7107_s15, 4   ;;  %s10810_s30 = smov %s7010_s10 }
 0xd96   : > { %s10811_s10 = smov %s7014_s11  ;;  %s10812_s11 = smov %s7118_s18 }
 0xd97   : > { %s10813_s12 = smov %s7107_s15  ;;  %21 = sbr.rel (!%p19_p2) target bundleno = 3 (0x3), region = 94 }
 0xd9c   :  { %5621 = vsyncpa [#allocation4], 1 }
 0xd9d   :  { %5623 = vsyncpa [#allocation4 + $0x1], 1 }

</bundles_post_ra>
